<compile_context>
chip_gen: v6e
topology: v6e:2x2x1
jax: 0.10.0
libtpu: 0.0.40
codegen_flags: <defaults>
</compile_context>

<pallas_src>
import math
import functools

import numpy as np
import jax
import jax.numpy as jnp
from jax.experimental import pallas as pl
from jax.experimental.pallas import tpu as pltpu


_VMEM = pl.BlockSpec(memory_space=pltpu.MemorySpace.VMEM)
_LANES = 128        # conv output channels / feature dims padded to this (lane-dense stores)
_BN_EPS = 1e-5


# ----------------------------------------------------------------------------
# Pallas kernels
# ----------------------------------------------------------------------------
def _mask_kernel(mh_ref, heat_ref, mwt_ref, img_ref, o_ref):
    # UpsamplingBilinear2d(scale=4, align_corners=True) as two matmuls, then
    # sigmoid, then per-channel multiply with the image (heat.repeat(3,1,1)).
    t = jnp.dot(mh_ref[...], heat_ref[...], preferred_element_type=jnp.float32)
    up = jnp.dot(t, mwt_ref[...], preferred_element_type=jnp.float32)
    m = jax.nn.sigmoid(up)
    for c in range(3):
        o_ref[c, :, :] = img_ref[c, :, :] * m


def fused_upsample_mask(m_h, heat, m_w_t, img_chw):
    return pl.pallas_call(
        _mask_kernel,
        out_shape=jax.ShapeDtypeStruct(img_chw.shape, jnp.float32),
        in_specs=[_VMEM] * 4,
        out_specs=_VMEM,
    )(m_h, heat, m_w_t, img_chw)


def _conv_bn_relu_pool_kernel(p_ref, w_ref, g_ref, b_ref, o_ref, *, eps, n_rows):
    # p_ref: (4, P4, K) im2col patches grouped by 2x2 max-pool window member.
    # Fused conv(matmul) -> BatchNorm(train-mode batch stats, biased var) ->
    # ReLU -> MaxPool2x2.  Output is lane-dense (P4, 128).
    w = w_ref[...]
    y = [jnp.dot(p_ref[q], w, preferred_element_type=jnp.float32) for q in range(4)]
    sum_y = jnp.sum(y[0] + y[1] + y[2] + y[3], axis=0, keepdims=True)
    sum_y2 = jnp.sum(y[0] * y[0] + y[1] * y[1] + y[2] * y[2] + y[3] * y[3],
                     axis=0, keepdims=True)
    inv_n = 1.0 / n_rows
    mean = sum_y * inv_n
    var = jnp.maximum(sum_y2 * inv_n - mean * mean, 0.0)      # single-pass variance
    scale = g_ref[...] * jax.lax.rsqrt(var + eps)
    shift = b_ref[...] - mean * scale
    z = [jnp.maximum(yq * scale + shift, 0.0) for yq in y]
    o_ref[...] = jnp.maximum(jnp.maximum(z[0], z[1]), jnp.maximum(z[2], z[3]))


def conv_bn_relu_pool(patch_groups, w_mat, gamma_p, beta_p, eps=_BN_EPS):
    _, p4, _ = patch_groups.shape
    kern = functools.partial(_conv_bn_relu_pool_kernel, eps=eps, n_rows=float(4 * p4))
    return pl.pallas_call(
        kern,
        out_shape=jax.ShapeDtypeStruct((p4, _LANES), jnp.float32),
        in_specs=[_VMEM] * 4,
        out_specs=_VMEM,
    )(patch_groups, w_mat, gamma_p, beta_p)


def _conv3_head_kernel(p_ref, w3_ref, g3_ref, b3_ref,
                       wi0_ref, b0_ref, wi1_ref, b1_ref, wfc_ref,
                       logits_ref, hcat_ref, *, eps, hidden):
    H = hidden
    # conv3 at its 4 pre-pool positions: one (4, K) x (K, 128) matmul.
    y = jnp.dot(p_ref[...], w3_ref[...], preferred_element_type=jnp.float32)   # (4, 128)
    mean = jnp.mean(y, axis=0, keepdims=True)
    var = jnp.maximum(jnp.mean(y * y, axis=0, keepdims=True) - mean * mean, 0.0)
    scale = g3_ref[...] * jax.lax.rsqrt(var + eps)
    shift = b3_ref[...] - mean * scale
    z = jnp.maximum(y * scale + shift, 0.0)
    feat = jnp.max(z, axis=0, keepdims=True)       # MaxPool2x2 over the 2x2 spatial -> (1,128)
    # F.normalize(dim=0): pad lanes 80..127 are exactly zero so they don't perturb the norm
    nrm = jnp.sqrt(jnp.sum(feat * feat, axis=1, keepdims=True))
    xn = feat / jnp.maximum(nrm, 1e-12)
    # LSTM layer 0 at t=0 (h0=c0=0 -> W_hh matmul and forget-gate term vanish)
    g0 = jnp.dot(xn, wi0_ref[...], preferred_element_type=jnp.float32) + b0_ref[...]
    c0 = jax.nn.sigmoid(g0[:, 0:H]) * jnp.tanh(g0[:, 2 * H:3 * H])
    h1 = jax.nn.sigmoid(g0[:, 3 * H:4 * H]) * jnp.tanh(c0)
    # TODO(synk): nn.LSTM inter-layer dropout (p=0.5, train-mode RNG) omitted — eval semantics.
    g1 = jnp.dot(h1, wi1_ref[...], preferred_element_type=jnp.float32) + b1_ref[...]
    c1 = jax.nn.sigmoid(g1[:, 0:H]) * jnp.tanh(g1[:, 2 * H:3 * H])
    h2 = jax.nn.sigmoid(g1[:, 3 * H:4 * H]) * jnp.tanh(c1)
    hcat_ref[:, 0:H] = h2
    hcat_ref[:, H:2 * H] = h2
    # fc6(cat(h2, h2)) folded into a single (H x 128-padded) matmul
    logits_ref[...] = jnp.dot(h2, wfc_ref[...], preferred_element_type=jnp.float32)


def conv3_lstm_fc_head(patches, w3, g3, b3, wi0, b0, wi1, b1, wfc,
                       hidden=128, eps=_BN_EPS):
    kern = functools.partial(_conv3_head_kernel, eps=eps, hidden=hidden)
    return pl.pallas_call(
        kern,
        out_shape=(jax.ShapeDtypeStruct((1, _LANES), jnp.float32),
                   jax.ShapeDtypeStruct((1, 2 * hidden), jnp.float32)),
        in_specs=[_VMEM] * 9,
        out_specs=(_VMEM, _VMEM),
    )(patches, w3, g3, b3, wi0, b0, wi1, b1, wfc)


# ----------------------------------------------------------------------------
# Plain-JAX / numpy glue (runs inside the single jit)
# ----------------------------------------------------------------------------
def upsample_matrix_align_corners(n_in, scale):
    """Interpolation matrix for UpsamplingBilinear2d (align_corners=True).
    Built with numpy -> becomes a compile-time constant under jit."""
    n_out = n_in * scale
    if n_in == 1:
        return np.ones((n_out, 1), np.float32)
    src = np.arange(n_out, dtype=np.float64) * ((n_in - 1) / (n_out - 1))
    lo = np.clip(np.floor(src).astype(np.int64), 0, n_in - 2)
    frac = (src - lo).astype(np.float32)
    m = np.zeros((n_out, n_in), np.float32)
    rows = np.arange(n_out)
    m[rows, lo] += 1.0 - frac
    m[rows, lo + 1] += frac
    return m


def im2col_pool_groups(x_hwc, k, s, pad, k_pad):
    """(H, W, C) -> (4, P4, k_pad) im2col patches grouped so that group q=2*dh+dw
    holds the patch feeding pooled output (i, j) from conv position (2i+dh, 2j+dw).
    Built with static strided slices + concat only (no gathers); inner patch order
    is (kh, kw, c), matching the weight layout produced in __init__."""
    if pad:
        x_hwc = jnp.pad(x_hwc, ((pad, pad), (pad, pad), (0, 0)))
    H, W, C = x_hwc.shape
    oh = (H - k) // s + 1
    ow = (W - k) // s + 1
    cols = [x_hwc[dh:dh + s * oh:s, dw:dw + s * ow:s, :]
            for dh in range(k) for dw in range(k)]
    p = jnp.concatenate(cols, axis=-1)                                # (OH, OW, k*k*C)
    ph, pw = oh // 2, ow // 2
    # TODO(synk): if OH/OW were odd, BN batch stats would exclude the rows dropped by
    # floor-pooling; with the reference geometry (even conv outputs) this is exact.
    p = p[:2 * ph, :2 * pw]
    groups = [p[dh::2, dw::2].reshape(ph * pw, k * k * C)
              for dh in range(2) for dw in range(2)]
    g = jnp.stack(groups, axis=0)                                     # (4, P4, k*k*C)
    if g.shape[-1] < k_pad:
        g = jnp.pad(g, ((0, 0), (0, 0), (0, k_pad - g.shape[-1])))
    return g, ph, pw


# ----------------------------------------------------------------------------
# Model
# ----------------------------------------------------------------------------
class BlinkEyelidNetPallas:
    def __init__(self, key):
        self.hi_channel = 128
        H = self.hi_channel
        ks = jax.random.split(key, 12)

        def conv_w(k, oc, ic, ksz):
            n = ksz * ksz * oc
            return jax.random.normal(k, (oc, ic, ksz, ksz), jnp.float32) * math.sqrt(2.0 / n)

        w1 = conv_w(ks[0], 24, 3, 5)
        w2 = conv_w(ks[1], 48, 24, 3)
        w3 = conv_w(ks[2], 80, 48, 3)

        def conv_layout(w_oihw, icp, k_pad):
            """OIHW -> lane-dense (k_pad, 128) matmul weight + padded BN affine.
            Pad channels get zero weights / gamma / beta so they stay exactly 0."""
            oc, ic, k, _ = w_oihw.shape
            w = jnp.transpose(w_oihw, (2, 3, 1, 0))                   # (kh, kw, ic, oc)
            w = jnp.pad(w, ((0, 0), (0, 0), (0, icp - ic), (0, _LANES - oc)))
            w = w.reshape(k * k * icp, _LANES)
            if w.shape[0] < k_pad:
                w = jnp.pad(w, ((0, k_pad - w.shape[0]), (0, 0)))
            gamma = jnp.zeros((1, _LANES), jnp.float32).at[:, :oc].set(1.0)
            beta = jnp.zeros((1, _LANES), jnp.float32)
            return w, gamma, beta

        wm1, gm1, bt1 = conv_layout(w1, icp=3, k_pad=128)
        wm2, gm2, bt2 = conv_layout(w2, icp=_LANES, k_pad=9 * _LANES)
        wm3, gm3, bt3 = conv_layout(w3, icp=_LANES, k_pad=9 * _LANES)
        # (w_mat, gamma, beta, kernel, stride, padding, K_pad)
        self.conv_layers = (
            (wm1, gm1, bt1, 5, 3, 0, 128),
            (wm2, gm2, bt2, 3, 2, 0, 9 * _LANES),
            (wm3, gm3, bt3, 3, 2, 1, 9 * _LANES),
        )

        stdv = 1.0 / math.sqrt(H)

        def u(k, shape, bound=stdv):
            return jax.random.uniform(k, shape, jnp.float32, -bound, bound)

        # nn.LSTM(input_size=160, hidden_size=128, num_layers=2) parameters
        w_ih0 = u(ks[3], (4 * H, 2 * 80))
        _w_hh0 = u(ks[4], (4 * H, H))     # multiplies h0 = 0 -> not needed in forward
        b_ih0 = u(ks[5], (4 * H,))
        b_hh0 = u(ks[6], (4 * H,))
        w_ih1 = u(ks[7], (4 * H, H))
        _w_hh1 = u(ks[8], (4 * H, H))     # multiplies h0 = 0 -> not needed in forward
        b_ih1 = u(ks[9], (4 * H,))
        b_hh1 = u(ks[10], (4 * H,))
        w_fc6 = u(ks[11], (2, 2 * H), bound=1.0 / math.sqrt(2 * H))

        # Pre-laid-out LSTM/FC parameters (all per-call transposes hoisted here).
        # LSTM input is cat(feat80, zeros80); feat arrives lane-padded to 128 with
        # zeros, so only the first 80 input rows of W_ih0 matter.
        self.wi0 = jnp.zeros((_LANES, 4 * H), jnp.float32).at[:80, :].set(w_ih0[:, :80].T)
        self.b0 = (b_ih0 + b_hh0).reshape(1, 4 * H)
        self.wi1 = w_ih1.T                                            # (128, 512)
        self.b1 = (b_ih1 + b_hh1).reshape(1, 4 * H)
        # fc6 on cat(h2, h2): fold the two halves, pad output dim to 128 lanes.
        wfc = (w_fc6[:, :H] + w_fc6[:, H:]).T                          # (128, 2)
        self.wfc = jnp.zeros((H, _LANES), jnp.float32).at[:, :2].set(wfc)

        self._forward_jit = jax.jit(self._forward, static_argnums=(0, 1, 2, 3))

    # ---------------- jitted forward (height/width/bbox static) ----------------
    def _forward(self, height, width, bbox0, bbox1, image, heatmap):
        img_h, img_w = image.shape[2], image.shape[3]
        hh, hw = heatmap.shape[2], heatmap.shape[3]
        assert 4 * hh == img_h and 4 * hw == img_w, "heatmap spatial dims must be image/4"

        # Fused upsample + sigmoid + mask (single pallas_call)
        m_h = jnp.asarray(upsample_matrix_align_corners(hh, 4))
        m_w_t = jnp.asarray(upsample_matrix_align_corners(hw, 4).T)
        img = fused_upsample_mask(m_h, heatmap[0, 0].astype(jnp.float32),
                                  m_w_t, image[0].astype(jnp.float32))   # (3, H, W)

        # 50-px padded canvas, then crop (reference indexing quirk preserved)
        img_temp = jnp.pad(img, ((0, 0), (50, 50), (50, 50)))
        img_proc = img_temp[:, bbox1:bbox1 + height, bbox0:bbox0 + width]

        # conv1/conv2: channels-last, one fused conv+BN+ReLU+pool kernel per layer
        act = jnp.transpose(img_proc, (1, 2, 0))                         # (height, width, 3)
        for w_mat, gamma, beta, k, s, pad, k_pad in self.conv_layers[:2]:
            patches, ph, pw = im2col_pool_groups(act, k, s, pad, k_pad)
            act = conv_bn_relu_pool(patches, w_mat, gamma, beta).reshape(ph, pw, _LANES)

        # conv3 + BN + ReLU + pool + normalize + LSTM + fc6 fused in one kernel
        w3, g3, b3, k3, s3, pad3, kp3 = self.conv_layers[2]
        patches3, ph3, pw3 = im2col_pool_groups(act, k3, s3, pad3, kp3)
        assert ph3 == 1 and pw3 == 1, "reference torch.squeeze assumes 1x1 final spatial"
        patches3 = patches3.reshape(4, kp3)
        logits_p, h_cat = conv3_lstm_fc_head(patches3, w3, g3, b3,
                                             self.wi0, self.b0, self.wi1, self.b1,
                                             self.wfc, hidden=self.hi_channel)
        return logits_p[:, :2], h_cat

    def __call__(self, image, height, width, pos, heatmap):
        # np.int64 truncation semantics of the reference bbox computation
        bbox0 = int(int(pos[0]) - height * 0.5)
        bbox1 = int(int(pos[1]) - width * 0.5)
        return self._forward_jit(int(height), int(width), bbox0, bbox1, image, heatmap)


# ----------------------------------------------------------------------------
# Demo
# ----------------------------------------------------------------------------
if __name__ == "__main__":
    key = jax.random.PRNGKey(0)
    k_img, k_heat, k_params = jax.random.split(key, 3)

    img_h = img_w = 96
    image = jax.random.normal(k_img, (1, 3, img_h, img_w), jnp.float32)
    heatmap = jax.random.normal(k_heat, (1, 1, img_h // 4, img_w // 4), jnp.float32)
    height = width = 80          # conv stack reduces 80 -> 1x1 spatial
    pos = (90, 90)

    net = BlinkEyelidNetPallas(k_params)
    logits, h = net(image, height, width, pos, heatmap)
    jax.block_until_ready((logits, h))

    assert logits.shape == (1, 2), logits.shape
    assert h.shape == (1, 256), h.shape
    assert bool(jnp.all(jnp.isfinite(logits))) and bool(jnp.all(jnp.isfinite(h)))
    print("KERNEL_OK")
</pallas_src>

<mosaic_0001>
module attributes {stable_mosaic.version = 11 : i64} {
  func.func @_mask_kernel(%arg0: memref<96x24xf32, #tpu.memory_space<vmem>>, %arg1: memref<24x24xf32, #tpu.memory_space<vmem>>, %arg2: memref<24x96xf32, #tpu.memory_space<vmem>>, %arg3: memref<3x96x96xf32, #tpu.memory_space<vmem>>, %arg4: memref<3x96x96xf32, #tpu.memory_space<vmem>>) attributes {dimension_semantics = [], scalar_prefetch = 0 : i64, scratch_operands = 0 : i64, tpu.core_type = #tpu.core_type<tc>} {
    %c0 = arith.constant 0 : index
    %c0_0 = arith.constant 0 : index
    %0 = vector.load %arg0[%c0, %c0_0] : memref<96x24xf32, #tpu.memory_space<vmem>>, vector<96x24xf32>
    %c0_1 = arith.constant 0 : index
    %c0_2 = arith.constant 0 : index
    %1 = vector.load %arg1[%c0_1, %c0_2] : memref<24x24xf32, #tpu.memory_space<vmem>>, vector<24x24xf32>
    %cst = arith.constant dense<0.000000e+00> : vector<96x24xf32>
    %2 = tpu.matmul %0, %1, %cst {dimension_numbers = #tpu.dot_dimension_numbers<[1], [0], [0], [1], [0, 0, 1, 1], [], []>} : vector<96x24xf32>, vector<24x24xf32>, vector<96x24xf32> -> vector<96x24xf32>
    %c0_3 = arith.constant 0 : index
    %c0_4 = arith.constant 0 : index
    %3 = vector.load %arg2[%c0_3, %c0_4] : memref<24x96xf32, #tpu.memory_space<vmem>>, vector<24x96xf32>
    %cst_5 = arith.constant dense<0.000000e+00> : vector<96x96xf32>
    %4 = tpu.matmul %2, %3, %cst_5 {dimension_numbers = #tpu.dot_dimension_numbers<[1], [0], [0], [1], [0, 0, 1, 1], [], []>} : vector<96x24xf32>, vector<24x96xf32>, vector<96x96xf32> -> vector<96x96xf32>
    %5 = arith.negf %4 : vector<96x96xf32>
    %6 = math.exp %5 : vector<96x96xf32>
    %cst_6 = arith.constant 1.000000e+00 : f32
    %7 = vector.broadcast %cst_6 : f32 to vector<96x96xf32>
    %8 = arith.addf %7, %6 : vector<96x96xf32>
    %9 = arith.divf %7, %8 : vector<96x96xf32>
    %c0_7 = arith.constant 0 : index
    %c0_8 = arith.constant 0 : index
    %c0_9 = arith.constant 0 : index
    %10 = vector.load %arg3[%c0_7, %c0_8, %c0_9] : memref<3x96x96xf32, #tpu.memory_space<vmem>>, vector<1x96x96xf32>
    %11 = vector.shape_cast %10 : vector<1x96x96xf32> to vector<96x96xf32>
    %12 = arith.mulf %11, %9 : vector<96x96xf32>
    %c0_10 = arith.constant 0 : index
    %c0_11 = arith.constant 0 : index
    %c0_12 = arith.constant 0 : index
    %13 = vector.load %arg4[%c0_10, %c0_11, %c0_12] : memref<3x96x96xf32, #tpu.memory_space<vmem>>, vector<1x96x96xf32>
    %14 = vector.shape_cast %13 : vector<1x96x96xf32> to vector<96x96xf32>
    %15 = vector.shape_cast %12 : vector<96x96xf32> to vector<1x96x96xf32>
    tpu.vector_store %arg4[%c0_10, %c0_11, %c0_12], %15 {strides = array<i32>} : memref<3x96x96xf32, #tpu.memory_space<vmem>>, vector<1x96x96xf32>,
    %c1 = arith.constant 1 : index
    %c0_13 = arith.constant 0 : index
    %c0_14 = arith.constant 0 : index
    %16 = vector.load %arg3[%c1, %c0_13, %c0_14] : memref<3x96x96xf32, #tpu.memory_space<vmem>>, vector<1x96x96xf32>
    %17 = vector.shape_cast %16 : vector<1x96x96xf32> to vector<96x96xf32>
    %18 = arith.mulf %17, %9 : vector<96x96xf32>
    %c1_15 = arith.constant 1 : index
    %c0_16 = arith.constant 0 : index
    %c0_17 = arith.constant 0 : index
    %19 = vector.load %arg4[%c1_15, %c0_16, %c0_17] : memref<3x96x96xf32, #tpu.memory_space<vmem>>, vector<1x96x96xf32>
    %20 = vector.shape_cast %19 : vector<1x96x96xf32> to vector<96x96xf32>
    %21 = vector.shape_cast %18 : vector<96x96xf32> to vector<1x96x96xf32>
    tpu.vector_store %arg4[%c1_15, %c0_16, %c0_17], %21 {strides = array<i32>} : memref<3x96x96xf32, #tpu.memory_space<vmem>>, vector<1x96x96xf32>,
    %c2 = arith.constant 2 : index
    %c0_18 = arith.constant 0 : index
    %c0_19 = arith.constant 0 : index
    %22 = vector.load %arg3[%c2, %c0_18, %c0_19] : memref<3x96x96xf32, #tpu.memory_space<vmem>>, vector<1x96x96xf32>
    %23 = vector.shape_cast %22 : vector<1x96x96xf32> to vector<96x96xf32>
    %24 = arith.mulf %23, %9 : vector<96x96xf32>
    %c2_20 = arith.constant 2 : index
    %c0_21 = arith.constant 0 : index
    %c0_22 = arith.constant 0 : index
    %25 = vector.load %arg4[%c2_20, %c0_21, %c0_22] : memref<3x96x96xf32, #tpu.memory_space<vmem>>, vector<1x96x96xf32>
    %26 = vector.shape_cast %25 : vector<1x96x96xf32> to vector<96x96xf32>
    %27 = vector.shape_cast %24 : vector<96x96xf32> to vector<1x96x96xf32>
    tpu.vector_store %arg4[%c2_20, %c0_21, %c0_22], %27 {strides = array<i32>} : memref<3x96x96xf32, #tpu.memory_space<vmem>>, vector<1x96x96xf32>,
    return
  }
}

module attributes {stable_mosaic.version = 11 : i64} {
  func.func @_conv_bn_relu_pool_kernel(%arg0: memref<4x169x128xf32, #tpu.memory_space<vmem>>, %arg1: memref<128x128xf32, #tpu.memory_space<vmem>>, %arg2: memref<1x128xf32, #tpu.memory_space<vmem>>, %arg3: memref<1x128xf32, #tpu.memory_space<vmem>>, %arg4: memref<169x128xf32, #tpu.memory_space<vmem>>) attributes {dimension_semantics = [], scalar_prefetch = 0 : i64, scratch_operands = 0 : i64, tpu.core_type = #tpu.core_type<tc>} {
    %c0 = arith.constant 0 : index
    %c0_0 = arith.constant 0 : index
    %0 = vector.load %arg1[%c0, %c0_0] : memref<128x128xf32, #tpu.memory_space<vmem>>, vector<128x128xf32>
    %c0_1 = arith.constant 0 : index
    %c0_2 = arith.constant 0 : index
    %c0_3 = arith.constant 0 : index
    %1 = vector.load %arg0[%c0_1, %c0_2, %c0_3] : memref<4x169x128xf32, #tpu.memory_space<vmem>>, vector<1x169x128xf32>
    %2 = vector.shape_cast %1 : vector<1x169x128xf32> to vector<169x128xf32>
    %cst = arith.constant dense<0.000000e+00> : vector<169x128xf32>
    %3 = tpu.matmul %2, %0, %cst {dimension_numbers = #tpu.dot_dimension_numbers<[1], [0], [0], [1], [0, 0, 1, 1], [], []>} : vector<169x128xf32>, vector<128x128xf32>, vector<169x128xf32> -> vector<169x128xf32>
    %c1 = arith.constant 1 : index
    %c0_4 = arith.constant 0 : index
    %c0_5 = arith.constant 0 : index
    %4 = vector.load %arg0[%c1, %c0_4, %c0_5] : memref<4x169x128xf32, #tpu.memory_space<vmem>>, vector<1x169x128xf32>
    %5 = vector.shape_cast %4 : vector<1x169x128xf32> to vector<169x128xf32>
    %cst_6 = arith.constant dense<0.000000e+00> : vector<169x128xf32>
    %6 = tpu.matmul %5, %0, %cst_6 {dimension_numbers = #tpu.dot_dimension_numbers<[1], [0], [0], [1], [0, 0, 1, 1], [], []>} : vector<169x128xf32>, vector<128x128xf32>, vector<169x128xf32> -> vector<169x128xf32>
    %c2 = arith.constant 2 : index
    %c0_7 = arith.constant 0 : index
    %c0_8 = arith.constant 0 : index
    %7 = vector.load %arg0[%c2, %c0_7, %c0_8] : memref<4x169x128xf32, #tpu.memory_space<vmem>>, vector<1x169x128xf32>
    %8 = vector.shape_cast %7 : vector<1x169x128xf32> to vector<169x128xf32>
    %cst_9 = arith.constant dense<0.000000e+00> : vector<169x128xf32>
    %9 = tpu.matmul %8, %0, %cst_9 {dimension_numbers = #tpu.dot_dimension_numbers<[1], [0], [0], [1], [0, 0, 1, 1], [], []>} : vector<169x128xf32>, vector<128x128xf32>, vector<169x128xf32> -> vector<169x128xf32>
    %c3 = arith.constant 3 : index
    %c0_10 = arith.constant 0 : index
    %c0_11 = arith.constant 0 : index
    %10 = vector.load %arg0[%c3, %c0_10, %c0_11] : memref<4x169x128xf32, #tpu.memory_space<vmem>>, vector<1x169x128xf32>
    %11 = vector.shape_cast %10 : vector<1x169x128xf32> to vector<169x128xf32>
    %cst_12 = arith.constant dense<0.000000e+00> : vector<169x128xf32>
    %12 = tpu.matmul %11, %0, %cst_12 {dimension_numbers = #tpu.dot_dimension_numbers<[1], [0], [0], [1], [0, 0, 1, 1], [], []>} : vector<169x128xf32>, vector<128x128xf32>, vector<169x128xf32> -> vector<169x128xf32>
    %13 = arith.addf %3, %6 : vector<169x128xf32>
    %14 = arith.addf %13, %9 : vector<169x128xf32>
    %15 = arith.addf %14, %12 : vector<169x128xf32>
    %cst_13 = arith.constant dense<0.000000e+00> : vector<128xf32>
    %16 = vector.multi_reduction <add>, %15, %cst_13 [0] : vector<169x128xf32> to vector<128xf32>
    %17 = vector.shape_cast %16 : vector<128xf32> to vector<1x128xf32>
    %18 = arith.mulf %3, %3 : vector<169x128xf32>
    %19 = arith.mulf %6, %6 : vector<169x128xf32>
    %20 = arith.addf %18, %19 : vector<169x128xf32>
    %21 = arith.mulf %9, %9 : vector<169x128xf32>
    %22 = arith.addf %20, %21 : vector<169x128xf32>
    %23 = arith.mulf %12, %12 : vector<169x128xf32>
    %24 = arith.addf %22, %23 : vector<169x128xf32>
    %cst_14 = arith.constant dense<0.000000e+00> : vector<128xf32>
    %25 = vector.multi_reduction <add>, %24, %cst_14 [0] : vector<169x128xf32> to vector<128xf32>
    %26 = vector.shape_cast %25 : vector<128xf32> to vector<1x128xf32>
    %cst_15 = arith.constant 1.479290e-03 : f32
    %27 = vector.broadcast %cst_15 : f32 to vector<1x128xf32>
    %28 = arith.mulf %17, %27 : vector<1x128xf32>
    %cst_16 = arith.constant 1.479290e-03 : f32
    %29 = vector.broadcast %cst_16 : f32 to vector<1x128xf32>
    %30 = arith.mulf %26, %29 : vector<1x128xf32>
    %31 = arith.mulf %28, %28 : vector<1x128xf32>
    %32 = arith.subf %30, %31 : vector<1x128xf32>
    %cst_17 = arith.constant 0.000000e+00 : f32
    %33 = vector.broadcast %cst_17 : f32 to vector<1x128xf32>
    %34 = arith.maximumf %32, %33 : vector<1x128xf32>
    %c0_18 = arith.constant 0 : index
    %c0_19 = arith.constant 0 : index
    %35 = vector.load %arg2[%c0_18, %c0_19] : memref<1x128xf32, #tpu.memory_space<vmem>>, vector<1x128xf32>
    %cst_20 = arith.constant 9.99999974E-6 : f32
    %36 = vector.broadcast %cst_20 : f32 to vector<1x128xf32>
    %37 = arith.addf %34, %36 : vector<1x128xf32>
    %38 = math.rsqrt %37 : vector<1x128xf32>
    %39 = arith.mulf %35, %38 : vector<1x128xf32>
    %c0_21 = arith.constant 0 : index
    %c0_22 = arith.constant 0 : index
    %40 = vector.load %arg3[%c0_21, %c0_22] : memref<1x128xf32, #tpu.memory_space<vmem>>, vector<1x128xf32>
    %41 = arith.mulf %28, %39 : vector<1x128xf32>
    %42 = arith.subf %40, %41 : vector<1x128xf32>
    %43 = vector.broadcast %39 : vector<1x128xf32> to vector<169x128xf32>
    %44 = arith.mulf %3, %43 : vector<169x128xf32>
    %45 = vector.broadcast %42 : vector<1x128xf32> to vector<169x128xf32>
    %46 = arith.addf %44, %45 : vector<169x128xf32>
    %cst_23 = arith.constant 0.000000e+00 : f32
    %47 = vector.broadcast %cst_23 : f32 to vector<169x128xf32>
    %48 = arith.maximumf %46, %47 : vector<169x128xf32>
    %49 = vector.broadcast %39 : vector<1x128xf32> to vector<169x128xf32>
    %50 = arith.mulf %6, %49 : vector<169x128xf32>
    %51 = vector.broadcast %42 : vector<1x128xf32> to vector<169x128xf32>
    %52 = arith.addf %50, %51 : vector<169x128xf32>
    %cst_24 = arith.constant 0.000000e+00 : f32
    %53 = vector.broadcast %cst_24 : f32 to vector<169x128xf32>
    %54 = arith.maximumf %52, %53 : vector<169x128xf32>
    %55 = vector.broadcast %39 : vector<1x128xf32> to vector<169x128xf32>
    %56 = arith.mulf %9, %55 : vector<169x128xf32>
    %57 = vector.broadcast %42 : vector<1x128xf32> to vector<169x128xf32>
    %58 = arith.addf %56, %57 : vector<169x128xf32>
    %cst_25 = arith.constant 0.000000e+00 : f32
    %59 = vector.broadcast %cst_25 : f32 to vector<169x128xf32>
    %60 = arith.maximumf %58, %59 : vector<169x128xf32>
    %61 = vector.broadcast %39 : vector<1x128xf32> to vector<169x128xf32>
    %62 = arith.mulf %12, %61 : vector<169x128xf32>
    %63 = vector.broadcast %42 : vector<1x128xf32> to vector<169x128xf32>
    %64 = arith.addf %62, %63 : vector<169x128xf32>
    %cst_26 = arith.constant 0.000000e+00 : f32
    %65 = vector.broadcast %cst_26 : f32 to vector<169x128xf32>
    %66 = arith.maximumf %64, %65 : vector<169x128xf32>
    %67 = arith.maximumf %48, %54 : vector<169x128xf32>
    %68 = arith.maximumf %60, %66 : vector<169x128xf32>
    %69 = arith.maximumf %67, %68 : vector<169x128xf32>
    %c0_27 = arith.constant 0 : index
    %c0_28 = arith.constant 0 : index
    %70 = vector.load %arg4[%c0_27, %c0_28] : memref<169x128xf32, #tpu.memory_space<vmem>>, vector<169x128xf32>
    tpu.vector_store %arg4[%c0_27, %c0_28], %69 {strides = array<i32>} : memref<169x128xf32, #tpu.memory_space<vmem>>, vector<169x128xf32>,
    return
  }
}

module attributes {stable_mosaic.version = 11 : i64} {
  func.func @_conv_bn_relu_pool_kernel(%arg0: memref<4x9x1152xf32, #tpu.memory_space<vmem>>, %arg1: memref<1152x128xf32, #tpu.memory_space<vmem>>, %arg2: memref<1x128xf32, #tpu.memory_space<vmem>>, %arg3: memref<1x128xf32, #tpu.memory_space<vmem>>, %arg4: memref<9x128xf32, #tpu.memory_space<vmem>>) attributes {dimension_semantics = [], scalar_prefetch = 0 : i64, scratch_operands = 0 : i64, tpu.core_type = #tpu.core_type<tc>} {
    %c0 = arith.constant 0 : index
    %c0_0 = arith.constant 0 : index
    %0 = vector.load %arg1[%c0, %c0_0] : memref<1152x128xf32, #tpu.memory_space<vmem>>, vector<1152x128xf32>
    %c0_1 = arith.constant 0 : index
    %c0_2 = arith.constant 0 : index
    %c0_3 = arith.constant 0 : index
    %1 = vector.load %arg0[%c0_1, %c0_2, %c0_3] : memref<4x9x1152xf32, #tpu.memory_space<vmem>>, vector<1x9x1152xf32>
    %2 = vector.shape_cast %1 : vector<1x9x1152xf32> to vector<9x1152xf32>
    %cst = arith.constant dense<0.000000e+00> : vector<9x128xf32>
    %3 = tpu.matmul %2, %0, %cst {dimension_numbers = #tpu.dot_dimension_numbers<[1], [0], [0], [1], [0, 0, 1, 1], [], []>} : vector<9x1152xf32>, vector<1152x128xf32>, vector<9x128xf32> -> vector<9x128xf32>
    %c1 = arith.constant 1 : index
    %c0_4 = arith.constant 0 : index
    %c0_5 = arith.constant 0 : index
    %4 = vector.load %arg0[%c1, %c0_4, %c0_5] : memref<4x9x1152xf32, #tpu.memory_space<vmem>>, vector<1x9x1152xf32>
    %5 = vector.shape_cast %4 : vector<1x9x1152xf32> to vector<9x1152xf32>
    %cst_6 = arith.constant dense<0.000000e+00> : vector<9x128xf32>
    %6 = tpu.matmul %5, %0, %cst_6 {dimension_numbers = #tpu.dot_dimension_numbers<[1], [0], [0], [1], [0, 0, 1, 1], [], []>} : vector<9x1152xf32>, vector<1152x128xf32>, vector<9x128xf32> -> vector<9x128xf32>
    %c2 = arith.constant 2 : index
    %c0_7 = arith.constant 0 : index
    %c0_8 = arith.constant 0 : index
    %7 = vector.load %arg0[%c2, %c0_7, %c0_8] : memref<4x9x1152xf32, #tpu.memory_space<vmem>>, vector<1x9x1152xf32>
    %8 = vector.shape_cast %7 : vector<1x9x1152xf32> to vector<9x1152xf32>
    %cst_9 = arith.constant dense<0.000000e+00> : vector<9x128xf32>
    %9 = tpu.matmul %8, %0, %cst_9 {dimension_numbers = #tpu.dot_dimension_numbers<[1], [0], [0], [1], [0, 0, 1, 1], [], []>} : vector<9x1152xf32>, vector<1152x128xf32>, vector<9x128xf32> -> vector<9x128xf32>
    %c3 = arith.constant 3 : index
    %c0_10 = arith.constant 0 : index
    %c0_11 = arith.constant 0 : index
    %10 = vector.load %arg0[%c3, %c0_10, %c0_11] : memref<4x9x1152xf32, #tpu.memory_space<vmem>>, vector<1x9x1152xf32>
    %11 = vector.shape_cast %10 : vector<1x9x1152xf32> to vector<9x1152xf32>
    %cst_12 = arith.constant dense<0.000000e+00> : vector<9x128xf32>
    %12 = tpu.matmul %11, %0, %cst_12 {dimension_numbers = #tpu.dot_dimension_numbers<[1], [0], [0], [1], [0, 0, 1, 1], [], []>} : vector<9x1152xf32>, vector<1152x128xf32>, vector<9x128xf32> -> vector<9x128xf32>
    %13 = arith.addf %3, %6 : vector<9x128xf32>
    %14 = arith.addf %13, %9 : vector<9x128xf32>
    %15 = arith.addf %14, %12 : vector<9x128xf32>
    %cst_13 = arith.constant dense<0.000000e+00> : vector<128xf32>
    %16 = vector.multi_reduction <add>, %15, %cst_13 [0] : vector<9x128xf32> to vector<128xf32>
    %17 = vector.shape_cast %16 : vector<128xf32> to vector<1x128xf32>
    %18 = arith.mulf %3, %3 : vector<9x128xf32>
    %19 = arith.mulf %6, %6 : vector<9x128xf32>
    %20 = arith.addf %18, %19 : vector<9x128xf32>
    %21 = arith.mulf %9, %9 : vector<9x128xf32>
    %22 = arith.addf %20, %21 : vector<9x128xf32>
    %23 = arith.mulf %12, %12 : vector<9x128xf32>
    %24 = arith.addf %22, %23 : vector<9x128xf32>
    %cst_14 = arith.constant dense<0.000000e+00> : vector<128xf32>
    %25 = vector.multi_reduction <add>, %24, %cst_14 [0] : vector<9x128xf32> to vector<128xf32>
    %26 = vector.shape_cast %25 : vector<128xf32> to vector<1x128xf32>
    %cst_15 = arith.constant 0.027777778 : f32
    %27 = vector.broadcast %cst_15 : f32 to vector<1x128xf32>
    %28 = arith.mulf %17, %27 : vector<1x128xf32>
    %cst_16 = arith.constant 0.027777778 : f32
    %29 = vector.broadcast %cst_16 : f32 to vector<1x128xf32>
    %30 = arith.mulf %26, %29 : vector<1x128xf32>
    %31 = arith.mulf %28, %28 : vector<1x128xf32>
    %32 = arith.subf %30, %31 : vector<1x128xf32>
    %cst_17 = arith.constant 0.000000e+00 : f32
    %33 = vector.broadcast %cst_17 : f32 to vector<1x128xf32>
    %34 = arith.maximumf %32, %33 : vector<1x128xf32>
    %c0_18 = arith.constant 0 : index
    %c0_19 = arith.constant 0 : index
    %35 = vector.load %arg2[%c0_18, %c0_19] : memref<1x128xf32, #tpu.memory_space<vmem>>, vector<1x128xf32>
    %cst_20 = arith.constant 9.99999974E-6 : f32
    %36 = vector.broadcast %cst_20 : f32 to vector<1x128xf32>
    %37 = arith.addf %34, %36 : vector<1x128xf32>
    %38 = math.rsqrt %37 : vector<1x128xf32>
    %39 = arith.mulf %35, %38 : vector<1x128xf32>
    %c0_21 = arith.constant 0 : index
    %c0_22 = arith.constant 0 : index
    %40 = vector.load %arg3[%c0_21, %c0_22] : memref<1x128xf32, #tpu.memory_space<vmem>>, vector<1x128xf32>
    %41 = arith.mulf %28, %39 : vector<1x128xf32>
    %42 = arith.subf %40, %41 : vector<1x128xf32>
    %43 = vector.broadcast %39 : vector<1x128xf32> to vector<9x128xf32>
    %44 = arith.mulf %3, %43 : vector<9x128xf32>
    %45 = vector.broadcast %42 : vector<1x128xf32> to vector<9x128xf32>
    %46 = arith.addf %44, %45 : vector<9x128xf32>
    %cst_23 = arith.constant 0.000000e+00 : f32
    %47 = vector.broadcast %cst_23 : f32 to vector<9x128xf32>
    %48 = arith.maximumf %46, %47 : vector<9x128xf32>
    %49 = vector.broadcast %39 : vector<1x128xf32> to vector<9x128xf32>
    %50 = arith.mulf %6, %49 : vector<9x128xf32>
    %51 = vector.broadcast %42 : vector<1x128xf32> to vector<9x128xf32>
    %52 = arith.addf %50, %51 : vector<9x128xf32>
    %cst_24 = arith.constant 0.000000e+00 : f32
    %53 = vector.broadcast %cst_24 : f32 to vector<9x128xf32>
    %54 = arith.maximumf %52, %53 : vector<9x128xf32>
    %55 = vector.broadcast %39 : vector<1x128xf32> to vector<9x128xf32>
    %56 = arith.mulf %9, %55 : vector<9x128xf32>
    %57 = vector.broadcast %42 : vector<1x128xf32> to vector<9x128xf32>
    %58 = arith.addf %56, %57 : vector<9x128xf32>
    %cst_25 = arith.constant 0.000000e+00 : f32
    %59 = vector.broadcast %cst_25 : f32 to vector<9x128xf32>
    %60 = arith.maximumf %58, %59 : vector<9x128xf32>
    %61 = vector.broadcast %39 : vector<1x128xf32> to vector<9x128xf32>
    %62 = arith.mulf %12, %61 : vector<9x128xf32>
    %63 = vector.broadcast %42 : vector<1x128xf32> to vector<9x128xf32>
    %64 = arith.addf %62, %63 : vector<9x128xf32>
    %cst_26 = arith.constant 0.000000e+00 : f32
    %65 = vector.broadcast %cst_26 : f32 to vector<9x128xf32>
    %66 = arith.maximumf %64, %65 : vector<9x128xf32>
    %67 = arith.maximumf %48, %54 : vector<9x128xf32>
    %68 = arith.maximumf %60, %66 : vector<9x128xf32>
    %69 = arith.maximumf %67, %68 : vector<9x128xf32>
    %c0_27 = arith.constant 0 : index
    %c0_28 = arith.constant 0 : index
    %70 = vector.load %arg4[%c0_27, %c0_28] : memref<9x128xf32, #tpu.memory_space<vmem>>, vector<9x128xf32>
    tpu.vector_store %arg4[%c0_27, %c0_28], %69 {strides = array<i32>} : memref<9x128xf32, #tpu.memory_space<vmem>>, vector<9x128xf32>,
    return
  }
}

module attributes {stable_mosaic.version = 11 : i64} {
  func.func @_conv3_head_kernel(%arg0: memref<4x1152xf32, #tpu.memory_space<vmem>>, %arg1: memref<1152x128xf32, #tpu.memory_space<vmem>>, %arg2: memref<1x128xf32, #tpu.memory_space<vmem>>, %arg3: memref<1x128xf32, #tpu.memory_space<vmem>>, %arg4: memref<128x512xf32, #tpu.memory_space<vmem>>, %arg5: memref<1x512xf32, #tpu.memory_space<vmem>>, %arg6: memref<128x512xf32, #tpu.memory_space<vmem>>, %arg7: memref<1x512xf32, #tpu.memory_space<vmem>>, %arg8: memref<128x128xf32, #tpu.memory_space<vmem>>, %arg9: memref<1x128xf32, #tpu.memory_space<vmem>>, %arg10: memref<1x256xf32, #tpu.memory_space<vmem>>) attributes {dimension_semantics = [], scalar_prefetch = 0 : i64, scratch_operands = 0 : i64, tpu.core_type = #tpu.core_type<tc>} {
    %c0 = arith.constant 0 : index
    %c0_0 = arith.constant 0 : index
    %0 = vector.load %arg0[%c0, %c0_0] : memref<4x1152xf32, #tpu.memory_space<vmem>>, vector<4x1152xf32>
    %c0_1 = arith.constant 0 : index
    %c0_2 = arith.constant 0 : index
    %1 = vector.load %arg1[%c0_1, %c0_2] : memref<1152x128xf32, #tpu.memory_space<vmem>>, vector<1152x128xf32>
    %cst = arith.constant dense<0.000000e+00> : vector<4x128xf32>
    %2 = tpu.matmul %0, %1, %cst {dimension_numbers = #tpu.dot_dimension_numbers<[1], [0], [0], [1], [0, 0, 1, 1], [], []>} : vector<4x1152xf32>, vector<1152x128xf32>, vector<4x128xf32> -> vector<4x128xf32>
    %cst_3 = arith.constant dense<0.000000e+00> : vector<128xf32>
    %3 = vector.multi_reduction <add>, %2, %cst_3 [0] : vector<4x128xf32> to vector<128xf32>
    %4 = vector.shape_cast %3 : vector<128xf32> to vector<1x128xf32>
    %cst_4 = arith.constant 4.000000e+00 : f32
    %5 = vector.broadcast %cst_4 : f32 to vector<1x128xf32>
    %6 = arith.divf %4, %5 : vector<1x128xf32>
    %7 = arith.mulf %2, %2 : vector<4x128xf32>
    %cst_5 = arith.constant dense<0.000000e+00> : vector<128xf32>
    %8 = vector.multi_reduction <add>, %7, %cst_5 [0] : vector<4x128xf32> to vector<128xf32>
    %9 = vector.shape_cast %8 : vector<128xf32> to vector<1x128xf32>
    %cst_6 = arith.constant 4.000000e+00 : f32
    %10 = vector.broadcast %cst_6 : f32 to vector<1x128xf32>
    %11 = arith.divf %9, %10 : vector<1x128xf32>
    %12 = arith.mulf %6, %6 : vector<1x128xf32>
    %13 = arith.subf %11, %12 : vector<1x128xf32>
    %cst_7 = arith.constant 0.000000e+00 : f32
    %14 = vector.broadcast %cst_7 : f32 to vector<1x128xf32>
    %15 = arith.maximumf %13, %14 : vector<1x128xf32>
    %c0_8 = arith.constant 0 : index
    %c0_9 = arith.constant 0 : index
    %16 = vector.load %arg2[%c0_8, %c0_9] : memref<1x128xf32, #tpu.memory_space<vmem>>, vector<1x128xf32>
    %cst_10 = arith.constant 9.99999974E-6 : f32
    %17 = vector.broadcast %cst_10 : f32 to vector<1x128xf32>
    %18 = arith.addf %15, %17 : vector<1x128xf32>
    %19 = math.rsqrt %18 : vector<1x128xf32>
    %20 = arith.mulf %16, %19 : vector<1x128xf32>
    %c0_11 = arith.constant 0 : index
    %c0_12 = arith.constant 0 : index
    %21 = vector.load %arg3[%c0_11, %c0_12] : memref<1x128xf32, #tpu.memory_space<vmem>>, vector<1x128xf32>
    %22 = arith.mulf %6, %20 : vector<1x128xf32>
    %23 = arith.subf %21, %22 : vector<1x128xf32>
    %24 = vector.broadcast %20 : vector<1x128xf32> to vector<4x128xf32>
    %25 = arith.mulf %2, %24 : vector<4x128xf32>
    %26 = vector.broadcast %23 : vector<1x128xf32> to vector<4x128xf32>
    %27 = arith.addf %25, %26 : vector<4x128xf32>
    %cst_13 = arith.constant 0.000000e+00 : f32
    %28 = vector.broadcast %cst_13 : f32 to vector<4x128xf32>
    %29 = arith.maximumf %27, %28 : vector<4x128xf32>
    %cst_14 = arith.constant dense<0xFF800000> : vector<128xf32>
    %30 = vector.multi_reduction <maximumf>, %29, %cst_14 [0] : vector<4x128xf32> to vector<128xf32>
    %31 = vector.shape_cast %30 : vector<128xf32> to vector<1x128xf32>
    %32 = arith.mulf %31, %31 : vector<1x128xf32>
    %cst_15 = arith.constant dense<0.000000e+00> : vector<1xf32>
    %33 = vector.multi_reduction <add>, %32, %cst_15 [1] : vector<1x128xf32> to vector<1xf32>
    %34 = vector.shape_cast %33 : vector<1xf32> to vector<1x1xf32>
    %35 = math.sqrt %34 : vector<1x1xf32>
    %cst_16 = arith.constant 9.99999996E-13 : f32
    %36 = vector.broadcast %cst_16 : f32 to vector<1x1xf32>
    %37 = arith.maximumf %35, %36 : vector<1x1xf32>
    %38 = vector.broadcast %37 : vector<1x1xf32> to vector<1x128xf32>
    %39 = arith.divf %31, %38 : vector<1x128xf32>
    %c0_17 = arith.constant 0 : index
    %c0_18 = arith.constant 0 : index
    %40 = vector.load %arg4[%c0_17, %c0_18] : memref<128x512xf32, #tpu.memory_space<vmem>>, vector<128x512xf32>
    %cst_19 = arith.constant dense<0.000000e+00> : vector<1x512xf32>
    %41 = tpu.matmul %39, %40, %cst_19 {dimension_numbers = #tpu.dot_dimension_numbers<[1], [0], [0], [1], [0, 0, 1, 1], [], []>} : vector<1x128xf32>, vector<128x512xf32>, vector<1x512xf32> -> vector<1x512xf32>
    %c0_20 = arith.constant 0 : index
    %c0_21 = arith.constant 0 : index
    %42 = vector.load %arg5[%c0_20, %c0_21] : memref<1x512xf32, #tpu.memory_space<vmem>>, vector<1x512xf32>
    %43 = arith.addf %41, %42 : vector<1x512xf32>
    %44 = vector.extract_strided_slice %43 {offsets = [0, 0], sizes = [1, 128], strides = [1, 1]} : vector<1x512xf32> to vector<1x128xf32>
    %45 = arith.negf %44 : vector<1x128xf32>
    %46 = math.exp %45 : vector<1x128xf32>
    %cst_22 = arith.constant 1.000000e+00 : f32
    %47 = vector.broadcast %cst_22 : f32 to vector<1x128xf32>
    %48 = arith.addf %47, %46 : vector<1x128xf32>
    %49 = arith.divf %47, %48 : vector<1x128xf32>
    %50 = vector.extract_strided_slice %43 {offsets = [0, 256], sizes = [1, 128], strides = [1, 1]} : vector<1x512xf32> to vector<1x128xf32>
    %51 = math.tanh %50 : vector<1x128xf32>
    %52 = arith.mulf %49, %51 : vector<1x128xf32>
    %53 = vector.extract_strided_slice %43 {offsets = [0, 384], sizes = [1, 128], strides = [1, 1]} : vector<1x512xf32> to vector<1x128xf32>
    %54 = arith.negf %53 : vector<1x128xf32>
    %55 = math.exp %54 : vector<1x128xf32>
    %cst_23 = arith.constant 1.000000e+00 : f32
    %56 = vector.broadcast %cst_23 : f32 to vector<1x128xf32>
    %57 = arith.addf %56, %55 : vector<1x128xf32>
    %58 = arith.divf %56, %57 : vector<1x128xf32>
    %59 = math.tanh %52 : vector<1x128xf32>
    %60 = arith.mulf %58, %59 : vector<1x128xf32>
    %c0_24 = arith.constant 0 : index
    %c0_25 = arith.constant 0 : index
    %61 = vector.load %arg6[%c0_24, %c0_25] : memref<128x512xf32, #tpu.memory_space<vmem>>, vector<128x512xf32>
    %cst_26 = arith.constant dense<0.000000e+00> : vector<1x512xf32>
    %62 = tpu.matmul %60, %61, %cst_26 {dimension_numbers = #tpu.dot_dimension_numbers<[1], [0], [0], [1], [0, 0, 1, 1], [], []>} : vector<1x128xf32>, vector<128x512xf32>, vector<1x512xf32> -> vector<1x512xf32>
    %c0_27 = arith.constant 0 : index
    %c0_28 = arith.constant 0 : index
    %63 = vector.load %arg7[%c0_27, %c0_28] : memref<1x512xf32, #tpu.memory_space<vmem>>, vector<1x512xf32>
    %64 = arith.addf %62, %63 : vector<1x512xf32>
    %65 = vector.extract_strided_slice %64 {offsets = [0, 0], sizes = [1, 128], strides = [1, 1]} : vector<1x512xf32> to vector<1x128xf32>
    %66 = arith.negf %65 : vector<1x128xf32>
    %67 = math.exp %66 : vector<1x128xf32>
    %cst_29 = arith.constant 1.000000e+00 : f32
    %68 = vector.broadcast %cst_29 : f32 to vector<1x128xf32>
    %69 = arith.addf %68, %67 : vector<1x128xf32>
    %70 = arith.divf %68, %69 : vector<1x128xf32>
    %71 = vector.extract_strided_slice %64 {offsets = [0, 256], sizes = [1, 128], strides = [1, 1]} : vector<1x512xf32> to vector<1x128xf32>
    %72 = math.tanh %71 : vector<1x128xf32>
    %73 = arith.mulf %70, %72 : vector<1x128xf32>
    %74 = vector.extract_strided_slice %64 {offsets = [0, 384], sizes = [1, 128], strides = [1, 1]} : vector<1x512xf32> to vector<1x128xf32>
    %75 = arith.negf %74 : vector<1x128xf32>
    %76 = math.exp %75 : vector<1x128xf32>
    %cst_30 = arith.constant 1.000000e+00 : f32
    %77 = vector.broadcast %cst_30 : f32 to vector<1x128xf32>
    %78 = arith.addf %77, %76 : vector<1x128xf32>
    %79 = arith.divf %77, %78 : vector<1x128xf32>
    %80 = math.tanh %73 : vector<1x128xf32>
    %81 = arith.mulf %79, %80 : vector<1x128xf32>
    %c0_31 = arith.constant 0 : index
    %c0_32 = arith.constant 0 : index
    %82 = vector.load %arg10[%c0_31, %c0_32] : memref<1x256xf32, #tpu.memory_space<vmem>>, vector<1x128xf32>
    tpu.vector_store %arg10[%c0_31, %c0_32], %81 {strides = array<i32>} : memref<1x256xf32, #tpu.memory_space<vmem>>, vector<1x128xf32>,
    %c0_33 = arith.constant 0 : index
    %c128 = arith.constant 128 : index
    %83 = vector.load %arg10[%c0_33, %c128] : memref<1x256xf32, #tpu.memory_space<vmem>>, vector<1x128xf32>
    tpu.vector_store %arg10[%c0_33, %c128], %81 {strides = array<i32>} : memref<1x256xf32, #tpu.memory_space<vmem>>, vector<1x128xf32>,
    %c0_34 = arith.constant 0 : index
    %c0_35 = arith.constant 0 : index
    %84 = vector.load %arg8[%c0_34, %c0_35] : memref<128x128xf32, #tpu.memory_space<vmem>>, vector<128x128xf32>
    %cst_36 = arith.constant dense<0.000000e+00> : vector<1x128xf32>
    %85 = tpu.matmul %81, %84, %cst_36 {dimension_numbers = #tpu.dot_dimension_numbers<[1], [0], [0], [1], [0, 0, 1, 1], [], []>} : vector<1x128xf32>, vector<128x128xf32>, vector<1x128xf32> -> vector<1x128xf32>
    %c0_37 = arith.constant 0 : index
    %c0_38 = arith.constant 0 : index
    %86 = vector.load %arg9[%c0_37, %c0_38] : memref<1x128xf32, #tpu.memory_space<vmem>>, vector<1x128xf32>
    tpu.vector_store %arg9[%c0_37, %c0_38], %85 {strides = array<i32>} : memref<1x128xf32, #tpu.memory_space<vmem>>, vector<1x128xf32>,
    return
  }
}

</mosaic_0001>

<bundles_post_ra>
// kernel: _forward.4
= control target key start
LH: loop header
LB: loop body
LE: loop exit
PB: predicated region body
PF: predicated region fallthrough
CT: control target
= control target key end

     0   :  { %9 = vsyncpa [#allocation3], 0  ;;  %s1061_s0 = inlined_call_operand.hbm [shape: f32[96,24], index: 0, kind: input, shape index: {}]   ;;  %s1062_s1 = inlined_call_operand.hbm [shape: f32[24,24], index: 1, kind: input, shape index: {}]   ;;  %s1063_s2 = inlined_call_operand.vmem [shape: f32[24,96], index: 2, kind: input, shape index: {}]   ;;  %s1064_s3 = inlined_call_operand.hbm [shape: f32[3,96,96], index: 3, kind: input, shape index: {}]   ;;  %s1065_s4 = inlined_call_operand.vmem [shape: f32[3,96,96], index: 4, kind: output, shape index: {}]  }
   0x1   :  { %10 = vsyncpa [#allocation5], 0  ;;  %s845_s15 = smov [#allocation4]   ;;  %s846_s17 = smov [#allocation2]  }
   0x2   :  { %s28_s16 = sshll.u32 %s845_s15, 4  ;;  %s16_s18 = sshll.u32 %s846_s17, 4  ;;  %s29_s16 = int_to_ptr.vmem [resolvable:$true] %s28_s16  ;;  %s17_s18 = int_to_ptr.vmem [resolvable:$true] %s16_s18 }
   0x3   :  { %s789_s19 = scalar_lea.vmem %s29_s16, 384  ;;  %p794_p1 = scmp.lt.s32.totalorder %s29_s16, %s29_s16 }
   0x4   :  { %p790_p0 = scmp.ne.s32.totalorder %s29_s16, %s789_s19  ;;  %p795_p2 = scmp.lt.s32.totalorder %s789_s19, %s789_s19 }
   0x6   :  { %p796_p3 = por %p795_p2, %p794_p1 }
   0x8   :  { %p797_p4 = pnand %p796_p3, %p790_p0 }
   0xa   :  { %800 = shalt.err (!%p797_p4)
}
   0xb   :  { %s847_s20 = smov 128   ;;  %s848_s21 = smov 8  }
   0xc   :  { %34 = dma.hbm_to_vmem [thread:$0]  %s1062_s1, 384, %s29_s16, [#allocation5], %s847_s20, %s847_s20, %s848_s21  }
   0xd   :  { %s809_s24 = scalar_lea.vmem %s17_s18, 1536  ;;  %p814_p6 = scmp.lt.s32.totalorder %s17_s18, %s17_s18 }
   0xe   :  { %p810_p5 = scmp.ne.s32.totalorder %s17_s18, %s809_s24  ;;  %p815_p7 = scmp.lt.s32.totalorder %s809_s24, %s809_s24 }
  0x10   :  { %p816_p8 = por %p815_p7, %p814_p6 }
  0x12   :  { %p817_p9 = pnand %p816_p8, %p810_p5 }
  0x14   :  { %820 = shalt.err (!%p817_p9)
}
  0x15   :  { %22 = dma.hbm_to_vmem [thread:$0]  %s1061_s0, 1536, %s17_s18, [#allocation3], %s847_s20, %s847_s20, %s848_s21  }
  0x16   :  { %s849_s27 = smov [#allocation6]  }
  0x17   :  { %s42_s28 = sshll.u32 %s849_s27, 4  ;;  %s43_s28 = int_to_ptr.vmem [resolvable:$true] %s42_s28 }
  0x18   :  { %s829_s29 = scalar_lea.vmem %s43_s28, 4608  ;;  %p834_p11 = scmp.lt.s32.totalorder %s43_s28, %s43_s28 }
  0x19   :  { %p830_p10 = scmp.ne.s32.totalorder %s43_s28, %s829_s29  ;;  %p835_p12 = scmp.lt.s32.totalorder %s829_s29, %s829_s29 }
  0x1b   :  { %p836_p13 = por %p835_p12, %p834_p11 }
  0x1d   :  { %p837_p0 = pnand %p836_p13, %p830_p10 }
  0x1f   :  { %840 = shalt.err (!%p837_p0)
}
  0x20   :  { %48 = dma.hbm_to_vmem [thread:$0]  %s1064_s3, 4608, %s43_s28, [#allocation5], %s847_s20, %s847_s20, %s848_s21  }
  0x21   :  { %841 = dma.done.wait [#allocation3], 1536  }
  0x22   :  { %842 = vsyncadd [#allocation3], 4294965760 }
  0x23   :  { %843 = dma.done.wait [#allocation5], 4992  }
  0x24   :  { %844 = vsyncadd [#allocation5], 4294962304  ;;  %vm73_vm0 = vcmask 195584   ;;  %v72_v0 = vld [vmem:[#allocation4 + $0x10] sm:$0xff]  ;;  %v71_v1 = vld [vmem:[#allocation4 + $0x8] sm:$0xff]  ;;  %vm495_vm1 = vcmask 785408  }
  0x25   :  { %680 = vmatprep.subr.mxu0 %v72_v0  ;;  %v58_v2 = vld [vmem:[#allocation2] sm:$0xff]  ;;  %v59_v4 = vld [vmem:[#allocation2 + $0x8] sm:$0xff]  ;;  %v60_v5 = vld [vmem:[#allocation2 + $0x10] sm:$0xff] }
  0x26   :  { %681 = vmatpush3.msra.mxu0 %v72_v0  ;;  %v70_v3 = vld [vmem:[#allocation4] sm:$0xff]  ;;  %686 = vmatprep.mubr.msk.f32.mxu0 %vm73_vm0, %v58_v2  ;;  %v237_v6 = vld [vmem:[%s1063_s2 + $0x10] sm:$0xff]  ;;  %v61_v7 = vld [vmem:[#allocation2 + $0x18] sm:$0xff] }
  0x27   :  { %682 = vmatprep.subr.mxu0 %v71_v1  ;;  %704 = vmatprep.subr.mxu1 %v237_v6  ;;  %v62_v8 = vld [vmem:[#allocation2 + $0x20] sm:$0xff]  ;;  %v63_v9 = vld [vmem:[#allocation2 + $0x28] sm:$0xff]  ;;  %v64_v10 = vld [vmem:[#allocation2 + $0x30] sm:$0xff] }
  0x28   :  { %683 = vmatpush3.msra.mxu0 %v71_v1  ;;  %705 = vmatpush3.msra.mxu1 %v237_v6  ;;  %v65_v11 = vld [vmem:[#allocation2 + $0x38] sm:$0xff]  ;;  %v66_v12 = vld [vmem:[#allocation2 + $0x40] sm:$0xff]  ;;  %v67_v13 = vld [vmem:[#allocation2 + $0x48] sm:$0xff] }
  0x29   :  { %684 = vmatprep.subr.mxu0 %v70_v3  ;;  %v68_v14 = vld [vmem:[#allocation2 + $0x50] sm:$0xff]  ;;  %v69_v15 = vld [vmem:[#allocation2 + $0x58] sm:$0xff]  ;;  %v236_v16 = vld [vmem:[%s1063_s2 + $0x8] sm:$0xff] }
  0x2a   :  { %685 = vmatpush3.msra.mxu0 %v70_v3  ;;  %706 = vmatprep.subr.mxu1 %v236_v16  ;;  %v235_v17 = vld [vmem:[%s1063_s2] sm:$0xff] }
  0x2b   :  { %687 = vmatmul.mubr.msk.f32.vlgmr.msra.gmra.mxu0 %vm73_vm0, %v59_v4  ;;  %707 = vmatpush3.msra.mxu1 %v236_v16  ;;  %v510_v6 = vld [vmem:[#allocation6 + $0x68] sm:$0xff] }
  0x2c   :  { %689 = vmatprep.mubr.msk.f32.mxu0 %vm73_vm0, %v60_v5  ;;  %708 = vmatprep.subr.mxu1 %v235_v17  ;;  %v472_v5 = vld [vmem:[#allocation6 + $0x8] sm:$0xff] }
  0x2d   :  { %709 = vmatpush3.msra.mxu1 %v235_v17 }
  0x2f   :  { %690 = vmatmul.mubr.msk.f32.gmra.mxu0 %vm73_vm0, %v61_v7  ;;  %v548_v7 = vld [vmem:[#allocation6 + $0xc8] sm:$0xff] }
  0x30   :  { %692 = vmatprep.mubr.msk.f32.mxu0 %vm73_vm0, %v62_v8 }
  0x33   :  { %693 = vmatmul.mubr.msk.f32.gmra.mxu0 %vm73_vm0, %v63_v9 }
  0x34   :  { %695 = vmatprep.mubr.msk.f32.mxu0 %vm73_vm0, %v64_v10  ;;  %v471_v10 = vld [vmem:[#allocation6] sm:$0xff] }
  0x37   :  { %696 = vmatmul.mubr.msk.f32.gmra.mxu0 %vm73_vm0, %v65_v11  ;;  %v509_v11 = vld [vmem:[#allocation6 + $0x60] sm:$0xff] }
  0x38   :  { %698 = vmatprep.mubr.msk.f32.mxu0 %vm73_vm0, %v66_v12  ;;  %v547_v12 = vld [vmem:[#allocation6 + $0xc0] sm:$0xff] }
  0x3b   :  { %699 = vmatmul.mubr.msk.f32.gmra.mxu0 %vm73_vm0, %v67_v13 }
  0x3c   :  { %701 = vmatprep.mubr.msk.f32.mxu0 %vm73_vm0, %v68_v14 }
  0x3f   :  { %702 = vmatmul.mubr.msk.f32.gmra.mxu0 %vm73_vm0, %v69_v15 }
  0xeb   :  { %v688_v18 = vpop.f32.mrf.mxu0 }
  0xed   :  { %v176_v19 = vpop.f32.mrf.mxu0 }
  0xee   :  { %710 = vmatprep.mubr.msk.f32.mxu1 %vm73_vm0, %v176_v19  ;;  %v512_v19 = vld [vmem:[#allocation6 + $0x78] sm:$0xff] }
  0xef   :  { %v691_v20 = vpop.f32.mrf.mxu0  ;;  %711 = vmatmul.mubr.msk.f32.vlgmr.msra.gmra.mxu1 %vm73_vm0, %v688_v18  ;;  %v474_v18 = vld [vmem:[#allocation6 + $0x18] sm:$0xff] }
  0xf1   :  { %v186_v21 = vpop.f32.mrf.mxu0 }
  0xf2   :  { %713 = vmatprep.mubr.msk.f32.mxu1 %vm73_vm0, %v186_v21 }
  0xf3   :  { %v694_v22 = vpop.f32.mrf.mxu0  ;;  %714 = vmatmul.mubr.msk.f32.gmra.mxu1 %vm73_vm0, %v691_v20  ;;  %v550_v20 = vld [vmem:[#allocation6 + $0xd8] sm:$0xff] }
  0xf5   :  { %v196_v23 = vpop.f32.mrf.mxu0 }
  0xf6   :  { %716 = vmatprep.mubr.msk.f32.mxu1 %vm73_vm0, %v196_v23 }
  0xf7   :  { %v697_v24 = vpop.f32.mrf.mxu0  ;;  %717 = vmatmul.mubr.msk.f32.gmra.mxu1 %vm73_vm0, %v694_v22 }
  0xf9   :  { %v206_v25 = vpop.f32.mrf.mxu0 }
  0xfa   :  { %719 = vmatprep.mubr.msk.f32.mxu1 %vm73_vm0, %v206_v25 }
  0xfb   :  { %v700_v26 = vpop.f32.mrf.mxu0  ;;  %720 = vmatmul.mubr.msk.f32.gmra.mxu1 %vm73_vm0, %v697_v24 }
  0xfd   :  { %v216_v27 = vpop.f32.mrf.mxu0 }
  0xfe   :  { %722 = vmatprep.mubr.msk.f32.mxu1 %vm73_vm0, %v216_v27  ;;  %v473_v27 = vld [vmem:[#allocation6 + $0x10] sm:$0xff] }
  0xff   :  { %v703_v28 = vpop.f32.mrf.mxu0  ;;  %723 = vmatmul.mubr.msk.f32.gmra.mxu1 %vm73_vm0, %v700_v26 }
 0x101   :  { %v226_v29 = vpop.f32.mrf.mxu0 }
 0x102   :  { %725 = vmatprep.mubr.msk.f32.mxu1 %vm73_vm0, %v226_v29  ;;  %v549_v29 = vld [vmem:[#allocation6 + $0xd0] sm:$0xff] }
 0x103   :  { %726 = vmatmul.mubr.msk.f32.gmra.mxu1 %vm73_vm0, %v703_v28  ;;  %v511_v28 = vld [vmem:[#allocation6 + $0x70] sm:$0xff] }
 0x1af   :  { %v712_v30 = vpop.f32.mrf.mxu1 }
 0x1b0   :  { %v615_v31 = vmul.f32 -1.442695, %v712_v30 }
 0x1b1   :  { %v340_v32 = vpop.f32.mrf.mxu1 }
 0x1b2   :  { %733 = vpow2.f32 %v615_v31  ;;  %v614_v33 = vmul.f32 -1.442695, %v340_v32 }
 0x1b3   :  { %v715_v34 = vpop.f32.mrf.mxu1 }
 0x1b4   :  { %735 = vpow2.f32 %v614_v33  ;;  %v617_v35 = vmul.f32 -1.442695, %v715_v34 }
 0x1b5   :  { %v350_v36 = vpop.f32.mrf.mxu1 }
 0x1b6   :  { %737 = vpow2.f32 %v617_v35  ;;  %v616_v37 = vmul.f32 -1.442695, %v350_v36  ;;  %v476_v36 = vld [vmem:[#allocation6 + $0x28] sm:$0xff] }
 0x1b7   :  { %v718_v38 = vpop.f32.mrf.mxu1 }
 0x1b8   :  { %739 = vpow2.f32 %v616_v37  ;;  %v619_v39 = vmul.f32 -1.442695, %v718_v38  ;;  %v514_v37 = vld [vmem:[#allocation6 + $0x88] sm:$0xff] }
 0x1b9   :  { %v360_v40 = vpop.f32.mrf.mxu1  ;;  %v552_v38 = vld [vmem:[#allocation6 + $0xe8] sm:$0xff] }
 0x1ba   :  { %741 = vpow2.f32 %v619_v39  ;;  %v618_v41 = vmul.f32 -1.442695, %v360_v40 }
 0x1bb   :  { %v721_v42 = vpop.f32.mrf.mxu1 }
 0x1bc   :  { %743 = vpow2.f32 %v618_v41  ;;  %v621_v43 = vmul.f32 -1.442695, %v721_v42 }
 0x1bd   :  { %v370_v44 = vpop.f32.mrf.mxu1 }
 0x1be   :  { %745 = vpow2.f32 %v621_v43  ;;  %v620_v45 = vmul.f32 -1.442695, %v370_v44 }
 0x1bf   :  { %v734_v46 = vpop.eup %733  ;;  %v724_v47 = vpop.f32.mrf.mxu1 }
 0x1c0   :  { %v436_v48 = vadd.f32 1.0, %v734_v46  ;;  %747 = vpow2.f32 %v620_v45  ;;  %v623_v49 = vmul.f32 -1.442695, %v724_v47  ;;  %v475_v45 = vld [vmem:[#allocation6 + $0x20] sm:$0xff] }
 0x1c1   :  { %v736_v50 = vpop.eup %735  ;;  %v380_v51 = vpop.f32.mrf.mxu1  ;;  %v513_v46 = vld [vmem:[#allocation6 + $0x80] sm:$0xff] }
 0x1c2   :  { %749 = vrcp.f32 %v436_v48  ;;  %v435_v52 = vadd.f32 1.0, %v736_v50  ;;  %v622_v53 = vmul.f32 -1.442695, %v380_v51  ;;  %v551_v47 = vld [vmem:[#allocation6 + $0xe0] sm:$0xff] }
 0x1c3   :  { %v738_v54 = vpop.eup %737  ;;  %751 = vpow2.f32 %v623_v49  ;;  %v727_v55 = vpop.f32.mrf.mxu1 }
 0x1c4   :  { %753 = vrcp.f32 %v435_v52  ;;  %v438_v56 = vadd.f32 1.0, %v738_v54  ;;  %v625_v57 = vmul.f32 -1.442695, %v727_v55  ;;  %v516_v54 = vld [vmem:[#allocation6 + $0x98] sm:$0xff] }
 0x1c5   :  { %v740_v58 = vpop.eup %739  ;;  %755 = vpow2.f32 %v622_v53  ;;  %v390_v59 = vpop.f32.mrf.mxu1  ;;  %v478_v53 = vld [vmem:[#allocation6 + $0x38] sm:$0xff] }
 0x1c6   :  { %757 = vrcp.f32 %v438_v56  ;;  %v437_v60 = vadd.f32 1.0, %v740_v58  ;;  %v624_v61 = vmul.f32 -1.442695, %v390_v59  ;;  %v554_v55 = vld [vmem:[#allocation6 + $0xf8] sm:$0xff] }
 0x1c7   :  { %v742_v62 = vpop.eup %741  ;;  %759 = vpow2.f32 %v625_v57 }
 0x1c8   :  { %761 = vrcp.f32 %v437_v60  ;;  %v440_v63 = vadd.f32 1.0, %v742_v62  ;;  %v477_v60 = vld [vmem:[#allocation6 + $0x30] sm:$0xff] }
 0x1c9   :  { %v744_v0 = vpop.eup %743  ;;  %763 = vpow2.f32 %v624_v61  ;;  %v515_v61 = vld [vmem:[#allocation6 + $0x90] sm:$0xff] }
 0x1ca   :  { %765 = vrcp.f32 %v440_v63  ;;  %v439_v1 = vadd.f32 1.0, %v744_v0  ;;  %v553_v62 = vld [vmem:[#allocation6 + $0xf0] sm:$0xff] }
 0x1cb   :  { %v746_v2 = vpop.eup %745 }
 0x1cc   :  { %767 = vrcp.f32 %v439_v1  ;;  %v442_v3 = vadd.f32 1.0, %v746_v2 }
 0x1cd   :  { %v748_v4 = vpop.eup %747 }
 0x1ce   :  { %769 = vrcp.f32 %v442_v3  ;;  %v441_v8 = vadd.f32 1.0, %v748_v4 }
 0x1cf   :  { %v750_v9 = vpop.eup %749 }
 0x1d0   :  { %v752_v13 = vpop.eup %751  ;;  %v484_v14 = vmul.f32 %v750_v9, %v472_v5  ;;  %v522_v15 = vmul.f32 %v750_v9, %v510_v6  ;;  %v560_v16 = vmul.f32 %v750_v9, %v548_v7  ;;  %771 = vrcp.f32 %v441_v8  ;;  %v480_v6 = vld [vmem:[#allocation6 + $0x48] sm:$0xff] }
 0x1d1   :  { %v754_v17 = vpop.eup %753  ;;  %v444_v21 = vadd.f32 1.0, %v752_v13  ;;  %v518_v7 = vld [vmem:[#allocation6 + $0xa8] sm:$0xff] }
 0x1d2   :  { %v756_v22 = vpop.eup %755  ;;  %497 = vst.msk [vmem:[%s1065_s4 + $0x8] sm:$0xff] %vm495_vm1, %v484_v14  ;;  %627 = vst.msk [vmem:[%s1065_s4 + $0x68] sm:$0xff] %vm495_vm1, %v522_v15  ;;  %v483_v23 = vmul.f32 %v754_v17, %v471_v10  ;;  %v521_v24 = vmul.f32 %v754_v17, %v509_v11  ;;  %v559_v25 = vmul.f32 %v754_v17, %v547_v12  ;;  %v556_v8 = vld [vmem:[#allocation6 + $0x108] sm:$0xff]  ;;  %v479_v10 = vld [vmem:[#allocation6 + $0x40] sm:$0xff] }
 0x1d3   :  { %639 = vst.msk [vmem:[%s1065_s4 + $0xc8] sm:$0xff] %vm495_vm1, %v560_v16  ;;  %v758_v26 = vpop.eup %757  ;;  %773 = vrcp.f32 %v444_v21  ;;  %v443_v30 = vadd.f32 1.0, %v756_v22  ;;  %v517_v11 = vld [vmem:[#allocation6 + $0xa0] sm:$0xff]  ;;  %v482_v17 = vld [vmem:[#allocation6 + $0x58] sm:$0xff] }
 0x1d4   :  { %v760_v31 = vpop.eup %759  ;;  %496 = vst.msk [vmem:[%s1065_s4] sm:$0xff] %vm495_vm1, %v483_v23  ;;  %626 = vst.msk [vmem:[%s1065_s4 + $0x60] sm:$0xff] %vm495_vm1, %v521_v24  ;;  %v486_v32 = vmul.f32 %v758_v26, %v474_v18  ;;  %v524_v33 = vmul.f32 %v758_v26, %v512_v19  ;;  %v562_v34 = vmul.f32 %v758_v26, %v550_v20  ;;  %v555_v12 = vld [vmem:[#allocation6 + $0x100] sm:$0xff]  ;;  %v520_v18 = vld [vmem:[#allocation6 + $0xb8] sm:$0xff] }
 0x1d5   :  { %638 = vst.msk [vmem:[%s1065_s4 + $0xc0] sm:$0xff] %vm495_vm1, %v559_v25  ;;  %v762_v35 = vpop.eup %761  ;;  %775 = vrcp.f32 %v443_v30  ;;  %v446_v39 = vadd.f32 1.0, %v760_v31  ;;  %v558_v19 = vld [vmem:[#allocation6 + $0x118] sm:$0xff]  ;;  %v481_v24 = vld [vmem:[#allocation6 + $0x50] sm:$0xff] }
 0x1d6   :  { %v764_v40 = vpop.eup %763  ;;  %499 = vst.msk [vmem:[%s1065_s4 + $0x18] sm:$0xff] %vm495_vm1, %v486_v32  ;;  %629 = vst.msk [vmem:[%s1065_s4 + $0x78] sm:$0xff] %vm495_vm1, %v524_v33  ;;  %v485_v41 = vmul.f32 %v762_v35, %v473_v27  ;;  %v523_v42 = vmul.f32 %v762_v35, %v511_v28  ;;  %v561_v43 = vmul.f32 %v762_v35, %v549_v29  ;;  %v519_v25 = vld [vmem:[#allocation6 + $0xb0] sm:$0xff] }
 0x1d7   :  { %641 = vst.msk [vmem:[%s1065_s4 + $0xd8] sm:$0xff] %vm495_vm1, %v562_v34  ;;  %v766_v44 = vpop.eup %765  ;;  %777 = vrcp.f32 %v446_v39  ;;  %v445_v48 = vadd.f32 1.0, %v764_v40  ;;  %v557_v26 = vld [vmem:[#allocation6 + $0x110] sm:$0xff] }
 0x1d8   :  { %498 = vst.msk [vmem:[%s1065_s4 + $0x10] sm:$0xff] %vm495_vm1, %v485_v41  ;;  %628 = vst.msk [vmem:[%s1065_s4 + $0x70] sm:$0xff] %vm495_vm1, %v523_v42  ;;  %v488_v49 = vmul.f32 %v766_v44, %v476_v36  ;;  %v526_v50 = vmul.f32 %v766_v44, %v514_v37  ;;  %v564_v51 = vmul.f32 %v766_v44, %v552_v38 }
 0x1d9   :  { %640 = vst.msk [vmem:[%s1065_s4 + $0xd0] sm:$0xff] %vm495_vm1, %v561_v43  ;;  %v768_v52 = vpop.eup %767  ;;  %779 = vrcp.f32 %v445_v48 }
 0x1da   :  { %501 = vst.msk [vmem:[%s1065_s4 + $0x28] sm:$0xff] %vm495_vm1, %v488_v49  ;;  %631 = vst.msk [vmem:[%s1065_s4 + $0x88] sm:$0xff] %vm495_vm1, %v526_v50  ;;  %v487_v56 = vmul.f32 %v768_v52, %v475_v45  ;;  %v525_v57 = vmul.f32 %v768_v52, %v513_v46  ;;  %v563_v58 = vmul.f32 %v768_v52, %v551_v47 }
 0x1db   :  { %643 = vst.msk [vmem:[%s1065_s4 + $0xe8] sm:$0xff] %vm495_vm1, %v564_v51  ;;  %v770_v59 = vpop.eup %769 }
 0x1dc   :  { %500 = vst.msk [vmem:[%s1065_s4 + $0x20] sm:$0xff] %vm495_vm1, %v487_v56  ;;  %630 = vst.msk [vmem:[%s1065_s4 + $0x80] sm:$0xff] %vm495_vm1, %v525_v57  ;;  %v490_v63 = vmul.f32 %v770_v59, %v478_v53  ;;  %v528_v0 = vmul.f32 %v770_v59, %v516_v54  ;;  %v566_v1 = vmul.f32 %v770_v59, %v554_v55 }
 0x1dd   :  { %642 = vst.msk [vmem:[%s1065_s4 + $0xe0] sm:$0xff] %vm495_vm1, %v563_v58  ;;  %v772_v2 = vpop.eup %771 }
 0x1de   :  { %503 = vst.msk [vmem:[%s1065_s4 + $0x38] sm:$0xff] %vm495_vm1, %v490_v63  ;;  %633 = vst.msk [vmem:[%s1065_s4 + $0x98] sm:$0xff] %vm495_vm1, %v528_v0  ;;  %v489_v3 = vmul.f32 %v772_v2, %v477_v60  ;;  %v527_v4 = vmul.f32 %v772_v2, %v515_v61  ;;  %v565_v5 = vmul.f32 %v772_v2, %v553_v62 }
 0x1df   :  { %645 = vst.msk [vmem:[%s1065_s4 + $0xf8] sm:$0xff] %vm495_vm1, %v566_v1 }
 0x1e0   :  { %v774_v9 = vpop.eup %773  ;;  %502 = vst.msk [vmem:[%s1065_s4 + $0x30] sm:$0xff] %vm495_vm1, %v489_v3  ;;  %632 = vst.msk [vmem:[%s1065_s4 + $0x90] sm:$0xff] %vm495_vm1, %v527_v4 }
 0x1e1   :  { %644 = vst.msk [vmem:[%s1065_s4 + $0xf0] sm:$0xff] %vm495_vm1, %v565_v5  ;;  %v492_v13 = vmul.f32 %v774_v9, %v480_v6  ;;  %v530_v14 = vmul.f32 %v774_v9, %v518_v7  ;;  %v568_v15 = vmul.f32 %v774_v9, %v556_v8 }
 0x1e2   :  { %v776_v16 = vpop.eup %775 }
 0x1e3   :  { %505 = vst.msk [vmem:[%s1065_s4 + $0x48] sm:$0xff] %vm495_vm1, %v492_v13  ;;  %635 = vst.msk [vmem:[%s1065_s4 + $0xa8] sm:$0xff] %vm495_vm1, %v530_v14  ;;  %v491_v20 = vmul.f32 %v776_v16, %v479_v10  ;;  %v529_v21 = vmul.f32 %v776_v16, %v517_v11  ;;  %v567_v22 = vmul.f32 %v776_v16, %v555_v12 }
 0x1e4   :  { %647 = vst.msk [vmem:[%s1065_s4 + $0x108] sm:$0xff] %vm495_vm1, %v568_v15  ;;  %v778_v23 = vpop.eup %777 }
 0x1e5   :  { %504 = vst.msk [vmem:[%s1065_s4 + $0x40] sm:$0xff] %vm495_vm1, %v491_v20  ;;  %634 = vst.msk [vmem:[%s1065_s4 + $0xa0] sm:$0xff] %vm495_vm1, %v529_v21  ;;  %v494_v27 = vmul.f32 %v778_v23, %v482_v17  ;;  %v532_v28 = vmul.f32 %v778_v23, %v520_v18  ;;  %v570_v29 = vmul.f32 %v778_v23, %v558_v19 }
 0x1e6   :  { %646 = vst.msk [vmem:[%s1065_s4 + $0x100] sm:$0xff] %vm495_vm1, %v567_v22  ;;  %v780_v30 = vpop.eup %779 }
 0x1e7   :  { %507 = vst.msk [vmem:[%s1065_s4 + $0x58] sm:$0xff] %vm495_vm1, %v494_v27  ;;  %637 = vst.msk [vmem:[%s1065_s4 + $0xb8] sm:$0xff] %vm495_vm1, %v532_v28  ;;  %v493_v31 = vmul.f32 %v780_v30, %v481_v24  ;;  %v531_v32 = vmul.f32 %v780_v30, %v519_v25  ;;  %v569_v33 = vmul.f32 %v780_v30, %v557_v26 }
 0x1e8   :  { %649 = vst.msk [vmem:[%s1065_s4 + $0x118] sm:$0xff] %vm495_vm1, %v570_v29 }
 0x1e9   :  { %506 = vst.msk [vmem:[%s1065_s4 + $0x50] sm:$0xff] %vm495_vm1, %v493_v31  ;;  %636 = vst.msk [vmem:[%s1065_s4 + $0xb0] sm:$0xff] %vm495_vm1, %v531_v32 }
 0x1ea   :  { %648 = vst.msk [vmem:[%s1065_s4 + $0x110] sm:$0xff] %vm495_vm1, %v569_v33 }
 0x1eb   :  { %588 = vsyncpa [#allocation3], 1 }
 0x1ec   :  { %589 = vsyncpa [#allocation5], 1 }

// kernel: _forward.5
= control target key start
LH: loop header
LB: loop body
LE: loop exit
PB: predicated region body
PF: predicated region fallthrough
CT: control target
= control target key end

     0   :  { %vm910_vm0 = vcmask 1040384   ;;  %s3826_s1 = inlined_call_operand.vmem [shape: f32[128,128], index: 1, kind: input, shape index: {}]   ;;  %s3827_s0 = inlined_call_operand.vmem [shape: f32[4,169,128], index: 0, kind: input, shape index: {}]   ;;  %s3828_s2 = inlined_call_operand.vmem [shape: f32[1,128], index: 2, kind: input, shape index: {}]   ;;  %s3829_s3 = inlined_call_operand.vmem [shape: f32[1,128], index: 3, kind: input, shape index: {}]   ;;  %s3830_s4 = inlined_call_operand.vmem [shape: f32[169,128], index: 4, kind: output, shape index: {}]  }
   0x1   :  { %v1989_v0 = vld [vmem:[%s3826_s1 + $0x78] sm:$0xff]  ;;  %v1994_v1 = vld [vmem:[%s3826_s1 + $0x70] sm:$0xff]  ;;  %v2003_v2 = vld [vmem:[%s3826_s1 + $0x68] sm:$0xff] }
   0x2   :  { %1699 = vmatprep.subr.mxu0 %v1989_v0  ;;  %1764 = vmatprep.subr.mxu1 %v1989_v0  ;;  %v2012_v3 = vld [vmem:[%s3826_s1 + $0x60] sm:$0xff]  ;;  %v2021_v4 = vld [vmem:[%s3826_s1 + $0x58] sm:$0xff]  ;;  %v2030_v5 = vld [vmem:[%s3826_s1 + $0x50] sm:$0xff] }
   0x3   :  { %1700 = vmatpush3.msra.mxu0 %v1989_v0  ;;  %1765 = vmatpush3.msra.mxu1 %v1989_v0  ;;  %v2039_v6 = vld [vmem:[%s3826_s1 + $0x48] sm:$0xff]  ;;  %v2048_v7 = vld [vmem:[%s3826_s1 + $0x40] sm:$0xff]  ;;  %v2057_v8 = vld [vmem:[%s3826_s1 + $0x38] sm:$0xff] }
   0x4   :  { %1701 = vmatprep.subr.mxu0 %v1994_v1  ;;  %1766 = vmatprep.subr.mxu1 %v1994_v1  ;;  %v2066_v9 = vld [vmem:[%s3826_s1 + $0x30] sm:$0xff]  ;;  %v2075_v10 = vld [vmem:[%s3826_s1 + $0x28] sm:$0xff]  ;;  %v2084_v11 = vld [vmem:[%s3826_s1 + $0x20] sm:$0xff] }
   0x5   :  { %1702 = vmatpush3.msra.mxu0 %v1994_v1  ;;  %1767 = vmatpush3.msra.mxu1 %v1994_v1  ;;  %v2093_v12 = vld [vmem:[%s3826_s1 + $0x18] sm:$0xff]  ;;  %v2102_v13 = vld [vmem:[%s3826_s1 + $0x10] sm:$0xff]  ;;  %v2111_v14 = vld [vmem:[%s3826_s1 + $0x8] sm:$0xff] }
   0x6   :  { %1703 = vmatprep.subr.mxu0 %v2003_v2  ;;  %1768 = vmatprep.subr.mxu1 %v2003_v2  ;;  %v2120_v15 = vld [vmem:[%s3826_s1] sm:$0xff]  ;;  %v1481_v17 = vld [vmem:[%s3827_s0 + $0xb0] sm:$0xff]  ;;  %v34_v18 = vld [vmem:[%s3827_s0 + $0x8] sm:$0xff] }
   0x7   :  { %1704 = vmatpush3.msra.mxu0 %v2003_v2  ;;  %1769 = vmatpush3.msra.mxu1 %v2003_v2  ;;  %v33_v16 = vld [vmem:[%s3827_s0] sm:$0xff]  ;;  %v1482_v19 = vld [vmem:[%s3827_s0 + $0xb8] sm:$0xff]  ;;  %v35_v20 = vld [vmem:[%s3827_s0 + $0x10] sm:$0xff] }
   0x8   :  { %1705 = vmatprep.subr.mxu0 %v2012_v3  ;;  %1770 = vmatprep.subr.mxu1 %v2012_v3  ;;  %v1483_v21 = vld [vmem:[%s3827_s0 + $0xc0] sm:$0xff]  ;;  %v36_v22 = vld [vmem:[%s3827_s0 + $0x18] sm:$0xff]  ;;  %v1484_v23 = vld [vmem:[%s3827_s0 + $0xc8] sm:$0xff] }
   0x9   :  { %1706 = vmatpush3.msra.mxu0 %v2012_v3  ;;  %1771 = vmatpush3.msra.mxu1 %v2012_v3  ;;  %v37_v24 = vld [vmem:[%s3827_s0 + $0x20] sm:$0xff]  ;;  %v1485_v25 = vld [vmem:[%s3827_s0 + $0xd0] sm:$0xff]  ;;  %v38_v26 = vld [vmem:[%s3827_s0 + $0x28] sm:$0xff] }
   0xa   :  { %1707 = vmatprep.subr.mxu0 %v2021_v4  ;;  %1772 = vmatprep.subr.mxu1 %v2021_v4  ;;  %v1486_v27 = vld [vmem:[%s3827_s0 + $0xd8] sm:$0xff]  ;;  %v39_v28 = vld [vmem:[%s3827_s0 + $0x30] sm:$0xff]  ;;  %v1487_v29 = vld [vmem:[%s3827_s0 + $0xe0] sm:$0xff] }
   0xb   :  { %1708 = vmatpush3.msra.mxu0 %v2021_v4  ;;  %1773 = vmatpush3.msra.mxu1 %v2021_v4  ;;  %v40_v30 = vld [vmem:[%s3827_s0 + $0x38] sm:$0xff]  ;;  %v1488_v31 = vld [vmem:[%s3827_s0 + $0xe8] sm:$0xff]  ;;  %v41_v32 = vld [vmem:[%s3827_s0 + $0x40] sm:$0xff] }
   0xc   :  { %1709 = vmatprep.subr.mxu0 %v2030_v5  ;;  %1774 = vmatprep.subr.mxu1 %v2030_v5  ;;  %v1489_v33 = vld [vmem:[%s3827_s0 + $0xf0] sm:$0xff]  ;;  %v42_v34 = vld [vmem:[%s3827_s0 + $0x48] sm:$0xff]  ;;  %v1490_v35 = vld [vmem:[%s3827_s0 + $0xf8] sm:$0xff] }
   0xd   :  { %1710 = vmatpush3.msra.mxu0 %v2030_v5  ;;  %1775 = vmatpush3.msra.mxu1 %v2030_v5  ;;  %v43_v36 = vld [vmem:[%s3827_s0 + $0x50] sm:$0xff]  ;;  %v1491_v37 = vld [vmem:[%s3827_s0 + $0x100] sm:$0xff]  ;;  %v44_v38 = vld [vmem:[%s3827_s0 + $0x58] sm:$0xff] }
   0xe   :  { %1711 = vmatprep.subr.mxu0 %v2039_v6  ;;  %1776 = vmatprep.subr.mxu1 %v2039_v6  ;;  %v1492_v39 = vld [vmem:[%s3827_s0 + $0x108] sm:$0xff]  ;;  %v45_v40 = vld [vmem:[%s3827_s0 + $0x60] sm:$0xff]  ;;  %v1493_v41 = vld [vmem:[%s3827_s0 + $0x110] sm:$0xff] }
   0xf   :  { %1712 = vmatpush3.msra.mxu0 %v2039_v6  ;;  %1777 = vmatpush3.msra.mxu1 %v2039_v6  ;;  %v46_v42 = vld [vmem:[%s3827_s0 + $0x68] sm:$0xff]  ;;  %v1494_v43 = vld [vmem:[%s3827_s0 + $0x118] sm:$0xff]  ;;  %v47_v44 = vld [vmem:[%s3827_s0 + $0x70] sm:$0xff] }
  0x10   :  { %1713 = vmatprep.subr.mxu0 %v2048_v7  ;;  %1778 = vmatprep.subr.mxu1 %v2048_v7  ;;  %v1495_v45 = vld [vmem:[%s3827_s0 + $0x120] sm:$0xff]  ;;  %v48_v46 = vld [vmem:[%s3827_s0 + $0x78] sm:$0xff]  ;;  %v1496_v47 = vld [vmem:[%s3827_s0 + $0x128] sm:$0xff] }
  0x11   :  { %1714 = vmatpush3.msra.mxu0 %v2048_v7  ;;  %1779 = vmatpush3.msra.mxu1 %v2048_v7  ;;  %v49_v48 = vld [vmem:[%s3827_s0 + $0x80] sm:$0xff]  ;;  %v1497_v49 = vld [vmem:[%s3827_s0 + $0x130] sm:$0xff]  ;;  %v50_v50 = vld [vmem:[%s3827_s0 + $0x88] sm:$0xff] }
  0x12   :  { %1715 = vmatprep.subr.mxu0 %v2057_v8  ;;  %1780 = vmatprep.subr.mxu1 %v2057_v8  ;;  %v1498_v51 = vld [vmem:[%s3827_s0 + $0x138] sm:$0xff]  ;;  %v51_v52 = vld [vmem:[%s3827_s0 + $0x90] sm:$0xff]  ;;  %v1499_v53 = vld [vmem:[%s3827_s0 + $0x140] sm:$0xff] }
  0x13   :  { %1716 = vmatpush3.msra.mxu0 %v2057_v8  ;;  %1781 = vmatpush3.msra.mxu1 %v2057_v8  ;;  %v52_v54 = vld [vmem:[%s3827_s0 + $0x98] sm:$0xff]  ;;  %v1500_v55 = vld [vmem:[%s3827_s0 + $0x148] sm:$0xff]  ;;  %v53_v56 = vld [vmem:[%s3827_s0 + $0xa0] sm:$0xff] }
  0x14   :  { %1717 = vmatprep.subr.mxu0 %v2066_v9  ;;  %1782 = vmatprep.subr.mxu1 %v2066_v9  ;;  %v1501_v57 = vld [vmem:[%s3827_s0 + $0x150] sm:$0xff]  ;;  %v54_v58 = vld [vmem:[%s3827_s0 + $0xa8] sm:$0x1]  ;;  %v1502_v59 = vld [vmem:[%s3827_s0 + $0x158] sm:$0x1] }
  0x15   :  { %1718 = vmatpush3.msra.mxu0 %v2066_v9  ;;  %1783 = vmatpush3.msra.mxu1 %v2066_v9  ;;  %v1503_v60 = vld [vmem:[%s3827_s0 + $0x160] sm:$0xff]  ;;  %v1504_v61 = vld [vmem:[%s3827_s0 + $0x168] sm:$0xff]  ;;  %v1525_v62 = vld [vmem:[%s3827_s0 + $0x210] sm:$0xff] }
  0x16   :  { %1719 = vmatprep.subr.mxu0 %v2075_v10  ;;  %1784 = vmatprep.subr.mxu1 %v2075_v10  ;;  %v1505_v63 = vld [vmem:[%s3827_s0 + $0x170] sm:$0xff] }
  0x17   :  { %1720 = vmatpush3.msra.mxu0 %v2075_v10  ;;  %1785 = vmatpush3.msra.mxu1 %v2075_v10 }
  0x18   :  { %1721 = vmatprep.subr.mxu0 %v2084_v11  ;;  %1786 = vmatprep.subr.mxu1 %v2084_v11 }
  0x19   :  { %1722 = vmatpush3.msra.mxu0 %v2084_v11  ;;  %1787 = vmatpush3.msra.mxu1 %v2084_v11 }
  0x1a   :  { %1723 = vmatprep.subr.mxu0 %v2093_v12  ;;  %1788 = vmatprep.subr.mxu1 %v2093_v12 }
  0x1b   :  { %1724 = vmatpush3.msra.mxu0 %v2093_v12  ;;  %1789 = vmatpush3.msra.mxu1 %v2093_v12 }
  0x1c   :  { %1725 = vmatprep.subr.mxu0 %v2102_v13  ;;  %1790 = vmatprep.subr.mxu1 %v2102_v13 }
  0x1d   :  { %1726 = vmatpush3.msra.mxu0 %v2102_v13  ;;  %1791 = vmatpush3.msra.mxu1 %v2102_v13 }
  0x1e   :  { %1727 = vmatprep.subr.mxu0 %v2111_v14  ;;  %1792 = vmatprep.subr.mxu1 %v2111_v14 }
  0x1f   :  { %1728 = vmatpush3.msra.mxu0 %v2111_v14  ;;  %1793 = vmatpush3.msra.mxu1 %v2111_v14 }
  0x20   :  { %1729 = vmatprep.subr.mxu0 %v2120_v15  ;;  %1794 = vmatprep.subr.mxu1 %v2120_v15 }
  0x21   :  { %1730 = vmatpush3.msra.mxu0 %v2120_v15  ;;  %1731 = vmatprep.mubr.f32.mxu0 %v33_v16  ;;  %v1534_v16 = vld [vmem:[%s3827_s0 + $0x258] sm:$0xff] }
  0x22   :  { %1795 = vmatpush3.msra.mxu1 %v2120_v15  ;;  %1796 = vmatprep.mubr.f32.mxu1 %v1481_v17  ;;  %v1535_v17 = vld [vmem:[%s3827_s0 + $0x260] sm:$0xff] }
  0x23   :  { %1732 = vmatmul.mubr.f32.vlgmr.msra.gmra.mxu0 %v34_v18  ;;  %1797 = vmatmul.mubr.f32.vlgmr.msra.gmra.mxu1 %v1482_v19  ;;  %v1514_v18 = vld [vmem:[%s3827_s0 + $0x1b8] sm:$0xff]  ;;  %v1515_v19 = vld [vmem:[%s3827_s0 + $0x1c0] sm:$0xff] }
  0x24   :  { %1829 = vmatprep.subr.mxu0 %v1989_v0  ;;  %1894 = vmatprep.subr.mxu1 %v1989_v0 }
  0x25   :  { %1830 = vmatpush3.msra.mxu0 %v1989_v0  ;;  %1734 = vmatprep.mubr.f32.mxu0 %v35_v20  ;;  %v1536_v20 = vld [vmem:[%s3827_s0 + $0x268] sm:$0xff] }
  0x26   :  { %1799 = vmatprep.mubr.f32.mxu1 %v1483_v21  ;;  %1831 = vmatprep.subr.mxu0 %v1994_v1  ;;  %v1537_v21 = vld [vmem:[%s3827_s0 + $0x270] sm:$0xff] }
  0x27   :  { %1895 = vmatpush3.msra.mxu1 %v1989_v0  ;;  %1735 = vmatmul.mubr.f32.gmra.mxu0 %v36_v22  ;;  %v1526_v0 = vld [vmem:[%s3827_s0 + $0x218] sm:$0xff]  ;;  %v1516_v22 = vld [vmem:[%s3827_s0 + $0x1c8] sm:$0xff] }
  0x28   :  { %1800 = vmatmul.mubr.f32.gmra.mxu1 %v1484_v23  ;;  %1832 = vmatpush3.msra.mxu0 %v1994_v1  ;;  %v1517_v23 = vld [vmem:[%s3827_s0 + $0x1d0] sm:$0xff] }
  0x29   :  { %1896 = vmatprep.subr.mxu1 %v1994_v1  ;;  %1833 = vmatprep.subr.mxu0 %v2003_v2 }
  0x2a   :  { %1897 = vmatpush3.msra.mxu1 %v1994_v1  ;;  %1737 = vmatprep.mubr.f32.mxu0 %v37_v24  ;;  %v1527_v1 = vld [vmem:[%s3827_s0 + $0x220] sm:$0xff]  ;;  %v1538_v24 = vld [vmem:[%s3827_s0 + $0x278] sm:$0xff] }
  0x2b   :  { %1802 = vmatprep.mubr.f32.mxu1 %v1485_v25  ;;  %1834 = vmatpush3.msra.mxu0 %v2003_v2  ;;  %v1539_v25 = vld [vmem:[%s3827_s0 + $0x280] sm:$0xff] }
  0x2c   :  { %1738 = vmatmul.mubr.f32.gmra.mxu0 %v38_v26  ;;  %1803 = vmatmul.mubr.f32.gmra.mxu1 %v1486_v27  ;;  %v1518_v26 = vld [vmem:[%s3827_s0 + $0x1d8] sm:$0xff]  ;;  %v1519_v27 = vld [vmem:[%s3827_s0 + $0x1e0] sm:$0xff] }
  0x2d   :  { %1898 = vmatprep.subr.mxu1 %v2003_v2  ;;  %1835 = vmatprep.subr.mxu0 %v2012_v3 }
  0x2e   :  { %1899 = vmatpush3.msra.mxu1 %v2003_v2  ;;  %1836 = vmatpush3.msra.mxu0 %v2012_v3  ;;  %v1506_v2 = vld [vmem:[%s3827_s0 + $0x178] sm:$0xff] }
  0x2f   :  { %1740 = vmatprep.mubr.f32.mxu0 %v39_v28  ;;  %1805 = vmatprep.mubr.f32.mxu1 %v1487_v29  ;;  %v1540_v28 = vld [vmem:[%s3827_s0 + $0x288] sm:$0xff]  ;;  %v1541_v29 = vld [vmem:[%s3827_s0 + $0x290] sm:$0xff] }
  0x30   :  { %1837 = vmatprep.subr.mxu0 %v2021_v4  ;;  %1900 = vmatprep.subr.mxu1 %v2012_v3 }
  0x31   :  { %1741 = vmatmul.mubr.f32.gmra.mxu0 %v40_v30  ;;  %1806 = vmatmul.mubr.f32.gmra.mxu1 %v1488_v31  ;;  %v1520_v30 = vld [vmem:[%s3827_s0 + $0x1e8] sm:$0xff]  ;;  %v1521_v31 = vld [vmem:[%s3827_s0 + $0x1f0] sm:$0xff] }
  0x32   :  { %1838 = vmatpush3.msra.mxu0 %v2021_v4  ;;  %1901 = vmatpush3.msra.mxu1 %v2012_v3  ;;  %v1507_v3 = vld [vmem:[%s3827_s0 + $0x180] sm:$0xff] }
  0x33   :  { %1902 = vmatprep.subr.mxu1 %v2021_v4  ;;  %1839 = vmatprep.subr.mxu0 %v2030_v5 }
  0x34   :  { %1903 = vmatpush3.msra.mxu1 %v2021_v4  ;;  %1743 = vmatprep.mubr.f32.mxu0 %v41_v32  ;;  %v1528_v4 = vld [vmem:[%s3827_s0 + $0x228] sm:$0xff]  ;;  %v1542_v32 = vld [vmem:[%s3827_s0 + $0x298] sm:$0xff] }
  0x35   :  { %1808 = vmatprep.mubr.f32.mxu1 %v1489_v33  ;;  %1840 = vmatpush3.msra.mxu0 %v2030_v5  ;;  %v1543_v33 = vld [vmem:[%s3827_s0 + $0x2a0] sm:$0xff] }
  0x36   :  { %1744 = vmatmul.mubr.f32.gmra.mxu0 %v42_v34  ;;  %1809 = vmatmul.mubr.f32.gmra.mxu1 %v1490_v35  ;;  %v1522_v34 = vld [vmem:[%s3827_s0 + $0x1f8] sm:$0xff]  ;;  %v1523_v35 = vld [vmem:[%s3827_s0 + $0x200] sm:$0xff] }
  0x37   :  { %1904 = vmatprep.subr.mxu1 %v2030_v5  ;;  %1841 = vmatprep.subr.mxu0 %v2039_v6 }
  0x38   :  { %1905 = vmatpush3.msra.mxu1 %v2030_v5  ;;  %1842 = vmatpush3.msra.mxu0 %v2039_v6  ;;  %v1529_v5 = vld [vmem:[%s3827_s0 + $0x230] sm:$0xff] }
  0x39   :  { %1746 = vmatprep.mubr.f32.mxu0 %v43_v36  ;;  %1811 = vmatprep.mubr.f32.mxu1 %v1491_v37  ;;  %v1544_v36 = vld [vmem:[%s3827_s0 + $0x2a8] sm:$0xff]  ;;  %v1545_v37 = vld [vmem:[%s3827_s0 + $0x2b0] sm:$0xff] }
  0x3a   :  { %1906 = vmatprep.subr.mxu1 %v2039_v6  ;;  %1747 = vmatmul.mubr.f32.gmra.mxu0 %v44_v38  ;;  %v1524_v38 = vld [vmem:[%s3827_s0 + $0x208] sm:$0x1] }
  0x3b   :  { %1812 = vmatmul.mubr.f32.gmra.mxu1 %v1492_v39  ;;  %1843 = vmatprep.subr.mxu0 %v2048_v7  ;;  %v1546_v39 = vld [vmem:[%s3827_s0 + $0x2b8] sm:$0x1] }
  0x3c   :  { %1907 = vmatpush3.msra.mxu1 %v2039_v6  ;;  %1844 = vmatpush3.msra.mxu0 %v2048_v7  ;;  %v1508_v6 = vld [vmem:[%s3827_s0 + $0x188] sm:$0xff] }
  0x3d   :  { %1845 = vmatprep.subr.mxu0 %v2057_v8  ;;  %1908 = vmatprep.subr.mxu1 %v2048_v7 }
  0x3e   :  { %1749 = vmatprep.mubr.f32.mxu0 %v45_v40  ;;  %1814 = vmatprep.mubr.f32.mxu1 %v1493_v41 }
  0x3f   :  { %1846 = vmatpush3.msra.mxu0 %v2057_v8  ;;  %1909 = vmatpush3.msra.mxu1 %v2048_v7  ;;  %v1509_v7 = vld [vmem:[%s3827_s0 + $0x190] sm:$0xff] }
  0x40   :  { %1750 = vmatmul.mubr.f32.gmra.mxu0 %v46_v42  ;;  %1815 = vmatmul.mubr.f32.gmra.mxu1 %v1494_v43 }
  0x41   :  { %1910 = vmatprep.subr.mxu1 %v2057_v8  ;;  %1847 = vmatprep.subr.mxu0 %v2066_v9 }
  0x42   :  { %1911 = vmatpush3.msra.mxu1 %v2057_v8  ;;  %1848 = vmatpush3.msra.mxu0 %v2066_v9  ;;  %v1530_v8 = vld [vmem:[%s3827_s0 + $0x238] sm:$0xff] }
  0x43   :  { %1752 = vmatprep.mubr.f32.mxu0 %v47_v44  ;;  %1817 = vmatprep.mubr.f32.mxu1 %v1495_v45 }
  0x44   :  { %1912 = vmatprep.subr.mxu1 %v2066_v9  ;;  %1753 = vmatmul.mubr.f32.gmra.mxu0 %v48_v46 }
  0x45   :  { %1818 = vmatmul.mubr.f32.gmra.mxu1 %v1496_v47  ;;  %1849 = vmatprep.subr.mxu0 %v2075_v10 }
  0x46   :  { %1913 = vmatpush3.msra.mxu1 %v2066_v9  ;;  %1850 = vmatpush3.msra.mxu0 %v2075_v10  ;;  %v1531_v9 = vld [vmem:[%s3827_s0 + $0x240] sm:$0xff] }
  0x47   :  { %1914 = vmatprep.subr.mxu1 %v2075_v10  ;;  %1755 = vmatprep.mubr.f32.mxu0 %v49_v48 }
  0x48   :  { %1820 = vmatprep.mubr.f32.mxu1 %v1497_v49  ;;  %1851 = vmatprep.subr.mxu0 %v2084_v11 }
  0x49   :  { %1915 = vmatpush3.msra.mxu1 %v2075_v10  ;;  %1756 = vmatmul.mubr.f32.gmra.mxu0 %v50_v50  ;;  %v1510_v10 = vld [vmem:[%s3827_s0 + $0x198] sm:$0xff] }
  0x4a   :  { %1821 = vmatmul.mubr.f32.gmra.mxu1 %v1498_v51  ;;  %1852 = vmatpush3.msra.mxu0 %v2084_v11 }
  0x4b   :  { %1853 = vmatprep.subr.mxu0 %v2093_v12  ;;  %1916 = vmatprep.subr.mxu1 %v2084_v11 }
  0x4c   :  { %1854 = vmatpush3.msra.mxu0 %v2093_v12  ;;  %1917 = vmatpush3.msra.mxu1 %v2084_v11  ;;  %v1511_v11 = vld [vmem:[%s3827_s0 + $0x1a0] sm:$0xff] }
  0x4d   :  { %1758 = vmatprep.mubr.f32.mxu0 %v51_v52  ;;  %1823 = vmatprep.mubr.f32.mxu1 %v1499_v53 }
  0x4e   :  { %1918 = vmatprep.subr.mxu1 %v2093_v12  ;;  %1759 = vmatmul.mubr.f32.gmra.mxu0 %v52_v54 }
  0x4f   :  { %1824 = vmatmul.mubr.f32.gmra.mxu1 %v1500_v55  ;;  %1855 = vmatprep.subr.mxu0 %v2102_v13 }
  0x50   :  { %1919 = vmatpush3.msra.mxu1 %v2093_v12  ;;  %1856 = vmatpush3.msra.mxu0 %v2102_v13  ;;  %v1532_v12 = vld [vmem:[%s3827_s0 + $0x248] sm:$0xff] }
  0x51   :  { %1920 = vmatprep.subr.mxu1 %v2102_v13  ;;  %1761 = vmatprep.mubr.f32.mxu0 %v53_v56 }
  0x52   :  { %1826 = vmatprep.mubr.f32.mxu1 %v1501_v57  ;;  %1857 = vmatprep.subr.mxu0 %v2111_v14 }
  0x53   :  { %1921 = vmatpush3.msra.mxu1 %v2102_v13  ;;  %1762 = vmatmul.mubr.f32.gmra.mxu0 %v54_v58  ;;  %v1533_v13 = vld [vmem:[%s3827_s0 + $0x250] sm:$0xff] }
  0x54   :  { %1827 = vmatmul.mubr.f32.gmra.mxu1 %v1502_v59  ;;  %1858 = vmatpush3.msra.mxu0 %v2111_v14 }
  0x55   :  { %1922 = vmatprep.subr.mxu1 %v2111_v14  ;;  %1859 = vmatprep.subr.mxu0 %v2120_v15 }
  0x56   :  { %1923 = vmatpush3.msra.mxu1 %v2111_v14  ;;  %1860 = vmatpush3.msra.mxu0 %v2120_v15  ;;  %v1512_v14 = vld [vmem:[%s3827_s0 + $0x1a8] sm:$0xff] }
  0x57   :  { %1861 = vmatprep.mubr.f32.mxu0 %v1503_v60  ;;  %1924 = vmatprep.subr.mxu1 %v2120_v15 }
  0x58   :  { %1862 = vmatmul.mubr.f32.vlgmr.msra.gmra.mxu0 %v1504_v61  ;;  %1925 = vmatpush3.msra.mxu1 %v2120_v15  ;;  %v1513_v15 = vld [vmem:[%s3827_s0 + $0x1b0] sm:$0xff] }
  0x59   :  { %1926 = vmatprep.mubr.f32.mxu1 %v1525_v62  ;;  %1864 = vmatprep.mubr.f32.mxu0 %v1505_v63 }
  0x5a   :  { %1927 = vmatmul.mubr.f32.vlgmr.msra.gmra.mxu1 %v1526_v0 }
  0x5b   :  { %1929 = vmatprep.mubr.f32.mxu1 %v1527_v1 }
  0x5c   :  { %1865 = vmatmul.mubr.f32.gmra.mxu0 %v1506_v2 }
  0x5d   :  { %1867 = vmatprep.mubr.f32.mxu0 %v1507_v3 }
  0x5e   :  { %1930 = vmatmul.mubr.f32.gmra.mxu1 %v1528_v4 }
  0x5f   :  { %1932 = vmatprep.mubr.f32.mxu1 %v1529_v5 }
  0x60   :  { %1868 = vmatmul.mubr.f32.gmra.mxu0 %v1508_v6 }
  0x61   :  { %1870 = vmatprep.mubr.f32.mxu0 %v1509_v7 }
  0x62   :  { %1933 = vmatmul.mubr.f32.gmra.mxu1 %v1530_v8 }
  0x63   :  { %1935 = vmatprep.mubr.f32.mxu1 %v1531_v9 }
  0x64   :  { %1871 = vmatmul.mubr.f32.gmra.mxu0 %v1510_v10 }
  0x65   :  { %1873 = vmatprep.mubr.f32.mxu0 %v1511_v11 }
  0x66   :  { %1936 = vmatmul.mubr.f32.gmra.mxu1 %v1532_v12 }
  0x67   :  { %1938 = vmatprep.mubr.f32.mxu1 %v1533_v13 }
  0x68   :  { %1874 = vmatmul.mubr.f32.gmra.mxu0 %v1512_v14 }
  0x69   :  { %1876 = vmatprep.mubr.f32.mxu0 %v1513_v15 }
  0x6a   :  { %1939 = vmatmul.mubr.f32.gmra.mxu1 %v1534_v16 }
  0x6b   :  { %1941 = vmatprep.mubr.f32.mxu1 %v1535_v17 }
  0x6c   :  { %1877 = vmatmul.mubr.f32.gmra.mxu0 %v1514_v18 }
  0x6d   :  { %1879 = vmatprep.mubr.f32.mxu0 %v1515_v19 }
  0x6e   :  { %1942 = vmatmul.mubr.f32.gmra.mxu1 %v1536_v20 }
  0x6f   :  { %1944 = vmatprep.mubr.f32.mxu1 %v1537_v21 }
  0x70   :  { %1880 = vmatmul.mubr.f32.gmra.mxu0 %v1516_v22 }
  0x71   :  { %1882 = vmatprep.mubr.f32.mxu0 %v1517_v23 }
  0x72   :  { %1945 = vmatmul.mubr.f32.gmra.mxu1 %v1538_v24 }
  0x73   :  { %1947 = vmatprep.mubr.f32.mxu1 %v1539_v25 }
  0x74   :  { %1883 = vmatmul.mubr.f32.gmra.mxu0 %v1518_v26 }
  0x75   :  { %1885 = vmatprep.mubr.f32.mxu0 %v1519_v27 }
  0x76   :  { %1948 = vmatmul.mubr.f32.gmra.mxu1 %v1540_v28 }
  0x77   :  { %1950 = vmatprep.mubr.f32.mxu1 %v1541_v29 }
  0x78   :  { %1886 = vmatmul.mubr.f32.gmra.mxu0 %v1520_v30 }
  0x79   :  { %1888 = vmatprep.mubr.f32.mxu0 %v1521_v31 }
  0x7a   :  { %1951 = vmatmul.mubr.f32.gmra.mxu1 %v1542_v32 }
  0x7b   :  { %1953 = vmatprep.mubr.f32.mxu1 %v1543_v33 }
  0x7c   :  { %1889 = vmatmul.mubr.f32.gmra.mxu0 %v1522_v34 }
  0x7d   :  { %1891 = vmatprep.mubr.f32.mxu0 %v1523_v35 }
  0x7e   :  { %1954 = vmatmul.mubr.f32.gmra.mxu1 %v1544_v36 }
  0x7f   :  { %1956 = vmatprep.mubr.f32.mxu1 %v1545_v37 }
  0x80   :  { %1892 = vmatmul.mubr.f32.gmra.mxu0 %v1524_v38 }
  0x82   :  { %1957 = vmatmul.mubr.f32.gmra.mxu1 %v1546_v39 }
  0xe3   :  { %v2458_v40 = vpop.f32.mrf.mxu0  ;;  %v2460_v41 = vpop.f32.mrf.mxu1 }
  0xe4   :  { %3927 = vst [vmem:[#allocation2_spill] sm:$0xff] %v2458_v40  ;;  %3928 = vst [vmem:[#allocation3_spill] sm:$0xff] %v2460_v41  ;;  %v920_v6 = vmul.f32 %v2458_v40, %v2458_v40  ;;  %v942_v7 = vmul.f32 %v2460_v41, %v2460_v41  ;;  %v2550_v21 = vadd.f32 %v2460_v41, %v2458_v40 }
  0xe5   :  { %v2462_v42 = vpop.f32.mrf.mxu0  ;;  %v2464_v43 = vpop.f32.mrf.mxu1 }
  0xe6   :  { %3929 = vst [vmem:[#allocation4_spill] sm:$0xff] %v2464_v43  ;;  %v919_v8 = vmul.f32 %v2462_v42, %v2462_v42  ;;  %v941_v9 = vmul.f32 %v2464_v43, %v2464_v43  ;;  %v2552_v22 = vadd.f32 %v942_v7, %v920_v6  ;;  %v2556_v23 = vadd.f32 %v2464_v43, %v2462_v42 }
  0xe7   :  { %v2466_v44 = vpop.f32.mrf.mxu0 }
  0xe8   :  { %3930 = vst [vmem:[#allocation5_spill] sm:$0xff] %v2466_v44  ;;  %v2468_v45 = vpop.f32.mrf.mxu1  ;;  %v922_v11 = vmul.f32 %v2466_v44, %v2466_v44  ;;  %v2558_v24 = vadd.f32 %v941_v9, %v919_v8 }
  0xe9   :  { %3931 = vst [vmem:[#allocation6_spill] sm:$0xff] %v2468_v45  ;;  %v2470_v46 = vpop.f32.mrf.mxu0  ;;  %v944_v12 = vmul.f32 %v2468_v45, %v2468_v45  ;;  %v2564_v26 = vadd.f32 %v2468_v45, %v2466_v44 }
  0xea   :  { %3932 = vst [vmem:[#allocation7_spill] sm:$0xff] %v2470_v46  ;;  %v2472_v47 = vpop.f32.mrf.mxu1  ;;  %v921_v14 = vmul.f32 %v2470_v46, %v2470_v46 }
  0xeb   :  { %3933 = vst [vmem:[#allocation8_spill] sm:$0xff] %v2472_v47  ;;  %v943_v15 = vmul.f32 %v2472_v47, %v2472_v47  ;;  %v2566_v27 = vadd.f32 %v944_v12, %v922_v11  ;;  %v2576_v31 = vadd.f32 %v2472_v47, %v2470_v46 }
  0xec   :  { %v2474_v48 = vpop.f32.mrf.mxu0  ;;  %v2476_v49 = vpop.f32.mrf.mxu1 }
  0xed   :  { %3934 = vst [vmem:[#allocation9_spill] sm:$0xff] %v2474_v48  ;;  %3935 = vst [vmem:[#allocation10_spill] sm:$0xff] %v2476_v49  ;;  %v924_v16 = vmul.f32 %v2474_v48, %v2474_v48  ;;  %v946_v17 = vmul.f32 %v2476_v49, %v2476_v49  ;;  %v2578_v32 = vadd.f32 %v943_v15, %v921_v14 }
  0xee   :  { %v2478_v50 = vpop.f32.mrf.mxu0  ;;  %v2480_v51 = vpop.f32.mrf.mxu1  ;;  %v2588_v36 = vadd.f32 %v2476_v49, %v2474_v48 }
  0xef   :  { %3936 = vst [vmem:[#allocation11_spill] sm:$0xff] %v2478_v50  ;;  %3937 = vst [vmem:[#allocation12_spill] sm:$0xff] %v2480_v51  ;;  %v923_v18 = vmul.f32 %v2478_v50, %v2478_v50  ;;  %v945_v19 = vmul.f32 %v2480_v51, %v2480_v51  ;;  %v2590_v37 = vadd.f32 %v946_v17, %v924_v16 }
  0xf0   :  { %v2594_v38 = vadd.f32 %v2480_v51, %v2478_v50 }
  0xf1   :  { %v2482_v52 = vpop.f32.mrf.mxu0  ;;  %v2484_v53 = vpop.f32.mrf.mxu1  ;;  %v2596_v39 = vadd.f32 %v945_v19, %v923_v18 }
  0xf2   :  { %3938 = vst [vmem:[#allocation13_spill] sm:$0xff] %v2482_v52  ;;  %3939 = vst [vmem:[#allocation14_spill] sm:$0xff] %v2484_v53  ;;  %v926_v28 = vmul.f32 %v2482_v52, %v2482_v52  ;;  %v948_v29 = vmul.f32 %v2484_v53, %v2484_v53  ;;  %v2610_v12 = vadd.f32 %v2484_v53, %v2482_v52 }
  0xf3   :  { %v2486_v54 = vpop.f32.mrf.mxu0  ;;  %v2488_v55 = vpop.f32.mrf.mxu1 }
  0xf4   :  { %3940 = vst [vmem:[#allocation15_spill] sm:$0xff] %v2486_v54  ;;  %3941 = vst [vmem:[#allocation16_spill] sm:$0xff] %v2488_v55  ;;  %v925_v33 = vmul.f32 %v2486_v54, %v2486_v54  ;;  %v947_v34 = vmul.f32 %v2488_v55, %v2488_v55  ;;  %v2612_v14 = vadd.f32 %v948_v29, %v926_v28 }
  0xf5   :  { %v2622_v18 = vadd.f32 %v2488_v55, %v2486_v54 }
  0xf6   :  { %v2490_v56 = vpop.f32.mrf.mxu0  ;;  %v2492_v57 = vpop.f32.mrf.mxu1  ;;  %v2624_v19 = vadd.f32 %v947_v34, %v925_v33 }
  0xf7   :  { %3942 = vst [vmem:[#allocation17_spill] sm:$0xff] %v2490_v56  ;;  %3943 = vst [vmem:[#allocation18_spill] sm:$0xff] %v2492_v57  ;;  %v928_v6 = vmul.f32 %v2490_v56, %v2490_v56  ;;  %v950_v7 = vmul.f32 %v2492_v57, %v2492_v57  ;;  %v2644_v45 = vadd.f32 %v2492_v57, %v2490_v56 }
  0xf8   :  { %v2494_v58 = vpop.f32.mrf.mxu0  ;;  %v2496_v59 = vpop.f32.mrf.mxu1 }
  0xf9   :  { %3944 = vst [vmem:[#allocation19_spill] sm:$0xff] %v2494_v58  ;;  %3945 = vst [vmem:[#allocation20_spill] sm:$0xff] %v2496_v59  ;;  %v927_v8 = vmul.f32 %v2494_v58, %v2494_v58  ;;  %v949_v9 = vmul.f32 %v2496_v59, %v2496_v59  ;;  %v2646_v47 = vadd.f32 %v950_v7, %v928_v6 }
  0xfa   :  { %v2498_v60 = vpop.f32.mrf.mxu0  ;;  %v2650_v41 = vadd.f32 %v2496_v59, %v2494_v58 }
  0xfb   :  { %3946 = vst [vmem:[#allocation21_spill] sm:$0xff] %v2498_v60  ;;  %v2500_v61 = vpop.f32.mrf.mxu1  ;;  %v930_v15 = vmul.f32 %v2498_v60, %v2498_v60  ;;  %v2652_v43 = vadd.f32 %v949_v9, %v927_v8 }
  0xfc   :  { %3947 = vst [vmem:[#allocation22_spill] sm:$0xff] %v2500_v61  ;;  %v2502_v62 = vpop.f32.mrf.mxu0  ;;  %v952_v16 = vmul.f32 %v2500_v61, %v2500_v61  ;;  %v2656_v52 = vadd.f32 %v2500_v61, %v2498_v60 }
  0xfd   :  { %3948 = vst [vmem:[#allocation23_spill] sm:$0xff] %v2502_v62  ;;  %v2504_v63 = vpop.f32.mrf.mxu1  ;;  %v929_v53 = vmul.f32 %v2502_v62, %v2502_v62 }
  0xfe   :  { %3949 = vst [vmem:[#allocation24_spill] sm:$0xff] %v2504_v63  ;;  %v951_v28 = vmul.f32 %v2504_v63, %v2504_v63  ;;  %v2658_v54 = vadd.f32 %v952_v16, %v930_v15  ;;  %v2668_v7 = vadd.f32 %v2504_v63, %v2502_v62 }
 0x100   :  { %v2506_v0 = vpop.f32.mrf.mxu0  ;;  %v2508_v1 = vpop.f32.mrf.mxu1  ;;  %v2670_v8 = vadd.f32 %v951_v28, %v929_v53 }
 0x101   :  { %3950 = vst [vmem:[#allocation25_spill] sm:$0xff] %v2506_v0  ;;  %3951 = vst [vmem:[#allocation26_spill] sm:$0xff] %v2508_v1  ;;  %v932_v49 = vmul.f32 %v2506_v0, %v2506_v0  ;;  %v954_v51 = vmul.f32 %v2508_v1, %v2508_v1  ;;  %v2680_v61 = vadd.f32 %v2508_v1, %v2506_v0 }
 0x102   :  { %v2510_v2 = vpop.f32.mrf.mxu0  ;;  %v2512_v3 = vpop.f32.mrf.mxu1 }
 0x103   :  { %3952 = vst [vmem:[#allocation27_spill] sm:$0xff] %v2510_v2  ;;  %3953 = vst [vmem:[#allocation28_spill] sm:$0xff] %v2512_v3  ;;  %v931_v55 = vmul.f32 %v2510_v2, %v2510_v2  ;;  %v953_v33 = vmul.f32 %v2512_v3, %v2512_v3  ;;  %v2682_v59 = vadd.f32 %v954_v51, %v932_v49 }
 0x104   :  { %v2514_v4 = vpop.f32.mrf.mxu0  ;;  %v2686_v63 = vadd.f32 %v2512_v3, %v2510_v2 }
 0x105   :  { %3954 = vst [vmem:[#allocation29_spill] sm:$0xff] %v2514_v4  ;;  %v2516_v5 = vpop.f32.mrf.mxu1  ;;  %v934_v48 = vmul.f32 %v2514_v4, %v2514_v4  ;;  %v2688_v53 = vadd.f32 %v953_v33, %v931_v55 }
 0x106   :  { %3955 = vst [vmem:[#allocation30_spill] sm:$0xff] %v2516_v5  ;;  %v2526_v10 = vpop.f32.mrf.mxu0  ;;  %v956_v57 = vmul.f32 %v2516_v5, %v2516_v5  ;;  %v2704_v55 = vadd.f32 %v2516_v5, %v2514_v4 }
 0x107   :  { %3956 = vst [vmem:[#allocation31_spill] sm:$0xff] %v2526_v10  ;;  %v2532_v13 = vpop.f32.mrf.mxu1  ;;  %v933_v9 = vmul.f32 %v2526_v10, %v2526_v10 }
 0x108   :  { %3957 = vst [vmem:[#allocation32_spill] sm:$0xff] %v2532_v13  ;;  %v955_v15 = vmul.f32 %v2532_v13, %v2532_v13  ;;  %v2706_v33 = vadd.f32 %v956_v57, %v934_v48  ;;  %v2714_v2 = vadd.f32 %v2532_v13, %v2526_v10 }
 0x109   :  { %v2546_v20 = vpop.f32.mrf.mxu0 }
 0x10a   :  { %3958 = vst [vmem:[#allocation33_spill] sm:$0xff] %v2546_v20  ;;  %v2560_v25 = vpop.f32.mrf.mxu1  ;;  %v936_v60 = vmul.f32 %v2546_v20, %v2546_v20  ;;  %v2716_v56 = vadd.f32 %v955_v15, %v933_v9 }
 0x10b   :  { %3959 = vst [vmem:[#allocation34_spill] sm:$0xff] %v2560_v25  ;;  %v2572_v30 = vpop.f32.mrf.mxu0  ;;  %v958_v62 = vmul.f32 %v2560_v25, %v2560_v25  ;;  %v2726_v57 = vadd.f32 %v2560_v25, %v2546_v20 }
 0x10c   :  { %3960 = vst [vmem:[#allocation35_spill] sm:$0xff] %v2572_v30  ;;  %v2584_v35 = vpop.f32.mrf.mxu1  ;;  %v935_v1 = vmul.f32 %v2572_v30, %v2572_v30 }
 0x10d   :  { %3961 = vst [vmem:[#allocation36_spill] sm:$0xff] %v2584_v35  ;;  %v957_v49 = vmul.f32 %v2584_v35, %v2584_v35  ;;  %v2734_v15 = vadd.f32 %v958_v62, %v936_v60  ;;  %v2738_v10 = vadd.f32 %v2584_v35, %v2572_v30 }
 0x10e   :  { %v2606_v11 = vpop.f32.mrf.mxu0 }
 0x10f   :  { %3962 = vst [vmem:[#allocation37_spill] sm:$0xff] %v2606_v11  ;;  %v2618_v17 = vpop.f32.mrf.mxu1  ;;  %v938_v3 = vmul.f32 %v2606_v11, %v2606_v11  ;;  %v2740_v50 = vadd.f32 %v957_v49, %v935_v1 }
 0x110   :  { %3963 = vst [vmem:[#allocation38_spill] sm:$0xff] %v2618_v17  ;;  %v2630_v29 = vpop.f32.mrf.mxu0  ;;  %v960_v0 = vmul.f32 %v2618_v17, %v2618_v17  ;;  %v2744_v25 = vadd.f32 %v2618_v17, %v2606_v11 }
 0x111   :  { %3964 = vst [vmem:[#allocation39_spill] sm:$0xff] %v2630_v29  ;;  %v2640_v34 = vpop.f32.mrf.mxu1  ;;  %v937_v58 = vmul.f32 %v2630_v29, %v2630_v29 }
 0x112   :  { %3965 = vst [vmem:[#allocation40_spill] sm:$0xff] %v2640_v34  ;;  %v959_v5 = vmul.f32 %v2640_v34, %v2640_v34  ;;  %v2750_v46 = vadd.f32 %v960_v0, %v938_v3  ;;  %v2754_v60 = vadd.f32 %v2640_v34, %v2630_v29 }
 0x113   :  { %v2664_v6 = vpop.f32.mrf.mxu0 }
 0x114   :  { %3966 = vst [vmem:[#allocation41_spill] sm:$0xff] %v2664_v6  ;;  %v2676_v16 = vpop.f32.mrf.mxu1  ;;  %v940_v4 = vmul.f32 %v2664_v6, %v2664_v6  ;;  %v2760_v49 = vadd.f32 %v959_v5, %v937_v58 }
 0x115   :  { %3967 = vst [vmem:[#allocation42_spill] sm:$0xff] %v2676_v16  ;;  %v2690_v28 = vpop.f32.mrf.mxu0  ;;  %v962_v13 = vmul.f32 %v2676_v16, %v2676_v16 }
 0x116   :  { %v2700_v51 = vpop.f32.mrf.mxu1  ;;  %v939_v58 = vmul.f32 %v2690_v28, %v2690_v28 }
 0x118   :  { %v2722_v48 = vpop.f32.mrf.mxu0 }
 0x119   :  { %3968 = vst [vmem:[#allocation43_spill] sm:$0xff] %v2722_v48  ;;  %v986_v9 = vmul.f32 %v2722_v48, %v2722_v48  ;;  %v847_v62 = vadd.f32 %v2722_v48, %v2550_v21  ;;  %v2773_v21 = vadd.f32 %v2676_v16, %v2664_v6  ;;  %v2775_v48 = vadd.f32 %v962_v13, %v940_v4 }
 0x11a   :  { %v2746_v20 = vpop.f32.mrf.mxu1  ;;  %v2748_v44 = vpop.f32.mrf.mxu0 }
 0x11b   :  { %3969 = vst [vmem:[#allocation44_spill] sm:$0xff] %v2746_v20  ;;  %3970 = vst [vmem:[#allocation45_spill] sm:$0xff] %v2748_v44  ;;  %v846_v1 = vadd.f32 %v2556_v23, %v2748_v44  ;;  %v1008_v17 = vadd.f32 %v986_v9, %v2552_v22  ;;  %v1030_v35 = vmul.f32 %v2746_v20, %v2746_v20 }
 0x11c   :  { %v985_v0 = vmul.f32 %v2748_v44, %v2748_v44  ;;  %v2767_v3 = vpop.f32.mrf.mxu1  ;;  %v2769_v34 = vpop.f32.mrf.mxu0  ;;  %v961_v22 = vmul.f32 %v2700_v51, %v2700_v51  ;;  %v869_v13 = vadd.f32 %v2746_v20, %v847_v62 }
 0x11d   :  { %3971 = vst [vmem:[#allocation46_spill] sm:$0xff] %v2767_v3  ;;  %3972 = vst [vmem:[#allocation47_spill] sm:$0xff] %v2769_v34  ;;  %v868_v5 = vadd.f32 %v846_v1, %v2767_v3  ;;  %v1029_v9 = vmul.f32 %v2767_v3, %v2767_v3  ;;  %v988_v44 = vmul.f32 %v2769_v34, %v2769_v34 }
 0x11e   :  { %v1007_v23 = vadd.f32 %v985_v0, %v2558_v24  ;;  %v2787_v16 = vpop.f32.mrf.mxu1  ;;  %v2789_v4 = vpop.f32.mrf.mxu0  ;;  %v849_v1 = vadd.f32 %v2769_v34, %v2564_v26  ;;  %v1052_v0 = vadd.f32 %v1030_v35, %v1008_v17  ;;  %v2812_v35 = vadd.f32 %v2700_v51, %v2690_v28 }
 0x11f   :  { %v1032_v6 = vmul.f32 %v2787_v16, %v2787_v16  ;;  %v848_v24 = vadd.f32 %v2576_v31, %v2789_v4  ;;  %v1010_v11 = vadd.f32 %v988_v44, %v2566_v27  ;;  %v987_v29 = vmul.f32 %v2789_v4, %v2789_v4 }
 0x120   :  { %v1051_v3 = vadd.f32 %v1029_v9, %v1007_v23  ;;  %v2801_v30 = vpop.f32.mrf.mxu1  ;;  %v2803_v40 = vpop.f32.mrf.mxu0  ;;  %v890_v62 = vadd.f32 %v869_v13, %v868_v5  ;;  %v2814_v44 = vadd.f32 %v961_v22, %v939_v58 }
 0x121   :  { %3973 = vst [vmem:[#allocation48_spill] sm:$0xff] %v2801_v30  ;;  %3974 = vst [vmem:[#allocation49_spill] sm:$0xff] %v2803_v40  ;;  %v870_v26 = vadd.f32 %v848_v24, %v2801_v30  ;;  %v851_v20 = vadd.f32 %v2803_v40, %v2588_v36  ;;  %v990_v31 = vmul.f32 %v2803_v40, %v2803_v40 }
 0x122   :  { %v1009_v27 = vadd.f32 %v987_v29, %v2578_v32  ;;  %v1031_v17 = vmul.f32 %v2801_v30, %v2801_v30  ;;  %v2819_v5 = vpop.f32.mrf.mxu1  ;;  %v2821_v23 = vpop.f32.mrf.mxu0  ;;  %v1073_v9 = vadd.f32 %v1052_v0, %v1051_v3  ;;  %v871_v36 = vadd.f32 %v2787_v16, %v849_v1 }
 0x123   :  { %3975 = vst [vmem:[#allocation50_spill] sm:$0xff] %v2819_v5  ;;  %v1054_v13 = vadd.f32 %v1032_v6, %v1010_v11  ;;  %v891_v24 = vadd.f32 %v890_v62, %v870_v26  ;;  %v1012_v34 = vadd.f32 %v990_v31, %v2590_v37  ;;  %v850_v58 = vadd.f32 %v2594_v38, %v2821_v23 }
 0x124   :  { %v1053_v40 = vadd.f32 %v1031_v17, %v1009_v27  ;;  %v989_v32 = vmul.f32 %v2821_v23, %v2821_v23  ;;  %v2829_v29 = vpop.f32.mrf.mxu1  ;;  %v2831_v22 = vpop.f32.mrf.mxu0  ;;  %v873_v30 = vadd.f32 %v2819_v5, %v851_v20  ;;  %v1034_v3 = vmul.f32 %v2819_v5, %v2819_v5 }
 0x125   :  { %3976 = vst [vmem:[#allocation51_spill] sm:$0xff] %v2829_v29  ;;  %v892_v11 = vadd.f32 %v891_v24, %v871_v36  ;;  %v1033_v6 = vmul.f32 %v2829_v29, %v2829_v29  ;;  %v872_v38 = vadd.f32 %v850_v58, %v2829_v29  ;;  %v992_v0 = vmul.f32 %v2831_v22, %v2831_v22 }
 0x126   :  { %v1074_v37 = vadd.f32 %v1073_v9, %v1053_v40  ;;  %v1011_v1 = vadd.f32 %v989_v32, %v2596_v39  ;;  %v2842_v62 = vpop.f32.mrf.mxu1  ;;  %v2844_v26 = vpop.f32.mrf.mxu0  ;;  %v853_v20 = vadd.f32 %v2831_v22, %v2610_v12  ;;  %v1056_v29 = vadd.f32 %v1034_v3, %v1012_v34 }
 0x127   :  { %v1036_v31 = vmul.f32 %v2842_v62, %v2842_v62  ;;  %v852_v40 = vadd.f32 %v2622_v18, %v2844_v26  ;;  %v991_v39 = vmul.f32 %v2844_v26, %v2844_v26  ;;  %v893_v27 = vadd.f32 %v892_v11, %v872_v38 }
 0x128   :  { %v1055_v17 = vadd.f32 %v1033_v6, %v1011_v1  ;;  %v1075_v9 = vadd.f32 %v1074_v37, %v1054_v13  ;;  %v1014_v36 = vadd.f32 %v992_v0, %v2612_v14  ;;  %v2855_v24 = vpop.f32.mrf.mxu1  ;;  %v2857_v58 = vpop.f32.mrf.mxu0 }
 0x129   :  { %v1013_v12 = vadd.f32 %v991_v39, %v2624_v19  ;;  %v874_v32 = vadd.f32 %v852_v40, %v2855_v24  ;;  %v1035_v5 = vmul.f32 %v2855_v24, %v2855_v24  ;;  %v855_v18 = vadd.f32 %v2857_v58, %v2644_v45 }
 0x12a   :  { %v1076_v11 = vadd.f32 %v1075_v9, %v1055_v17  ;;  %v894_v6 = vadd.f32 %v893_v27, %v873_v30  ;;  %v994_v14 = vmul.f32 %v2857_v58, %v2857_v58  ;;  %v2867_v13 = vpop.f32.mrf.mxu1  ;;  %v2869_v37 = vpop.f32.mrf.mxu0  ;;  %v875_v19 = vadd.f32 %v2842_v62, %v853_v20 }
 0x12b   :  { %v1058_v1 = vadd.f32 %v1036_v31, %v1014_v36  ;;  %v1057_v38 = vadd.f32 %v1035_v5, %v1013_v12  ;;  %v854_v0 = vadd.f32 %v2650_v41, %v2869_v37  ;;  %v877_v45 = vadd.f32 %v2867_v13, %v855_v18 }
 0x12c   :  { %v895_v40 = vadd.f32 %v894_v6, %v874_v32  ;;  %v1077_v39 = vadd.f32 %v1076_v11, %v1056_v29  ;;  %v993_v30 = vmul.f32 %v2869_v37, %v2869_v37  ;;  %v2877_v34 = vpop.f32.mrf.mxu1  ;;  %v2879_v3 = vpop.f32.mrf.mxu0  ;;  %v1016_v27 = vadd.f32 %v994_v14, %v2646_v47 }
 0x12d   :  { %v1038_v20 = vmul.f32 %v2867_v13, %v2867_v13  ;;  %v876_v5 = vadd.f32 %v854_v0, %v2877_v34  ;;  %v996_v41 = vmul.f32 %v2879_v3, %v2879_v3  ;;  %v1037_v9 = vmul.f32 %v2877_v34, %v2877_v34 }
 0x12e   :  { %v1078_v29 = vadd.f32 %v1077_v39, %v1057_v38  ;;  %v1015_v31 = vadd.f32 %v993_v30, %v2652_v43  ;;  %v896_v17 = vadd.f32 %v895_v40, %v875_v19  ;;  %v2890_v36 = vpop.f32.mrf.mxu1  ;;  %v2892_v12 = vpop.f32.mrf.mxu0  ;;  %v857_v47 = vadd.f32 %v2879_v3, %v2656_v52 }
 0x12f   :  { %v1018_v32 = vadd.f32 %v996_v41, %v2658_v54  ;;  %v1040_v18 = vmul.f32 %v2890_v36, %v2890_v36  ;;  %v856_v11 = vadd.f32 %v2668_v7, %v2892_v12  ;;  %v995_v19 = vmul.f32 %v2892_v12, %v2892_v12 }
 0x130   :  { %v897_v43 = vadd.f32 %v896_v17, %v876_v5  ;;  %v1059_v6 = vadd.f32 %v1037_v9, %v1015_v31  ;;  %v1079_v14 = vadd.f32 %v1078_v29, %v1058_v1  ;;  %v2903_v38 = vpop.f32.mrf.mxu1  ;;  %v2905_v0 = vpop.f32.mrf.mxu0  ;;  %v1060_v40 = vadd.f32 %v1038_v20, %v1016_v27 }
 0x131   :  { %v878_v52 = vadd.f32 %v856_v11, %v2903_v38  ;;  %v1039_v54 = vmul.f32 %v2903_v38, %v2903_v38  ;;  %v859_v39 = vadd.f32 %v2905_v0, %v2680_v61  ;;  %v1017_v30 = vadd.f32 %v995_v19, %v2670_v8 }
 0x132   :  { %v1080_v7 = vadd.f32 %v1079_v14, %v1059_v6  ;;  %v898_v1 = vadd.f32 %v897_v43, %v877_v45  ;;  %v998_v5 = vmul.f32 %v2905_v0, %v2905_v0  ;;  %v2915_v41 = vpop.f32.mrf.mxu1  ;;  %v2917_v29 = vpop.f32.mrf.mxu0  ;;  %v879_v27 = vadd.f32 %v2890_v36, %v857_v47 }
 0x133   :  { %3977 = vst [vmem:[#allocation52_spill] sm:$0xff] %v2915_v41  ;;  %v1062_v20 = vadd.f32 %v1040_v18, %v1018_v32  ;;  %v858_v31 = vadd.f32 %v2686_v63, %v2917_v29  ;;  %v997_v61 = vmul.f32 %v2917_v29, %v2917_v29  ;;  %v1061_v9 = vadd.f32 %v1039_v54, %v1017_v30 }
 0x134   :  { %v899_v17 = vadd.f32 %v898_v1, %v878_v52  ;;  %v1081_v8 = vadd.f32 %v1080_v7, %v1060_v40  ;;  %v1042_v45 = vmul.f32 %v2915_v41, %v2915_v41  ;;  %v2926_v11 = vpop.f32.mrf.mxu1  ;;  %v2928_v43 = vpop.f32.mrf.mxu0  ;;  %v1020_v6 = vadd.f32 %v998_v5, %v2682_v59 }
 0x135   :  { %3978 = vst [vmem:[#allocation53_spill] sm:$0xff] %v2926_v11  ;;  %v1019_v47 = vadd.f32 %v997_v61, %v2688_v53  ;;  %v880_v32 = vadd.f32 %v858_v31, %v2926_v11  ;;  %v1041_v63 = vmul.f32 %v2926_v11, %v2926_v11  ;;  %v881_v14 = vadd.f32 %v2915_v41, %v859_v39 }
 0x136   :  { %v1082_v18 = vadd.f32 %v1081_v8, %v1061_v9  ;;  %v900_v19 = vadd.f32 %v899_v17, %v879_v27  ;;  %v1000_v40 = vmul.f32 %v2928_v43, %v2928_v43  ;;  %v2938_v52 = vpop.f32.mrf.mxu1  ;;  %v2940_v54 = vpop.f32.mrf.mxu0  ;;  %v861_v59 = vadd.f32 %v2928_v43, %v2704_v55 }
 0x137   :  { %3979 = vst [vmem:[#allocation54_spill] sm:$0xff] %v2938_v52  ;;  %v1063_v7 = vadd.f32 %v1041_v63, %v1019_v47  ;;  %v1044_v53 = vmul.f32 %v2938_v52, %v2938_v52  ;;  %v860_v30 = vadd.f32 %v2714_v2, %v2940_v54  ;;  %v999_v27 = vmul.f32 %v2940_v54, %v2940_v54 }
 0x138   :  { %v901_v1 = vadd.f32 %v900_v19, %v880_v32  ;;  %v1083_v39 = vadd.f32 %v1082_v18, %v1062_v20  ;;  %v1022_v5 = vadd.f32 %v1000_v40, %v2706_v33  ;;  %v2951_v31 = vpop.f32.mrf.mxu1  ;;  %v2953_v61 = vpop.f32.mrf.mxu0  ;;  %v1064_v17 = vadd.f32 %v1042_v45, %v1020_v6 }
 0x139   :  { %3980 = vst [vmem:[#allocation55_spill] sm:$0xff] %v2951_v31  ;;  %v882_v55 = vadd.f32 %v860_v30, %v2951_v31  ;;  %v863_v9 = vadd.f32 %v2953_v61, %v2726_v57  ;;  %v1002_v2 = vmul.f32 %v2953_v61, %v2953_v61  ;;  %v1021_v20 = vadd.f32 %v999_v27, %v2716_v56 }
 0x13a   :  { %v1084_v8 = vadd.f32 %v1083_v39, %v1063_v7  ;;  %v902_v33 = vadd.f32 %v901_v1, %v881_v14  ;;  %v1043_v47 = vmul.f32 %v2951_v31, %v2951_v31  ;;  %v2963_v32 = vpop.f32.mrf.mxu1  ;;  %v2965_v63 = vpop.f32.mrf.mxu0  ;;  %v883_v45 = vadd.f32 %v2938_v52, %v861_v59 }
 0x13b   :  { %3981 = vst [vmem:[#allocation56_spill] sm:$0xff] %v2963_v32  ;;  %v1066_v6 = vadd.f32 %v1044_v53, %v1022_v5  ;;  %v1024_v18 = vadd.f32 %v1002_v2, %v2734_v15  ;;  %v862_v57 = vadd.f32 %v2738_v10, %v2965_v63  ;;  %v1001_v56 = vmul.f32 %v2965_v63, %v2965_v63 }
 0x13c   :  { %v903_v19 = vadd.f32 %v902_v33, %v882_v55  ;;  %v1065_v40 = vadd.f32 %v1043_v47, %v1021_v20  ;;  %v1085_v7 = vadd.f32 %v1084_v8, %v1064_v17  ;;  %v2973_v14 = vpop.f32.mrf.mxu1  ;;  %v2975_v30 = vpop.f32.mrf.mxu0  ;;  %v885_v1 = vadd.f32 %v2963_v32, %v863_v9 }
 0x13d   :  { %3982 = vst [vmem:[#allocation57_spill] sm:$0xff] %v2973_v14  ;;  %v1046_v59 = vmul.f32 %v2963_v32, %v2963_v32  ;;  %v884_v15 = vadd.f32 %v862_v57, %v2973_v14  ;;  %v1045_v10 = vmul.f32 %v2973_v14, %v2973_v14  ;;  %v1023_v39 = vadd.f32 %v1001_v56, %v2740_v50 }
 0x13e   :  { %v1086_v53 = vadd.f32 %v1085_v7, %v1065_v40  ;;  %v904_v5 = vadd.f32 %v903_v19, %v883_v45  ;;  %v1004_v27 = vmul.f32 %v2975_v30, %v2975_v30  ;;  %v2986_v17 = vpop.f32.mrf.mxu1  ;;  %v2988_v55 = vpop.f32.mrf.mxu0  ;;  %v865_v9 = vadd.f32 %v2975_v30, %v2744_v25 }
 0x13f   :  { %3983 = vst [vmem:[#allocation58_spill] sm:$0xff] %v2986_v17  ;;  %v1048_v2 = vmul.f32 %v2986_v17, %v2986_v17  ;;  %v864_v8 = vadd.f32 %v2754_v60, %v2988_v55  ;;  %v1003_v50 = vmul.f32 %v2988_v55, %v2988_v55  ;;  %v1067_v33 = vadd.f32 %v1045_v10, %v1023_v39 }
 0x140   :  { %v905_v20 = vadd.f32 %v904_v5, %v884_v15  ;;  %v1087_v47 = vadd.f32 %v1086_v53, %v1066_v6  ;;  %v1026_v45 = vadd.f32 %v1004_v27, %v2750_v46  ;;  %v2999_v57 = vpop.f32.mrf.mxu1  ;;  %v3001_v19 = vpop.f32.mrf.mxu0  ;;  %v1068_v56 = vadd.f32 %v1046_v59, %v1024_v18 }
 0x141   :  { %3984 = vst [vmem:[#allocation59_spill] sm:$0xff] %v2999_v57  ;;  %v1025_v25 = vadd.f32 %v1003_v50, %v2760_v49  ;;  %v886_v40 = vadd.f32 %v864_v8, %v2999_v57  ;;  %v1047_v7 = vmul.f32 %v2999_v57, %v2999_v57  ;;  %v867_v60 = vadd.f32 %v3001_v19, %v2773_v21 }
 0x142   :  { %v1088_v15 = vadd.f32 %v1087_v47, %v1067_v33  ;;  %v906_v10 = vadd.f32 %v905_v20, %v885_v1  ;;  %v1006_v46 = vmul.f32 %v3001_v19, %v3001_v19  ;;  %v3011_v6 = vpop.f32.mrf.mxu1  ;;  %v3013_v53 = vpop.f32.mrf.mxu0  ;;  %v887_v49 = vadd.f32 %v2986_v17, %v865_v9 }
 0x143   :  { %3985 = vst [vmem:[#allocation60_spill] sm:$0xff] %v3011_v6  ;;  %v1069_v39 = vadd.f32 %v1047_v7, %v1025_v25  ;;  %v1050_v5 = vmul.f32 %v3011_v6, %v3011_v6  ;;  %v866_v27 = vadd.f32 %v2812_v35, %v3013_v53  ;;  %v1005_v59 = vmul.f32 %v3013_v53, %v3013_v53 }
 0x144   :  { %v907_v21 = vadd.f32 %v906_v10, %v886_v40  ;;  %v1089_v18 = vadd.f32 %v1088_v15, %v1068_v56  ;;  %v1028_v1 = vadd.f32 %v1006_v46, %v2775_v48  ;;  %v3023_v8 = vpop.f32.mrf.mxu1  ;;  %v1070_v50 = vadd.f32 %v1048_v2, %v1026_v45 }
 0x145   :  { %3986 = vst [vmem:[#allocation61_spill] sm:$0xff] %v3023_v8  ;;  %v889_v20 = vadd.f32 %v3011_v6, %v867_v60  ;;  %v888_v9 = vadd.f32 %v866_v27, %v3023_v8  ;;  %v1027_v47 = vadd.f32 %v1005_v59, %v2814_v44  ;;  %v1049_v35 = vmul.f32 %v3023_v8, %v3023_v8 }
 0x146   :  { %v1090_v33 = vadd.f32 %v1089_v18, %v1069_v39  ;;  %v908_v25 = vadd.f32 %v907_v21, %v887_v49  ;;  %v1072_v40 = vadd.f32 %v1050_v5, %v1028_v1 }
 0x147   :  { %v1071_v7 = vadd.f32 %v1049_v35, %v1027_v47  ;;  %v911_v15 = vsel %vm910_vm0, %v889_v20, 0.0 }
 0x148   :  { %v909_v48 = vadd.f32 %v908_v25, %v888_v9  ;;  %v1091_v56 = vadd.f32 %v1090_v33, %v1070_v50  ;;  %v1093_v2 = vsel %vm910_vm0, %v1072_v40, 0.0  ;;  %v1114_v25 = vlaneseq }
 0x14a   :  { %v912_v10 = vadd.f32 %v911_v15, %v909_v48  ;;  %v1092_v46 = vadd.f32 %v1091_v56, %v1071_v7  ;;  %v1115_v35 = vshrl.u32 %v1114_v25, 7 }
 0x14c   :  { %v913_v45 = vrot.slane %v912_v10, 4  ;;  %v1094_v60 = vadd.f32 %v1093_v2, %v1092_v46  ;;  %v3987_v46 = vld [vmem:[#allocation2_spill] sm:$0xff] }
 0x14e   :  { %v914_v6 = vadd.f32 %v913_v45, %v912_v10  ;;  %v1095_v17 = vrot.slane %v1094_v60, 4  ;;  %v3988_v45 = vld [vmem:[#allocation7_spill] sm:$0xff] }
 0x150   :  { %v915_v27 = vrot.slane %v914_v6, 2  ;;  %v1096_v39 = vadd.f32 %v1095_v17, %v1094_v60  ;;  %v1106_v17 = vld [vmem:[%s3828_s2] sm:$0x1] }
 0x152   :  { %v916_v18 = vadd.f32 %v915_v27, %v914_v6  ;;  %v1097_v44 = vrot.slane %v1096_v39, 2  ;;  %v1116_v6 = vsub.s32 0, %v1115_v35  ;;  %v3989_v27 = vld [vmem:[#allocation5_spill] sm:$0xff] }
 0x153   :  { %v3997_v35 = vld [vmem:[#allocation21_spill] sm:$0xff] }
 0x154   :  { %v917_v49 = vrot.slane %v916_v18, 1  ;;  %v1098_v21 = vadd.f32 %v1097_v44, %v1096_v39 }
 0x156   :  { %v918_v59 = vadd.f32 %v917_v49, %v916_v18  ;;  %v1099_v8 = vrot.slane %v1098_v21, 1  ;;  %v3990_v18 = vld [vmem:[#allocation11_spill] sm:$0xff]  ;;  %v3991_v49 = vld [vmem:[#allocation9_spill] sm:$0xff] }
 0x158   :  { %v1100_v5 = vadd.f32 %v1099_v8, %v1098_v21  ;;  %v1101_v1 = vmul.f32 0.00147929, %v918_v59  ;;  %v1110_v8 = vld [vmem:[%s3829_s3] sm:$0x1]  ;;  %v3992_v59 = vld [vmem:[#allocation15_spill] sm:$0xff] }
 0x15a   :  { %v1102_v9 = vmul.f32 0.00147929, %v1100_v5  ;;  %v1103_v50 = vmul.f32 %v1101_v1, %v1101_v1 }
 0x15c   :  { %v1104_v20 = vsub.f32 %v1102_v9, %v1103_v50  ;;  %v3994_v9 = vld [vmem:[#allocation19_spill] sm:$0xff] }
 0x15e   :  { %v1105_v33 = vmax.f32 %v1104_v20, 0.0  ;;  %v3995_v20 = vld [vmem:[#allocation17_spill] sm:$0xff] }
 0x160   :  { %v1107_v47 = vadd.f32 1e-05, %v1105_v33 }
 0x162   :  { %1959 = vrsqrt.f32 %v1107_v47  ;;  %v3996_v47 = vld [vmem:[#allocation23_spill] sm:$0xff] }
 0x16f   :  { %v1960_v40 = vpop.eup %1959 }
 0x170   :  { %v1109_v48 = vmul.f32 %v1960_v40, %v1106_v17  ;;  %v3998_v40 = vld [vmem:[#allocation27_spill] sm:$0xff] }
 0x172   :  { %v1111_v7 = vmul.f32 %v1109_v48, %v1101_v1  ;;  %v3036_v56 = vrot.slane %v1109_v48, %v1116_v6 }
 0x174   :  { %v1112_v15 = vsub.f32 %v1110_v8, %v1111_v7  ;;  %v1119_v10 = vmul.f32 %v3036_v56, %v2462_v42  ;;  %v1120_v2 = vmul.f32 %v3987_v46, %v3036_v56  ;;  %v1121_v60 = vmul.f32 %v3036_v56, %v3988_v45  ;;  %v3993_v42 = vld [vmem:[#allocation13_spill] sm:$0xff]  ;;  %v4000_v46 = vld [vmem:[#allocation31_spill] sm:$0xff] }
 0x175   :  { %v1122_v39 = vmul.f32 %v3989_v27, %v3036_v56  ;;  %v1123_v44 = vmul.f32 %v3036_v56, %v3990_v18  ;;  %v1124_v21 = vmul.f32 %v3991_v49, %v3036_v56  ;;  %v1125_v5 = vmul.f32 %v3036_v56, %v3992_v59  ;;  %v3999_v8 = vld [vmem:[#allocation25_spill] sm:$0xff]  ;;  %v4002_v49 = vld [vmem:[#allocation35_spill] sm:$0xff] }
 0x176   :  { %v1126_v1 = vmul.f32 %v3993_v42, %v3036_v56  ;;  %v1127_v50 = vmul.f32 %v3036_v56, %v3994_v9  ;;  %v1128_v33 = vmul.f32 %v3995_v20, %v3036_v56  ;;  %v1129_v25 = vmul.f32 %v3036_v56, %v3996_v47  ;;  %v4001_v27 = vld [vmem:[#allocation29_spill] sm:$0xff]  ;;  %v4004_v20 = vld [vmem:[#allocation39_spill] sm:$0xff] }
 0x177   :  { %v1130_v17 = vmul.f32 %v3997_v35, %v3036_v56  ;;  %v1131_v48 = vmul.f32 %v3036_v56, %v3998_v40  ;;  %v1132_v7 = vmul.f32 %v3999_v8, %v3036_v56  ;;  %v1133_v45 = vmul.f32 %v3036_v56, %v4000_v46  ;;  %v4003_v42 = vld [vmem:[#allocation33_spill] sm:$0xff] }
 0x178   :  { %v1134_v18 = vmul.f32 %v4001_v27, %v3036_v56  ;;  %v1135_v59 = vmul.f32 %v3036_v56, %v4002_v49  ;;  %v1136_v9 = vmul.f32 %v4003_v42, %v3036_v56  ;;  %v1137_v47 = vmul.f32 %v3036_v56, %v4004_v20  ;;  %v4005_v35 = vld [vmem:[#allocation37_spill] sm:$0xff]  ;;  %v4007_v27 = vld [vmem:[#allocation4_spill] sm:$0xff]  ;;  %v4008_v42 = vld [vmem:[#allocation3_spill] sm:$0xff] }
 0x179   :  { %v1138_v40 = vmul.f32 %v4005_v35, %v3036_v56  ;;  %v1139_v8 = vmul.f32 %v3036_v56, %v2690_v28  ;;  %v4006_v46 = vld [vmem:[#allocation41_spill] sm:$0xff]  ;;  %v3082_v32 = vrot.slane %v1112_v15, %v1116_v6  ;;  %v3086_v49 = vmul.f32 %v3036_v56, %v4007_v27  ;;  %v4009_v20 = vld [vmem:[#allocation8_spill] sm:$0xff]  ;;  %v4010_v35 = vld [vmem:[#allocation6_spill] sm:$0xff] }
 0x17a   :  { %v1140_v57 = vmul.f32 %v4006_v46, %v3036_v56  ;;  %v3090_v14 = vmul.f32 %v4008_v42, %v3036_v56  ;;  %v3094_v52 = vmul.f32 %v3036_v56, %v4009_v20  ;;  %v3098_v28 = vmul.f32 %v4010_v35, %v3036_v56 }
 0x17b   :  { %v3101_v46 = vadd.f32 %v3082_v32, %v1119_v10  ;;  %v3104_v6 = vadd.f32 %v3082_v32, %v1120_v2  ;;  %v3107_v15 = vadd.f32 %v3082_v32, %v1121_v60  ;;  %v3110_v27 = vadd.f32 %v3082_v32, %v1122_v39 }
 0x17c   :  { %v3113_v42 = vadd.f32 %v3082_v32, %v1123_v44  ;;  %v3116_v20 = vadd.f32 %v3082_v32, %v1124_v21  ;;  %v3119_v35 = vadd.f32 %v3082_v32, %v1125_v5  ;;  %v3122_v10 = vadd.f32 %v3082_v32, %v1126_v1 }
 0x17d   :  { %v3125_v2 = vadd.f32 %v3082_v32, %v1127_v50  ;;  %v3128_v60 = vadd.f32 %v3082_v32, %v1128_v33  ;;  %v3131_v39 = vadd.f32 %v3082_v32, %v1129_v25  ;;  %v3134_v44 = vadd.f32 %v3082_v32, %v1130_v17 }
 0x17e   :  { %4011 = vst [vmem:[#allocation2_spill] sm:$0xff] %v3116_v20  ;;  %4012 = vst [vmem:[#allocation7_spill] sm:$0xff] %v3119_v35  ;;  %v3137_v21 = vadd.f32 %v3082_v32, %v1131_v48  ;;  %v3140_v5 = vadd.f32 %v3082_v32, %v1132_v7  ;;  %v3143_v1 = vadd.f32 %v3082_v32, %v1133_v45 }
 0x17f   :  { %4013 = vst [vmem:[#allocation5_spill] sm:$0xff] %v3122_v10  ;;  %4014 = vst [vmem:[#allocation11_spill] sm:$0xff] %v3125_v2  ;;  %v3146_v50 = vadd.f32 %v3082_v32, %v1134_v18  ;;  %v3149_v33 = vadd.f32 %v3082_v32, %v1135_v59  ;;  %v3152_v25 = vadd.f32 %v3082_v32, %v1136_v9  ;;  %v4029_v9 = vld [vmem:[#allocation10_spill] sm:$0xff] }
 0x180   :  { %4015 = vst [vmem:[#allocation9_spill] sm:$0xff] %v3128_v60  ;;  %4016 = vst [vmem:[#allocation15_spill] sm:$0xff] %v3131_v39  ;;  %v3155_v17 = vadd.f32 %v3082_v32, %v1137_v47  ;;  %v3158_v48 = vadd.f32 %v3082_v32, %v1138_v40  ;;  %v3161_v7 = vadd.f32 %v3082_v32, %v1139_v8  ;;  %v4031_v40 = vld [vmem:[#allocation14_spill] sm:$0xff]  ;;  %v4042_v39 = vld [vmem:[#allocation40_spill] sm:$0xff] }
 0x181   :  { %4017 = vst [vmem:[#allocation13_spill] sm:$0xff] %v3134_v44  ;;  %4018 = vst [vmem:[#allocation19_spill] sm:$0xff] %v3137_v21  ;;  %v3164_v45 = vadd.f32 %v3082_v32, %v1140_v57  ;;  %v4028_v44 = vld [vmem:[#allocation12_spill] sm:$0xff]  ;;  %v1196_v47 = vmul.f32 %v4029_v9, %v3036_v56  ;;  %v1198_v8 = vmul.f32 %v4031_v40, %v3036_v56  ;;  %v4033_v57 = vld [vmem:[#allocation18_spill] sm:$0xff] }
 0x182   :  { %4019 = vst [vmem:[#allocation17_spill] sm:$0xff] %v3140_v5  ;;  %4020 = vst [vmem:[#allocation23_spill] sm:$0xff] %v3143_v1  ;;  %v1195_v31 = vmul.f32 %v3036_v56, %v4028_v44  ;;  %v4030_v1 = vld [vmem:[#allocation16_spill] sm:$0xff]  ;;  %v1200_v18 = vmul.f32 %v4033_v57, %v3036_v56  ;;  %v4035_v44 = vld [vmem:[#allocation22_spill] sm:$0xff]  ;;  %v1259_v35 = vmul.f32 %v3036_v56, %v2789_v4 }
 0x183   :  { %4021 = vst [vmem:[#allocation21_spill] sm:$0xff] %v3146_v50  ;;  %4022 = vst [vmem:[#allocation27_spill] sm:$0xff] %v3149_v33  ;;  %v1197_v41 = vmul.f32 %v3036_v56, %v4030_v1  ;;  %v4037_v1 = vld [vmem:[#allocation26_spill] sm:$0xff]  ;;  %v4038_v33 = vld [vmem:[#allocation32_spill] sm:$0xff]  ;;  %v1261_v20 = vmul.f32 %v3036_v56, %v2821_v23  ;;  %v1266_v4 = vmul.f32 %v2857_v58, %v3036_v56 }
 0x184   :  { %4023 = vst [vmem:[#allocation25_spill] sm:$0xff] %v3152_v25  ;;  %4024 = vst [vmem:[#allocation31_spill] sm:$0xff] %v3155_v17  ;;  %v4032_v25 = vld [vmem:[#allocation20_spill] sm:$0xff]  ;;  %v1204_v17 = vmul.f32 %v4037_v1, %v3036_v56  ;;  %v1205_v40 = vmul.f32 %v3036_v56, %v4038_v33  ;;  %v1211_v1 = vmul.f32 %v3036_v56, %v2700_v51  ;;  %v4044_v33 = vld [vmem:[#allocation42_spill] sm:$0xff] }
 0x185   :  { %4025 = vst [vmem:[#allocation29_spill] sm:$0xff] %v3158_v48  ;;  %4026 = vst [vmem:[#allocation35_spill] sm:$0xff] %v3161_v7  ;;  %v1199_v11 = vmul.f32 %v3036_v56, %v4032_v25  ;;  %v4034_v7 = vld [vmem:[#allocation24_spill] sm:$0xff]  ;;  %v4039_v25 = vld [vmem:[#allocation30_spill] sm:$0xff]  ;;  %v1212_v2 = vmul.f32 %v4044_v33, %v3036_v56  ;;  %v3241_v51 = vadd.f32 %v1195_v31, %v3082_v32 }
 0x186   :  { %4027 = vst [vmem:[#allocation33_spill] sm:$0xff] %v3164_v45  ;;  %v1201_v59 = vmul.f32 %v3036_v56, %v4034_v7  ;;  %v1202_v45 = vmul.f32 %v4035_v44, %v3036_v56  ;;  %v4036_v48 = vld [vmem:[#allocation28_spill] sm:$0xff]  ;;  %v1206_v50 = vmul.f32 %v4039_v25, %v3036_v56  ;;  %v4041_v7 = vld [vmem:[#allocation34_spill] sm:$0xff]  ;;  %v1209_v44 = vmul.f32 %v3036_v56, %v4042_v39 }
 0x187   :  { %v1203_v9 = vmul.f32 %v3036_v56, %v4036_v48  ;;  %v4040_v5 = vld [vmem:[#allocation36_spill] sm:$0xff]  ;;  %v1208_v21 = vmul.f32 %v4041_v7, %v3036_v56  ;;  %v4043_v48 = vld [vmem:[#allocation38_spill] sm:$0xff]  ;;  %v3226_v25 = vadd.f32 %v3086_v49, %v3082_v32  ;;  %v3234_v39 = vadd.f32 %v3094_v52, %v3082_v32 }
 0x188   :  { %v1207_v57 = vmul.f32 %v3036_v56, %v4040_v5  ;;  %v1210_v60 = vmul.f32 %v4043_v48, %v3036_v56  ;;  %v3230_v5 = vadd.f32 %v3090_v14, %v3082_v32  ;;  %v3238_v7 = vadd.f32 %v3098_v28, %v3082_v32 }
 0x189   :  { %v3244_v48 = vadd.f32 %v1196_v47, %v3082_v32  ;;  %v3247_v49 = vadd.f32 %v1197_v41, %v3082_v32  ;;  %v3250_v14 = vadd.f32 %v1198_v8, %v3082_v32  ;;  %v3253_v33 = vadd.f32 %v1199_v11, %v3082_v32 }
 0x18a   :  { %v3256_v52 = vadd.f32 %v1200_v18, %v3082_v32  ;;  %v3259_v28 = vadd.f32 %v1201_v59, %v3082_v32  ;;  %v3262_v31 = vadd.f32 %v1202_v45, %v3082_v32  ;;  %v3265_v47 = vadd.f32 %v1203_v9, %v3082_v32 }
 0x18b   :  { %v3268_v41 = vadd.f32 %v1204_v17, %v3082_v32  ;;  %v3271_v8 = vadd.f32 %v1205_v40, %v3082_v32  ;;  %v3274_v11 = vadd.f32 %v1206_v50, %v3082_v32  ;;  %v3277_v18 = vadd.f32 %v1207_v57, %v3082_v32 }
 0x18c   :  { %4045 = vst [vmem:[#allocation39_spill] sm:$0xff] %v3262_v31  ;;  %v3280_v59 = vadd.f32 %v1208_v21, %v3082_v32  ;;  %v3283_v45 = vadd.f32 %v1209_v44, %v3082_v32  ;;  %v3286_v9 = vadd.f32 %v1210_v60, %v3082_v32  ;;  %v3289_v17 = vadd.f32 %v1211_v1, %v3082_v32  ;;  %v4049_v31 = vld [vmem:[#allocation45_spill] sm:$0xff]  ;;  %v4050_v21 = vld [vmem:[#allocation43_spill] sm:$0xff] }
 0x18d   :  { %v3292_v40 = vadd.f32 %v1212_v2, %v3082_v32  ;;  %v1257_v10 = vmul.f32 %v3036_v56, %v4049_v31  ;;  %v1258_v44 = vmul.f32 %v4050_v21, %v3036_v56  ;;  %v4051_v60 = vld [vmem:[#allocation47_spill] sm:$0xff]  ;;  %v4052_v2 = vld [vmem:[#allocation49_spill] sm:$0xff]  ;;  %v1263_v57 = vmul.f32 %v3036_v56, %v2844_v26 }
 0x18e   :  { %4046 = vst [vmem:[#allocation37_spill] sm:$0xff] %v3286_v9  ;;  %4047 = vst [vmem:[#allocation41_spill] sm:$0xff] %v3289_v17  ;;  %v1260_v1 = vmul.f32 %v4051_v60, %v3036_v56  ;;  %v1262_v50 = vmul.f32 %v4052_v2, %v3036_v56  ;;  %v1264_v31 = vmul.f32 %v2831_v22, %v3036_v56 }
 0x18f   :  { %4048 = vst [vmem:[#allocation4_spill] sm:$0xff] %v3292_v40  ;;  %v1265_v21 = vmul.f32 %v3036_v56, %v2869_v37  ;;  %v1267_v60 = vmul.f32 %v3036_v56, %v2892_v12  ;;  %v1268_v23 = vmul.f32 %v2879_v3, %v3036_v56  ;;  %v1269_v2 = vmul.f32 %v3036_v56, %v2917_v29 }
 0x190   :  { %v1270_v26 = vmul.f32 %v2905_v0, %v3036_v56  ;;  %v1271_v22 = vmul.f32 %v3036_v56, %v2940_v54  ;;  %v1272_v37 = vmul.f32 %v2928_v43, %v3036_v56  ;;  %v1273_v58 = vmul.f32 %v3036_v56, %v2965_v63 }
 0x191   :  { %v1274_v12 = vmul.f32 %v2953_v61, %v3036_v56  ;;  %v1275_v3 = vmul.f32 %v3036_v56, %v2988_v55  ;;  %v1276_v29 = vmul.f32 %v2975_v30, %v3036_v56  ;;  %v1277_v0 = vmul.f32 %v3036_v56, %v3013_v53 }
 0x192   :  { %v1278_v54 = vmul.f32 %v3001_v19, %v3036_v56  ;;  %v3361_v43 = vadd.f32 %v1257_v10, %v3082_v32  ;;  %v3364_v63 = vadd.f32 %v1258_v44, %v3082_v32  ;;  %v3367_v61 = vadd.f32 %v1259_v35, %v3082_v32 }
 0x193   :  { %v3370_v55 = vadd.f32 %v1260_v1, %v3082_v32  ;;  %v3373_v30 = vadd.f32 %v1261_v20, %v3082_v32  ;;  %v3376_v53 = vadd.f32 %v1262_v50, %v3082_v32  ;;  %v3379_v19 = vadd.f32 %v1263_v57, %v3082_v32 }
 0x194   :  { %v3382_v10 = vadd.f32 %v1264_v31, %v3082_v32  ;;  %v3385_v44 = vadd.f32 %v1265_v21, %v3082_v32  ;;  %v3388_v35 = vadd.f32 %v1266_v4, %v3082_v32  ;;  %v3391_v1 = vadd.f32 %v1267_v60, %v3082_v32 }
 0x195   :  { %v3394_v20 = vadd.f32 %v1268_v23, %v3082_v32  ;;  %v3397_v50 = vadd.f32 %v1269_v2, %v3082_v32  ;;  %v3400_v57 = vadd.f32 %v1270_v26, %v3082_v32  ;;  %v3403_v31 = vadd.f32 %v1271_v22, %v3082_v32 }
 0x196   :  { %4053 = vst [vmem:[#allocation3_spill] sm:$0xff] %v3382_v10  ;;  %4054 = vst [vmem:[#allocation8_spill] sm:$0xff] %v3385_v44  ;;  %v3406_v21 = vadd.f32 %v1272_v37, %v3082_v32  ;;  %v3409_v4 = vadd.f32 %v1273_v58, %v3082_v32  ;;  %v3412_v60 = vadd.f32 %v1274_v12, %v3082_v32  ;;  %v4069_v12 = vld [vmem:[#allocation44_spill] sm:$0xff] }
 0x197   :  { %4055 = vst [vmem:[#allocation6_spill] sm:$0xff] %v3388_v35  ;;  %4056 = vst [vmem:[#allocation12_spill] sm:$0xff] %v3391_v1  ;;  %v3415_v23 = vadd.f32 %v1275_v3, %v3082_v32  ;;  %v3418_v2 = vadd.f32 %v1276_v29, %v3082_v32  ;;  %v3421_v26 = vadd.f32 %v1277_v0, %v3082_v32  ;;  %v4071_v29 = vld [vmem:[#allocation51_spill] sm:$0xff] }
 0x198   :  { %4057 = vst [vmem:[#allocation10_spill] sm:$0xff] %v3394_v20  ;;  %4058 = vst [vmem:[#allocation16_spill] sm:$0xff] %v3397_v50  ;;  %v3424_v22 = vadd.f32 %v1278_v54, %v3082_v32  ;;  %v4068_v20 = vld [vmem:[#allocation46_spill] sm:$0xff]  ;;  %v1324_v3 = vmul.f32 %v4069_v12, %v3036_v56  ;;  %v1326_v0 = vmul.f32 %v2787_v16, %v3036_v56  ;;  %v4081_v50 = vld [vmem:[#allocation61_spill] sm:$0xff] }
 0x199   :  { %4059 = vst [vmem:[#allocation14_spill] sm:$0xff] %v3400_v57  ;;  %4060 = vst [vmem:[#allocation20_spill] sm:$0xff] %v3403_v31  ;;  %v1323_v40 = vmul.f32 %v3036_v56, %v4068_v20  ;;  %v4070_v31 = vld [vmem:[#allocation48_spill] sm:$0xff]  ;;  %v1327_v9 = vmul.f32 %v3036_v56, %v4071_v29  ;;  %v4072_v54 = vld [vmem:[#allocation50_spill] sm:$0xff]  ;;  %v1329_v58 = vmul.f32 %v3036_v56, %v2855_v24 }
 0x19a   :  { %4061 = vst [vmem:[#allocation18_spill] sm:$0xff] %v3406_v21  ;;  %4062 = vst [vmem:[#allocation24_spill] sm:$0xff] %v3409_v4  ;;  %v1325_v17 = vmul.f32 %v3036_v56, %v4070_v31  ;;  %v1328_v37 = vmul.f32 %v4072_v54, %v3036_v56  ;;  %v1330_v20 = vmul.f32 %v2842_v62, %v3036_v56  ;;  %v4074_v24 = vld [vmem:[#allocation52_spill] sm:$0xff]  ;;  %v4079_v21 = vld [vmem:[#allocation59_spill] sm:$0xff] }
 0x19b   :  { %4063 = vst [vmem:[#allocation22_spill] sm:$0xff] %v3412_v60  ;;  %4064 = vst [vmem:[#allocation28_spill] sm:$0xff] %v3415_v23  ;;  %v1331_v12 = vmul.f32 %v3036_v56, %v2877_v34  ;;  %v1332_v31 = vmul.f32 %v2867_v13, %v3036_v56  ;;  %v1333_v16 = vmul.f32 %v3036_v56, %v2903_v38  ;;  %v4076_v34 = vld [vmem:[#allocation54_spill] sm:$0xff]  ;;  %v4077_v60 = vld [vmem:[#allocation57_spill] sm:$0xff] }
 0x19c   :  { %4065 = vst [vmem:[#allocation26_spill] sm:$0xff] %v3418_v2  ;;  %4066 = vst [vmem:[#allocation32_spill] sm:$0xff] %v3421_v26  ;;  %v1334_v29 = vmul.f32 %v2890_v36, %v3036_v56  ;;  %v1336_v26 = vmul.f32 %v4074_v24, %v3036_v56  ;;  %v4075_v2 = vld [vmem:[#allocation55_spill] sm:$0xff]  ;;  %v1338_v23 = vmul.f32 %v4076_v34, %v3036_v56  ;;  %v4078_v38 = vld [vmem:[#allocation56_spill] sm:$0xff] }
 0x19d   :  { %4067 = vst [vmem:[#allocation30_spill] sm:$0xff] %v3424_v22  ;;  %v4073_v22 = vld [vmem:[#allocation53_spill] sm:$0xff]  ;;  %v1337_v62 = vmul.f32 %v3036_v56, %v4075_v2  ;;  %v1339_v13 = vmul.f32 %v3036_v56, %v4077_v60  ;;  %v1340_v4 = vmul.f32 %v4078_v38, %v3036_v56  ;;  %v1341_v36 = vmul.f32 %v3036_v56, %v4079_v21  ;;  %v4082_v2 = vld [vmem:[#allocation60_spill] sm:$0xff] }
 0x19e   :  { %v1335_v54 = vmul.f32 %v3036_v56, %v4073_v22  ;;  %v4080_v22 = vld [vmem:[#allocation58_spill] sm:$0xff]  ;;  %v1343_v24 = vmul.f32 %v3036_v56, %v4081_v50  ;;  %v1344_v1 = vmul.f32 %v4082_v2, %v3036_v56  ;;  %v3493_v34 = vadd.f32 %v1323_v40, %v3082_v32 }
 0x19f   :  { %v1342_v57 = vmul.f32 %v4080_v22, %v3036_v56  ;;  %v3496_v60 = vadd.f32 %v1324_v3, %v3082_v32  ;;  %v3499_v38 = vadd.f32 %v1325_v17, %v3082_v32  ;;  %v3502_v21 = vadd.f32 %v1326_v0, %v3082_v32 }
 0x1a0   :  { %v3505_v22 = vadd.f32 %v1327_v9, %v3082_v32  ;;  %v3508_v50 = vadd.f32 %v1328_v37, %v3082_v32  ;;  %v3511_v56 = vadd.f32 %v1329_v58, %v3082_v32  ;;  %v3514_v40 = vadd.f32 %v1330_v20, %v3082_v32 }
 0x1a1   :  { %v3517_v3 = vadd.f32 %v1331_v12, %v3082_v32  ;;  %v3520_v17 = vadd.f32 %v1332_v31, %v3082_v32  ;;  %v3523_v0 = vadd.f32 %v1333_v16, %v3082_v32  ;;  %v3526_v9 = vadd.f32 %v1334_v29, %v3082_v32 }
 0x1a2   :  { %v3529_v37 = vadd.f32 %v1335_v54, %v3082_v32  ;;  %v3532_v58 = vadd.f32 %v1336_v26, %v3082_v32  ;;  %v3535_v20 = vadd.f32 %v1337_v62, %v3082_v32  ;;  %v3538_v12 = vadd.f32 %v1338_v23, %v3082_v32 }
 0x1a3   :  { %v3541_v31 = vadd.f32 %v1339_v13, %v3082_v32  ;;  %v3544_v16 = vadd.f32 %v1340_v4, %v3082_v32  ;;  %v3547_v29 = vadd.f32 %v1341_v36, %v3082_v32  ;;  %v3550_v54 = vadd.f32 %v1342_v57, %v3082_v32 }
 0x1a4   :  { %v3553_v26 = vadd.f32 %v1343_v24, %v3082_v32  ;;  %v3556_v62 = vadd.f32 %v1344_v1, %v3082_v32  ;;  %v1367_v23 = vmax.f32 %v3493_v34, 0.0  ;;  %v1368_v13 = vmax.f32 %v3496_v60, 0.0 }
 0x1a5   :  { %v1369_v2 = vmax.f32 %v3499_v38, 0.0  ;;  %v1370_v4 = vmax.f32 %v3502_v21, 0.0  ;;  %v1371_v36 = vmax.f32 %v3505_v22, 0.0  ;;  %v1372_v35 = vmax.f32 %v3508_v50, 0.0 }
 0x1a6   :  { %v1373_v57 = vmax.f32 %v3511_v56, 0.0  ;;  %v1374_v24 = vmax.f32 %v3514_v40, 0.0  ;;  %v1375_v44 = vmax.f32 %v3517_v3, 0.0  ;;  %v1376_v32 = vmax.f32 %v3520_v17, 0.0 }
 0x1a7   :  { %v1377_v1 = vmax.f32 %v3523_v0, 0.0  ;;  %v1378_v34 = vmax.f32 %v3526_v9, 0.0  ;;  %v1379_v60 = vmax.f32 %v3529_v37, 0.0  ;;  %v1380_v38 = vmax.f32 %v3532_v58, 0.0 }
 0x1a8   :  { %v1381_v21 = vmax.f32 %v3535_v20, 0.0  ;;  %v1382_v22 = vmax.f32 %v3538_v12, 0.0  ;;  %v1383_v50 = vmax.f32 %v3541_v31, 0.0  ;;  %v1384_v56 = vmax.f32 %v3544_v16, 0.0 }
 0x1a9   :  { %v1385_v40 = vmax.f32 %v3547_v29, 0.0  ;;  %v1386_v3 = vmax.f32 %v3550_v54, 0.0  ;;  %v1387_v17 = vmax.f32 %v3553_v26, 0.0  ;;  %v1388_v0 = vmax.f32 %v3556_v62, 0.0 }
 0x1aa   :  { %v4083_v9 = vmax.f32 %v3226_v25, 0.0  ;;  %v4084_v37 = vmax.f32 %v3101_v46, 0.0  ;;  %v4085_v20 = vmax.f32 %v3230_v5, 0.0  ;;  %v4086_v12 = vmax.f32 %v3104_v6, 0.0 }
 0x1ab   :  { %v4087_v16 = vmax.f32 %v3234_v39, 0.0  ;;  %v4088_v29 = vmax.f32 %v3107_v15, 0.0  ;;  %v4089_v54 = vmax.f32 %v3238_v7, 0.0  ;;  %v4090_v26 = vmax.f32 %v3110_v27, 0.0  ;;  %v4100_v27 = vld [vmem:[#allocation5_spill] sm:$0xff] }
 0x1ac   :  { %v1389_v58 = vmax.f32 %v4084_v37, %v4083_v9  ;;  %v1390_v31 = vmax.f32 %v4086_v12, %v4085_v20  ;;  %v4091_v25 = vmax.f32 %v3241_v51, 0.0  ;;  %v4092_v46 = vmax.f32 %v3113_v42, 0.0  ;;  %v4094_v37 = vld [vmem:[#allocation2_spill] sm:$0xff]  ;;  %v4097_v12 = vld [vmem:[#allocation7_spill] sm:$0xff] }
 0x1ad   :  { %v1391_v10 = vmax.f32 %v4088_v29, %v4087_v16  ;;  %v1392_v62 = vmax.f32 %v4090_v26, %v4089_v54  ;;  %v4093_v5 = vmax.f32 %v3244_v48, 0.0  ;;  %v4095_v6 = vmax.f32 %v4094_v37, 0.0  ;;  %v4103_v51 = vld [vmem:[#allocation11_spill] sm:$0xff] }
 0x1ae   :  { %v1393_v9 = vmax.f32 %v4092_v46, %v4091_v25  ;;  %v4096_v39 = vmax.f32 %v3247_v49, 0.0  ;;  %v4098_v15 = vmax.f32 %v4097_v12, 0.0  ;;  %v4099_v7 = vmax.f32 %v3250_v14, 0.0  ;;  %v4106_v46 = vld [vmem:[#allocation9_spill] sm:$0xff]  ;;  %v4111_v12 = vld [vmem:[#allocation39_spill] sm:$0xff] }
 0x1af   :  { %v1394_v20 = vmax.f32 %v4095_v6, %v4093_v5  ;;  %v4101_v29 = vmax.f32 %v4100_v27, 0.0  ;;  %v4102_v42 = vmax.f32 %v3253_v33, 0.0  ;;  %v4104_v26 = vmax.f32 %v4103_v51, 0.0  ;;  %v4109_v6 = vld [vmem:[#allocation15_spill] sm:$0xff] }
 0x1b0   :  { %v3608_v16 = vmax.f32 %v4098_v15, %v4096_v39  ;;  %v4105_v25 = vmax.f32 %v3256_v52, 0.0  ;;  %v4107_v49 = vmax.f32 %v4106_v46, 0.0  ;;  %v4108_v37 = vmax.f32 %v3259_v28, 0.0 }
 0x1b1   :  { %v3614_v54 = vmax.f32 %v4101_v29, %v4099_v7  ;;  %v3620_v48 = vmax.f32 %v4104_v26, %v4102_v42  ;;  %v4110_v14 = vmax.f32 %v4109_v6, 0.0  ;;  %v4112_v15 = vmax.f32 %v4111_v12, 0.0  ;;  %v4113_v7 = vld [vmem:[#allocation13_spill] sm:$0xff]  ;;  %v4116_v42 = vld [vmem:[#allocation19_spill] sm:$0xff] }
 0x1b2   :  { %v3626_v5 = vmax.f32 %v4107_v49, %v4105_v25  ;;  %v4114_v33 = vmax.f32 %v4113_v7, 0.0  ;;  %v4115_v29 = vmax.f32 %v3265_v47, 0.0  ;;  %v4117_v52 = vmax.f32 %v4116_v42, 0.0  ;;  %v4119_v25 = vld [vmem:[#allocation17_spill] sm:$0xff] }
 0x1b3   :  { %v3632_v39 = vmax.f32 %v4110_v14, %v4108_v37  ;;  %v4118_v26 = vmax.f32 %v3268_v41, 0.0  ;;  %v4120_v28 = vmax.f32 %v4119_v25, 0.0  ;;  %v4121_v49 = vmax.f32 %v3271_v8, 0.0  ;;  %v4122_v37 = vld [vmem:[#allocation23_spill] sm:$0xff] }
 0x1b4   :  { %v3638_v27 = vmax.f32 %v4114_v33, %v4112_v15  ;;  %v3644_v51 = vmax.f32 %v4117_v52, %v4115_v29  ;;  %v4123_v6 = vmax.f32 %v4122_v37, 0.0  ;;  %v4124_v12 = vmax.f32 %v3274_v11, 0.0  ;;  %v4125_v15 = vld [vmem:[#allocation21_spill] sm:$0xff]  ;;  %v4128_v29 = vld [vmem:[#allocation27_spill] sm:$0xff] }
 0x1b5   :  { %v3650_v46 = vmax.f32 %v4120_v28, %v4118_v26  ;;  %v4126_v47 = vmax.f32 %v4125_v15, 0.0  ;;  %v4127_v33 = vmax.f32 %v3277_v18, 0.0  ;;  %v4129_v41 = vmax.f32 %v4128_v29, 0.0  ;;  %v4132_v26 = vld [vmem:[#allocation25_spill] sm:$0xff] }
 0x1b6   :  { %v3656_v14 = vmax.f32 %v4123_v6, %v4121_v49  ;;  %v4131_v52 = vmax.f32 %v3280_v59, 0.0  ;;  %v4133_v8 = vmax.f32 %v4132_v26, 0.0  ;;  %v4135_v28 = vmax.f32 %v3283_v45, 0.0  ;;  %v4136_v49 = vld [vmem:[#allocation31_spill] sm:$0xff]  ;;  %v4138_v6 = vld [vmem:[#allocation37_spill] sm:$0xff] }
 0x1b7   :  { %v3662_v7 = vmax.f32 %v4126_v47, %v4124_v12  ;;  %v3668_v42 = vmax.f32 %v4129_v41, %v4127_v33  ;;  %v4137_v11 = vmax.f32 %v4136_v49, 0.0  ;;  %v4139_v12 = vmax.f32 %v4138_v6, 0.0  ;;  %v4140_v15 = vld [vmem:[#allocation29_spill] sm:$0xff]  ;;  %v4144_v41 = vld [vmem:[#allocation35_spill] sm:$0xff] }
 0x1b8   :  { %v3674_v25 = vmax.f32 %v4133_v8, %v4131_v52  ;;  %v4141_v18 = vmax.f32 %v4140_v15, 0.0  ;;  %v4142_v33 = vld [vmem:[#allocation41_spill] sm:$0xff]  ;;  %v4145_v59 = vmax.f32 %v4144_v41, 0.0  ;;  %v4146_v52 = vld [vmem:[#allocation4_spill] sm:$0xff] }
 0x1b9   :  { %4130 = vst [vmem:[#allocation36_spill] sm:$0xff] %v3668_v42  ;;  %v3680_v37 = vmax.f32 %v4137_v11, %v4135_v28  ;;  %v4143_v29 = vmax.f32 %v4142_v33, 0.0  ;;  %v4147_v26 = vmax.f32 %v4146_v52, 0.0  ;;  %v4148_v8 = vld [vmem:[#allocation33_spill] sm:$0xff]  ;;  %v4150_v28 = vmax.f32 %v3361_v43, 0.0  ;;  %v4157_v43 = vld [vmem:[#allocation3_spill] sm:$0xff] }
 0x1ba   :  { %4134 = vst [vmem:[#allocation34_spill] sm:$0xff] %v3674_v25  ;;  %v3686_v47 = vmax.f32 %v4141_v18, %v4139_v12  ;;  %v4149_v45 = vmax.f32 %v4148_v8, 0.0  ;;  %v4151_v11 = vmax.f32 %v3364_v63, 0.0  ;;  %v4152_v12 = vmax.f32 %v3367_v61, 0.0  ;;  %v4159_v63 = vld [vmem:[#allocation8_spill] sm:$0xff]  ;;  %v4161_v61 = vld [vmem:[#allocation6_spill] sm:$0xff] }
 0x1bb   :  { %v3692_v42 = vmax.f32 %v4145_v59, %v4143_v29  ;;  %v1411_v49 = vmax.f32 %v4150_v28, %v1367_v23  ;;  %v4153_v18 = vmax.f32 %v3370_v55, 0.0  ;;  %v4154_v29 = vmax.f32 %v3373_v30, 0.0  ;;  %v4163_v55 = vld [vmem:[#allocation12_spill] sm:$0xff]  ;;  %v4165_v30 = vld [vmem:[#allocation10_spill] sm:$0xff] }
 0x1bc   :  { %v3698_v25 = vmax.f32 %v4149_v45, %v4147_v26  ;;  %v1412_v6 = vmax.f32 %v4151_v11, %v1368_v13  ;;  %v1413_v15 = vmax.f32 %v4152_v12, %v1369_v2  ;;  %v4155_v59 = vmax.f32 %v3376_v53, 0.0  ;;  %v4167_v53 = vld [vmem:[#allocation16_spill] sm:$0xff] }
 0x1bd   :  { %v1414_v33 = vmax.f32 %v4153_v18, %v1370_v4  ;;  %v1415_v41 = vmax.f32 %v4154_v29, %v1371_v36  ;;  %v4156_v26 = vmax.f32 %v3379_v19, 0.0  ;;  %v4158_v23 = vmax.f32 %v4157_v43, 0.0  ;;  %v4169_v19 = vld [vmem:[#allocation14_spill] sm:$0xff] }
 0x1be   :  { %v1416_v52 = vmax.f32 %v4155_v59, %v1372_v35  ;;  %v4160_v13 = vmax.f32 %v4159_v63, 0.0  ;;  %v4162_v2 = vmax.f32 %v4161_v61, 0.0  ;;  %v4164_v4 = vmax.f32 %v4163_v55, 0.0 }
 0x1bf   :  { %v1417_v8 = vmax.f32 %v4156_v26, %v1373_v57  ;;  %v1418_v45 = vmax.f32 %v4158_v23, %v1374_v24  ;;  %v4166_v36 = vmax.f32 %v4165_v30, 0.0  ;;  %v4168_v35 = vmax.f32 %v4167_v53, 0.0  ;;  %v4171_v26 = vld [vmem:[#allocation20_spill] sm:$0xff]  ;;  %v4173_v23 = vld [vmem:[#allocation18_spill] sm:$0xff] }
 0x1c0   :  { %v1419_v28 = vmax.f32 %v4160_v13, %v1375_v44  ;;  %v1420_v11 = vmax.f32 %v4162_v2, %v1376_v32  ;;  %v1421_v12 = vmax.f32 %v4164_v4, %v1377_v1  ;;  %v4170_v57 = vmax.f32 %v4169_v19, 0.0  ;;  %v4175_v13 = vld [vmem:[#allocation24_spill] sm:$0xff]  ;;  %v4177_v2 = vld [vmem:[#allocation22_spill] sm:$0xff] }
 0x1c1   :  { %v1422_v18 = vmax.f32 %v4166_v36, %v1378_v34  ;;  %v1423_v29 = vmax.f32 %v4168_v35, %v1379_v60  ;;  %v4172_v24 = vmax.f32 %v4171_v26, 0.0  ;;  %v4174_v44 = vmax.f32 %v4173_v23, 0.0  ;;  %v4179_v4 = vld [vmem:[#allocation28_spill] sm:$0xff]  ;;  %v4181_v36 = vld [vmem:[#allocation26_spill] sm:$0xff] }
 0x1c2   :  { %v1424_v59 = vmax.f32 %v4170_v57, %v1380_v38  ;;  %v4176_v32 = vmax.f32 %v4175_v13, 0.0  ;;  %v4178_v1 = vmax.f32 %v4177_v2, 0.0  ;;  %v4180_v34 = vmax.f32 %v4179_v4, 0.0  ;;  %v4183_v35 = vld [vmem:[#allocation32_spill] sm:$0xff]  ;;  %v4185_v57 = vld [vmem:[#allocation30_spill] sm:$0xff] }
 0x1c3   :  { %v1425_v43 = vmax.f32 %v4172_v24, %v1381_v21  ;;  %v1426_v63 = vmax.f32 %v4174_v44, %v1382_v22  ;;  %v4182_v60 = vmax.f32 %v4181_v36, 0.0  ;;  %v4184_v38 = vmax.f32 %v4183_v35, 0.0 }
 0x1c4   :  { %v1427_v61 = vmax.f32 %v4176_v32, %v1383_v50  ;;  %v1428_v55 = vmax.f32 %v4178_v1, %v1384_v56  ;;  %v1429_v30 = vmax.f32 %v4180_v34, %v1385_v40  ;;  %v4186_v21 = vmax.f32 %v4185_v57, 0.0 }
 0x1c5   :  { %v1430_v53 = vmax.f32 %v4182_v60, %v1386_v3  ;;  %v1431_v19 = vmax.f32 %v4184_v38, %v1387_v17  ;;  %v1433_v24 = vmax.f32 %v1389_v58, %v1411_v49  ;;  %v1434_v22 = vmax.f32 %v1390_v31, %v1412_v6 }
 0x1c6   :  { %v1432_v26 = vmax.f32 %v4186_v21, %v1388_v0  ;;  %v1435_v23 = vmax.f32 %v1391_v10, %v1413_v15  ;;  %v1436_v44 = vmax.f32 %v1392_v62, %v1414_v33  ;;  %v1437_v50 = vmax.f32 %v1393_v9, %v1415_v41  ;;  %v4187_v9 = vld [vmem:[#allocation36_spill] sm:$0xff] }
 0x1c7   :  { %v1438_v13 = vmax.f32 %v1394_v20, %v1416_v52  ;;  %v1439_v56 = vmax.f32 %v3608_v16, %v1417_v8  ;;  %v1440_v32 = vmax.f32 %v3614_v54, %v1418_v45  ;;  %v1441_v40 = vmax.f32 %v3620_v48, %v1419_v28  ;;  %1455 = vst [vmem:[%s3830_s4] sm:$0xff] %v1433_v24  ;;  %v4188_v16 = vld [vmem:[#allocation34_spill] sm:$0xff] }
 0x1c8   :  { %v1442_v3 = vmax.f32 %v3626_v5, %v1420_v11  ;;  %1456 = vst [vmem:[%s3830_s4 + $0x8] sm:$0xff] %v1434_v22  ;;  %v1443_v10 = vmax.f32 %v3632_v39, %v1421_v12  ;;  %v1444_v17 = vmax.f32 %v3638_v27, %v1422_v18  ;;  %v1445_v0 = vmax.f32 %v3644_v51, %v1423_v29 }
 0x1c9   :  { %v1446_v58 = vmax.f32 %v3650_v46, %v1424_v59  ;;  %1457 = vst [vmem:[%s3830_s4 + $0x10] sm:$0xff] %v1435_v23  ;;  %1458 = vst [vmem:[%s3830_s4 + $0x18] sm:$0xff] %v1436_v44  ;;  %v1447_v31 = vmax.f32 %v3656_v14, %v1425_v43  ;;  %v1448_v62 = vmax.f32 %v3662_v7, %v1426_v63 }
 0x1ca   :  { %1459 = vst [vmem:[%s3830_s4 + $0x20] sm:$0xff] %v1437_v50  ;;  %1460 = vst [vmem:[%s3830_s4 + $0x28] sm:$0xff] %v1438_v13  ;;  %v1449_v20 = vmax.f32 %v4187_v9, %v1427_v61  ;;  %v1450_v54 = vmax.f32 %v4188_v16, %v1428_v55  ;;  %v1451_v48 = vmax.f32 %v3680_v37, %v1429_v30 }
 0x1cb   :  { %1461 = vst [vmem:[%s3830_s4 + $0x30] sm:$0xff] %v1439_v56  ;;  %1462 = vst [vmem:[%s3830_s4 + $0x38] sm:$0xff] %v1440_v32  ;;  %v1452_v5 = vmax.f32 %v3686_v47, %v1430_v53  ;;  %v1453_v39 = vmax.f32 %v3692_v42, %v1431_v19  ;;  %v1454_v27 = vmax.f32 %v3698_v25, %v1432_v26 }
 0x1cc   :  { %1463 = vst [vmem:[%s3830_s4 + $0x40] sm:$0xff] %v1441_v40  ;;  %1464 = vst [vmem:[%s3830_s4 + $0x48] sm:$0xff] %v1442_v3 }
 0x1cd   :  { %1465 = vst [vmem:[%s3830_s4 + $0x50] sm:$0xff] %v1443_v10  ;;  %1466 = vst [vmem:[%s3830_s4 + $0x58] sm:$0xff] %v1444_v17 }
 0x1ce   :  { %1467 = vst [vmem:[%s3830_s4 + $0x60] sm:$0xff] %v1445_v0  ;;  %1468 = vst [vmem:[%s3830_s4 + $0x68] sm:$0xff] %v1446_v58 }
 0x1cf   :  { %1469 = vst [vmem:[%s3830_s4 + $0x70] sm:$0xff] %v1447_v31  ;;  %1470 = vst [vmem:[%s3830_s4 + $0x78] sm:$0xff] %v1448_v62 }
 0x1d0   :  { %1471 = vst [vmem:[%s3830_s4 + $0x80] sm:$0xff] %v1449_v20  ;;  %1472 = vst [vmem:[%s3830_s4 + $0x88] sm:$0xff] %v1450_v54 }
 0x1d1   :  { %1473 = vst [vmem:[%s3830_s4 + $0x90] sm:$0xff] %v1451_v48  ;;  %1474 = vst [vmem:[%s3830_s4 + $0x98] sm:$0xff] %v1452_v5 }
 0x1d2   :  { %1475 = vst [vmem:[%s3830_s4 + $0xa0] sm:$0xff] %v1453_v39  ;;  %1476 = vst [vmem:[%s3830_s4 + $0xa8] sm:$0x1] %v1454_v27 }

// kernel: _forward.6
= control target key start
LH: loop header
LB: loop body
LE: loop exit
PB: predicated region body
PF: predicated region fallthrough
CT: control target
= control target key end

     0   :  { %vm1742_vm0 = vcmask 1040384   ;;  %s4912_s1 = inlined_call_operand.vmem [shape: f32[1152,128], index: 1, kind: input, shape index: {}]   ;;  %s4913_s0 = inlined_call_operand.vmem [shape: f32[4,9,1152], index: 0, kind: input, shape index: {}]   ;;  %s4914_s2 = inlined_call_operand.vmem [shape: f32[1,128], index: 2, kind: input, shape index: {}]   ;;  %s4915_s3 = inlined_call_operand.vmem [shape: f32[1,128], index: 3, kind: input, shape index: {}]   ;;  %s4916_s4 = inlined_call_operand.vmem [shape: f32[9,128], index: 4, kind: output, shape index: {}]  }
   0x1   :  { %v2881_v0 = vld [vmem:[%s4912_s1 + $0xf8] sm:$0xff]  ;;  %v2903_v4 = vld [vmem:[%s4912_s1 + $0xf0] sm:$0xff]  ;;  %v2925_v8 = vld [vmem:[%s4912_s1 + $0xe8] sm:$0xff] }
   0x2   :  { %v2886_v1 = vld [vmem:[%s4912_s1 + $0x1f8] sm:$0xff]  ;;  %1887 = vmatprep.subr.mxu0 %v2881_v0  ;;  %v2908_v5 = vld [vmem:[%s4912_s1 + $0x1f0] sm:$0xff]  ;;  %v2932_v9 = vld [vmem:[%s4912_s1 + $0x1e8] sm:$0xff] }
   0x3   :  { %v2891_v2 = vld [vmem:[%s4912_s1 + $0x78] sm:$0xff]  ;;  %1925 = vmatprep.subr.mxu1 %v2886_v1  ;;  %v2915_v6 = vld [vmem:[%s4912_s1 + $0x70] sm:$0xff]  ;;  %v2937_v10 = vld [vmem:[%s4912_s1 + $0x68] sm:$0xff] }
   0x4   :  { %v2898_v3 = vld [vmem:[%s4912_s1 + $0x178] sm:$0xff]  ;;  %1888 = vmatpush3.msra.mxu0 %v2891_v2  ;;  %v2920_v7 = vld [vmem:[%s4912_s1 + $0x170] sm:$0xff]  ;;  %v2942_v11 = vld [vmem:[%s4912_s1 + $0x168] sm:$0xff] }
   0x5   :  { %1926 = vmatpush3.msra.mxu1 %v2898_v3  ;;  %1889 = vmatprep.subr.mxu0 %v2903_v4  ;;  %v2949_v12 = vld [vmem:[%s4912_s1 + $0xe0] sm:$0xff]  ;;  %v2973_v16 = vld [vmem:[%s4912_s1 + $0xd8] sm:$0xff]  ;;  %v2997_v20 = vld [vmem:[%s4912_s1 + $0xd0] sm:$0xff] }
   0x6   :  { %1927 = vmatprep.subr.mxu1 %v2908_v5  ;;  %1890 = vmatpush3.msra.mxu0 %v2915_v6  ;;  %v2954_v13 = vld [vmem:[%s4912_s1 + $0x1e0] sm:$0xff]  ;;  %v2978_v17 = vld [vmem:[%s4912_s1 + $0x1d8] sm:$0xff]  ;;  %v3002_v21 = vld [vmem:[%s4912_s1 + $0x1d0] sm:$0xff] }
   0x7   :  { %1928 = vmatpush3.msra.mxu1 %v2920_v7  ;;  %1891 = vmatprep.subr.mxu0 %v2925_v8  ;;  %v2961_v14 = vld [vmem:[%s4912_s1 + $0x60] sm:$0xff]  ;;  %v2985_v18 = vld [vmem:[%s4912_s1 + $0x58] sm:$0xff]  ;;  %v3009_v22 = vld [vmem:[%s4912_s1 + $0x50] sm:$0xff] }
   0x8   :  { %1929 = vmatprep.subr.mxu1 %v2932_v9  ;;  %v2966_v15 = vld [vmem:[%s4912_s1 + $0x160] sm:$0xff]  ;;  %1892 = vmatpush3.msra.mxu0 %v2937_v10  ;;  %v2990_v19 = vld [vmem:[%s4912_s1 + $0x158] sm:$0xff]  ;;  %v3014_v23 = vld [vmem:[%s4912_s1 + $0x150] sm:$0xff] }
   0x9   :  { %1930 = vmatpush3.msra.mxu1 %v2942_v11  ;;  %1893 = vmatprep.subr.mxu0 %v2949_v12  ;;  %v3021_v24 = vld [vmem:[%s4912_s1 + $0xc8] sm:$0xff]  ;;  %v3045_v28 = vld [vmem:[%s4912_s1 + $0xc0] sm:$0xff]  ;;  %v3069_v32 = vld [vmem:[%s4912_s1 + $0xb8] sm:$0xff] }
   0xa   :  { %1931 = vmatprep.subr.mxu1 %v2954_v13  ;;  %1894 = vmatpush3.msra.mxu0 %v2961_v14  ;;  %v3026_v25 = vld [vmem:[%s4912_s1 + $0x1c8] sm:$0xff]  ;;  %v3050_v29 = vld [vmem:[%s4912_s1 + $0x1c0] sm:$0xff]  ;;  %v3074_v33 = vld [vmem:[%s4912_s1 + $0x1b8] sm:$0xff] }
   0xb   :  { %1932 = vmatpush3.msra.mxu1 %v2966_v15  ;;  %1895 = vmatprep.subr.mxu0 %v2973_v16  ;;  %5119 = vst [vmem:[#allocation2_spill] sm:$0xff] %v3026_v25  ;;  %v3033_v26 = vld [vmem:[%s4912_s1 + $0x48] sm:$0xff]  ;;  %5121 = vst [vmem:[#allocation4_spill] sm:$0xff] %v3050_v29  ;;  %v3057_v30 = vld [vmem:[%s4912_s1 + $0x40] sm:$0xff] }
   0xc   :  { %1933 = vmatprep.subr.mxu1 %v2978_v17  ;;  %1896 = vmatpush3.msra.mxu0 %v2985_v18  ;;  %v3038_v27 = vld [vmem:[%s4912_s1 + $0x148] sm:$0xff]  ;;  %v3062_v31 = vld [vmem:[%s4912_s1 + $0x140] sm:$0xff]  ;;  %5123 = vst [vmem:[#allocation6_spill] sm:$0xff] %v3074_v33  ;;  %v3081_v34 = vld [vmem:[%s4912_s1 + $0x38] sm:$0xff] }
   0xd   :  { %1934 = vmatpush3.msra.mxu1 %v2990_v19  ;;  %1897 = vmatprep.subr.mxu0 %v2997_v20  ;;  %5120 = vst [vmem:[#allocation3_spill] sm:$0xff] %v3038_v27  ;;  %5122 = vst [vmem:[#allocation5_spill] sm:$0xff] %v3062_v31  ;;  %v3086_v35 = vld [vmem:[%s4912_s1 + $0x138] sm:$0xff]  ;;  %v3093_v36 = vld [vmem:[%s4912_s1 + $0xb0] sm:$0xff] }
   0xe   :  { %1935 = vmatprep.subr.mxu1 %v3002_v21  ;;  %1898 = vmatpush3.msra.mxu0 %v3009_v22  ;;  %5124 = vst [vmem:[#allocation7_spill] sm:$0xff] %v3086_v35  ;;  %v3098_v37 = vld [vmem:[%s4912_s1 + $0x1b0] sm:$0xff]  ;;  %v3117_v40 = vld [vmem:[%s4912_s1 + $0xa8] sm:$0xff]  ;;  %v3141_v44 = vld [vmem:[%s4912_s1 + $0xa0] sm:$0xff] }
   0xf   :  { %1936 = vmatpush3.msra.mxu1 %v3014_v23  ;;  %1899 = vmatprep.subr.mxu0 %v3021_v24  ;;  %5125 = vst [vmem:[#allocation8_spill] sm:$0xff] %v3098_v37  ;;  %v3105_v38 = vld [vmem:[%s4912_s1 + $0x30] sm:$0xff]  ;;  %v3122_v41 = vld [vmem:[%s4912_s1 + $0x1a8] sm:$0xff]  ;;  %v3146_v45 = vld [vmem:[%s4912_s1 + $0x1a0] sm:$0xff] }
  0x10   :  { %1937 = vmatprep.subr.mxu1 %v3026_v25  ;;  %1900 = vmatpush3.msra.mxu0 %v3033_v26  ;;  %v3110_v39 = vld [vmem:[%s4912_s1 + $0x130] sm:$0xff]  ;;  %5127 = vst [vmem:[#allocation10_spill] sm:$0xff] %v3122_v41  ;;  %v3129_v42 = vld [vmem:[%s4912_s1 + $0x28] sm:$0xff]  ;;  %5129 = vst [vmem:[#allocation12_spill] sm:$0xff] %v3146_v45 }
  0x11   :  { %1938 = vmatpush3.msra.mxu1 %v3038_v27  ;;  %1901 = vmatprep.subr.mxu0 %v3045_v28  ;;  %5126 = vst [vmem:[#allocation9_spill] sm:$0xff] %v3110_v39  ;;  %v3134_v43 = vld [vmem:[%s4912_s1 + $0x128] sm:$0xff]  ;;  %v3153_v46 = vld [vmem:[%s4912_s1 + $0x20] sm:$0xff]  ;;  %v3165_v48 = vld [vmem:[%s4912_s1 + $0x98] sm:$0xff] }
  0x12   :  { %1939 = vmatprep.subr.mxu1 %v3050_v29  ;;  %1902 = vmatpush3.msra.mxu0 %v3057_v30  ;;  %5128 = vst [vmem:[#allocation11_spill] sm:$0xff] %v3134_v43  ;;  %v3158_v47 = vld [vmem:[%s4912_s1 + $0x120] sm:$0xff]  ;;  %v3170_v49 = vld [vmem:[%s4912_s1 + $0x198] sm:$0xff]  ;;  %v3189_v52 = vld [vmem:[%s4912_s1 + $0x90] sm:$0xff] }
  0x13   :  { %1940 = vmatpush3.msra.mxu1 %v3062_v31  ;;  %1903 = vmatprep.subr.mxu0 %v3069_v32  ;;  %5130 = vst [vmem:[#allocation13_spill] sm:$0xff] %v3158_v47  ;;  %5131 = vst [vmem:[#allocation14_spill] sm:$0xff] %v3170_v49  ;;  %v3177_v50 = vld [vmem:[%s4912_s1 + $0x18] sm:$0xff]  ;;  %v3194_v53 = vld [vmem:[%s4912_s1 + $0x190] sm:$0xff] }
  0x14   :  { %1941 = vmatprep.subr.mxu1 %v3074_v33  ;;  %1904 = vmatpush3.msra.mxu0 %v3081_v34  ;;  %v3182_v51 = vld [vmem:[%s4912_s1 + $0x118] sm:$0xff]  ;;  %5133 = vst [vmem:[#allocation16_spill] sm:$0xff] %v3194_v53  ;;  %v3201_v54 = vld [vmem:[%s4912_s1 + $0x10] sm:$0xff]  ;;  %v3213_v56 = vld [vmem:[%s4912_s1 + $0x88] sm:$0xff] }
  0x15   :  { %1942 = vmatpush3.msra.mxu1 %v3086_v35  ;;  %1905 = vmatprep.subr.mxu0 %v3093_v36  ;;  %5132 = vst [vmem:[#allocation15_spill] sm:$0xff] %v3182_v51  ;;  %v3206_v55 = vld [vmem:[%s4912_s1 + $0x110] sm:$0xff]  ;;  %v3218_v57 = vld [vmem:[%s4912_s1 + $0x188] sm:$0xff]  ;;  %v3237_v60 = vld [vmem:[%s4912_s1 + $0x80] sm:$0xff] }
  0x16   :  { %1943 = vmatprep.subr.mxu1 %v3098_v37  ;;  %1906 = vmatpush3.msra.mxu0 %v3105_v38  ;;  %5134 = vst [vmem:[#allocation17_spill] sm:$0xff] %v3206_v55  ;;  %5135 = vst [vmem:[#allocation18_spill] sm:$0xff] %v3218_v57  ;;  %v3225_v58 = vld [vmem:[%s4912_s1 + $0x8] sm:$0xff]  ;;  %v3242_v61 = vld [vmem:[%s4912_s1 + $0x180] sm:$0xff] }
  0x17   :  { %1944 = vmatpush3.msra.mxu1 %v3110_v39  ;;  %1907 = vmatprep.subr.mxu0 %v3117_v40  ;;  %v3230_v59 = vld [vmem:[%s4912_s1 + $0x108] sm:$0xff]  ;;  %5137 = vst [vmem:[#allocation20_spill] sm:$0xff] %v3242_v61  ;;  %v3249_v62 = vld [vmem:[%s4912_s1] sm:$0xff]  ;;  %v3369_v39 = vld [vmem:[%s4912_s1 + $0x2d8] sm:$0xff] }
  0x18   :  { %1945 = vmatprep.subr.mxu1 %v3122_v41  ;;  %1908 = vmatpush3.msra.mxu0 %v3129_v42  ;;  %5136 = vst [vmem:[#allocation19_spill] sm:$0xff] %v3230_v59  ;;  %v162_v63 = vld [vmem:[%s4913_s0 + $0x8] sm:$0xff]  ;;  %v3357_v41 = vld [vmem:[%s4912_s1 + $0x260] sm:$0xff]  ;;  %5151 = vst [vmem:[#allocation34_spill] sm:$0xff] %v3369_v39 }
  0x19   :  { %1946 = vmatpush3.msra.mxu1 %v3134_v43  ;;  %1909 = vmatprep.subr.mxu0 %v3141_v44  ;;  %v3345_v43 = vld [vmem:[%s4912_s1 + $0x2e0] sm:$0xff]  ;;  %5149 = vst [vmem:[#allocation32_spill] sm:$0xff] %v3357_v41  ;;  %v3381_v37 = vld [vmem:[%s4912_s1 + $0x258] sm:$0xff]  ;;  %v3393_v35 = vld [vmem:[%s4912_s1 + $0x2d0] sm:$0xff] }
  0x1a   :  { %1947 = vmatprep.subr.mxu1 %v3146_v45  ;;  %1910 = vmatpush3.msra.mxu0 %v3153_v46  ;;  %v3333_v45 = vld [vmem:[%s4912_s1 + $0x268] sm:$0xff]  ;;  %5147 = vst [vmem:[#allocation30_spill] sm:$0xff] %v3345_v43  ;;  %5153 = vst [vmem:[#allocation36_spill] sm:$0xff] %v3381_v37  ;;  %v3405_v33 = vld [vmem:[%s4912_s1 + $0x250] sm:$0xff] }
  0x1b   :  { %1948 = vmatpush3.msra.mxu1 %v3158_v47  ;;  %1911 = vmatprep.subr.mxu0 %v3165_v48  ;;  %v3297_v47 = vld [vmem:[%s4912_s1 + $0x2f0] sm:$0xff]  ;;  %5145 = vst [vmem:[#allocation28_spill] sm:$0xff] %v3333_v45  ;;  %5155 = vst [vmem:[#allocation38_spill] sm:$0xff] %v3393_v35  ;;  %v3417_v31 = vld [vmem:[%s4912_s1 + $0x2c8] sm:$0xff] }
  0x1c   :  { %1949 = vmatprep.subr.mxu1 %v3170_v49  ;;  %1912 = vmatpush3.msra.mxu0 %v3177_v50  ;;  %v3287_v49 = vld [vmem:[%s4912_s1 + $0x278] sm:$0xff]  ;;  %5157 = vst [vmem:[#allocation40_spill] sm:$0xff] %v3405_v33  ;;  %5159 = vst [vmem:[#allocation42_spill] sm:$0xff] %v3417_v31  ;;  %v3429_v29 = vld [vmem:[%s4912_s1 + $0x248] sm:$0xff] }
  0x1d   :  { %1950 = vmatpush3.msra.mxu1 %v3182_v51  ;;  %1913 = vmatprep.subr.mxu0 %v3189_v52  ;;  %v3276_v51 = vld [vmem:[%s4912_s1 + $0x2f8] sm:$0xff]  ;;  %5161 = vst [vmem:[#allocation44_spill] sm:$0xff] %v3429_v29  ;;  %v3441_v27 = vld [vmem:[%s4912_s1 + $0x2c0] sm:$0xff] }
  0x1e   :  { %1951 = vmatprep.subr.mxu1 %v3194_v53  ;;  %1914 = vmatpush3.msra.mxu0 %v3201_v54  ;;  %v161_v53 = vld [vmem:[%s4913_s0] sm:$0xff]  ;;  %5163 = vst [vmem:[#allocation46_spill] sm:$0xff] %v3441_v27 }
  0x1f   :  { %1952 = vmatpush3.msra.mxu1 %v3206_v55  ;;  %1915 = vmatprep.subr.mxu0 %v3213_v56  ;;  %v3259_v55 = vld [vmem:[%s4912_s1 + $0x100] sm:$0xff] }
  0x20   :  { %1953 = vmatprep.subr.mxu1 %v3218_v57  ;;  %1916 = vmatpush3.msra.mxu0 %v3225_v58  ;;  %5138 = vst [vmem:[#allocation21_spill] sm:$0xff] %v3259_v55  ;;  %v164_v57 = vld [vmem:[%s4913_s0 + $0x18] sm:$0xff]  ;;  %v3453_v25 = vld [vmem:[%s4912_s1 + $0x240] sm:$0xff] }
  0x21   :  { %1954 = vmatpush3.msra.mxu1 %v3230_v59  ;;  %1917 = vmatprep.subr.mxu0 %v3237_v60  ;;  %v163_v59 = vld [vmem:[%s4913_s0 + $0x10] sm:$0xff]  ;;  %5165 = vst [vmem:[#allocation48_spill] sm:$0xff] %v3453_v25 }
  0x22   :  { %1955 = vmatprep.subr.mxu1 %v3242_v61  ;;  %1918 = vmatpush3.msra.mxu0 %v3249_v62  ;;  %v3281_v61 = vld [vmem:[%s4912_s1 + $0x3f8] sm:$0xff] }
  0x23   :  { %243 = vmatprep.mubr.f32.mxu0 %v162_v63  ;;  %5139 = vst [vmem:[#allocation22_spill] sm:$0xff] %v3281_v61  ;;  %1956 = vmatpush3.msra.mxu1 %v3259_v55  ;;  %v3292_v63 = vld [vmem:[%s4912_s1 + $0x378] sm:$0xff]  ;;  %v3309_v55 = vld [vmem:[%s4912_s1 + $0x270] sm:$0xff] }
  0x24   :  { %318 = vmatprep.mubr.f32.mxu1 %v164_v57  ;;  %5140 = vst [vmem:[#allocation23_spill] sm:$0xff] %v3292_v63  ;;  %244 = vmatmul.mubr.f32.vlgmr.msra.gmra.mxu0 %v161_v53  ;;  %v3302_v57 = vld [vmem:[%s4912_s1 + $0x3f0] sm:$0xff] }
  0x25   :  { %319 = vmatmul.mubr.f32.vlgmr.msra.gmra.mxu1 %v163_v59  ;;  %5141 = vst [vmem:[#allocation24_spill] sm:$0xff] %v3302_v57  ;;  %1963 = vmatprep.subr.mxu0 %v3276_v51  ;;  %v3314_v53 = vld [vmem:[%s4912_s1 + $0x370] sm:$0xff]  ;;  %v3321_v59 = vld [vmem:[%s4912_s1 + $0x2e8] sm:$0xff] }
  0x26   :  { %2001 = vmatprep.subr.mxu1 %v3281_v61  ;;  %5142 = vst [vmem:[#allocation25_spill] sm:$0xff] %v3314_v53  ;;  %1964 = vmatpush3.msra.mxu0 %v3287_v49  ;;  %5143 = vst [vmem:[#allocation26_spill] sm:$0xff] %v3321_v59  ;;  %v3326_v61 = vld [vmem:[%s4912_s1 + $0x3e8] sm:$0xff] }
  0x27   :  { %2002 = vmatpush3.msra.mxu1 %v3292_v63  ;;  %5144 = vst [vmem:[#allocation27_spill] sm:$0xff] %v3326_v61  ;;  %1965 = vmatprep.subr.mxu0 %v3297_v47  ;;  %v3338_v63 = vld [vmem:[%s4912_s1 + $0x368] sm:$0xff] }
  0x28   :  { %2003 = vmatprep.subr.mxu1 %v3302_v57  ;;  %5146 = vst [vmem:[#allocation29_spill] sm:$0xff] %v3338_v63  ;;  %1966 = vmatpush3.msra.mxu0 %v3309_v55  ;;  %v3350_v57 = vld [vmem:[%s4912_s1 + $0x3e0] sm:$0xff] }
  0x29   :  { %2004 = vmatpush3.msra.mxu1 %v3314_v53  ;;  %5148 = vst [vmem:[#allocation31_spill] sm:$0xff] %v3350_v57  ;;  %1967 = vmatprep.subr.mxu0 %v3321_v59  ;;  %v3362_v53 = vld [vmem:[%s4912_s1 + $0x360] sm:$0xff] }
  0x2a   :  { %2005 = vmatprep.subr.mxu1 %v3326_v61  ;;  %5150 = vst [vmem:[#allocation33_spill] sm:$0xff] %v3362_v53  ;;  %1968 = vmatpush3.msra.mxu0 %v3333_v45  ;;  %v3374_v61 = vld [vmem:[%s4912_s1 + $0x3d8] sm:$0xff] }
  0x2b   :  { %2006 = vmatpush3.msra.mxu1 %v3338_v63  ;;  %5152 = vst [vmem:[#allocation35_spill] sm:$0xff] %v3374_v61  ;;  %1969 = vmatprep.subr.mxu0 %v3345_v43  ;;  %v3386_v63 = vld [vmem:[%s4912_s1 + $0x358] sm:$0xff] }
  0x2c   :  { %2007 = vmatprep.subr.mxu1 %v3350_v57  ;;  %5154 = vst [vmem:[#allocation37_spill] sm:$0xff] %v3386_v63  ;;  %1970 = vmatpush3.msra.mxu0 %v3357_v41  ;;  %v3398_v57 = vld [vmem:[%s4912_s1 + $0x3d0] sm:$0xff] }
  0x2d   :  { %2008 = vmatpush3.msra.mxu1 %v3362_v53  ;;  %5156 = vst [vmem:[#allocation39_spill] sm:$0xff] %v3398_v57  ;;  %1971 = vmatprep.subr.mxu0 %v3369_v39  ;;  %v3410_v53 = vld [vmem:[%s4912_s1 + $0x350] sm:$0xff] }
  0x2e   :  { %2009 = vmatprep.subr.mxu1 %v3374_v61  ;;  %5158 = vst [vmem:[#allocation41_spill] sm:$0xff] %v3410_v53  ;;  %1972 = vmatpush3.msra.mxu0 %v3381_v37  ;;  %v3422_v61 = vld [vmem:[%s4912_s1 + $0x3c8] sm:$0xff] }
  0x2f   :  { %2010 = vmatpush3.msra.mxu1 %v3386_v63  ;;  %5160 = vst [vmem:[#allocation43_spill] sm:$0xff] %v3422_v61  ;;  %1973 = vmatprep.subr.mxu0 %v3393_v35  ;;  %v3434_v63 = vld [vmem:[%s4912_s1 + $0x348] sm:$0xff] }
  0x30   :  { %2011 = vmatprep.subr.mxu1 %v3398_v57  ;;  %5162 = vst [vmem:[#allocation45_spill] sm:$0xff] %v3434_v63  ;;  %1974 = vmatpush3.msra.mxu0 %v3405_v33  ;;  %v3446_v57 = vld [vmem:[%s4912_s1 + $0x3c0] sm:$0xff]  ;;  %v3593_v33 = vld [vmem:[%s4912_s1 + $0x290] sm:$0xff] }
  0x31   :  { %2012 = vmatpush3.msra.mxu1 %v3410_v53  ;;  %5164 = vst [vmem:[#allocation47_spill] sm:$0xff] %v3446_v57  ;;  %1975 = vmatprep.subr.mxu0 %v3417_v31  ;;  %v3458_v53 = vld [vmem:[%s4912_s1 + $0x340] sm:$0xff]  ;;  %v3465_v31 = vld [vmem:[%s4912_s1 + $0x2b8] sm:$0xff]  ;;  %5187 = vst [vmem:[#allocation70_spill] sm:$0xff] %v3593_v33 }
  0x32   :  { %2013 = vmatprep.subr.mxu1 %v3422_v61  ;;  %5166 = vst [vmem:[#allocation49_spill] sm:$0xff] %v3458_v53  ;;  %1976 = vmatpush3.msra.mxu0 %v3429_v29  ;;  %5167 = vst [vmem:[#allocation50_spill] sm:$0xff] %v3465_v31  ;;  %v3470_v61 = vld [vmem:[%s4912_s1 + $0x3b8] sm:$0xff] }
  0x33   :  { %2014 = vmatpush3.msra.mxu1 %v3434_v63  ;;  %5168 = vst [vmem:[#allocation51_spill] sm:$0xff] %v3470_v61  ;;  %1977 = vmatprep.subr.mxu0 %v3441_v27  ;;  %v3477_v29 = vld [vmem:[%s4912_s1 + $0x238] sm:$0xff]  ;;  %v3489_v27 = vld [vmem:[%s4912_s1 + $0x2b0] sm:$0xff] }
  0x34   :  { %2015 = vmatprep.subr.mxu1 %v3446_v57  ;;  %5169 = vst [vmem:[#allocation52_spill] sm:$0xff] %v3477_v29  ;;  %v3482_v63 = vld [vmem:[%s4912_s1 + $0x338] sm:$0xff]  ;;  %1978 = vmatpush3.msra.mxu0 %v3453_v25  ;;  %5171 = vst [vmem:[#allocation54_spill] sm:$0xff] %v3489_v27  ;;  %v3494_v57 = vld [vmem:[%s4912_s1 + $0x3b0] sm:$0xff] }
  0x35   :  { %5170 = vst [vmem:[#allocation53_spill] sm:$0xff] %v3482_v63  ;;  %2016 = vmatpush3.msra.mxu1 %v3458_v53  ;;  %5172 = vst [vmem:[#allocation55_spill] sm:$0xff] %v3494_v57  ;;  %1979 = vmatprep.subr.mxu0 %v3465_v31  ;;  %v3501_v25 = vld [vmem:[%s4912_s1 + $0x230] sm:$0xff]  ;;  %v3513_v31 = vld [vmem:[%s4912_s1 + $0x2a8] sm:$0xff] }
  0x36   :  { %2017 = vmatprep.subr.mxu1 %v3470_v61  ;;  %5173 = vst [vmem:[#allocation56_spill] sm:$0xff] %v3501_v25  ;;  %v3506_v53 = vld [vmem:[%s4912_s1 + $0x330] sm:$0xff]  ;;  %1980 = vmatpush3.msra.mxu0 %v3477_v29  ;;  %5175 = vst [vmem:[#allocation58_spill] sm:$0xff] %v3513_v31  ;;  %v3518_v61 = vld [vmem:[%s4912_s1 + $0x3a8] sm:$0xff] }
  0x37   :  { %5174 = vst [vmem:[#allocation57_spill] sm:$0xff] %v3506_v53  ;;  %2018 = vmatpush3.msra.mxu1 %v3482_v63  ;;  %5176 = vst [vmem:[#allocation59_spill] sm:$0xff] %v3518_v61  ;;  %1981 = vmatprep.subr.mxu0 %v3489_v27  ;;  %v3525_v29 = vld [vmem:[%s4912_s1 + $0x228] sm:$0xff]  ;;  %v3537_v27 = vld [vmem:[%s4912_s1 + $0x2a0] sm:$0xff] }
  0x38   :  { %2019 = vmatprep.subr.mxu1 %v3494_v57  ;;  %5177 = vst [vmem:[#allocation60_spill] sm:$0xff] %v3525_v29  ;;  %v3530_v63 = vld [vmem:[%s4912_s1 + $0x328] sm:$0xff]  ;;  %1982 = vmatpush3.msra.mxu0 %v3501_v25  ;;  %5179 = vst [vmem:[#allocation62_spill] sm:$0xff] %v3537_v27  ;;  %v3542_v57 = vld [vmem:[%s4912_s1 + $0x3a0] sm:$0xff] }
  0x39   :  { %5178 = vst [vmem:[#allocation61_spill] sm:$0xff] %v3530_v63  ;;  %2020 = vmatpush3.msra.mxu1 %v3506_v53  ;;  %5180 = vst [vmem:[#allocation63_spill] sm:$0xff] %v3542_v57  ;;  %1983 = vmatprep.subr.mxu0 %v3513_v31  ;;  %v3549_v25 = vld [vmem:[%s4912_s1 + $0x220] sm:$0xff]  ;;  %v3561_v31 = vld [vmem:[%s4912_s1 + $0x298] sm:$0xff] }
  0x3a   :  { %2021 = vmatprep.subr.mxu1 %v3518_v61  ;;  %5181 = vst [vmem:[#allocation64_spill] sm:$0xff] %v3549_v25  ;;  %v3554_v53 = vld [vmem:[%s4912_s1 + $0x320] sm:$0xff]  ;;  %1984 = vmatpush3.msra.mxu0 %v3525_v29  ;;  %5183 = vst [vmem:[#allocation66_spill] sm:$0xff] %v3561_v31  ;;  %v3566_v61 = vld [vmem:[%s4912_s1 + $0x398] sm:$0xff] }
  0x3b   :  { %5182 = vst [vmem:[#allocation65_spill] sm:$0xff] %v3554_v53  ;;  %2022 = vmatpush3.msra.mxu1 %v3530_v63  ;;  %5184 = vst [vmem:[#allocation67_spill] sm:$0xff] %v3566_v61  ;;  %1985 = vmatprep.subr.mxu0 %v3537_v27  ;;  %v3573_v29 = vld [vmem:[%s4912_s1 + $0x218] sm:$0xff]  ;;  %v171_v27 = vld [vmem:[%s4913_s0 + $0x50] sm:$0x1] }
  0x3c   :  { %2023 = vmatprep.subr.mxu1 %v3542_v57  ;;  %5185 = vst [vmem:[#allocation68_spill] sm:$0xff] %v3573_v29  ;;  %v3578_v63 = vld [vmem:[%s4912_s1 + $0x318] sm:$0xff]  ;;  %1986 = vmatpush3.msra.mxu0 %v3549_v25  ;;  %v173_v57 = vld [vmem:[%s4913_s0 + $0x60] sm:$0x1]  ;;  %v3611_v25 = vld [vmem:[%s4912_s1 + $0x210] sm:$0xff] }
  0x3d   :  { %5186 = vst [vmem:[#allocation69_spill] sm:$0xff] %v3578_v63  ;;  %2024 = vmatpush3.msra.mxu1 %v3554_v53  ;;  %1987 = vmatprep.subr.mxu0 %v3561_v31  ;;  %v3598_v53 = vld [vmem:[%s4912_s1 + $0x390] sm:$0xff]  ;;  %v170_v31 = vld [vmem:[%s4913_s0 + $0x48] sm:$0x1]  ;;  %5189 = vst [vmem:[#allocation72_spill] sm:$0xff] %v3611_v25 }
  0x3e   :  { %2025 = vmatprep.subr.mxu1 %v3566_v61  ;;  %5188 = vst [vmem:[#allocation71_spill] sm:$0xff] %v3598_v53  ;;  %1988 = vmatpush3.msra.mxu0 %v3573_v29  ;;  %v172_v61 = vld [vmem:[%s4913_s0 + $0x58] sm:$0x1]  ;;  %v3616_v29 = vld [vmem:[%s4912_s1 + $0x310] sm:$0xff] }
  0x3f   :  { %2026 = vmatpush3.msra.mxu1 %v3578_v63  ;;  %248 = vmatprep.mubr.f32.mxu0 %v171_v27  ;;  %5190 = vst [vmem:[#allocation73_spill] sm:$0xff] %v3616_v29  ;;  %v3623_v63 = vld [vmem:[%s4912_s1 + $0x288] sm:$0xff] }
  0x40   :  { %323 = vmatprep.mubr.f32.mxu1 %v173_v57  ;;  %1989 = vmatprep.subr.mxu0 %v3593_v33  ;;  %5191 = vst [vmem:[#allocation74_spill] sm:$0xff] %v3623_v63  ;;  %v3628_v27 = vld [vmem:[%s4912_s1 + $0x388] sm:$0xff]  ;;  %v3645_v33 = vld [vmem:[%s4912_s1 + $0x280] sm:$0xff] }
  0x41   :  { %2027 = vmatprep.subr.mxu1 %v3598_v53  ;;  %5192 = vst [vmem:[#allocation75_spill] sm:$0xff] %v3628_v27  ;;  %249 = vmatmul.mubr.f32.gmra.mxu0 %v170_v31  ;;  %v3633_v57 = vld [vmem:[%s4912_s1 + $0x208] sm:$0xff]  ;;  %5195 = vst [vmem:[#allocation78_spill] sm:$0xff] %v3645_v33  ;;  %v3650_v31 = vld [vmem:[%s4912_s1 + $0x380] sm:$0xff] }
  0x42   :  { %324 = vmatmul.mubr.f32.gmra.mxu1 %v172_v61  ;;  %5193 = vst [vmem:[#allocation76_spill] sm:$0xff] %v3633_v57  ;;  %v3638_v53 = vld [vmem:[%s4912_s1 + $0x308] sm:$0xff]  ;;  %1990 = vmatpush3.msra.mxu0 %v3611_v25  ;;  %5196 = vst [vmem:[#allocation79_spill] sm:$0xff] %v3650_v31  ;;  %v3657_v61 = vld [vmem:[%s4912_s1 + $0x200] sm:$0xff] }
  0x43   :  { %5194 = vst [vmem:[#allocation77_spill] sm:$0xff] %v3638_v53  ;;  %2028 = vmatpush3.msra.mxu1 %v3616_v29  ;;  %1991 = vmatprep.subr.mxu0 %v3623_v63  ;;  %5197 = vst [vmem:[#allocation80_spill] sm:$0xff] %v3657_v61  ;;  %v166_v29 = vld [vmem:[%s4913_s0 + $0x28] sm:$0xff]  ;;  %v3667_v25 = vld [vmem:[%s4912_s1 + $0x300] sm:$0xff] }
  0x44   :  { %2029 = vmatprep.subr.mxu1 %v3628_v27  ;;  %1992 = vmatpush3.msra.mxu0 %v3633_v57  ;;  %5198 = vst [vmem:[#allocation81_spill] sm:$0xff] %v3667_v25  ;;  %v165_v27 = vld [vmem:[%s4913_s0 + $0x20] sm:$0xff]  ;;  %v168_v63 = vld [vmem:[%s4913_s0 + $0x38] sm:$0xff]  ;;  %v167_v57 = vld [vmem:[%s4913_s0 + $0x30] sm:$0xff] }
  0x45   :  { %2030 = vmatpush3.msra.mxu1 %v3638_v53  ;;  %1993 = vmatprep.subr.mxu0 %v3645_v33  ;;  %v3680_v53 = vld [vmem:[%s4912_s1 + $0x478] sm:$0xff] }
  0x46   :  { %2031 = vmatprep.subr.mxu1 %v3650_v31  ;;  %5199 = vst [vmem:[#allocation82_spill] sm:$0xff] %v3680_v53  ;;  %1994 = vmatpush3.msra.mxu0 %v3657_v61  ;;  %v3691_v31 = vld [vmem:[%s4912_s1 + $0x470] sm:$0xff] }
  0x47   :  { %393 = vmatprep.mubr.f32.mxu0 %v166_v29  ;;  %2032 = vmatpush3.msra.mxu1 %v3667_v25  ;;  %5200 = vst [vmem:[#allocation83_spill] sm:$0xff] %v3691_v31  ;;  %v175_v29 = vld [vmem:[%s4913_s0 + $0x70] sm:$0x1] }
  0x48   :  { %394 = vmatmul.mubr.f32.vlgmr.msra.gmra.mxu0 %v165_v27  ;;  %468 = vmatprep.mubr.f32.mxu1 %v168_v63  ;;  %v174_v63 = vld [vmem:[%s4913_s0 + $0x68] sm:$0x1]  ;;  %v3717_v27 = vld [vmem:[%s4912_s1 + $0x460] sm:$0xff] }
  0x49   :  { %2567 = vmatprep.subr.mxu0 %v3680_v53  ;;  %2057 = vmatprep.subr.mxu1 %v2881_v0  ;;  %v3707_v0 = vld [vmem:[%s4912_s1 + $0x468] sm:$0xff]  ;;  %5202 = vst [vmem:[#allocation85_spill] sm:$0xff] %v3717_v27 }
  0x4a   :  { %469 = vmatmul.mubr.f32.vlgmr.msra.gmra.mxu1 %v167_v57  ;;  %2568 = vmatpush3.msra.mxu0 %v3680_v53  ;;  %5201 = vst [vmem:[#allocation84_spill] sm:$0xff] %v3707_v0  ;;  %v169_v57 = vld [vmem:[%s4913_s0 + $0x40] sm:$0xff] }
  0x4b   :  { %2058 = vmatpush3.msra.mxu1 %v2891_v2  ;;  %2569 = vmatprep.subr.mxu0 %v3691_v31  ;;  %v177_v2 = vld [vmem:[%s4913_s0 + $0x80] sm:$0x1] }
  0x4c   :  { %2059 = vmatprep.subr.mxu1 %v2903_v4  ;;  %398 = vmatprep.mubr.f32.mxu0 %v175_v29  ;;  %v176_v4 = vld [vmem:[%s4913_s0 + $0x78] sm:$0x1]  ;;  %v178_v29 = vld [vmem:[%s4913_s0 + $0x88] sm:$0x1] }
  0x4d   :  { %2570 = vmatpush3.msra.mxu0 %v3691_v31  ;;  %2060 = vmatpush3.msra.mxu1 %v2915_v6  ;;  %v3730_v6 = vld [vmem:[%s4912_s1 + $0x458] sm:$0xff] }
  0x4e   :  { %399 = vmatmul.mubr.f32.gmra.mxu0 %v174_v63  ;;  %2571 = vmatprep.subr.mxu0 %v3707_v0  ;;  %5203 = vst [vmem:[#allocation86_spill] sm:$0xff] %v3730_v6  ;;  %v1834_v63 = vld [vmem:[%s4913_s0 + $0x98] sm:$0xff] }
  0x4f   :  { %2061 = vmatprep.subr.mxu1 %v2925_v8  ;;  %473 = vmatprep.mubr.f32.mxu1 %v177_v2  ;;  %v3738_v8 = vld [vmem:[%s4912_s1 + $0x450] sm:$0xff] }
  0x50   :  { %2572 = vmatpush3.msra.mxu0 %v3707_v0  ;;  %2062 = vmatpush3.msra.mxu1 %v2937_v10  ;;  %5204 = vst [vmem:[#allocation87_spill] sm:$0xff] %v3738_v8  ;;  %v3747_v10 = vld [vmem:[%s4912_s1 + $0x448] sm:$0xff]  ;;  %v1833_v2 = vld [vmem:[%s4913_s0 + $0x90] sm:$0xff] }
  0x51   :  { %2573 = vmatprep.subr.mxu0 %v3717_v27  ;;  %474 = vmatmul.mubr.f32.gmra.mxu1 %v176_v4  ;;  %5205 = vst [vmem:[#allocation88_spill] sm:$0xff] %v3747_v10  ;;  %v5227_v4 = vld [vmem:[#allocation52_spill] sm:$0xff] }
  0x52   :  { %2063 = vmatprep.subr.mxu1 %v2949_v12  ;;  %2574 = vmatpush3.msra.mxu0 %v3717_v27  ;;  %v3756_v12 = vld [vmem:[%s4912_s1 + $0x440] sm:$0xff] }
  0x53   :  { %2064 = vmatpush3.msra.mxu1 %v2961_v14  ;;  %2575 = vmatprep.subr.mxu0 %v3730_v6  ;;  %5206 = vst [vmem:[#allocation89_spill] sm:$0xff] %v3756_v12  ;;  %v3765_v14 = vld [vmem:[%s4912_s1 + $0x438] sm:$0xff] }
  0x54   :  { %2065 = vmatprep.subr.mxu1 %v2973_v16  ;;  %2576 = vmatpush3.msra.mxu0 %v3730_v6  ;;  %5207 = vst [vmem:[#allocation90_spill] sm:$0xff] %v3765_v14  ;;  %v3774_v16 = vld [vmem:[%s4912_s1 + $0x430] sm:$0xff] }
  0x55   :  { %2066 = vmatpush3.msra.mxu1 %v2985_v18  ;;  %2577 = vmatprep.subr.mxu0 %v3738_v8  ;;  %5208 = vst [vmem:[#allocation91_spill] sm:$0xff] %v3774_v16  ;;  %v3783_v18 = vld [vmem:[%s4912_s1 + $0x428] sm:$0xff] }
  0x56   :  { %2067 = vmatprep.subr.mxu1 %v2997_v20  ;;  %2578 = vmatpush3.msra.mxu0 %v3738_v8  ;;  %5209 = vst [vmem:[#allocation92_spill] sm:$0xff] %v3783_v18  ;;  %v3792_v20 = vld [vmem:[%s4912_s1 + $0x420] sm:$0xff] }
  0x57   :  { %2068 = vmatpush3.msra.mxu1 %v3009_v22  ;;  %2579 = vmatprep.subr.mxu0 %v3747_v10  ;;  %5210 = vst [vmem:[#allocation93_spill] sm:$0xff] %v3792_v20  ;;  %v3801_v22 = vld [vmem:[%s4912_s1 + $0x418] sm:$0xff] }
  0x58   :  { %2069 = vmatprep.subr.mxu1 %v3021_v24  ;;  %2580 = vmatpush3.msra.mxu0 %v3747_v10  ;;  %5211 = vst [vmem:[#allocation94_spill] sm:$0xff] %v3801_v22  ;;  %v3810_v24 = vld [vmem:[%s4912_s1 + $0x410] sm:$0xff] }
  0x59   :  { %2070 = vmatpush3.msra.mxu1 %v3033_v26  ;;  %2581 = vmatprep.subr.mxu0 %v3756_v12  ;;  %5212 = vst [vmem:[#allocation95_spill] sm:$0xff] %v3810_v24  ;;  %v3819_v26 = vld [vmem:[%s4912_s1 + $0x408] sm:$0xff] }
  0x5a   :  { %2071 = vmatprep.subr.mxu1 %v3045_v28  ;;  %2582 = vmatpush3.msra.mxu0 %v3756_v12  ;;  %5213 = vst [vmem:[#allocation96_spill] sm:$0xff] %v3819_v26  ;;  %v3828_v28 = vld [vmem:[%s4912_s1 + $0x400] sm:$0xff] }
  0x5b   :  { %2072 = vmatpush3.msra.mxu1 %v3057_v30  ;;  %2583 = vmatprep.subr.mxu0 %v3765_v14  ;;  %5214 = vst [vmem:[#allocation97_spill] sm:$0xff] %v3828_v28 }
  0x5c   :  { %2073 = vmatprep.subr.mxu1 %v3069_v32  ;;  %2584 = vmatpush3.msra.mxu0 %v3765_v14 }
  0x5d   :  { %2074 = vmatpush3.msra.mxu1 %v3081_v34  ;;  %2585 = vmatprep.subr.mxu0 %v3774_v16 }
  0x5e   :  { %2075 = vmatprep.subr.mxu1 %v3093_v36  ;;  %2586 = vmatpush3.msra.mxu0 %v3774_v16 }
  0x5f   :  { %2076 = vmatpush3.msra.mxu1 %v3105_v38  ;;  %2587 = vmatprep.subr.mxu0 %v3783_v18 }
  0x60   :  { %2077 = vmatprep.subr.mxu1 %v3117_v40  ;;  %2588 = vmatpush3.msra.mxu0 %v3783_v18 }
  0x61   :  { %2078 = vmatpush3.msra.mxu1 %v3129_v42  ;;  %2589 = vmatprep.subr.mxu0 %v3792_v20 }
  0x62   :  { %2079 = vmatprep.subr.mxu1 %v3141_v44  ;;  %2590 = vmatpush3.msra.mxu0 %v3792_v20 }
  0x63   :  { %2080 = vmatpush3.msra.mxu1 %v3153_v46  ;;  %2591 = vmatprep.subr.mxu0 %v3801_v22 }
  0x64   :  { %2081 = vmatprep.subr.mxu1 %v3165_v48  ;;  %2592 = vmatpush3.msra.mxu0 %v3801_v22 }
  0x65   :  { %2082 = vmatpush3.msra.mxu1 %v3177_v50  ;;  %2593 = vmatprep.subr.mxu0 %v3810_v24 }
  0x66   :  { %2083 = vmatprep.subr.mxu1 %v3189_v52  ;;  %2594 = vmatpush3.msra.mxu0 %v3810_v24 }
  0x67   :  { %2084 = vmatpush3.msra.mxu1 %v3201_v54  ;;  %2595 = vmatprep.subr.mxu0 %v3819_v26 }
  0x68   :  { %2085 = vmatprep.subr.mxu1 %v3213_v56  ;;  %2596 = vmatpush3.msra.mxu0 %v3819_v26 }
  0x69   :  { %2086 = vmatpush3.msra.mxu1 %v3225_v58  ;;  %2597 = vmatprep.subr.mxu0 %v3828_v28 }
  0x6a   :  { %2087 = vmatprep.subr.mxu1 %v3237_v60  ;;  %2598 = vmatpush3.msra.mxu0 %v3828_v28 }
  0x6b   :  { %2599 = vmatprep.mubr.f32.mxu0 %v169_v57  ;;  %2088 = vmatpush3.msra.mxu1 %v3249_v62  ;;  %v5228_v57 = vld [vmem:[#allocation8_spill] sm:$0xff] }
  0x6c   :  { %2600 = vmatmul.mubr.f32.vlgmr.msra.gmra.mxu0 %v178_v29  ;;  %637 = vmatprep.mubr.f32.mxu1 %v1834_v63  ;;  %v5229_v29 = vld [vmem:[#allocation54_spill] sm:$0xff]  ;;  %v5230_v63 = vld [vmem:[#allocation9_spill] sm:$0xff] }
  0x6d   :  { %2095 = vmatprep.subr.mxu0 %v2886_v1  ;;  %2133 = vmatprep.subr.mxu1 %v3276_v51  ;;  %v5215_v1 = vld [vmem:[#allocation40_spill] sm:$0xff] }
  0x6e   :  { %638 = vmatmul.mubr.f32.vlgmr.msra.gmra.mxu1 %v1833_v2  ;;  %2096 = vmatpush3.msra.mxu0 %v2898_v3  ;;  %v5216_v3 = vld [vmem:[#allocation2_spill] sm:$0xff]  ;;  %v5231_v2 = vld [vmem:[#allocation56_spill] sm:$0xff] }
  0x6f   :  { %2134 = vmatpush3.msra.mxu1 %v3287_v49  ;;  %2097 = vmatprep.subr.mxu0 %v2908_v5  ;;  %v5217_v5 = vld [vmem:[#allocation42_spill] sm:$0xff] }
  0x70   :  { %2135 = vmatprep.subr.mxu1 %v3297_v47  ;;  %2098 = vmatpush3.msra.mxu0 %v2920_v7  ;;  %v5218_v7 = vld [vmem:[#allocation3_spill] sm:$0xff] }
  0x71   :  { %2136 = vmatpush3.msra.mxu1 %v3309_v55  ;;  %2099 = vmatprep.subr.mxu0 %v2932_v9  ;;  %v5219_v9 = vld [vmem:[#allocation44_spill] sm:$0xff] }
  0x72   :  { %2137 = vmatprep.subr.mxu1 %v3321_v59  ;;  %2100 = vmatpush3.msra.mxu0 %v2942_v11  ;;  %v5220_v11 = vld [vmem:[#allocation4_spill] sm:$0xff]  ;;  %v5259_v59 = vld [vmem:[#allocation29_spill] sm:$0xff] }
  0x73   :  { %2138 = vmatpush3.msra.mxu1 %v3333_v45  ;;  %2101 = vmatprep.subr.mxu0 %v2954_v13  ;;  %v5221_v13 = vld [vmem:[#allocation46_spill] sm:$0xff]  ;;  %v5252_v45 = vld [vmem:[#allocation20_spill] sm:$0xff] }
  0x74   :  { %2139 = vmatprep.subr.mxu1 %v3345_v43  ;;  %2102 = vmatpush3.msra.mxu0 %v2966_v15  ;;  %v5222_v15 = vld [vmem:[#allocation5_spill] sm:$0xff]  ;;  %v1835_v43 = vld [vmem:[%s4913_s0 + $0xa0] sm:$0xff] }
  0x75   :  { %2140 = vmatpush3.msra.mxu1 %v3357_v41  ;;  %2103 = vmatprep.subr.mxu0 %v2978_v17  ;;  %v5223_v17 = vld [vmem:[#allocation48_spill] sm:$0xff]  ;;  %v5250_v41 = vld [vmem:[#allocation19_spill] sm:$0xff] }
  0x76   :  { %2141 = vmatprep.subr.mxu1 %v3369_v39  ;;  %2104 = vmatpush3.msra.mxu0 %v2990_v19  ;;  %v5224_v19 = vld [vmem:[#allocation6_spill] sm:$0xff]  ;;  %v1836_v39 = vld [vmem:[%s4913_s0 + $0xa8] sm:$0xff] }
  0x77   :  { %2142 = vmatpush3.msra.mxu1 %v3381_v37  ;;  %2105 = vmatprep.subr.mxu0 %v3002_v21  ;;  %v5225_v21 = vld [vmem:[#allocation50_spill] sm:$0xff]  ;;  %v5247_v37 = vld [vmem:[#allocation72_spill] sm:$0xff] }
  0x78   :  { %2143 = vmatprep.subr.mxu1 %v3393_v35  ;;  %2106 = vmatpush3.msra.mxu0 %v3014_v23  ;;  %v5226_v23 = vld [vmem:[#allocation7_spill] sm:$0xff]  ;;  %v5245_v35 = vld [vmem:[#allocation70_spill] sm:$0xff] }
  0x79   :  { %2144 = vmatpush3.msra.mxu1 %v5215_v1  ;;  %2107 = vmatprep.subr.mxu0 %v5216_v3  ;;  %v5232_v3 = vld [vmem:[#allocation10_spill] sm:$0xff]  ;;  %v5243_v1 = vld [vmem:[#allocation68_spill] sm:$0xff] }
  0x7a   :  { %2145 = vmatprep.subr.mxu1 %v5217_v5  ;;  %2108 = vmatpush3.msra.mxu0 %v5218_v7  ;;  %v5233_v7 = vld [vmem:[#allocation58_spill] sm:$0xff] }
  0x7b   :  { %2146 = vmatpush3.msra.mxu1 %v5219_v9  ;;  %2109 = vmatprep.subr.mxu0 %v5220_v11  ;;  %v5234_v11 = vld [vmem:[#allocation11_spill] sm:$0xff]  ;;  %v5239_v9 = vld [vmem:[#allocation64_spill] sm:$0xff]  ;;  %v5241_v5 = vld [vmem:[#allocation66_spill] sm:$0xff] }
  0x7c   :  { %2147 = vmatprep.subr.mxu1 %v5221_v13  ;;  %2110 = vmatpush3.msra.mxu0 %v5222_v15  ;;  %v5237_v13 = vld [vmem:[#allocation62_spill] sm:$0xff] }
  0x7d   :  { %2148 = vmatpush3.msra.mxu1 %v5223_v17  ;;  %2111 = vmatprep.subr.mxu0 %v5224_v19  ;;  %v5235_v17 = vld [vmem:[#allocation60_spill] sm:$0xff] }
  0x7e   :  { %2149 = vmatprep.subr.mxu1 %v5225_v21  ;;  %2112 = vmatpush3.msra.mxu0 %v5226_v23  ;;  %v5236_v21 = vld [vmem:[#allocation12_spill] sm:$0xff] }
  0x7f   :  { %2150 = vmatpush3.msra.mxu1 %v5227_v4  ;;  %2113 = vmatprep.subr.mxu0 %v5228_v57  ;;  %v5238_v4 = vld [vmem:[#allocation13_spill] sm:$0xff] }
  0x80   :  { %2151 = vmatprep.subr.mxu1 %v5229_v29  ;;  %2114 = vmatpush3.msra.mxu0 %v5230_v63  ;;  %v5240_v29 = vld [vmem:[#allocation14_spill] sm:$0xff] }
  0x81   :  { %2152 = vmatpush3.msra.mxu1 %v5231_v2  ;;  %2115 = vmatprep.subr.mxu0 %v5232_v3  ;;  %v5242_v2 = vld [vmem:[#allocation15_spill] sm:$0xff] }
  0x82   :  { %2153 = vmatprep.subr.mxu1 %v5233_v7  ;;  %2116 = vmatpush3.msra.mxu0 %v5234_v11  ;;  %v5244_v7 = vld [vmem:[#allocation16_spill] sm:$0xff] }
  0x83   :  { %2154 = vmatpush3.msra.mxu1 %v5235_v17  ;;  %2117 = vmatprep.subr.mxu0 %v5236_v21  ;;  %v1843_v17 = vld [vmem:[%s4913_s0 + $0xe0] sm:$0x1] }
  0x84   :  { %2155 = vmatprep.subr.mxu1 %v5237_v13  ;;  %2118 = vmatpush3.msra.mxu0 %v5238_v4  ;;  %v5246_v13 = vld [vmem:[#allocation17_spill] sm:$0xff] }
  0x85   :  { %2156 = vmatpush3.msra.mxu1 %v5239_v9  ;;  %2119 = vmatprep.subr.mxu0 %v5240_v29  ;;  %v1842_v9 = vld [vmem:[%s4913_s0 + $0xd8] sm:$0x1] }
  0x86   :  { %2157 = vmatprep.subr.mxu1 %v5241_v5  ;;  %2120 = vmatpush3.msra.mxu0 %v5242_v2  ;;  %v5248_v5 = vld [vmem:[#allocation18_spill] sm:$0xff] }
  0x87   :  { %2158 = vmatpush3.msra.mxu1 %v5243_v1  ;;  %2121 = vmatprep.subr.mxu0 %v5244_v7  ;;  %v5249_v1 = vld [vmem:[#allocation74_spill] sm:$0xff] }
  0x88   :  { %2159 = vmatprep.subr.mxu1 %v5245_v35  ;;  %2122 = vmatpush3.msra.mxu0 %v5246_v13  ;;  %v5251_v35 = vld [vmem:[#allocation76_spill] sm:$0xff] }
  0x89   :  { %2160 = vmatpush3.msra.mxu1 %v5247_v37  ;;  %642 = vmatprep.mubr.f32.mxu1 %v1843_v17  ;;  %v5253_v17 = vld [vmem:[#allocation21_spill] sm:$0xff]  ;;  %v5255_v37 = vld [vmem:[#allocation23_spill] sm:$0xff] }
  0x8a   :  { %2123 = vmatprep.subr.mxu0 %v5248_v5  ;;  %2161 = vmatprep.subr.mxu1 %v5249_v1  ;;  %v1837_v1 = vld [vmem:[%s4913_s0 + $0xb0] sm:$0xff] }
  0x8b   :  { %643 = vmatmul.mubr.f32.gmra.mxu1 %v1842_v9  ;;  %2124 = vmatpush3.msra.mxu0 %v5250_v41  ;;  %v1838_v9 = vld [vmem:[%s4913_s0 + $0xb8] sm:$0xff] }
  0x8c   :  { %2162 = vmatpush3.msra.mxu1 %v5251_v35  ;;  %2125 = vmatprep.subr.mxu0 %v5252_v45  ;;  %v5254_v35 = vld [vmem:[#allocation22_spill] sm:$0xff] }
  0x8d   :  { %2163 = vmatprep.subr.mxu1 %v3645_v33  ;;  %2126 = vmatpush3.msra.mxu0 %v5253_v17  ;;  %v1845_v33 = vld [vmem:[%s4913_s0 + $0xf0] sm:$0x1] }
  0x8e   :  { %712 = vmatprep.mubr.f32.mxu0 %v1836_v39  ;;  %2164 = vmatpush3.msra.mxu1 %v3657_v61  ;;  %v1844_v39 = vld [vmem:[%s4913_s0 + $0xe8] sm:$0x1]  ;;  %v5256_v61 = vld [vmem:[#allocation24_spill] sm:$0xff] }
  0x8f   :  { %713 = vmatmul.mubr.f32.vlgmr.msra.gmra.mxu0 %v1835_v43  ;;  %787 = vmatprep.mubr.f32.mxu1 %v1838_v9  ;;  %v5257_v43 = vld [vmem:[#allocation25_spill] sm:$0xff]  ;;  %v5258_v9 = vld [vmem:[#allocation27_spill] sm:$0xff] }
  0x90   :  { %2171 = vmatprep.subr.mxu0 %v5254_v35  ;;  %2602 = vmatprep.subr.mxu1 %v3680_v53 }
  0x91   :  { %788 = vmatmul.mubr.f32.vlgmr.msra.gmra.mxu1 %v1837_v1  ;;  %2172 = vmatpush3.msra.mxu0 %v5255_v37  ;;  %v1847_v1 = vld [vmem:[%s4913_s0 + $0x100] sm:$0x1] }
  0x92   :  { %2603 = vmatpush3.msra.mxu1 %v3680_v53  ;;  %2173 = vmatprep.subr.mxu0 %v5256_v61  ;;  %v1846_v53 = vld [vmem:[%s4913_s0 + $0xf8] sm:$0x1] }
  0x93   :  { %2604 = vmatprep.subr.mxu1 %v3691_v31  ;;  %717 = vmatprep.mubr.f32.mxu0 %v1845_v33  ;;  %v5260_v33 = vld [vmem:[#allocation31_spill] sm:$0xff] }
  0x94   :  { %2174 = vmatpush3.msra.mxu0 %v5257_v43  ;;  %2605 = vmatpush3.msra.mxu1 %v3691_v31  ;;  %v5261_v31 = vld [vmem:[#allocation33_spill] sm:$0xff] }
  0x95   :  { %718 = vmatmul.mubr.f32.gmra.mxu0 %v1844_v39  ;;  %2175 = vmatprep.subr.mxu0 %v5258_v9  ;;  %v5262_v39 = vld [vmem:[#allocation35_spill] sm:$0xff]  ;;  %v5263_v9 = vld [vmem:[#allocation37_spill] sm:$0xff] }
  0x96   :  { %2606 = vmatprep.subr.mxu1 %v3707_v0  ;;  %792 = vmatprep.mubr.f32.mxu1 %v1847_v1  ;;  %v5264_v1 = vld [vmem:[#allocation39_spill] sm:$0xff] }
  0x97   :  { %2176 = vmatpush3.msra.mxu0 %v5259_v59  ;;  %2607 = vmatpush3.msra.mxu1 %v3707_v0  ;;  %v5265_v0 = vld [vmem:[#allocation41_spill] sm:$0xff] }
  0x98   :  { %2177 = vmatprep.subr.mxu0 %v5260_v33  ;;  %793 = vmatmul.mubr.f32.gmra.mxu1 %v1846_v53  ;;  %v5266_v53 = vld [vmem:[#allocation43_spill] sm:$0xff] }
  0x99   :  { %2608 = vmatprep.subr.mxu1 %v3717_v27  ;;  %2178 = vmatpush3.msra.mxu0 %v5261_v31 }
  0x9a   :  { %2609 = vmatpush3.msra.mxu1 %v3717_v27  ;;  %2179 = vmatprep.subr.mxu0 %v5262_v39  ;;  %v5267_v27 = vld [vmem:[#allocation45_spill] sm:$0xff]  ;;  %v5268_v39 = vld [vmem:[#allocation47_spill] sm:$0xff] }
  0x9b   :  { %2610 = vmatprep.subr.mxu1 %v3730_v6  ;;  %2180 = vmatpush3.msra.mxu0 %v5263_v9 }
  0x9c   :  { %2611 = vmatpush3.msra.mxu1 %v3730_v6  ;;  %2181 = vmatprep.subr.mxu0 %v5264_v1  ;;  %v5269_v6 = vld [vmem:[#allocation49_spill] sm:$0xff]  ;;  %v5270_v1 = vld [vmem:[#allocation51_spill] sm:$0xff] }
  0x9d   :  { %2612 = vmatprep.subr.mxu1 %v3738_v8  ;;  %2182 = vmatpush3.msra.mxu0 %v5265_v0 }
  0x9e   :  { %2613 = vmatpush3.msra.mxu1 %v3738_v8  ;;  %2183 = vmatprep.subr.mxu0 %v5266_v53  ;;  %v5271_v8 = vld [vmem:[#allocation53_spill] sm:$0xff]  ;;  %v5272_v53 = vld [vmem:[#allocation55_spill] sm:$0xff] }
  0x9f   :  { %2614 = vmatprep.subr.mxu1 %v3747_v10  ;;  %2184 = vmatpush3.msra.mxu0 %v5267_v27 }
  0xa0   :  { %2615 = vmatpush3.msra.mxu1 %v3747_v10  ;;  %2185 = vmatprep.subr.mxu0 %v5268_v39  ;;  %v5273_v10 = vld [vmem:[#allocation57_spill] sm:$0xff]  ;;  %v5274_v39 = vld [vmem:[#allocation59_spill] sm:$0xff] }
  0xa1   :  { %2616 = vmatprep.subr.mxu1 %v3756_v12  ;;  %2186 = vmatpush3.msra.mxu0 %v5269_v6 }
  0xa2   :  { %2617 = vmatpush3.msra.mxu1 %v3756_v12  ;;  %2187 = vmatprep.subr.mxu0 %v5270_v1  ;;  %v5275_v12 = vld [vmem:[#allocation61_spill] sm:$0xff]  ;;  %v5276_v1 = vld [vmem:[#allocation63_spill] sm:$0xff] }
  0xa3   :  { %2618 = vmatprep.subr.mxu1 %v3765_v14  ;;  %2188 = vmatpush3.msra.mxu0 %v5271_v8 }
  0xa4   :  { %2619 = vmatpush3.msra.mxu1 %v3765_v14  ;;  %2189 = vmatprep.subr.mxu0 %v5272_v53  ;;  %v5277_v14 = vld [vmem:[#allocation65_spill] sm:$0xff]  ;;  %v5278_v53 = vld [vmem:[#allocation67_spill] sm:$0xff] }
  0xa5   :  { %2620 = vmatprep.subr.mxu1 %v3774_v16  ;;  %2190 = vmatpush3.msra.mxu0 %v5273_v10 }
  0xa6   :  { %2621 = vmatpush3.msra.mxu1 %v3774_v16  ;;  %2191 = vmatprep.subr.mxu0 %v5274_v39  ;;  %v5279_v16 = vld [vmem:[#allocation69_spill] sm:$0xff]  ;;  %v5280_v39 = vld [vmem:[#allocation71_spill] sm:$0xff] }
  0xa7   :  { %2622 = vmatprep.subr.mxu1 %v3783_v18  ;;  %2192 = vmatpush3.msra.mxu0 %v5275_v12 }
  0xa8   :  { %2623 = vmatpush3.msra.mxu1 %v3783_v18  ;;  %2193 = vmatprep.subr.mxu0 %v5276_v1  ;;  %v5281_v18 = vld [vmem:[#allocation73_spill] sm:$0xff]  ;;  %v5282_v1 = vld [vmem:[#allocation75_spill] sm:$0xff] }
  0xa9   :  { %2624 = vmatprep.subr.mxu1 %v3792_v20  ;;  %2194 = vmatpush3.msra.mxu0 %v5277_v14 }
  0xaa   :  { %2625 = vmatpush3.msra.mxu1 %v3792_v20  ;;  %2195 = vmatprep.subr.mxu0 %v5278_v53  ;;  %v1840_v20 = vld [vmem:[%s4913_s0 + $0xc8] sm:$0xff]  ;;  %v5283_v53 = vld [vmem:[#allocation77_spill] sm:$0xff] }
  0xab   :  { %2626 = vmatprep.subr.mxu1 %v3801_v22  ;;  %2196 = vmatpush3.msra.mxu0 %v5279_v16 }
  0xac   :  { %2627 = vmatpush3.msra.mxu1 %v3801_v22  ;;  %2197 = vmatprep.subr.mxu0 %v5280_v39  ;;  %v1839_v22 = vld [vmem:[%s4913_s0 + $0xc0] sm:$0xff]  ;;  %v5284_v39 = vld [vmem:[#allocation79_spill] sm:$0xff] }
  0xad   :  { %2628 = vmatprep.subr.mxu1 %v3810_v24  ;;  %2198 = vmatpush3.msra.mxu0 %v5281_v18 }
  0xae   :  { %2629 = vmatpush3.msra.mxu1 %v3810_v24  ;;  %2199 = vmatprep.subr.mxu0 %v5282_v1  ;;  %v1841_v24 = vld [vmem:[%s4913_s0 + $0xd0] sm:$0xff] }
  0xaf   :  { %2630 = vmatprep.subr.mxu1 %v3819_v26  ;;  %2200 = vmatpush3.msra.mxu0 %v5283_v53  ;;  %v1850_v53 = vld [vmem:[%s4913_s0 + $0x118] sm:$0x1] }
  0xb0   :  { %2631 = vmatpush3.msra.mxu1 %v3819_v26  ;;  %2201 = vmatprep.subr.mxu0 %v5284_v39  ;;  %v4023_v26 = vld [vmem:[%s4912_s1 + $0xf8] sm:$0xff] }
  0xb1   :  { %2632 = vmatprep.subr.mxu1 %v3828_v28  ;;  %2202 = vmatpush3.msra.mxu0 %v3667_v25  ;;  %v4029_v25 = vld [vmem:[%s4912_s1 + $0x1f8] sm:$0xff] }
  0xb2   :  { %862 = vmatprep.mubr.f32.mxu0 %v1840_v20  ;;  %2633 = vmatpush3.msra.mxu1 %v3828_v28  ;;  %5285 = vst [vmem:[#allocation2_spill] sm:$0xff] %v4029_v25  ;;  %v1849_v20 = vld [vmem:[%s4913_s0 + $0x110] sm:$0x1] }
  0xb3   :  { %863 = vmatmul.mubr.f32.vlgmr.msra.gmra.mxu0 %v1839_v22  ;;  %2634 = vmatprep.mubr.f32.mxu1 %v1841_v24  ;;  %v4038_v22 = vld [vmem:[%s4912_s1 + $0x78] sm:$0xff]  ;;  %v4059_v28 = vld [vmem:[%s4912_s1 + $0x1f0] sm:$0xff] }
  0xb4   :  { %2227 = vmatprep.subr.mxu0 %v4023_v26  ;;  %2265 = vmatprep.subr.mxu1 %v4029_v25  ;;  %5286 = vst [vmem:[#allocation3_spill] sm:$0xff] %v4038_v22  ;;  %v4044_v24 = vld [vmem:[%s4912_s1 + $0x178] sm:$0xff]  ;;  %v4053_v25 = vld [vmem:[%s4912_s1 + $0xf0] sm:$0xff]  ;;  %5288 = vst [vmem:[#allocation5_spill] sm:$0xff] %v4059_v28 }
  0xb5   :  { %2635 = vmatmul.mubr.f32.vlgmr.msra.gmra.mxu1 %v1850_v53  ;;  %2228 = vmatpush3.msra.mxu0 %v4038_v22  ;;  %5287 = vst [vmem:[#allocation4_spill] sm:$0xff] %v4044_v24  ;;  %v1848_v53 = vld [vmem:[%s4913_s0 + $0x108] sm:$0x1]  ;;  %v4071_v22 = vld [vmem:[%s4912_s1 + $0x170] sm:$0xff] }
  0xb6   :  { %2266 = vmatpush3.msra.mxu1 %v4044_v24  ;;  %2229 = vmatprep.subr.mxu0 %v4053_v25  ;;  %v4065_v24 = vld [vmem:[%s4912_s1 + $0x70] sm:$0xff]  ;;  %5290 = vst [vmem:[#allocation7_spill] sm:$0xff] %v4071_v22 }
  0xb7   :  { %2267 = vmatprep.subr.mxu1 %v4059_v28  ;;  %867 = vmatprep.mubr.f32.mxu0 %v1849_v20  ;;  %5289 = vst [vmem:[#allocation6_spill] sm:$0xff] %v4065_v24  ;;  %v4077_v28 = vld [vmem:[%s4912_s1 + $0xe8] sm:$0xff] }
  0xb8   :  { %2230 = vmatpush3.msra.mxu0 %v4065_v24  ;;  %2268 = vmatpush3.msra.mxu1 %v4071_v22  ;;  %v4083_v20 = vld [vmem:[%s4912_s1 + $0x1e8] sm:$0xff]  ;;  %v4101_v22 = vld [vmem:[%s4912_s1 + $0xe0] sm:$0xff] }
  0xb9   :  { %868 = vmatmul.mubr.f32.gmra.mxu0 %v1848_v53  ;;  %2231 = vmatprep.subr.mxu0 %v4077_v28  ;;  %5291 = vst [vmem:[#allocation8_spill] sm:$0xff] %v4083_v20  ;;  %v4089_v24 = vld [vmem:[%s4912_s1 + $0x68] sm:$0xff]  ;;  %5294 = vst [vmem:[#allocation11_spill] sm:$0xff] %v4101_v22 }
  0xba   :  { %2269 = vmatprep.subr.mxu1 %v4083_v20  ;;  %5292 = vst [vmem:[#allocation9_spill] sm:$0xff] %v4089_v24  ;;  %2232 = vmatpush3.msra.mxu0 %v4089_v24  ;;  %v4095_v53 = vld [vmem:[%s4912_s1 + $0x168] sm:$0xff]  ;;  %v4107_v20 = vld [vmem:[%s4912_s1 + $0x1e0] sm:$0xff] }
  0xbb   :  { %5293 = vst [vmem:[#allocation10_spill] sm:$0xff] %v4095_v53  ;;  %2270 = vmatpush3.msra.mxu1 %v4095_v53  ;;  %2233 = vmatprep.subr.mxu0 %v4101_v22  ;;  %5295 = vst [vmem:[#allocation12_spill] sm:$0xff] %v4107_v20  ;;  %v4113_v24 = vld [vmem:[%s4912_s1 + $0x60] sm:$0xff]  ;;  %v4125_v22 = vld [vmem:[%s4912_s1 + $0xd8] sm:$0xff] }
  0xbc   :  { %2271 = vmatprep.subr.mxu1 %v4107_v20  ;;  %5296 = vst [vmem:[#allocation13_spill] sm:$0xff] %v4113_v24  ;;  %2234 = vmatpush3.msra.mxu0 %v4113_v24  ;;  %v4119_v53 = vld [vmem:[%s4912_s1 + $0x160] sm:$0xff]  ;;  %5298 = vst [vmem:[#allocation15_spill] sm:$0xff] %v4125_v22  ;;  %v4131_v20 = vld [vmem:[%s4912_s1 + $0x1d8] sm:$0xff] }
  0xbd   :  { %5297 = vst [vmem:[#allocation14_spill] sm:$0xff] %v4119_v53  ;;  %2272 = vmatpush3.msra.mxu1 %v4119_v53  ;;  %2235 = vmatprep.subr.mxu0 %v4125_v22  ;;  %5299 = vst [vmem:[#allocation16_spill] sm:$0xff] %v4131_v20  ;;  %v4137_v24 = vld [vmem:[%s4912_s1 + $0x58] sm:$0xff]  ;;  %v4149_v22 = vld [vmem:[%s4912_s1 + $0xd0] sm:$0xff] }
  0xbe   :  { %2273 = vmatprep.subr.mxu1 %v4131_v20  ;;  %5300 = vst [vmem:[#allocation17_spill] sm:$0xff] %v4137_v24  ;;  %2236 = vmatpush3.msra.mxu0 %v4137_v24  ;;  %v4143_v53 = vld [vmem:[%s4912_s1 + $0x158] sm:$0xff]  ;;  %5302 = vst [vmem:[#allocation19_spill] sm:$0xff] %v4149_v22  ;;  %v4155_v20 = vld [vmem:[%s4912_s1 + $0x1d0] sm:$0xff] }
  0xbf   :  { %5301 = vst [vmem:[#allocation18_spill] sm:$0xff] %v4143_v53  ;;  %2274 = vmatpush3.msra.mxu1 %v4143_v53  ;;  %2237 = vmatprep.subr.mxu0 %v4149_v22  ;;  %5303 = vst [vmem:[#allocation20_spill] sm:$0xff] %v4155_v20  ;;  %v4161_v24 = vld [vmem:[%s4912_s1 + $0x50] sm:$0xff]  ;;  %v4173_v22 = vld [vmem:[%s4912_s1 + $0xc8] sm:$0xff] }
  0xc0   :  { %2275 = vmatprep.subr.mxu1 %v4155_v20  ;;  %5304 = vst [vmem:[#allocation21_spill] sm:$0xff] %v4161_v24  ;;  %2238 = vmatpush3.msra.mxu0 %v4161_v24  ;;  %v4167_v53 = vld [vmem:[%s4912_s1 + $0x150] sm:$0xff]  ;;  %5306 = vst [vmem:[#allocation23_spill] sm:$0xff] %v4173_v22  ;;  %v4179_v20 = vld [vmem:[%s4912_s1 + $0x1c8] sm:$0xff] }
  0xc1   :  { %5305 = vst [vmem:[#allocation22_spill] sm:$0xff] %v4167_v53  ;;  %2276 = vmatpush3.msra.mxu1 %v4167_v53  ;;  %2239 = vmatprep.subr.mxu0 %v4173_v22  ;;  %5307 = vst [vmem:[#allocation24_spill] sm:$0xff] %v4179_v20  ;;  %v4185_v24 = vld [vmem:[%s4912_s1 + $0x48] sm:$0xff]  ;;  %v4197_v22 = vld [vmem:[%s4912_s1 + $0xc0] sm:$0xff] }
  0xc2   :  { %2277 = vmatprep.subr.mxu1 %v4179_v20  ;;  %2240 = vmatpush3.msra.mxu0 %v4185_v24  ;;  %v4191_v53 = vld [vmem:[%s4912_s1 + $0x148] sm:$0xff]  ;;  %v4203_v20 = vld [vmem:[%s4912_s1 + $0x1c0] sm:$0xff] }
  0xc3   :  { %2278 = vmatpush3.msra.mxu1 %v4191_v53  ;;  %2241 = vmatprep.subr.mxu0 %v4197_v22 }
  0xc4   :  { %2279 = vmatprep.subr.mxu1 %v4203_v20  ;;  %2242 = vmatpush3.msra.mxu0 %v3057_v30  ;;  %v1852_v30 = vld [vmem:[%s4913_s0 + $0x128] sm:$0xff] }
  0xc5   :  { %2280 = vmatpush3.msra.mxu1 %v5222_v15  ;;  %2243 = vmatprep.subr.mxu0 %v3069_v32  ;;  %v1854_v32 = vld [vmem:[%s4913_s0 + $0x138] sm:$0xff]  ;;  %v5337_v15 = vld [vmem:[#allocation66_spill] sm:$0xff] }
  0xc6   :  { %2281 = vmatprep.subr.mxu1 %v5224_v19  ;;  %2244 = vmatpush3.msra.mxu0 %v3081_v34  ;;  %v1851_v34 = vld [vmem:[%s4913_s0 + $0x120] sm:$0xff]  ;;  %v1862_v19 = vld [vmem:[%s4913_s0 + $0x178] sm:$0x1] }
  0xc7   :  { %2282 = vmatpush3.msra.mxu1 %v5226_v23  ;;  %2245 = vmatprep.subr.mxu0 %v3093_v36  ;;  %v1853_v36 = vld [vmem:[%s4913_s0 + $0x130] sm:$0xff]  ;;  %v5339_v23 = vld [vmem:[#allocation70_spill] sm:$0xff] }
  0xc8   :  { %2283 = vmatprep.subr.mxu1 %v5228_v57  ;;  %2246 = vmatpush3.msra.mxu0 %v3105_v38  ;;  %v5308_v38 = vld [vmem:[#allocation26_spill] sm:$0xff] }
  0xc9   :  { %2284 = vmatpush3.msra.mxu1 %v5230_v63  ;;  %2247 = vmatprep.subr.mxu0 %v3117_v40  ;;  %v5309_v40 = vld [vmem:[#allocation27_spill] sm:$0xff]  ;;  %v5342_v57 = vld [vmem:[#allocation74_spill] sm:$0xff] }
  0xca   :  { %2285 = vmatprep.subr.mxu1 %v5232_v3  ;;  %2248 = vmatpush3.msra.mxu0 %v3129_v42  ;;  %v5313_v42 = vld [vmem:[#allocation34_spill] sm:$0xff]  ;;  %v1856_v63 = vld [vmem:[%s4913_s0 + $0x148] sm:$0xff] }
  0xcb   :  { %2286 = vmatpush3.msra.mxu1 %v5234_v11  ;;  %2249 = vmatprep.subr.mxu0 %v3141_v44  ;;  %v5314_v44 = vld [vmem:[#allocation35_spill] sm:$0xff]  ;;  %v1855_v3 = vld [vmem:[%s4913_s0 + $0x140] sm:$0xff]  ;;  %v1858_v11 = vld [vmem:[%s4913_s0 + $0x158] sm:$0xff] }
  0xcc   :  { %2287 = vmatprep.subr.mxu1 %v5236_v21  ;;  %2250 = vmatpush3.msra.mxu0 %v3153_v46  ;;  %v5316_v46 = vld [vmem:[#allocation38_spill] sm:$0xff]  ;;  %v5338_v21 = vld [vmem:[#allocation68_spill] sm:$0xff] }
  0xcd   :  { %2288 = vmatpush3.msra.mxu1 %v5238_v4  ;;  %2251 = vmatprep.subr.mxu0 %v3165_v48  ;;  %v5318_v48 = vld [vmem:[#allocation40_spill] sm:$0xff]  ;;  %v5340_v4 = vld [vmem:[#allocation67_spill] sm:$0xff] }
  0xce   :  { %2289 = vmatprep.subr.mxu1 %v5240_v29  ;;  %2252 = vmatpush3.msra.mxu0 %v3177_v50  ;;  %v5320_v50 = vld [vmem:[#allocation43_spill] sm:$0xff] }
  0xcf   :  { %2290 = vmatpush3.msra.mxu1 %v5242_v2  ;;  %2253 = vmatprep.subr.mxu0 %v3189_v52  ;;  %v5322_v52 = vld [vmem:[#allocation46_spill] sm:$0xff]  ;;  %v5343_v29 = vld [vmem:[#allocation71_spill] sm:$0xff]  ;;  %v5344_v2 = vld [vmem:[#allocation76_spill] sm:$0xff] }
  0xd0   :  { %2291 = vmatprep.subr.mxu1 %v5244_v7  ;;  %2254 = vmatpush3.msra.mxu0 %v3201_v54  ;;  %v5323_v54 = vld [vmem:[#allocation47_spill] sm:$0xff]  ;;  %v5345_v7 = vld [vmem:[#allocation78_spill] sm:$0xff] }
  0xd1   :  { %2292 = vmatpush3.msra.mxu1 %v5246_v13  ;;  %2255 = vmatprep.subr.mxu0 %v3213_v56  ;;  %v5325_v56 = vld [vmem:[#allocation50_spill] sm:$0xff]  ;;  %v5336_v13 = vld [vmem:[#allocation64_spill] sm:$0xff] }
  0xd2   :  { %2293 = vmatprep.subr.mxu1 %v5248_v5  ;;  %2256 = vmatpush3.msra.mxu0 %v3225_v58  ;;  %v5326_v58 = vld [vmem:[#allocation51_spill] sm:$0xff] }
  0xd3   :  { %2294 = vmatpush3.msra.mxu1 %v5250_v41  ;;  %2257 = vmatprep.subr.mxu0 %v3237_v60  ;;  %v5310_v41 = vld [vmem:[#allocation28_spill] sm:$0xff]  ;;  %v5335_v5 = vld [vmem:[#allocation63_spill] sm:$0xff] }
  0xd4   :  { %2295 = vmatprep.subr.mxu1 %v5252_v45  ;;  %2258 = vmatpush3.msra.mxu0 %v3249_v62  ;;  %v5315_v45 = vld [vmem:[#allocation36_spill] sm:$0xff]  ;;  %v5328_v62 = vld [vmem:[#allocation54_spill] sm:$0xff] }
  0xd5   :  { %1031 = vmatprep.mubr.f32.mxu0 %v1852_v30  ;;  %2296 = vmatpush3.msra.mxu1 %v5253_v17  ;;  %v5327_v60 = vld [vmem:[#allocation52_spill] sm:$0xff]  ;;  %v5347_v17 = vld [vmem:[#allocation77_spill] sm:$0xff]  ;;  %v5350_v30 = vld [vmem:[#allocation83_spill] sm:$0xff] }
  0xd6   :  { %1106 = vmatprep.mubr.f32.mxu1 %v1854_v32  ;;  %1032 = vmatmul.mubr.f32.vlgmr.msra.gmra.mxu0 %v1851_v34  ;;  %v5351_v32 = vld [vmem:[#allocation3_spill] sm:$0xff]  ;;  %v5352_v34 = vld [vmem:[#allocation84_spill] sm:$0xff] }
  0xd7   :  { %1107 = vmatmul.mubr.f32.vlgmr.msra.gmra.mxu1 %v1853_v36  ;;  %2303 = vmatprep.subr.mxu0 %v3276_v51  ;;  %v5321_v51 = vld [vmem:[#allocation44_spill] sm:$0xff]  ;;  %v1866_v36 = vld [vmem:[%s4913_s0 + $0x198] sm:$0x1] }
  0xd8   :  { %2341 = vmatprep.subr.mxu1 %v5254_v35  ;;  %2304 = vmatpush3.msra.mxu0 %v3287_v49  ;;  %v5311_v35 = vld [vmem:[#allocation30_spill] sm:$0xff] }
  0xd9   :  { %2342 = vmatpush3.msra.mxu1 %v5255_v37  ;;  %2305 = vmatprep.subr.mxu0 %v3297_v47  ;;  %v5312_v37 = vld [vmem:[#allocation32_spill] sm:$0xff]  ;;  %v5317_v47 = vld [vmem:[#allocation39_spill] sm:$0xff]  ;;  %v5319_v49 = vld [vmem:[#allocation42_spill] sm:$0xff] }
  0xda   :  { %2343 = vmatprep.subr.mxu1 %v5256_v61  ;;  %2306 = vmatpush3.msra.mxu0 %v3309_v55  ;;  %v5324_v55 = vld [vmem:[#allocation48_spill] sm:$0xff]  ;;  %v5331_v61 = vld [vmem:[#allocation58_spill] sm:$0xff] }
  0xdb   :  { %2344 = vmatpush3.msra.mxu1 %v5257_v43  ;;  %2307 = vmatprep.subr.mxu0 %v5308_v38  ;;  %v5348_v43 = vld [vmem:[#allocation82_spill] sm:$0xff]  ;;  %v5354_v38 = vld [vmem:[#allocation85_spill] sm:$0xff] }
  0xdc   :  { %2345 = vmatprep.subr.mxu1 %v5309_v40  ;;  %2308 = vmatpush3.msra.mxu0 %v5310_v41  ;;  %v5355_v40 = vld [vmem:[#allocation9_spill] sm:$0xff]  ;;  %v5356_v41 = vld [vmem:[#allocation86_spill] sm:$0xff] }
  0xdd   :  { %2346 = vmatpush3.msra.mxu1 %v5259_v59  ;;  %2309 = vmatprep.subr.mxu0 %v5311_v35  ;;  %v5329_v59 = vld [vmem:[#allocation55_spill] sm:$0xff]  ;;  %v5358_v35 = vld [vmem:[#allocation13_spill] sm:$0xff] }
  0xde   :  { %2347 = vmatprep.subr.mxu1 %v5260_v33  ;;  %2310 = vmatpush3.msra.mxu0 %v5312_v37  ;;  %v1865_v33 = vld [vmem:[%s4913_s0 + $0x190] sm:$0x1]  ;;  %v5359_v37 = vld [vmem:[#allocation87_spill] sm:$0xff] }
  0xdf   :  { %2348 = vmatpush3.msra.mxu1 %v5261_v31  ;;  %2311 = vmatprep.subr.mxu0 %v5313_v42  ;;  %v5330_v31 = vld [vmem:[#allocation56_spill] sm:$0xff]  ;;  %v5360_v42 = vld [vmem:[#allocation15_spill] sm:$0xff] }
  0xe0   :  { %2349 = vmatprep.subr.mxu1 %v5314_v44  ;;  %2312 = vmatpush3.msra.mxu0 %v5315_v45  ;;  %v5361_v44 = vld [vmem:[#allocation17_spill] sm:$0xff]  ;;  %v5363_v45 = vld [vmem:[#allocation19_spill] sm:$0xff] }
  0xe1   :  { %2350 = vmatpush3.msra.mxu1 %v5263_v9  ;;  %2313 = vmatprep.subr.mxu0 %v5316_v46  ;;  %v5349_v9 = vld [vmem:[#allocation81_spill] sm:$0xff] }
  0xe2   :  { %2351 = vmatprep.subr.mxu1 %v5317_v47  ;;  %2314 = vmatpush3.msra.mxu0 %v5318_v48  ;;  %v5364_v46 = vld [vmem:[#allocation21_spill] sm:$0xff]  ;;  %v5366_v48 = vld [vmem:[#allocation23_spill] sm:$0xff] }
  0xe3   :  { %2352 = vmatpush3.msra.mxu1 %v5265_v0  ;;  %2315 = vmatprep.subr.mxu0 %v5319_v49  ;;  %v5332_v0 = vld [vmem:[#allocation59_spill] sm:$0xff]  ;;  %v5365_v47 = vld [vmem:[#allocation89_spill] sm:$0xff]  ;;  %v5367_v49 = vld [vmem:[#allocation90_spill] sm:$0xff] }
  0xe4   :  { %2353 = vmatprep.subr.mxu1 %v5320_v50  ;;  %2316 = vmatpush3.msra.mxu0 %v5321_v51  ;;  %v2739_v50 = vld [vmem:[%s4912_s1 + $0x40] sm:$0xff]  ;;  %v5368_v51 = vld [vmem:[#allocation91_spill] sm:$0xff] }
  0xe5   :  { %2354 = vmatpush3.msra.mxu1 %v5267_v27  ;;  %2317 = vmatprep.subr.mxu0 %v5322_v52  ;;  %v5333_v27 = vld [vmem:[#allocation60_spill] sm:$0xff]  ;;  %v2740_v52 = vld [vmem:[%s4912_s1 + $0xb8] sm:$0xff] }
  0xe6   :  { %2355 = vmatprep.subr.mxu1 %v5323_v54  ;;  %2318 = vmatpush3.msra.mxu0 %v5324_v55  ;;  %v2742_v54 = vld [vmem:[%s4912_s1 + $0xb0] sm:$0xff] }
  0xe7   :  { %2356 = vmatpush3.msra.mxu1 %v5269_v6  ;;  %2319 = vmatprep.subr.mxu0 %v5325_v56  ;;  %v1861_v6 = vld [vmem:[%s4913_s0 + $0x170] sm:$0x1]  ;;  %v5370_v56 = vld [vmem:[#allocation93_spill] sm:$0xff] }
  0xe8   :  { %2357 = vmatprep.subr.mxu1 %v5326_v58  ;;  %2320 = vmatpush3.msra.mxu0 %v5327_v60  ;;  %v2743_v55 = vld [vmem:[%s4912_s1 + $0x30] sm:$0xff]  ;;  %v2744_v58 = vld [vmem:[%s4912_s1 + $0xa8] sm:$0xff] }
  0xe9   :  { %2358 = vmatpush3.msra.mxu1 %v5271_v8  ;;  %2321 = vmatprep.subr.mxu0 %v5328_v62  ;;  %v5334_v8 = vld [vmem:[#allocation62_spill] sm:$0xff]  ;;  %v2745_v60 = vld [vmem:[%s4912_s1 + $0x28] sm:$0xff] }
  0xea   :  { %2359 = vmatprep.subr.mxu1 %v5329_v59  ;;  %2322 = vmatpush3.msra.mxu0 %v5330_v31  ;;  %v5371_v62 = vld [vmem:[#allocation94_spill] sm:$0xff] }
  0xeb   :  { %2360 = vmatpush3.msra.mxu1 %v5273_v10  ;;  %2323 = vmatprep.subr.mxu0 %v5331_v61  ;;  %v1863_v10 = vld [vmem:[%s4913_s0 + $0x180] sm:$0x1]  ;;  %v5372_v61 = vld [vmem:[#allocation95_spill] sm:$0xff] }
  0xec   :  { %2361 = vmatprep.subr.mxu1 %v5332_v0  ;;  %2324 = vmatpush3.msra.mxu0 %v5333_v27  ;;  %v2746_v59 = vld [vmem:[%s4912_s1 + $0xa0] sm:$0xff]  ;;  %v2748_v0 = vld [vmem:[%s4912_s1 + $0x98] sm:$0xff] }
  0xed   :  { %2362 = vmatpush3.msra.mxu1 %v5275_v12  ;;  %2325 = vmatprep.subr.mxu0 %v5334_v8  ;;  %v1860_v12 = vld [vmem:[%s4913_s0 + $0x168] sm:$0x1]  ;;  %v2747_v31 = vld [vmem:[%s4912_s1 + $0x20] sm:$0xff]  ;;  %v2749_v27 = vld [vmem:[%s4912_s1 + $0x18] sm:$0xff] }
  0xee   :  { %2363 = vmatprep.subr.mxu1 %v5335_v5  ;;  %2326 = vmatpush3.msra.mxu0 %v5336_v13  ;;  %v2750_v8 = vld [vmem:[%s4912_s1 + $0x90] sm:$0xff]  ;;  %v1859_v5 = vld [vmem:[%s4913_s0 + $0x160] sm:$0xff]  ;;  %v1868_v13 = vld [vmem:[%s4913_s0 + $0x1a8] sm:$0x1] }
  0xef   :  { %2364 = vmatpush3.msra.mxu1 %v5277_v14  ;;  %2327 = vmatprep.subr.mxu0 %v5337_v15  ;;  %v5341_v14 = vld [vmem:[#allocation72_spill] sm:$0xff]  ;;  %v5374_v15 = vld [vmem:[#allocation97_spill] sm:$0xff] }
  0xf0   :  { %1036 = vmatprep.mubr.f32.mxu0 %v1861_v6  ;;  %2328 = vmatpush3.msra.mxu0 %v5338_v21  ;;  %v5373_v6 = vld [vmem:[#allocation96_spill] sm:$0xff]  ;;  %v1870_v21 = vld [vmem:[%s4913_s0 + $0x1b8] sm:$0xff] }
  0xf1   :  { %1111 = vmatprep.mubr.f32.mxu1 %v1863_v10  ;;  %2329 = vmatprep.subr.mxu0 %v5339_v23  ;;  %v2751_v10 = vld [vmem:[%s4912_s1 + $0x10] sm:$0xff]  ;;  %v2754_v23 = vld [vmem:[%s4912_s1 + $0x80] sm:$0xff] }
  0xf2   :  { %2365 = vmatprep.subr.mxu1 %v5340_v4  ;;  %1037 = vmatmul.mubr.f32.gmra.mxu0 %v1860_v12  ;;  %v2752_v12 = vld [vmem:[%s4912_s1 + $0x88] sm:$0xff]  ;;  %v5375_v4 = vld [vmem:[#allocation2_spill] sm:$0xff] }
  0xf3   :  { %1112 = vmatmul.mubr.f32.gmra.mxu1 %v1862_v19  ;;  %2330 = vmatpush3.msra.mxu0 %v5341_v14  ;;  %v2753_v19 = vld [vmem:[%s4912_s1 + $0x8] sm:$0xff]  ;;  %v1869_v14 = vld [vmem:[%s4913_s0 + $0x1b0] sm:$0xff] }
  0xf4   :  { %2366 = vmatpush3.msra.mxu1 %v5279_v16  ;;  %2331 = vmatprep.subr.mxu0 %v5342_v57  ;;  %v5346_v16 = vld [vmem:[#allocation80_spill] sm:$0xff]  ;;  %v2755_v57 = vld [vmem:[%s4912_s1] sm:$0xff] }
  0xf5   :  { %2367 = vmatprep.subr.mxu1 %v5343_v29  ;;  %2332 = vmatpush3.msra.mxu0 %v5344_v2  ;;  %v5376_v29 = vld [vmem:[#allocation4_spill] sm:$0xff]  ;;  %v2756_v2 = vld [vmem:[%s4912_s1 + $0x2f8] sm:$0xff] }
  0xf6   :  { %2368 = vmatpush3.msra.mxu1 %v5281_v18  ;;  %2333 = vmatprep.subr.mxu0 %v5345_v7  ;;  %v1857_v18 = vld [vmem:[%s4913_s0 + $0x150] sm:$0xff]  ;;  %v2757_v7 = vld [vmem:[%s4912_s1 + $0x278] sm:$0xff] }
  0xf7   :  { %2369 = vmatprep.subr.mxu1 %v5282_v1  ;;  %2334 = vmatpush3.msra.mxu0 %v5346_v16  ;;  %v1864_v1 = vld [vmem:[%s4913_s0 + $0x188] sm:$0x1]  ;;  %v5379_v16 = vld [vmem:[#allocation8_spill] sm:$0xff] }
  0xf8   :  { %1181 = vmatprep.mubr.f32.mxu0 %v1856_v63  ;;  %2370 = vmatpush3.msra.mxu1 %v5347_v17  ;;  %v5377_v63 = vld [vmem:[#allocation5_spill] sm:$0xff]  ;;  %v5380_v17 = vld [vmem:[#allocation10_spill] sm:$0xff] }
  0xf9   :  { %1182 = vmatmul.mubr.f32.vlgmr.msra.gmra.mxu0 %v1855_v3  ;;  %2371 = vmatprep.subr.mxu1 %v5284_v39  ;;  %v1867_v39 = vld [vmem:[%s4913_s0 + $0x1a0] sm:$0x1]  ;;  %v5378_v3 = vld [vmem:[#allocation7_spill] sm:$0xff] }
  0xfa   :  { %2637 = vmatprep.subr.mxu0 %v5348_v43  ;;  %2372 = vmatpush3.msra.mxu1 %v5349_v9  ;;  %v2760_v9 = vld [vmem:[%s4912_s1 + $0x2e8] sm:$0xff] }
  0xfb   :  { %1256 = vmatprep.mubr.f32.mxu1 %v1858_v11  ;;  %2638 = vmatpush3.msra.mxu0 %v5348_v43  ;;  %v2758_v11 = vld [vmem:[%s4912_s1 + $0x2f0] sm:$0xff] }
  0xfc   :  { %1257 = vmatmul.mubr.f32.vlgmr.msra.gmra.mxu1 %v1857_v18  ;;  %2639 = vmatprep.subr.mxu0 %v5350_v30  ;;  %v2759_v18 = vld [vmem:[%s4912_s1 + $0x270] sm:$0xff] }
  0xfd   :  { %2397 = vmatprep.subr.mxu1 %v4023_v26  ;;  %1186 = vmatprep.mubr.f32.mxu0 %v1865_v33  ;;  %v5353_v26 = vld [vmem:[#allocation6_spill] sm:$0xff]  ;;  %v5381_v43 = vld [vmem:[#allocation12_spill] sm:$0xff] }
  0xfe   :  { %2640 = vmatpush3.msra.mxu0 %v5350_v30  ;;  %2398 = vmatpush3.msra.mxu1 %v5351_v32  ;;  %v5382_v33 = vld [vmem:[#allocation14_spill] sm:$0xff]  ;;  %v5383_v30 = vld [vmem:[#allocation16_spill] sm:$0xff] }
  0xff   :  { %1187 = vmatmul.mubr.f32.gmra.mxu0 %v1864_v1  ;;  %2641 = vmatprep.subr.mxu0 %v5352_v34  ;;  %v2761_v1 = vld [vmem:[%s4912_s1 + $0x268] sm:$0xff]  ;;  %v5384_v32 = vld [vmem:[#allocation18_spill] sm:$0xff] }
 0x100   :  { %2399 = vmatprep.subr.mxu1 %v4053_v25  ;;  %1261 = vmatprep.mubr.f32.mxu1 %v1867_v39  ;;  %v5357_v25 = vld [vmem:[#allocation11_spill] sm:$0xff]  ;;  %v2762_v39 = vld [vmem:[%s4912_s1 + $0x2e0] sm:$0xff] }
 0x101   :  { %2642 = vmatpush3.msra.mxu0 %v5352_v34  ;;  %2400 = vmatpush3.msra.mxu1 %v5353_v26  ;;  %v2763_v34 = vld [vmem:[%s4912_s1 + $0x260] sm:$0xff]  ;;  %v2764_v26 = vld [vmem:[%s4912_s1 + $0x2d8] sm:$0xff] }
 0x102   :  { %2643 = vmatprep.subr.mxu0 %v5354_v38  ;;  %1262 = vmatmul.mubr.f32.gmra.mxu1 %v1866_v36  ;;  %v5385_v36 = vld [vmem:[#allocation20_spill] sm:$0xff] }
 0x103   :  { %2401 = vmatprep.subr.mxu1 %v4077_v28  ;;  %2644 = vmatpush3.msra.mxu0 %v5354_v38  ;;  %v5362_v28 = vld [vmem:[#allocation88_spill] sm:$0xff]  ;;  %v5386_v38 = vld [vmem:[#allocation22_spill] sm:$0xff] }
 0x104   :  { %2402 = vmatpush3.msra.mxu1 %v5355_v40  ;;  %2645 = vmatprep.subr.mxu0 %v5356_v41  ;;  %v2765_v40 = vld [vmem:[%s4912_s1 + $0x258] sm:$0xff] }
 0x105   :  { %2403 = vmatprep.subr.mxu1 %v5357_v25  ;;  %2646 = vmatpush3.msra.mxu0 %v5356_v41  ;;  %v5387_v41 = vld [vmem:[#allocation24_spill] sm:$0xff] }
 0x106   :  { %2404 = vmatpush3.msra.mxu1 %v5358_v35  ;;  %2647 = vmatprep.subr.mxu0 %v5359_v37  ;;  %v2766_v25 = vld [vmem:[%s4912_s1 + $0x2d0] sm:$0xff] }
 0x107   :  { %2405 = vmatprep.subr.mxu1 %v5360_v42  ;;  %2648 = vmatpush3.msra.mxu0 %v5359_v37  ;;  %v2767_v35 = vld [vmem:[%s4912_s1 + $0x250] sm:$0xff]  ;;  %v2768_v37 = vld [vmem:[%s4912_s1 + $0x2c8] sm:$0xff]  ;;  %v2769_v42 = vld [vmem:[%s4912_s1 + $0x140] sm:$0xff] }
 0x108   :  { %2406 = vmatpush3.msra.mxu1 %v5361_v44  ;;  %2649 = vmatprep.subr.mxu0 %v5362_v28  ;;  %v2771_v44 = vld [vmem:[%s4912_s1 + $0x1b8] sm:$0xff] }
 0x109   :  { %2407 = vmatprep.subr.mxu1 %v5363_v45  ;;  %2650 = vmatpush3.msra.mxu0 %v5362_v28  ;;  %v2773_v28 = vld [vmem:[%s4912_s1 + $0x138] sm:$0xff]  ;;  %v2774_v45 = vld [vmem:[%s4912_s1 + $0x240] sm:$0xff] }
 0x10a   :  { %2408 = vmatpush3.msra.mxu1 %v5364_v46  ;;  %2651 = vmatprep.subr.mxu0 %v5365_v47  ;;  %v2775_v46 = vld [vmem:[%s4912_s1 + $0x1b0] sm:$0xff] }
 0x10b   :  { %2409 = vmatprep.subr.mxu1 %v5366_v48  ;;  %2652 = vmatpush3.msra.mxu0 %v5365_v47  ;;  %v2776_v47 = vld [vmem:[%s4912_s1 + $0x2b8] sm:$0xff]  ;;  %v2777_v48 = vld [vmem:[%s4912_s1 + $0x130] sm:$0xff] }
 0x10c   :  { %2410 = vmatpush3.msra.mxu1 %v4185_v24  ;;  %2653 = vmatprep.subr.mxu0 %v5367_v49  ;;  %v5369_v24 = vld [vmem:[#allocation92_spill] sm:$0xff] }
 0x10d   :  { %2411 = vmatprep.subr.mxu1 %v4197_v22  ;;  %2654 = vmatpush3.msra.mxu0 %v5367_v49  ;;  %v2741_v22 = vld [vmem:[%s4912_s1 + $0x38] sm:$0xff] }
 0x10e   :  { %2412 = vmatpush3.msra.mxu1 %v2739_v50  ;;  %2655 = vmatprep.subr.mxu0 %v5368_v51  ;;  %v2778_v49 = vld [vmem:[%s4912_s1 + $0x238] sm:$0xff]  ;;  %v2779_v50 = vld [vmem:[%s4912_s1 + $0x1a8] sm:$0xff] }
 0x10f   :  { %2413 = vmatprep.subr.mxu1 %v2740_v52  ;;  %2656 = vmatpush3.msra.mxu0 %v5368_v51  ;;  %v2780_v51 = vld [vmem:[%s4912_s1 + $0x2b0] sm:$0xff]  ;;  %v2781_v52 = vld [vmem:[%s4912_s1 + $0x128] sm:$0xff] }
 0x110   :  { %2414 = vmatpush3.msra.mxu1 %v2741_v22  ;;  %2657 = vmatprep.subr.mxu0 %v5369_v24  ;;  %v2782_v22 = vld [vmem:[%s4912_s1 + $0x230] sm:$0xff] }
 0x111   :  { %2415 = vmatprep.subr.mxu1 %v2742_v54  ;;  %2658 = vmatpush3.msra.mxu0 %v5369_v24  ;;  %v2783_v24 = vld [vmem:[%s4912_s1 + $0x1a0] sm:$0xff]  ;;  %v2784_v54 = vld [vmem:[%s4912_s1 + $0x2a8] sm:$0xff] }
 0x112   :  { %2416 = vmatpush3.msra.mxu1 %v2743_v55  ;;  %2659 = vmatprep.subr.mxu0 %v5370_v56  ;;  %v2785_v55 = vld [vmem:[%s4912_s1 + $0x120] sm:$0xff] }
 0x113   :  { %2417 = vmatprep.subr.mxu1 %v2744_v58  ;;  %2660 = vmatpush3.msra.mxu0 %v5370_v56  ;;  %v2786_v56 = vld [vmem:[%s4912_s1 + $0x228] sm:$0xff]  ;;  %v2787_v58 = vld [vmem:[%s4912_s1 + $0x198] sm:$0xff] }
 0x114   :  { %2418 = vmatpush3.msra.mxu1 %v2745_v60  ;;  %2661 = vmatprep.subr.mxu0 %v5371_v62  ;;  %v2788_v60 = vld [vmem:[%s4912_s1 + $0x2a0] sm:$0xff] }
 0x115   :  { %2419 = vmatprep.subr.mxu1 %v2746_v59  ;;  %2662 = vmatpush3.msra.mxu0 %v5371_v62  ;;  %v2789_v62 = vld [vmem:[%s4912_s1 + $0x118] sm:$0xff]  ;;  %v2790_v59 = vld [vmem:[%s4912_s1 + $0x220] sm:$0xff] }
 0x116   :  { %2420 = vmatpush3.msra.mxu1 %v2747_v31  ;;  %2663 = vmatprep.subr.mxu0 %v5372_v61  ;;  %v2791_v31 = vld [vmem:[%s4912_s1 + $0x190] sm:$0xff] }
 0x117   :  { %2421 = vmatprep.subr.mxu1 %v2748_v0  ;;  %2664 = vmatpush3.msra.mxu0 %v5372_v61  ;;  %v2792_v61 = vld [vmem:[%s4912_s1 + $0x298] sm:$0xff]  ;;  %v1879_v0 = vld [vmem:[%s4913_s0 + $0x200] sm:$0x1] }
 0x118   :  { %2422 = vmatpush3.msra.mxu1 %v2749_v27  ;;  %2665 = vmatprep.subr.mxu0 %v5373_v6  ;;  %v2793_v27 = vld [vmem:[%s4912_s1 + $0x110] sm:$0xff] }
 0x119   :  { %2423 = vmatprep.subr.mxu1 %v2750_v8  ;;  %2666 = vmatpush3.msra.mxu0 %v5373_v6  ;;  %v2794_v6 = vld [vmem:[%s4912_s1 + $0x218] sm:$0xff]  ;;  %v2795_v8 = vld [vmem:[%s4912_s1 + $0x188] sm:$0xff] }
 0x11a   :  { %2424 = vmatpush3.msra.mxu1 %v2751_v10  ;;  %2667 = vmatprep.subr.mxu0 %v5374_v15  ;;  %v1878_v10 = vld [vmem:[%s4913_s0 + $0x1f8] sm:$0x1] }
 0x11b   :  { %2425 = vmatprep.subr.mxu1 %v2752_v12  ;;  %2668 = vmatpush3.msra.mxu0 %v5374_v15  ;;  %v1872_v15 = vld [vmem:[%s4913_s0 + $0x1c8] sm:$0xff]  ;;  %v2798_v12 = vld [vmem:[%s4912_s1 + $0x210] sm:$0xff] }
 0x11c   :  { %2669 = vmatprep.mubr.f32.mxu0 %v1859_v5  ;;  %2426 = vmatpush3.msra.mxu1 %v2753_v19  ;;  %v2796_v5 = vld [vmem:[%s4912_s1 + $0x290] sm:$0xff]  ;;  %v2799_v19 = vld [vmem:[%s4912_s1 + $0x180] sm:$0xff] }
 0x11d   :  { %2670 = vmatmul.mubr.f32.vlgmr.msra.gmra.mxu0 %v1868_v13  ;;  %2427 = vmatprep.subr.mxu1 %v2754_v23  ;;  %v2797_v13 = vld [vmem:[%s4912_s1 + $0x108] sm:$0xff] }
 0x11e   :  { %2435 = vmatprep.subr.mxu0 %v5375_v4  ;;  %2428 = vmatpush3.msra.mxu1 %v2755_v57  ;;  %v2800_v23 = vld [vmem:[%s4912_s1 + $0x288] sm:$0xff]  ;;  %v2801_v4 = vld [vmem:[%s4912_s1 + $0x100] sm:$0xff] }
 0x11f   :  { %2436 = vmatpush3.msra.mxu0 %v5376_v29  ;;  %1425 = vmatprep.mubr.f32.mxu1 %v1870_v21  ;;  %v1871_v21 = vld [vmem:[%s4913_s0 + $0x1c0] sm:$0xff]  ;;  %v2802_v57 = vld [vmem:[%s4912_s1 + $0x208] sm:$0xff]  ;;  %v1873_v29 = vld [vmem:[%s4913_s0 + $0x1d0] sm:$0xff] }
 0x120   :  { %2437 = vmatprep.subr.mxu0 %v5377_v63  ;;  %2473 = vmatprep.subr.mxu1 %v2756_v2  ;;  %v2803_v63 = vld [vmem:[%s4912_s1 + $0x280] sm:$0xff]  ;;  %v2804_v2 = vld [vmem:[%s4912_s1 + $0x3f8] sm:$0xff] }
 0x121   :  { %1426 = vmatmul.mubr.f32.vlgmr.msra.gmra.mxu1 %v1869_v14  ;;  %2438 = vmatpush3.msra.mxu0 %v5378_v3  ;;  %v1874_v14 = vld [vmem:[%s4913_s0 + $0x1d8] sm:$0xff]  ;;  %v1881_v3 = vld [vmem:[%s4913_s0 + $0x210] sm:$0x1] }
 0x122   :  { %2474 = vmatpush3.msra.mxu1 %v2757_v7  ;;  %2439 = vmatprep.subr.mxu0 %v5379_v16  ;;  %v2805_v7 = vld [vmem:[%s4912_s1 + $0x200] sm:$0xff]  ;;  %v2806_v16 = vld [vmem:[%s4912_s1 + $0x378] sm:$0xff] }
 0x123   :  { %2475 = vmatprep.subr.mxu1 %v2758_v11  ;;  %2440 = vmatpush3.msra.mxu0 %v5380_v17  ;;  %v1880_v11 = vld [vmem:[%s4913_s0 + $0x208] sm:$0x1]  ;;  %v2807_v17 = vld [vmem:[%s4912_s1 + $0x3f0] sm:$0xff] }
 0x124   :  { %2476 = vmatpush3.msra.mxu1 %v2759_v18  ;;  %2441 = vmatprep.subr.mxu0 %v5381_v43  ;;  %v1883_v18 = vld [vmem:[%s4913_s0 + $0x220] sm:$0x1]  ;;  %v2808_v43 = vld [vmem:[%s4912_s1 + $0x370] sm:$0xff] }
 0x125   :  { %2477 = vmatprep.subr.mxu1 %v2760_v9  ;;  %2442 = vmatpush3.msra.mxu0 %v5382_v33  ;;  %v2809_v9 = vld [vmem:[%s4912_s1 + $0x478] sm:$0xff]  ;;  %v2810_v33 = vld [vmem:[%s4912_s1 + $0x3e8] sm:$0xff] }
 0x126   :  { %2478 = vmatpush3.msra.mxu1 %v2761_v1  ;;  %2443 = vmatprep.subr.mxu0 %v5383_v30  ;;  %v1882_v1 = vld [vmem:[%s4913_s0 + $0x218] sm:$0x1]  ;;  %v2811_v30 = vld [vmem:[%s4912_s1 + $0x368] sm:$0xff] }
 0x127   :  { %2479 = vmatprep.subr.mxu1 %v2762_v39  ;;  %2444 = vmatpush3.msra.mxu0 %v5384_v32  ;;  %v2812_v39 = vld [vmem:[%s4912_s1 + $0x3e0] sm:$0xff]  ;;  %v2813_v32 = vld [vmem:[%s4912_s1 + $0x470] sm:$0xff] }
 0x128   :  { %2480 = vmatpush3.msra.mxu1 %v2763_v34  ;;  %2445 = vmatprep.subr.mxu0 %v5385_v36  ;;  %v2814_v34 = vld [vmem:[%s4912_s1 + $0x360] sm:$0xff]  ;;  %v2815_v36 = vld [vmem:[%s4912_s1 + $0x3d8] sm:$0xff] }
 0x129   :  { %2481 = vmatprep.subr.mxu1 %v2764_v26  ;;  %2446 = vmatpush3.msra.mxu0 %v5386_v38  ;;  %v2816_v26 = vld [vmem:[%s4912_s1 + $0x468] sm:$0xff]  ;;  %v2817_v38 = vld [vmem:[%s4912_s1 + $0x358] sm:$0xff] }
 0x12a   :  { %2482 = vmatpush3.msra.mxu1 %v2765_v40  ;;  %2447 = vmatprep.subr.mxu0 %v5387_v41  ;;  %v2818_v40 = vld [vmem:[%s4912_s1 + $0x3d0] sm:$0xff]  ;;  %v2819_v41 = vld [vmem:[%s4912_s1 + $0x460] sm:$0xff] }
 0x12b   :  { %2483 = vmatprep.subr.mxu1 %v2766_v25  ;;  %2448 = vmatpush3.msra.mxu0 %v4191_v53  ;;  %v2770_v53 = vld [vmem:[%s4912_s1 + $0x248] sm:$0xff]  ;;  %v2820_v25 = vld [vmem:[%s4912_s1 + $0x350] sm:$0xff] }
 0x12c   :  { %2484 = vmatpush3.msra.mxu1 %v2767_v35  ;;  %2449 = vmatprep.subr.mxu0 %v4203_v20  ;;  %v2772_v20 = vld [vmem:[%s4912_s1 + $0x2c0] sm:$0xff]  ;;  %v2821_v35 = vld [vmem:[%s4912_s1 + $0x3c8] sm:$0xff] }
 0x12d   :  { %2485 = vmatprep.subr.mxu1 %v2768_v37  ;;  %2450 = vmatpush3.msra.mxu0 %v2769_v42  ;;  %v2822_v37 = vld [vmem:[%s4912_s1 + $0x458] sm:$0xff]  ;;  %v2823_v42 = vld [vmem:[%s4912_s1 + $0x348] sm:$0xff] }
 0x12e   :  { %2486 = vmatpush3.msra.mxu1 %v2770_v53  ;;  %2451 = vmatprep.subr.mxu0 %v2771_v44  ;;  %v2824_v53 = vld [vmem:[%s4912_s1 + $0x3c0] sm:$0xff]  ;;  %v2825_v44 = vld [vmem:[%s4912_s1 + $0x450] sm:$0xff] }
 0x12f   :  { %2487 = vmatprep.subr.mxu1 %v2772_v20  ;;  %2452 = vmatpush3.msra.mxu0 %v2773_v28  ;;  %v2826_v20 = vld [vmem:[%s4912_s1 + $0x340] sm:$0xff]  ;;  %v2827_v28 = vld [vmem:[%s4912_s1 + $0x3b8] sm:$0xff] }
 0x130   :  { %2488 = vmatpush3.msra.mxu1 %v2774_v45  ;;  %2453 = vmatprep.subr.mxu0 %v2775_v46  ;;  %v2828_v45 = vld [vmem:[%s4912_s1 + $0x448] sm:$0xff]  ;;  %v2829_v46 = vld [vmem:[%s4912_s1 + $0x338] sm:$0xff] }
 0x131   :  { %2489 = vmatprep.subr.mxu1 %v2776_v47  ;;  %2454 = vmatpush3.msra.mxu0 %v2777_v48  ;;  %v2830_v47 = vld [vmem:[%s4912_s1 + $0x3b0] sm:$0xff]  ;;  %v2831_v48 = vld [vmem:[%s4912_s1 + $0x440] sm:$0xff] }
 0x132   :  { %2490 = vmatpush3.msra.mxu1 %v2778_v49  ;;  %2455 = vmatprep.subr.mxu0 %v2779_v50  ;;  %v2832_v49 = vld [vmem:[%s4912_s1 + $0x330] sm:$0xff]  ;;  %v2833_v50 = vld [vmem:[%s4912_s1 + $0x3a8] sm:$0xff] }
 0x133   :  { %2491 = vmatprep.subr.mxu1 %v2780_v51  ;;  %2456 = vmatpush3.msra.mxu0 %v2781_v52  ;;  %v2834_v51 = vld [vmem:[%s4912_s1 + $0x438] sm:$0xff]  ;;  %v2835_v52 = vld [vmem:[%s4912_s1 + $0x328] sm:$0xff] }
 0x134   :  { %2492 = vmatpush3.msra.mxu1 %v2782_v22  ;;  %2457 = vmatprep.subr.mxu0 %v2783_v24  ;;  %v2836_v22 = vld [vmem:[%s4912_s1 + $0x3a0] sm:$0xff]  ;;  %v2837_v24 = vld [vmem:[%s4912_s1 + $0x430] sm:$0xff] }
 0x135   :  { %2493 = vmatprep.subr.mxu1 %v2784_v54  ;;  %2458 = vmatpush3.msra.mxu0 %v2785_v55  ;;  %v2838_v54 = vld [vmem:[%s4912_s1 + $0x320] sm:$0xff]  ;;  %v2839_v55 = vld [vmem:[%s4912_s1 + $0x398] sm:$0xff] }
 0x136   :  { %2494 = vmatpush3.msra.mxu1 %v2786_v56  ;;  %2459 = vmatprep.subr.mxu0 %v2787_v58  ;;  %v2840_v56 = vld [vmem:[%s4912_s1 + $0x428] sm:$0xff]  ;;  %v2841_v58 = vld [vmem:[%s4912_s1 + $0x318] sm:$0xff] }
 0x137   :  { %2495 = vmatprep.subr.mxu1 %v2788_v60  ;;  %2460 = vmatpush3.msra.mxu0 %v2789_v62  ;;  %v2842_v60 = vld [vmem:[%s4912_s1 + $0x390] sm:$0xff]  ;;  %v2843_v62 = vld [vmem:[%s4912_s1 + $0x420] sm:$0xff] }
 0x138   :  { %2496 = vmatpush3.msra.mxu1 %v2790_v59  ;;  %2461 = vmatprep.subr.mxu0 %v2791_v31  ;;  %v2844_v59 = vld [vmem:[%s4912_s1 + $0x310] sm:$0xff]  ;;  %v2845_v31 = vld [vmem:[%s4912_s1 + $0x388] sm:$0xff] }
 0x139   :  { %2497 = vmatprep.subr.mxu1 %v2792_v61  ;;  %2462 = vmatpush3.msra.mxu0 %v2793_v27  ;;  %v2846_v61 = vld [vmem:[%s4912_s1 + $0x418] sm:$0xff]  ;;  %v2847_v27 = vld [vmem:[%s4912_s1 + $0x308] sm:$0xff] }
 0x13a   :  { %2498 = vmatpush3.msra.mxu1 %v2794_v6  ;;  %2463 = vmatprep.subr.mxu0 %v2795_v8  ;;  %v1875_v6 = vld [vmem:[%s4913_s0 + $0x1e0] sm:$0xff] }
 0x13b   :  { %2499 = vmatprep.subr.mxu1 %v2796_v5  ;;  %1430 = vmatprep.mubr.f32.mxu1 %v1879_v0  ;;  %v1876_v0 = vld [vmem:[%s4913_s0 + $0x1e8] sm:$0xff]  ;;  %v2848_v8 = vld [vmem:[%s4912_s1 + $0x380] sm:$0xff]  ;;  %v2849_v5 = vld [vmem:[%s4912_s1 + $0x410] sm:$0xff] }
 0x13c   :  { %2464 = vmatpush3.msra.mxu0 %v2797_v13  ;;  %2500 = vmatpush3.msra.mxu1 %v2798_v12  ;;  %v2850_v13 = vld [vmem:[%s4912_s1 + $0x300] sm:$0xff]  ;;  %v2851_v12 = vld [vmem:[%s4912_s1 + $0x408] sm:$0xff] }
 0x13d   :  { %2465 = vmatprep.subr.mxu0 %v2799_v19  ;;  %1431 = vmatmul.mubr.f32.gmra.mxu1 %v1878_v10  ;;  %v1885_v10 = vld [vmem:[%s4913_s0 + $0x230] sm:$0x1]  ;;  %v1884_v19 = vld [vmem:[%s4913_s0 + $0x228] sm:$0x1] }
 0x13e   :  { %2501 = vmatprep.subr.mxu1 %v2800_v23  ;;  %2466 = vmatpush3.msra.mxu0 %v2801_v4  ;;  %v2852_v23 = vld [vmem:[%s4912_s1 + $0x400] sm:$0xff]  ;;  %v4816_v4 = vpop.f32.mrf.mxu0 }
 0x13f   :  { %1500 = vmatprep.mubr.f32.mxu0 %v1872_v15  ;;  %2502 = vmatpush3.msra.mxu1 %v2802_v57  ;;  %v1877_v15 = vld [vmem:[%s4913_s0 + $0x1f0] sm:$0xff] }
 0x140   :  { %1501 = vmatmul.mubr.f32.vlgmr.msra.gmra.mxu0 %v1871_v21  ;;  %2503 = vmatprep.subr.mxu1 %v2803_v63  ;;  %v1886_v21 = vld [vmem:[%s4913_s0 + $0x238] sm:$0x1]  ;;  %v1920_v57 = vpop.f32.mrf.mxu0 }
 0x141   :  { %2511 = vmatprep.subr.mxu0 %v2804_v2  ;;  %2504 = vmatpush3.msra.mxu1 %v2805_v7 }
 0x142   :  { %1575 = vmatprep.mubr.f32.mxu1 %v1874_v14  ;;  %2512 = vmatpush3.msra.mxu0 %v2806_v16  ;;  %v4818_v14 = vpop.f32.mrf.mxu1  ;;  %v1922_v63 = vpop.f32.mrf.mxu0 }
 0x143   :  { %1576 = vmatmul.mubr.f32.vlgmr.msra.gmra.mxu1 %v1873_v29  ;;  %2513 = vmatprep.subr.mxu0 %v2807_v17 }
 0x144   :  { %1505 = vmatprep.mubr.f32.mxu0 %v1881_v3  ;;  %2514 = vmatpush3.msra.mxu0 %v2808_v43  ;;  %v1958_v29 = vpop.f32.mrf.mxu1  ;;  %v1923_v3 = vpop.f32.mrf.mxu0 }
 0x145   :  { %2672 = vmatprep.subr.mxu1 %v2809_v9  ;;  %1506 = vmatmul.mubr.f32.gmra.mxu0 %v1880_v11 }
 0x146   :  { %2515 = vmatprep.subr.mxu0 %v2810_v33  ;;  %1580 = vmatprep.mubr.f32.mxu1 %v1883_v18  ;;  %v1960_v2 = vpop.f32.mrf.mxu1  ;;  %v1995_v11 = vpop.f32.mrf.mxu0 }
 0x147   :  { %2516 = vmatpush3.msra.mxu0 %v2811_v30  ;;  %2673 = vmatpush3.msra.mxu1 %v2809_v9 }
 0x148   :  { %2517 = vmatprep.subr.mxu0 %v2812_v39  ;;  %1581 = vmatmul.mubr.f32.gmra.mxu1 %v1882_v1  ;;  %v1961_v7 = vpop.f32.mrf.mxu1  ;;  %v1996_v18 = vpop.f32.mrf.mxu0 }
 0x149   :  { %2674 = vmatprep.subr.mxu1 %v2813_v32  ;;  %2518 = vmatpush3.msra.mxu0 %v2814_v34 }
 0x14a   :  { %2675 = vmatpush3.msra.mxu1 %v2813_v32  ;;  %2519 = vmatprep.subr.mxu0 %v2815_v36  ;;  %v4820_v16 = vpop.f32.mrf.mxu1  ;;  %v4826_v9 = vpop.f32.mrf.mxu0 }
 0x14b   :  { %2676 = vmatprep.subr.mxu1 %v2816_v26  ;;  %2520 = vmatpush3.msra.mxu0 %v2817_v38  ;;  %5388 = vst [vmem:[#allocation25_spill] sm:$0xff] %v4820_v16  ;;  %5391 = vst [vmem:[#allocation33_spill] sm:$0xff] %v4826_v9 }
 0x14c   :  { %2677 = vmatpush3.msra.mxu1 %v2816_v26  ;;  %2521 = vmatprep.subr.mxu0 %v2818_v40  ;;  %v4822_v17 = vpop.f32.mrf.mxu1  ;;  %v1999_v1 = vpop.f32.mrf.mxu0 }
 0x14d   :  { %2678 = vmatprep.subr.mxu1 %v2819_v41  ;;  %2522 = vmatpush3.msra.mxu0 %v2820_v25  ;;  %5389 = vst [vmem:[#allocation29_spill] sm:$0xff] %v4822_v17 }
 0x14e   :  { %2679 = vmatpush3.msra.mxu1 %v2819_v41  ;;  %2523 = vmatprep.subr.mxu0 %v2821_v35  ;;  %v4824_v43 = vpop.f32.mrf.mxu1  ;;  %v4830_v39 = vpop.f32.mrf.mxu0 }
 0x14f   :  { %2680 = vmatprep.subr.mxu1 %v2822_v37  ;;  %2524 = vmatpush3.msra.mxu0 %v2823_v42  ;;  %5390 = vst [vmem:[#allocation31_spill] sm:$0xff] %v4824_v43  ;;  %5393 = vst [vmem:[#allocation41_spill] sm:$0xff] %v4830_v39 }
 0x150   :  { %2681 = vmatpush3.msra.mxu1 %v2822_v37  ;;  %2525 = vmatprep.subr.mxu0 %v2824_v53  ;;  %v4828_v33 = vpop.f32.mrf.mxu1  ;;  %v4832_v34 = vpop.f32.mrf.mxu0 }
 0x151   :  { %2682 = vmatprep.subr.mxu1 %v2825_v44  ;;  %2526 = vmatpush3.msra.mxu0 %v2826_v20  ;;  %5392 = vst [vmem:[#allocation37_spill] sm:$0xff] %v4828_v33  ;;  %5394 = vst [vmem:[#allocation45_spill] sm:$0xff] %v4832_v34  ;;  %v1959_v34 = vadd.f32 %v1958_v29, %v4818_v14 }
 0x152   :  { %2683 = vmatpush3.msra.mxu1 %v2825_v44  ;;  %2527 = vmatprep.subr.mxu0 %v2827_v28  ;;  %v2089_v30 = vpop.f32.mrf.mxu1  ;;  %v2127_v26 = vpop.f32.mrf.mxu0 }
 0x153   :  { %2684 = vmatprep.subr.mxu1 %v2828_v45  ;;  %2528 = vmatpush3.msra.mxu0 %v2829_v46 }
 0x154   :  { %2685 = vmatpush3.msra.mxu1 %v2828_v45  ;;  %2529 = vmatprep.subr.mxu0 %v2830_v47  ;;  %v2090_v32 = vpop.f32.mrf.mxu1  ;;  %v2128_v40 = vpop.f32.mrf.mxu0 }
 0x155   :  { %2686 = vmatprep.subr.mxu1 %v2831_v48  ;;  %2530 = vmatpush3.msra.mxu0 %v2832_v49  ;;  %v2129_v39 = vadd.f32 %v2128_v40, %v2127_v26  ;;  %v2091_v17 = vadd.f32 %v2090_v32, %v2089_v30 }
 0x156   :  { %2687 = vmatpush3.msra.mxu1 %v2831_v48  ;;  %2531 = vmatprep.subr.mxu0 %v2833_v50  ;;  %v2092_v36 = vpop.f32.mrf.mxu1  ;;  %v2130_v25 = vpop.f32.mrf.mxu0 }
 0x157   :  { %2688 = vmatprep.subr.mxu1 %v2834_v51  ;;  %2532 = vmatpush3.msra.mxu0 %v2835_v52 }
 0x158   :  { %2689 = vmatpush3.msra.mxu1 %v2834_v51  ;;  %2533 = vmatprep.subr.mxu0 %v2836_v22  ;;  %v2093_v38 = vpop.f32.mrf.mxu1  ;;  %v2131_v37 = vpop.f32.mrf.mxu0 }
 0x159   :  { %2690 = vmatprep.subr.mxu1 %v2837_v24  ;;  %2534 = vmatpush3.msra.mxu0 %v2838_v54 }
 0x15a   :  { %2691 = vmatpush3.msra.mxu1 %v2837_v24  ;;  %2535 = vmatprep.subr.mxu0 %v2839_v55  ;;  %v2165_v41 = vpop.f32.mrf.mxu1 }
 0x15b   :  { %2692 = vmatprep.subr.mxu1 %v2840_v56  ;;  %2536 = vmatpush3.msra.mxu0 %v2841_v58 }
 0x15c   :  { %2693 = vmatpush3.msra.mxu1 %v2840_v56  ;;  %2537 = vmatprep.subr.mxu0 %v2842_v60  ;;  %v2166_v35 = vpop.f32.mrf.mxu1 }
 0x15d   :  { %2694 = vmatprep.subr.mxu1 %v2843_v62  ;;  %2538 = vmatpush3.msra.mxu0 %v2844_v59 }
 0x15e   :  { %2695 = vmatpush3.msra.mxu1 %v2843_v62  ;;  %2539 = vmatprep.subr.mxu0 %v2845_v31  ;;  %v2168_v42 = vpop.f32.mrf.mxu1 }
 0x15f   :  { %2696 = vmatprep.subr.mxu1 %v2846_v61  ;;  %2540 = vmatpush3.msra.mxu0 %v2847_v27 }
 0x160   :  { %2697 = vmatpush3.msra.mxu1 %v2846_v61  ;;  %2541 = vmatprep.subr.mxu0 %v2848_v8  ;;  %v2169_v44 = vpop.f32.mrf.mxu1 }
 0x161   :  { %2698 = vmatprep.subr.mxu1 %v2849_v5  ;;  %2542 = vmatpush3.msra.mxu0 %v2850_v13  ;;  %v2170_v16 = vadd.f32 %v2169_v44, %v2168_v42  ;;  %v5401_v44 = vld [vmem:[#allocation31_spill] sm:$0xff] }
 0x162   :  { %1650 = vmatprep.mubr.f32.mxu0 %v1876_v0  ;;  %2699 = vmatpush3.msra.mxu1 %v2849_v5 }
 0x163   :  { %1651 = vmatmul.mubr.f32.vlgmr.msra.gmra.mxu0 %v1875_v6  ;;  %2700 = vmatprep.subr.mxu1 %v2851_v12 }
 0x164   :  { %1655 = vmatprep.mubr.f32.mxu0 %v1885_v10  ;;  %2701 = vmatpush3.msra.mxu1 %v2851_v12  ;;  %v2132_v12 = vadd.f32 %v2131_v37, %v2130_v25  ;;  %v715_v37 = vadd.f32 %v2129_v39, %v2091_v17 }
 0x165   :  { %2704 = vmatprep.mubr.f32.mxu1 %v1877_v15  ;;  %2702 = vmatprep.subr.mxu1 %v2852_v23  ;;  %v2094_v15 = vadd.f32 %v2093_v38, %v2092_v36  ;;  %v5400_v38 = vld [vmem:[#allocation33_spill] sm:$0xff] }
 0x166   :  { %2703 = vmatpush3.msra.mxu1 %v2852_v23  ;;  %v1921_v23 = vadd.f32 %v1920_v57, %v4816_v4  ;;  %v2000_v25 = vadd.f32 %v1999_v1, %v5400_v38  ;;  %v2167_v4 = vadd.f32 %v2166_v35, %v2165_v41 }
 0x167   :  { %1656 = vmatmul.mubr.f32.gmra.mxu0 %v1884_v19  ;;  %2705 = vmatmul.mubr.f32.vlgmr.msra.gmra.mxu1 %v1886_v21 }
 0x168   :  { %v321_v36 = vadd.f32 %v1959_v34, %v1921_v23  ;;  %v5402_v34 = vld [vmem:[#allocation37_spill] sm:$0xff]  ;;  %v790_v1 = vadd.f32 %v2167_v4, %v715_v37 }
 0x173   :  { %v2203_v53 = vpop.f32.mrf.mxu0 }
 0x175   :  { %v2204_v20 = vpop.f32.mrf.mxu0  ;;  %v4834_v28 = vpop.f32.mrf.mxu1 }
 0x176   :  { %5395 = vst [vmem:[#allocation49_spill] sm:$0xff] %v4834_v28  ;;  %v1962_v28 = vadd.f32 %v1961_v7, %v1960_v2  ;;  %v2205_v7 = vadd.f32 %v2204_v20, %v2203_v53  ;;  %v5404_v53 = vld [vmem:[#allocation29_spill] sm:$0xff] }
 0x177   :  { %v4836_v46 = vpop.f32.mrf.mxu1 }
 0x178   :  { %5396 = vst [vmem:[#allocation53_spill] sm:$0xff] %v4836_v46  ;;  %v1924_v46 = vadd.f32 %v1923_v3, %v1922_v63 }
 0x179   :  { %v2206_v45 = vpop.f32.mrf.mxu0 }
 0x17a   :  { %v326_v40 = vadd.f32 %v1962_v28, %v1924_v46 }
 0x17b   :  { %v2207_v47 = vpop.f32.mrf.mxu0 }
 0x17c   :  { %v2208_v57 = vadd.f32 %v2207_v47, %v2206_v45  ;;  %v401_v42 = vadd.f32 %v2000_v25, %v326_v40 }
 0x196   :  { %v2259_v49 = vpop.f32.mrf.mxu0 }
 0x197   :  { %v2297_v48 = vpop.f32.mrf.mxu1 }
 0x198   :  { %v2260_v51 = vpop.f32.mrf.mxu0 }
 0x199   :  { %v2298_v50 = vpop.f32.mrf.mxu1  ;;  %v2261_v14 = vadd.f32 %v2260_v51, %v2259_v49 }
 0x19a   :  { %v2299_v29 = vadd.f32 %v2298_v50, %v2297_v48 }
 0x19c   :  { %v1109_v41 = vadd.f32 %v2299_v29, %v2261_v14 }
 0x1b2   :  { %v2262_v22 = vpop.f32.mrf.mxu0 }
 0x1b3   :  { %v2300_v52 = vpop.f32.mrf.mxu1 }
 0x1b4   :  { %v2263_v54 = vpop.f32.mrf.mxu0 }
 0x1b5   :  { %v2301_v24 = vpop.f32.mrf.mxu1  ;;  %v2264_v33 = vadd.f32 %v2263_v54, %v2262_v22  ;;  %v5406_v54 = vld [vmem:[#allocation49_spill] sm:$0xff] }
 0x1b6   :  { %v2302_v43 = vadd.f32 %v2301_v24, %v2300_v52  ;;  %v2038_v52 = vadd.f32 %v5402_v34, %v5401_v44 }
 0x1b8   :  { %v476_v24 = vadd.f32 %v2038_v52, %v401_v42 }
 0x1b9   :  { %v2335_v56 = vpop.f32.mrf.mxu0 }
 0x1bb   :  { %v2336_v60 = vpop.f32.mrf.mxu0 }
 0x1bc   :  { %v4838_v55 = vpop.f32.mrf.mxu1 }
 0x1bd   :  { %5397 = vst [vmem:[#allocation57_spill] sm:$0xff] %v4838_v55  ;;  %v1997_v55 = vadd.f32 %v1996_v18, %v1995_v11  ;;  %v1114_v11 = vadd.f32 %v2302_v43, %v2264_v33  ;;  %v2337_v18 = vadd.f32 %v2336_v60, %v2335_v56  ;;  %v865_v33 = vadd.f32 %v2205_v7, %v790_v1 }
 0x1be   :  { %v2374_v58 = vpop.f32.mrf.mxu1 }
 0x1bf   :  { %v2338_v59 = vpop.f32.mrf.mxu0  ;;  %v396_v63 = vadd.f32 %v1997_v55, %v321_v36  ;;  %v1184_v20 = vadd.f32 %v2337_v18, %v1109_v41 }
 0x1c1   :  { %v2339_v0 = vpop.f32.mrf.mxu0 }
 0x1c2   :  { %v2376_v62 = vpop.f32.mrf.mxu1  ;;  %v2340_v26 = vadd.f32 %v2339_v0, %v2338_v59  ;;  %v5407_v0 = vld [vmem:[#allocation53_spill] sm:$0xff] }
 0x1c4   :  { %v2377_v31 = vpop.f32.mrf.mxu1  ;;  %v1189_v35 = vadd.f32 %v2340_v26, %v1114_v11  ;;  %v5405_v49 = vld [vmem:[#allocation57_spill] sm:$0xff] }
 0x1c5   :  { %v2378_v45 = vadd.f32 %v2377_v31, %v2376_v62  ;;  %v2375_v50 = vadd.f32 %v2374_v58, %v5405_v49 }
 0x1c7   :  { %v1264_v56 = vadd.f32 %v2378_v45, %v1189_v35 }
 0x1dd   :  { %v4840_v27 = vpop.f32.mrf.mxu0 }
 0x1de   :  { %5398 = vst [vmem:[#allocation61_spill] sm:$0xff] %v4840_v27  ;;  %v720_v27 = vadd.f32 %v2132_v12, %v2094_v15 }
 0x1df   :  { %v4842_v5 = vpop.f32.mrf.mxu0 }
 0x1e0   :  { %5399 = vst [vmem:[#allocation65_spill] sm:$0xff] %v4842_v5  ;;  %v795_v3 = vadd.f32 %v2170_v16, %v720_v27  ;;  %v5403_v16 = vld [vmem:[#allocation25_spill] sm:$0xff]  ;;  %v4856_v27 = vadd.f32 %v5407_v0, %v865_v33  ;;  %v1786_v0 = vlaneseq }
 0x1e1   :  { %v2429_v61 = vpop.f32.mrf.mxu1  ;;  %v2035_v43 = vadd.f32 %v5404_v53, %v5403_v16 }
 0x1e2   :  { %v870_v39 = vadd.f32 %v2208_v57, %v795_v3  ;;  %v1753_v14 = vmul.f32 %v4856_v27, %v4856_v27 }
 0x1e3   :  { %v2430_v6 = vpop.f32.mrf.mxu1 }
 0x1e4   :  { %v2431_v17 = vadd.f32 %v2430_v6, %v2429_v61  ;;  %v4853_v55 = vadd.f32 %v5406_v54, %v870_v39  ;;  %v471_v61 = vadd.f32 %v2035_v43, %v396_v63  ;;  %v1259_v6 = vadd.f32 %v2375_v50, %v1184_v20 }
 0x1e6   :  { %v1754_v25 = vmul.f32 %v4853_v55, %v4853_v55 }
 0x1e7   :  { %v5411_v23 = vld [vmem:[#allocation65_spill] sm:$0xff] }
 0x1e8   :  { %v4868_v36 = vadd.f32 %v5411_v23, %v1259_v6  ;;  %v1787_v6 = vshrl.u32 %v1786_v0, 7 }
 0x1ea   :  { %v1757_v11 = vmul.f32 %v4868_v36, %v4868_v36 }
 0x1fd   :  { %v2432_v8 = vpop.f32.mrf.mxu1 }
 0x1ff   :  { %v2433_v10 = vpop.f32.mrf.mxu1 }
 0x200   :  { %v2467_v13 = vpop.f32.mrf.mxu0  ;;  %v2434_v47 = vadd.f32 %v2433_v10, %v2432_v8  ;;  %v5409_v10 = vld [vmem:[#allocation61_spill] sm:$0xff] }
 0x202   :  { %v2468_v19 = vpop.f32.mrf.mxu0 }
 0x203   :  { %v2505_v21 = vpop.f32.mrf.mxu1  ;;  %v2469_v2 = vadd.f32 %v2468_v19, %v2467_v13  ;;  %v4862_v13 = vadd.f32 %v5409_v10, %v1264_v56  ;;  %v5410_v19 = vld [vmem:[#allocation45_spill] sm:$0xff] }
 0x205   :  { %v2470_v5 = vpop.f32.mrf.mxu0  ;;  %v2506_v9 = vpop.f32.mrf.mxu1  ;;  %v1503_v28 = vadd.f32 %v2469_v2, %v2431_v17  ;;  %v1758_v63 = vmul.f32 %v4862_v13, %v4862_v13 }
 0x206   :  { %v2507_v46 = vadd.f32 %v2506_v9, %v2505_v21  ;;  %v4865_v21 = vadd.f32 %v5410_v19, %v471_v61 }
 0x207   :  { %v2471_v30 = vpop.f32.mrf.mxu0 }
 0x208   :  { %v2508_v32 = vpop.f32.mrf.mxu1  ;;  %v2472_v48 = vadd.f32 %v2471_v30, %v2470_v5  ;;  %v1578_v62 = vadd.f32 %v2507_v46, %v1503_v28  ;;  %v5408_v5 = vld [vmem:[#allocation41_spill] sm:$0xff]  ;;  %v1751_v3 = vmul.f32 %v4865_v21, %v4865_v21  ;;  %v1736_v7 = vadd.f32 %v4856_v27, %v4865_v21 }
 0x209   :  { %v4859_v58 = vadd.f32 %v5408_v5, %v476_v24  ;;  %v1788_v5 = vsub.s32 0, %v1787_v6 }
 0x20a   :  { %v2509_v51 = vpop.f32.mrf.mxu1  ;;  %v1508_v59 = vadd.f32 %v2472_v48, %v2434_v47  ;;  %v1755_v42 = vadd.f32 %v1753_v14, %v1751_v3  ;;  %v1738_v44 = vadd.f32 %v1736_v7, %v4868_v36 }
 0x20b   :  { %v2510_v31 = vadd.f32 %v2509_v51, %v2508_v32  ;;  %v1752_v26 = vmul.f32 %v4859_v58, %v4859_v58  ;;  %v1737_v40 = vadd.f32 %v4853_v55, %v4859_v58 }
 0x20c   :  { %v1759_v39 = vadd.f32 %v1757_v11, %v1755_v42 }
 0x20d   :  { %v1583_v37 = vadd.f32 %v2510_v31, %v1508_v59  ;;  %v1739_v18 = vadd.f32 %v1737_v40, %v4862_v13  ;;  %v1756_v30 = vadd.f32 %v1754_v25, %v1752_v26 }
 0x20f   :  { %v1760_v52 = vadd.f32 %v1758_v63, %v1756_v30 }
 0x223   :  { %v2543_v22 = vpop.f32.mrf.mxu0 }
 0x225   :  { %v2544_v60 = vpop.f32.mrf.mxu0 }
 0x226   :  { %v2545_v9 = vadd.f32 %v2544_v60, %v2543_v22 }
 0x227   :  { %v2546_v8 = vpop.f32.mrf.mxu0  ;;  %v2706_v15 = vpop.f32.mrf.mxu1 }
 0x228   :  { %v1653_v12 = vadd.f32 %v2545_v9, %v1578_v62 }
 0x229   :  { %v2547_v38 = vpop.f32.mrf.mxu0  ;;  %v1727_v57 = vpop.f32.mrf.mxu1 }
 0x22a   :  { %v2548_v4 = vadd.f32 %v2547_v38, %v2546_v8  ;;  %v4874_v29 = vadd.f32 %v1727_v57, %v1653_v12  ;;  %v1778_v8 = vld [vmem:[%s4914_s2] sm:$0x1] }
 0x22b   :  { %v1782_v12 = vld [vmem:[%s4915_s3] sm:$0x1] }
 0x22c   :  { %v1658_v2 = vadd.f32 %v2548_v4, %v1583_v37  ;;  %v1761_v34 = vmul.f32 %v4874_v29, %v4874_v29  ;;  %v1740_v41 = vadd.f32 %v1738_v44, %v4874_v29 }
 0x22e   :  { %v1733_v32 = vadd.f32 %v2706_v15, %v1658_v2  ;;  %v1763_v28 = vadd.f32 %v1761_v34, %v1759_v39 }
 0x230   :  { %v1741_v1 = vadd.f32 %v1739_v18, %v1733_v32  ;;  %v1762_v17 = vmul.f32 %v1733_v32, %v1733_v32 }
 0x232   :  { %v1764_v35 = vadd.f32 %v1762_v17, %v1760_v52  ;;  %v1743_v45 = vsel %vm1742_vm0, %v1741_v1, 0.0 }
 0x233   :  { %v1744_v47 = vadd.f32 %v1743_v45, %v1740_v41 }
 0x234   :  { %v1765_v46 = vsel %vm1742_vm0, %v1764_v35, 0.0 }
 0x235   :  { %v1745_v48 = vrot.slane %v1744_v47, 4  ;;  %v1766_v16 = vadd.f32 %v1765_v46, %v1763_v28 }
 0x237   :  { %v1746_v53 = vadd.f32 %v1745_v48, %v1744_v47  ;;  %v1767_v43 = vrot.slane %v1766_v16, 4 }
 0x239   :  { %v1747_v33 = vrot.slane %v1746_v53, 2  ;;  %v1768_v20 = vadd.f32 %v1767_v43, %v1766_v16 }
 0x23b   :  { %v1748_v49 = vadd.f32 %v1747_v33, %v1746_v53  ;;  %v1769_v50 = vrot.slane %v1768_v20, 2 }
 0x23d   :  { %v1749_v51 = vrot.slane %v1748_v49, 1  ;;  %v1770_v22 = vadd.f32 %v1769_v50, %v1768_v20 }
 0x23f   :  { %v1750_v24 = vadd.f32 %v1749_v51, %v1748_v49  ;;  %v1771_v54 = vrot.slane %v1770_v22, 1 }
 0x241   :  { %v1772_v56 = vadd.f32 %v1771_v54, %v1770_v22  ;;  %v1773_v60 = vmul.f32 0.027777778, %v1750_v24 }
 0x243   :  { %v1774_v62 = vmul.f32 0.027777778, %v1772_v56  ;;  %v1775_v59 = vmul.f32 %v1773_v60, %v1773_v60 }
 0x245   :  { %v1776_v31 = vsub.f32 %v1774_v62, %v1775_v59 }
 0x247   :  { %v1777_v9 = vmax.f32 %v1776_v31, 0.0 }
 0x249   :  { %v1779_v61 = vadd.f32 1e-05, %v1777_v9 }
 0x24b   :  { %2707 = vrsqrt.f32 %v1779_v61 }
 0x258   :  { %v2708_v10 = vpop.eup %2707 }
 0x259   :  { %v1781_v15 = vmul.f32 %v2708_v10, %v1778_v8 }
 0x25b   :  { %v1783_v19 = vmul.f32 %v1781_v15, %v1773_v60  ;;  %v1789_v23 = vrot.slane %v1781_v15, %v1788_v5 }
 0x25d   :  { %v1784_v38 = vsub.f32 %v1782_v12, %v1783_v19  ;;  %v1791_v25 = vmul.f32 %v1789_v23, %v4865_v21  ;;  %v1792_v37 = vmul.f32 %v1789_v23, %v4859_v58  ;;  %v1803_v57 = vmul.f32 %v1789_v23, %v4856_v27 }
 0x25e   :  { %v1804_v14 = vmul.f32 %v1789_v23, %v4853_v55  ;;  %v1809_v26 = vmul.f32 %v1789_v23, %v4868_v36  ;;  %v1810_v40 = vmul.f32 %v1789_v23, %v4862_v13  ;;  %v1815_v63 = vmul.f32 %v1789_v23, %v4874_v29 }
 0x25f   :  { %v1797_v4 = vrot.slane %v1784_v38, %v1788_v5  ;;  %v1816_v2 = vmul.f32 %v1789_v23, %v1733_v32 }
 0x261   :  { %v1799_v3 = vadd.f32 %v1797_v4, %v1791_v25  ;;  %v1800_v7 = vadd.f32 %v1797_v4, %v1792_v37  ;;  %v1805_v11 = vadd.f32 %v1803_v57, %v1797_v4  ;;  %v1806_v18 = vadd.f32 %v1804_v14, %v1797_v4 }
 0x262   :  { %v1811_v30 = vadd.f32 %v1809_v26, %v1797_v4  ;;  %v1812_v21 = vadd.f32 %v1810_v40, %v1797_v4  ;;  %v1817_v42 = vadd.f32 %v1815_v63, %v1797_v4  ;;  %v1818_v58 = vadd.f32 %v1816_v2, %v1797_v4 }
 0x263   :  { %v1801_v44 = vmax.f32 %v1799_v3, 0.0  ;;  %v1802_v34 = vmax.f32 %v1800_v7, 0.0  ;;  %v1807_v27 = vmax.f32 %v1805_v11, 0.0  ;;  %v1808_v52 = vmax.f32 %v1806_v18, 0.0 }
 0x264   :  { %v1813_v55 = vmax.f32 %v1811_v30, 0.0  ;;  %v1814_v1 = vmax.f32 %v1812_v21, 0.0  ;;  %v1819_v36 = vmax.f32 %v1817_v42, 0.0  ;;  %v1820_v17 = vmax.f32 %v1818_v58, 0.0 }
 0x265   :  { %v1821_v13 = vmax.f32 %v1801_v44, %v1807_v27  ;;  %v1822_v39 = vmax.f32 %v1802_v34, %v1808_v52 }
 0x266   :  { %v1823_v29 = vmax.f32 %v1813_v55, %v1819_v36  ;;  %v1824_v32 = vmax.f32 %v1814_v1, %v1820_v17 }
 0x268   :  { %v1825_v41 = vmax.f32 %v1821_v13, %v1823_v29  ;;  %v1826_v35 = vmax.f32 %v1822_v39, %v1824_v32 }
 0x26a   :  { %1827 = vst [vmem:[%s4916_s4] sm:$0xff] %v1825_v41  ;;  %1828 = vst [vmem:[%s4916_s4 + $0x8] sm:$0x1] %v1826_v35 }

// kernel: _forward.7
= control target key start
LH: loop header
LB: loop body
LE: loop exit
PB: predicated region body
PF: predicated region fallthrough
CT: control target
= control target key end

     0   :  { %16 = vsyncpa [#allocation3], 0  ;;  %s2563_s0 = inlined_call_operand.vmem [shape: f32[4,1152], index: 0, kind: input, shape index: {}]   ;;  %s2564_s1 = inlined_call_operand.vmem [shape: f32[1152,128], index: 1, kind: input, shape index: {}]   ;;  %s2565_s2 = inlined_call_operand.vmem [shape: f32[1,128], index: 2, kind: input, shape index: {}]   ;;  %s2566_s3 = inlined_call_operand.vmem [shape: f32[1,128], index: 3, kind: input, shape index: {}]   ;;  %s2567_s4 = inlined_call_operand.vmem [shape: f32[128,512], index: 4, kind: input, shape index: {}]   ;;  %s2568_s5 = inlined_call_operand.vmem [shape: f32[1,512], index: 5, kind: input, shape index: {}]   ;;  %s2569_s6 = inlined_call_operand.vmem [shape: f32[128,512], index: 6, kind: input, shape index: {}]   ;;  %s2570_s7 = inlined_call_operand.vmem [shape: f32[1,512], index: 7, kind: input, shape index: {}]   ;;  %s2571_s8 = inlined_call_operand.vmem [shape: f32[128,128], index: 8, kind: input, shape index: {}]   ;;  %s2572_s9 = inlined_call_operand.hbm [shape: f32[1,128], index: 9, kind: output, shape index: {0}]   ;;  %s2573_s10 = inlined_call_operand.hbm [shape: f32[1,256], index: 10, kind: output, shape index: {1}]  }
   0x1   :  { %v72_v0 = vld [vmem:[%s2564_s1 + $0xf8] sm:$0xff]  ;;  %v71_v4 = vld [vmem:[%s2564_s1 + $0xf0] sm:$0xff]  ;;  %v70_v8 = vld [vmem:[%s2564_s1 + $0xe8] sm:$0xff] }
   0x2   :  { %v104_v1 = vld [vmem:[%s2564_s1 + $0x1f8] sm:$0xff]  ;;  %1212 = vmatprep.subr.mxu0 %v72_v0  ;;  %v103_v5 = vld [vmem:[%s2564_s1 + $0x1f0] sm:$0xff]  ;;  %v102_v9 = vld [vmem:[%s2564_s1 + $0x1e8] sm:$0xff] }
   0x3   :  { %v56_v2 = vld [vmem:[%s2564_s1 + $0x78] sm:$0xff]  ;;  %1247 = vmatprep.subr.mxu1 %v104_v1  ;;  %v55_v6 = vld [vmem:[%s2564_s1 + $0x70] sm:$0xff]  ;;  %v54_v10 = vld [vmem:[%s2564_s1 + $0x68] sm:$0xff] }
   0x4   :  { %v88_v3 = vld [vmem:[%s2564_s1 + $0x178] sm:$0xff]  ;;  %1213 = vmatpush3.msra.mxu0 %v56_v2  ;;  %v87_v7 = vld [vmem:[%s2564_s1 + $0x170] sm:$0xff]  ;;  %v86_v11 = vld [vmem:[%s2564_s1 + $0x168] sm:$0xff] }
   0x5   :  { %1248 = vmatpush3.msra.mxu1 %v88_v3  ;;  %1214 = vmatprep.subr.mxu0 %v71_v4  ;;  %v69_v12 = vld [vmem:[%s2564_s1 + $0xe0] sm:$0xff]  ;;  %v68_v16 = vld [vmem:[%s2564_s1 + $0xd8] sm:$0xff]  ;;  %v67_v20 = vld [vmem:[%s2564_s1 + $0xd0] sm:$0xff] }
   0x6   :  { %1249 = vmatprep.subr.mxu1 %v103_v5  ;;  %1215 = vmatpush3.msra.mxu0 %v55_v6  ;;  %v101_v13 = vld [vmem:[%s2564_s1 + $0x1e0] sm:$0xff]  ;;  %v100_v17 = vld [vmem:[%s2564_s1 + $0x1d8] sm:$0xff]  ;;  %v99_v21 = vld [vmem:[%s2564_s1 + $0x1d0] sm:$0xff] }
   0x7   :  { %1250 = vmatpush3.msra.mxu1 %v87_v7  ;;  %1216 = vmatprep.subr.mxu0 %v70_v8  ;;  %v53_v14 = vld [vmem:[%s2564_s1 + $0x60] sm:$0xff]  ;;  %v52_v18 = vld [vmem:[%s2564_s1 + $0x58] sm:$0xff]  ;;  %v51_v22 = vld [vmem:[%s2564_s1 + $0x50] sm:$0xff] }
   0x8   :  { %1251 = vmatprep.subr.mxu1 %v102_v9  ;;  %v85_v15 = vld [vmem:[%s2564_s1 + $0x160] sm:$0xff]  ;;  %1217 = vmatpush3.msra.mxu0 %v54_v10  ;;  %v84_v19 = vld [vmem:[%s2564_s1 + $0x158] sm:$0xff]  ;;  %v83_v23 = vld [vmem:[%s2564_s1 + $0x150] sm:$0xff] }
   0x9   :  { %1252 = vmatpush3.msra.mxu1 %v86_v11  ;;  %1218 = vmatprep.subr.mxu0 %v69_v12  ;;  %v66_v24 = vld [vmem:[%s2564_s1 + $0xc8] sm:$0xff]  ;;  %v65_v28 = vld [vmem:[%s2564_s1 + $0xc0] sm:$0xff]  ;;  %v64_v32 = vld [vmem:[%s2564_s1 + $0xb8] sm:$0xff] }
   0xa   :  { %1253 = vmatprep.subr.mxu1 %v101_v13  ;;  %1219 = vmatpush3.msra.mxu0 %v53_v14  ;;  %v98_v25 = vld [vmem:[%s2564_s1 + $0x1c8] sm:$0xff]  ;;  %v97_v29 = vld [vmem:[%s2564_s1 + $0x1c0] sm:$0xff]  ;;  %v96_v33 = vld [vmem:[%s2564_s1 + $0x1b8] sm:$0xff] }
   0xb   :  { %1254 = vmatpush3.msra.mxu1 %v85_v15  ;;  %1220 = vmatprep.subr.mxu0 %v68_v16  ;;  %v50_v26 = vld [vmem:[%s2564_s1 + $0x48] sm:$0xff]  ;;  %v49_v30 = vld [vmem:[%s2564_s1 + $0x40] sm:$0xff]  ;;  %v48_v34 = vld [vmem:[%s2564_s1 + $0x38] sm:$0xff] }
   0xc   :  { %1255 = vmatprep.subr.mxu1 %v100_v17  ;;  %1221 = vmatpush3.msra.mxu0 %v52_v18  ;;  %v82_v27 = vld [vmem:[%s2564_s1 + $0x148] sm:$0xff]  ;;  %v81_v31 = vld [vmem:[%s2564_s1 + $0x140] sm:$0xff]  ;;  %v80_v35 = vld [vmem:[%s2564_s1 + $0x138] sm:$0xff] }
   0xd   :  { %1256 = vmatpush3.msra.mxu1 %v84_v19  ;;  %1222 = vmatprep.subr.mxu0 %v67_v20  ;;  %v63_v36 = vld [vmem:[%s2564_s1 + $0xb0] sm:$0xff]  ;;  %v62_v40 = vld [vmem:[%s2564_s1 + $0xa8] sm:$0xff]  ;;  %v61_v44 = vld [vmem:[%s2564_s1 + $0xa0] sm:$0xff] }
   0xe   :  { %1257 = vmatprep.subr.mxu1 %v99_v21  ;;  %1223 = vmatpush3.msra.mxu0 %v51_v22  ;;  %v95_v37 = vld [vmem:[%s2564_s1 + $0x1b0] sm:$0xff]  ;;  %v94_v41 = vld [vmem:[%s2564_s1 + $0x1a8] sm:$0xff]  ;;  %v93_v45 = vld [vmem:[%s2564_s1 + $0x1a0] sm:$0xff] }
   0xf   :  { %1258 = vmatpush3.msra.mxu1 %v83_v23  ;;  %1224 = vmatprep.subr.mxu0 %v66_v24  ;;  %v47_v38 = vld [vmem:[%s2564_s1 + $0x30] sm:$0xff]  ;;  %v46_v42 = vld [vmem:[%s2564_s1 + $0x28] sm:$0xff]  ;;  %v45_v46 = vld [vmem:[%s2564_s1 + $0x20] sm:$0xff] }
  0x10   :  { %1259 = vmatprep.subr.mxu1 %v98_v25  ;;  %1225 = vmatpush3.msra.mxu0 %v50_v26  ;;  %v79_v39 = vld [vmem:[%s2564_s1 + $0x130] sm:$0xff]  ;;  %v78_v43 = vld [vmem:[%s2564_s1 + $0x128] sm:$0xff]  ;;  %v77_v47 = vld [vmem:[%s2564_s1 + $0x120] sm:$0xff] }
  0x11   :  { %1260 = vmatpush3.msra.mxu1 %v82_v27  ;;  %1226 = vmatprep.subr.mxu0 %v65_v28  ;;  %v60_v48 = vld [vmem:[%s2564_s1 + $0x98] sm:$0xff]  ;;  %v59_v52 = vld [vmem:[%s2564_s1 + $0x90] sm:$0xff]  ;;  %v36_v56 = vld [vmem:[%s2563_s0] sm:$0xff] }
  0x12   :  { %1261 = vmatprep.subr.mxu1 %v97_v29  ;;  %1227 = vmatpush3.msra.mxu0 %v49_v30  ;;  %v92_v49 = vld [vmem:[%s2564_s1 + $0x198] sm:$0xff]  ;;  %v91_v53 = vld [vmem:[%s2564_s1 + $0x190] sm:$0xff]  ;;  %v58_v57 = vld [vmem:[%s2564_s1 + $0x88] sm:$0xff]  ;;  %v189_v0 = vcombine.high %v36_v56, %v36_v56 }
  0x13   :  { %1262 = vmatpush3.msra.mxu1 %v81_v31  ;;  %1228 = vmatprep.subr.mxu0 %v64_v32  ;;  %v44_v50 = vld [vmem:[%s2564_s1 + $0x18] sm:$0xff]  ;;  %v43_v54 = vld [vmem:[%s2564_s1 + $0x10] sm:$0xff]  ;;  %v90_v58 = vld [vmem:[%s2564_s1 + $0x188] sm:$0xff] }
  0x14   :  { %1263 = vmatprep.subr.mxu1 %v96_v33  ;;  %1229 = vmatpush3.msra.mxu0 %v48_v34  ;;  %v76_v51 = vld [vmem:[%s2564_s1 + $0x118] sm:$0xff]  ;;  %v75_v55 = vld [vmem:[%s2564_s1 + $0x110] sm:$0xff]  ;;  %v37_v59 = vld [vmem:[%s2563_s0 + $0x8] sm:$0xff] }
  0x15   :  { %1264 = vmatpush3.msra.mxu1 %v80_v35  ;;  %1230 = vmatprep.subr.mxu0 %v63_v36  ;;  %v42_v60 = vld [vmem:[%s2564_s1 + $0x8] sm:$0xff]  ;;  %v57_v62 = vld [vmem:[%s2564_s1 + $0x80] sm:$0xff]  ;;  %v190_v2 = vcombine.high %v37_v59, %v37_v59  ;;  %v136_v4 = vld [vmem:[%s2564_s1 + $0x2f8] sm:$0xff] }
  0x16   :  { %1265 = vmatprep.subr.mxu1 %v95_v37  ;;  %1231 = vmatpush3.msra.mxu0 %v47_v38  ;;  %v74_v61 = vld [vmem:[%s2564_s1 + $0x108] sm:$0xff]  ;;  %v89_v63 = vld [vmem:[%s2564_s1 + $0x180] sm:$0xff]  ;;  %v168_v5 = vld [vmem:[%s2564_s1 + $0x3f8] sm:$0xff] }
  0x17   :  { %1266 = vmatpush3.msra.mxu1 %v79_v39  ;;  %1232 = vmatprep.subr.mxu0 %v62_v40  ;;  %v41_v1 = vld [vmem:[%s2564_s1] sm:$0xff]  ;;  %v120_v6 = vld [vmem:[%s2564_s1 + $0x278] sm:$0xff]  ;;  %v135_v8 = vld [vmem:[%s2564_s1 + $0x2f0] sm:$0xff] }
  0x18   :  { %1267 = vmatprep.subr.mxu1 %v94_v41  ;;  %1233 = vmatpush3.msra.mxu0 %v46_v42  ;;  %v73_v3 = vld [vmem:[%s2564_s1 + $0x100] sm:$0xff]  ;;  %v152_v7 = vld [vmem:[%s2564_s1 + $0x378] sm:$0xff]  ;;  %v167_v9 = vld [vmem:[%s2564_s1 + $0x3f0] sm:$0xff] }
  0x19   :  { %1268 = vmatpush3.msra.mxu1 %v78_v43  ;;  %1234 = vmatprep.subr.mxu0 %v61_v44  ;;  %v119_v10 = vld [vmem:[%s2564_s1 + $0x270] sm:$0xff]  ;;  %v134_v12 = vld [vmem:[%s2564_s1 + $0x2e8] sm:$0xff]  ;;  %v133_v16 = vld [vmem:[%s2564_s1 + $0x2e0] sm:$0xff] }
  0x1a   :  { %1269 = vmatprep.subr.mxu1 %v93_v45  ;;  %1235 = vmatpush3.msra.mxu0 %v45_v46  ;;  %v151_v11 = vld [vmem:[%s2564_s1 + $0x370] sm:$0xff]  ;;  %v166_v13 = vld [vmem:[%s2564_s1 + $0x3e8] sm:$0xff]  ;;  %v165_v17 = vld [vmem:[%s2564_s1 + $0x3e0] sm:$0xff] }
  0x1b   :  { %1270 = vmatpush3.msra.mxu1 %v77_v47  ;;  %1236 = vmatprep.subr.mxu0 %v60_v48  ;;  %v118_v14 = vld [vmem:[%s2564_s1 + $0x268] sm:$0xff]  ;;  %v117_v18 = vld [vmem:[%s2564_s1 + $0x260] sm:$0xff]  ;;  %v132_v20 = vld [vmem:[%s2564_s1 + $0x2d8] sm:$0xff] }
  0x1c   :  { %1271 = vmatprep.subr.mxu1 %v92_v49  ;;  %1237 = vmatpush3.msra.mxu0 %v44_v50  ;;  %v150_v15 = vld [vmem:[%s2564_s1 + $0x368] sm:$0xff]  ;;  %v149_v19 = vld [vmem:[%s2564_s1 + $0x360] sm:$0xff]  ;;  %v164_v21 = vld [vmem:[%s2564_s1 + $0x3d8] sm:$0xff] }
  0x1d   :  { %1272 = vmatpush3.msra.mxu1 %v76_v51  ;;  %1238 = vmatprep.subr.mxu0 %v59_v52  ;;  %v116_v22 = vld [vmem:[%s2564_s1 + $0x258] sm:$0xff]  ;;  %v131_v24 = vld [vmem:[%s2564_s1 + $0x2d0] sm:$0xff]  ;;  %v130_v28 = vld [vmem:[%s2564_s1 + $0x2c8] sm:$0xff] }
  0x1e   :  { %1273 = vmatprep.subr.mxu1 %v91_v53  ;;  %1239 = vmatpush3.msra.mxu0 %v43_v54  ;;  %v148_v23 = vld [vmem:[%s2564_s1 + $0x358] sm:$0xff]  ;;  %v163_v25 = vld [vmem:[%s2564_s1 + $0x3d0] sm:$0xff]  ;;  %v162_v29 = vld [vmem:[%s2564_s1 + $0x3c8] sm:$0xff] }
  0x1f   :  { %1274 = vmatpush3.msra.mxu1 %v75_v55  ;;  %1240 = vmatprep.subr.mxu0 %v58_v57  ;;  %v115_v26 = vld [vmem:[%s2564_s1 + $0x250] sm:$0xff]  ;;  %v114_v30 = vld [vmem:[%s2564_s1 + $0x248] sm:$0xff]  ;;  %v129_v32 = vld [vmem:[%s2564_s1 + $0x2c0] sm:$0xff] }
  0x20   :  { %1275 = vmatprep.subr.mxu1 %v90_v58  ;;  %1241 = vmatpush3.msra.mxu0 %v42_v60  ;;  %v147_v27 = vld [vmem:[%s2564_s1 + $0x350] sm:$0xff]  ;;  %v146_v31 = vld [vmem:[%s2564_s1 + $0x348] sm:$0xff]  ;;  %v161_v33 = vld [vmem:[%s2564_s1 + $0x3c0] sm:$0xff] }
  0x21   :  { %1276 = vmatpush3.msra.mxu1 %v74_v61  ;;  %1242 = vmatprep.subr.mxu0 %v57_v62  ;;  %v113_v34 = vld [vmem:[%s2564_s1 + $0x240] sm:$0xff]  ;;  %v128_v36 = vld [vmem:[%s2564_s1 + $0x2b8] sm:$0xff] }
  0x22   :  { %1277 = vmatprep.subr.mxu1 %v89_v63  ;;  %1243 = vmatpush3.msra.mxu0 %v41_v1  ;;  %v145_v35 = vld [vmem:[%s2564_s1 + $0x340] sm:$0xff]  ;;  %v160_v37 = vld [vmem:[%s2564_s1 + $0x3b8] sm:$0xff] }
  0x23   :  { %261 = vmatprep.mubr.f32.mxu0 %v189_v0  ;;  %1278 = vmatpush3.msra.mxu1 %v73_v3  ;;  %v112_v38 = vld [vmem:[%s2564_s1 + $0x238] sm:$0xff] }
  0x24   :  { %331 = vmatprep.mubr.f32.mxu1 %v190_v2  ;;  %262 = vmatmul.mubr.f32.vlgmr.msra.gmra.mxu0 %v36_v56  ;;  %v144_v39 = vld [vmem:[%s2564_s1 + $0x338] sm:$0xff] }
  0x25   :  { %332 = vmatmul.mubr.f32.vlgmr.msra.gmra.mxu1 %v37_v59  ;;  %1282 = vmatprep.subr.mxu0 %v136_v4 }
  0x26   :  { %1317 = vmatprep.subr.mxu1 %v168_v5  ;;  %1283 = vmatpush3.msra.mxu0 %v120_v6 }
  0x27   :  { %1318 = vmatpush3.msra.mxu1 %v152_v7  ;;  %1284 = vmatprep.subr.mxu0 %v135_v8 }
  0x28   :  { %1319 = vmatprep.subr.mxu1 %v167_v9  ;;  %1285 = vmatpush3.msra.mxu0 %v119_v10 }
  0x29   :  { %1320 = vmatpush3.msra.mxu1 %v151_v11  ;;  %1286 = vmatprep.subr.mxu0 %v134_v12 }
  0x2a   :  { %1321 = vmatprep.subr.mxu1 %v166_v13  ;;  %1287 = vmatpush3.msra.mxu0 %v118_v14 }
  0x2b   :  { %1322 = vmatpush3.msra.mxu1 %v150_v15  ;;  %1288 = vmatprep.subr.mxu0 %v133_v16 }
  0x2c   :  { %1323 = vmatprep.subr.mxu1 %v165_v17  ;;  %1289 = vmatpush3.msra.mxu0 %v117_v18 }
  0x2d   :  { %1324 = vmatpush3.msra.mxu1 %v149_v19  ;;  %1290 = vmatprep.subr.mxu0 %v132_v20 }
  0x2e   :  { %1325 = vmatprep.subr.mxu1 %v164_v21  ;;  %1291 = vmatpush3.msra.mxu0 %v116_v22 }
  0x2f   :  { %1326 = vmatpush3.msra.mxu1 %v148_v23  ;;  %1292 = vmatprep.subr.mxu0 %v131_v24 }
  0x30   :  { %1327 = vmatprep.subr.mxu1 %v163_v25  ;;  %1293 = vmatpush3.msra.mxu0 %v115_v26 }
  0x31   :  { %1328 = vmatpush3.msra.mxu1 %v147_v27  ;;  %1294 = vmatprep.subr.mxu0 %v130_v28 }
  0x32   :  { %1329 = vmatprep.subr.mxu1 %v162_v29  ;;  %1295 = vmatpush3.msra.mxu0 %v114_v30 }
  0x33   :  { %1330 = vmatpush3.msra.mxu1 %v146_v31  ;;  %1296 = vmatprep.subr.mxu0 %v129_v32 }
  0x34   :  { %1331 = vmatprep.subr.mxu1 %v161_v33 }
  0x35   :  { %17 = vsyncpa [#allocation5], 0  ;;  %1297 = vmatpush3.msra.mxu0 %v113_v34  ;;  %1332 = vmatpush3.msra.mxu1 %v145_v35  ;;  %v127_v40 = vld [vmem:[%s2564_s1 + $0x2b0] sm:$0xff]  ;;  %v126_v44 = vld [vmem:[%s2564_s1 + $0x2a8] sm:$0xff]  ;;  %v1538_v9 = vmov 0.0   ;;  %vm1539_vm0 = vmmov 0  }
  0x36   :  { %v159_v41 = vld [vmem:[%s2564_s1 + $0x3b0] sm:$0xff]  ;;  %1298 = vmatprep.subr.mxu0 %v128_v36  ;;  %1333 = vmatprep.subr.mxu1 %v160_v37  ;;  %v158_v45 = vld [vmem:[%s2564_s1 + $0x3a8] sm:$0xff]  ;;  %v125_v48 = vld [vmem:[%s2564_s1 + $0x2a0] sm:$0xff]  ;;  %vm547_vm1 = vcmask 1043456  }
  0x37   :  { %v111_v42 = vld [vmem:[%s2564_s1 + $0x230] sm:$0xff]  ;;  %1299 = vmatpush3.msra.mxu0 %v112_v38  ;;  %1334 = vmatpush3.msra.mxu1 %v144_v39  ;;  %v110_v46 = vld [vmem:[%s2564_s1 + $0x228] sm:$0xff]  ;;  %v157_v49 = vld [vmem:[%s2564_s1 + $0x3a0] sm:$0xff] }
  0x38   :  { %v143_v43 = vld [vmem:[%s2564_s1 + $0x330] sm:$0xff]  ;;  %1300 = vmatprep.subr.mxu0 %v127_v40  ;;  %1335 = vmatprep.subr.mxu1 %v159_v41  ;;  %v142_v47 = vld [vmem:[%s2564_s1 + $0x328] sm:$0xff]  ;;  %v109_v50 = vld [vmem:[%s2564_s1 + $0x220] sm:$0xff] }
  0x39   :  { %1301 = vmatpush3.msra.mxu0 %v111_v42  ;;  %1336 = vmatpush3.msra.mxu1 %v143_v43  ;;  %v141_v51 = vld [vmem:[%s2564_s1 + $0x320] sm:$0xff]  ;;  %v124_v52 = vld [vmem:[%s2564_s1 + $0x298] sm:$0xff]  ;;  %v38_v56 = vld [vmem:[%s2563_s0 + $0x10] sm:$0xff] }
  0x3a   :  { %1302 = vmatprep.subr.mxu0 %v126_v44  ;;  %1337 = vmatprep.subr.mxu1 %v158_v45  ;;  %v156_v53 = vld [vmem:[%s2564_s1 + $0x398] sm:$0xff]  ;;  %v123_v57 = vld [vmem:[%s2564_s1 + $0x290] sm:$0xff]  ;;  %v122_v61 = vld [vmem:[%s2564_s1 + $0x288] sm:$0xff]  ;;  %v191_v63 = vcombine.high %v38_v56, %v38_v56 }
  0x3b   :  { %1303 = vmatpush3.msra.mxu0 %v110_v46  ;;  %1338 = vmatpush3.msra.mxu1 %v142_v47  ;;  %v108_v54 = vld [vmem:[%s2564_s1 + $0x218] sm:$0xff]  ;;  %v155_v58 = vld [vmem:[%s2564_s1 + $0x390] sm:$0xff]  ;;  %v154_v62 = vld [vmem:[%s2564_s1 + $0x388] sm:$0xff] }
  0x3c   :  { %1304 = vmatprep.subr.mxu0 %v125_v48  ;;  %1339 = vmatprep.subr.mxu1 %v157_v49  ;;  %v140_v55 = vld [vmem:[%s2564_s1 + $0x318] sm:$0xff]  ;;  %v107_v59 = vld [vmem:[%s2564_s1 + $0x210] sm:$0xff]  ;;  %v106_v0 = vld [vmem:[%s2564_s1 + $0x208] sm:$0xff] }
  0x3d   :  { %1305 = vmatpush3.msra.mxu0 %v109_v50  ;;  %1340 = vmatpush3.msra.mxu1 %v141_v51  ;;  %v139_v60 = vld [vmem:[%s2564_s1 + $0x310] sm:$0xff]  ;;  %v39_v1 = vld [vmem:[%s2563_s0 + $0x18] sm:$0xff]  ;;  %v121_v2 = vld [vmem:[%s2564_s1 + $0x280] sm:$0xff] }
  0x3e   :  { %1306 = vmatprep.subr.mxu0 %v124_v52  ;;  %1341 = vmatprep.subr.mxu1 %v156_v53  ;;  %v138_v3 = vld [vmem:[%s2564_s1 + $0x308] sm:$0xff]  ;;  %v105_v4 = vld [vmem:[%s2564_s1 + $0x200] sm:$0xff]  ;;  %v192_v6 = vcombine.high %v39_v1, %v39_v1  ;;  %v184_v8 = vld [vmem:[%s2564_s1 + $0x478] sm:$0xff] }
  0x3f   :  { %1307 = vmatpush3.msra.mxu0 %v108_v54  ;;  %1342 = vmatpush3.msra.mxu1 %v140_v55  ;;  %v153_v5 = vld [vmem:[%s2564_s1 + $0x380] sm:$0xff]  ;;  %v183_v10 = vld [vmem:[%s2564_s1 + $0x470] sm:$0xff]  ;;  %v182_v11 = vld [vmem:[%s2564_s1 + $0x468] sm:$0xff] }
  0x40   :  { %1308 = vmatprep.subr.mxu0 %v123_v57  ;;  %1343 = vmatprep.subr.mxu1 %v155_v58  ;;  %v137_v7 = vld [vmem:[%s2564_s1 + $0x300] sm:$0xff]  ;;  %v180_v13 = vld [vmem:[%s2564_s1 + $0x458] sm:$0xff]  ;;  %v179_v14 = vld [vmem:[%s2564_s1 + $0x450] sm:$0xff] }
  0x41   :  { %1309 = vmatpush3.msra.mxu0 %v107_v59  ;;  %1344 = vmatpush3.msra.mxu1 %v139_v60  ;;  %v181_v12 = vld [vmem:[%s2564_s1 + $0x460] sm:$0xff]  ;;  %v178_v15 = vld [vmem:[%s2564_s1 + $0x448] sm:$0xff]  ;;  %v176_v17 = vld [vmem:[%s2564_s1 + $0x438] sm:$0xff] }
  0x42   :  { %1310 = vmatprep.subr.mxu0 %v122_v61  ;;  %1345 = vmatprep.subr.mxu1 %v154_v62  ;;  %v177_v16 = vld [vmem:[%s2564_s1 + $0x440] sm:$0xff]  ;;  %v175_v18 = vld [vmem:[%s2564_s1 + $0x430] sm:$0xff]  ;;  %v174_v19 = vld [vmem:[%s2564_s1 + $0x428] sm:$0xff] }
  0x43   :  { %1311 = vmatpush3.msra.mxu0 %v106_v0  ;;  %401 = vmatprep.mubr.f32.mxu0 %v191_v63  ;;  %v173_v20 = vld [vmem:[%s2564_s1 + $0x420] sm:$0xff]  ;;  %v172_v21 = vld [vmem:[%s2564_s1 + $0x418] sm:$0xff]  ;;  %v171_v22 = vld [vmem:[%s2564_s1 + $0x410] sm:$0xff] }
  0x44   :  { %1312 = vmatprep.subr.mxu0 %v121_v2  ;;  %1346 = vmatpush3.msra.mxu1 %v138_v3  ;;  %v170_v23 = vld [vmem:[%s2564_s1 + $0x408] sm:$0xff]  ;;  %v169_v24 = vld [vmem:[%s2564_s1 + $0x400] sm:$0xff] }
  0x45   :  { %1313 = vmatpush3.msra.mxu0 %v105_v4  ;;  %1347 = vmatprep.subr.mxu1 %v153_v5  ;;  %v40_v25 = vld [vmem:[%s2563_s0 + $0x20] sm:$0xf] }
  0x46   :  { %402 = vmatmul.mubr.f32.vlgmr.msra.gmra.mxu0 %v38_v56  ;;  %1386 = vmatprep.subr.mxu0 %v1538_v9  ;;  %v569_v3 = vld [vmem:[%s2565_s2] sm:$0x1] }
  0x47   :  { %1348 = vmatpush3.msra.mxu1 %v137_v7  ;;  %471 = vmatprep.mubr.f32.mxu1 %v192_v6  ;;  %v573_v7 = vld [vmem:[%s2566_s3] sm:$0x1] }
  0x48   :  { %1387 = vmatpush3.msra.mxu0 %v184_v8  ;;  %472 = vmatmul.mubr.f32.vlgmr.msra.gmra.mxu1 %v39_v1  ;;  %v577_v1 = vlaneseq }
  0x49   :  { %1388 = vmatprep.subr.mxu0 %v1538_v9  ;;  %1418 = vmatprep.mubr.msk.f32.mxu0 %vm1539_vm0, %v1538_v9 }
  0x4a   :  { %1389 = vmatpush3.msra.mxu0 %v183_v10  ;;  %756 = vmatprep.mubr.f32.mxu1 %v1538_v9  ;;  %v2067_v2 = vshrl.u32 %v577_v1, 7  ;;  %vm1089_vm4 = vcmp.lt.s32.totalorder %v577_v1, 128 }
  0x4b   :  { %1390 = vmatprep.subr.mxu0 %v1538_v9 }
  0x4c   :  { %1391 = vmatpush3.msra.mxu0 %v182_v11  ;;  %v2073_v4 = vsub.s32 0, %v2067_v2 }
  0x4d   :  { %1392 = vmatprep.subr.mxu0 %v1538_v9 }
  0x4e   :  { %1393 = vmatpush3.msra.mxu0 %v181_v12 }
  0x4f   :  { %1394 = vmatprep.subr.mxu0 %v1538_v9 }
  0x50   :  { %1395 = vmatpush3.msra.mxu0 %v180_v13 }
  0x51   :  { %1396 = vmatprep.subr.mxu0 %v1538_v9 }
  0x52   :  { %1397 = vmatpush3.msra.mxu0 %v179_v14 }
  0x53   :  { %1398 = vmatprep.subr.mxu0 %v1538_v9 }
  0x54   :  { %1399 = vmatpush3.msra.mxu0 %v178_v15 }
  0x55   :  { %1400 = vmatprep.subr.mxu0 %v1538_v9 }
  0x56   :  { %1401 = vmatpush3.msra.mxu0 %v177_v16 }
  0x57   :  { %1402 = vmatprep.subr.mxu0 %v1538_v9 }
  0x58   :  { %1403 = vmatpush3.msra.mxu0 %v176_v17 }
  0x59   :  { %1404 = vmatprep.subr.mxu0 %v1538_v9 }
  0x5a   :  { %1405 = vmatpush3.msra.mxu0 %v175_v18 }
  0x5b   :  { %1406 = vmatprep.subr.mxu0 %v1538_v9 }
  0x5c   :  { %1407 = vmatpush3.msra.mxu0 %v174_v19 }
  0x5d   :  { %1408 = vmatprep.subr.mxu0 %v1538_v9 }
  0x5e   :  { %1409 = vmatpush3.msra.mxu0 %v173_v20 }
  0x5f   :  { %1410 = vmatprep.subr.mxu0 %v1538_v9 }
  0x60   :  { %1411 = vmatpush3.msra.mxu0 %v172_v21 }
  0x61   :  { %1412 = vmatprep.subr.mxu0 %v1538_v9 }
  0x62   :  { %1413 = vmatpush3.msra.mxu0 %v171_v22 }
  0x63   :  { %1414 = vmatprep.subr.mxu0 %v1538_v9 }
  0x64   :  { %1415 = vmatpush3.msra.mxu0 %v170_v23 }
  0x65   :  { %1416 = vmatprep.subr.mxu0 %v1538_v9 }
  0x66   :  { %1417 = vmatpush3.msra.mxu0 %v169_v24  ;;  %v672_v24 = vld [vmem:[%s2567_s4 + $0x1e8] sm:$0xff] }
  0x67   :  { %1419 = vmatmul.mubr.f32.vlgmr.msra.gmra.mxu0 %v40_v25  ;;  %v674_v25 = vld [vmem:[%s2567_s4 + $0x1f8] sm:$0xff]  ;;  %692 = vmatprep.subr.mxu1 %v672_v24  ;;  %v617_v24 = vld [vmem:[%s2567_s4 + $0x30] sm:$0xff] }
  0x68   :  { %826 = vmatprep.mubr.f32.mxu0 %v1538_v9  ;;  %762 = vmatprep.subr.mxu0 %v674_v25  ;;  %v612_v25 = vld [vmem:[%s2567_s4 + $0x8] sm:$0xff] }
  0xe4   :  { %v1244_v26 = vpop.f32.mrf.mxu0 }
  0xe5   :  { %v1279_v27 = vpop.f32.mrf.mxu1 }
  0xe6   :  { %v1245_v28 = vpop.f32.mrf.mxu0 }
  0xe7   :  { %v1280_v30 = vpop.f32.mrf.mxu1  ;;  %v1246_v33 = vadd.f32 %v1245_v28, %v1244_v26  ;;  %v671_v26 = vld [vmem:[%s2567_s4 + $0x1e0] sm:$0xff]  ;;  %v668_v28 = vld [vmem:[%s2567_s4 + $0x1c8] sm:$0xff] }
  0xe8   :  { %v1281_v34 = vadd.f32 %v1280_v30, %v1279_v27  ;;  %v673_v27 = vld [vmem:[%s2567_s4 + $0x1f0] sm:$0xff]  ;;  %693 = vmatpush1.msra.mxu1 %v671_v26  ;;  %v667_v30 = vld [vmem:[%s2567_s4 + $0x1c0] sm:$0xff]  ;;  %v614_v26 = vld [vmem:[%s2567_s4 + $0x18] sm:$0xff] }
  0xe9   :  { %763 = vmatpush1.msra.mxu0 %v673_v27  ;;  %694 = vmatprep.subr.mxu1 %v668_v28  ;;  %v611_v27 = vld [vmem:[%s2567_s4] sm:$0xff]  ;;  %v613_v28 = vld [vmem:[%s2567_s4 + $0x10] sm:$0xff] }
  0xea   :  { %v334_v37 = vadd.f32 %v1281_v34, %v1246_v33  ;;  %695 = vmatpush1.msra.mxu1 %v667_v30  ;;  %v666_v33 = vld [vmem:[%s2567_s4 + $0x1b8] sm:$0xff]  ;;  %v663_v34 = vld [vmem:[%s2567_s4 + $0x1a0] sm:$0xff] }
 0x106   :  { %v1314_v29 = vpop.f32.mrf.mxu0 }
 0x108   :  { %v1315_v31 = vpop.f32.mrf.mxu0  ;;  %v1349_v32 = vpop.f32.mrf.mxu1 }
 0x109   :  { %v1316_v35 = vadd.f32 %v1315_v31, %v1314_v29  ;;  %v670_v29 = vld [vmem:[%s2567_s4 + $0x1d8] sm:$0xff]  ;;  %v669_v31 = vld [vmem:[%s2567_s4 + $0x1d0] sm:$0xff] }
 0x10a   :  { %v1350_v36 = vpop.f32.mrf.mxu1  ;;  %764 = vmatprep.subr.mxu0 %v670_v29 }
 0x10b   :  { %v404_v38 = vadd.f32 %v1316_v35, %v334_v37  ;;  %v1351_v39 = vadd.f32 %v1350_v36, %v1349_v32  ;;  %765 = vmatpush1.msra.mxu0 %v669_v31  ;;  %v664_v32 = vld [vmem:[%s2567_s4 + $0x1a8] sm:$0xff]  ;;  %v665_v35 = vld [vmem:[%s2567_s4 + $0x1b0] sm:$0xff]  ;;  %v662_v37 = vld [vmem:[%s2567_s4 + $0x198] sm:$0xff] }
 0x10c   :  { %696 = vmatprep.subr.mxu1 %v664_v32  ;;  %766 = vmatprep.subr.mxu0 %v666_v33  ;;  %v660_v36 = vld [vmem:[%s2567_s4 + $0x188] sm:$0xff] }
 0x10d   :  { %v474_v40 = vadd.f32 %v1351_v39, %v404_v38  ;;  %697 = vmatpush1.msra.mxu1 %v663_v34  ;;  %767 = vmatpush1.msra.mxu0 %v665_v35  ;;  %v659_v38 = vld [vmem:[%s2567_s4 + $0x180] sm:$0xff]  ;;  %v661_v39 = vld [vmem:[%s2567_s4 + $0x190] sm:$0xff] }
 0x10e   :  { %698 = vmatprep.subr.mxu1 %v660_v36  ;;  %768 = vmatprep.subr.mxu0 %v662_v37 }
 0x10f   :  { %699 = vmatpush1.msra.mxu1 %v659_v38  ;;  %769 = vmatpush1.msra.mxu0 %v661_v39  ;;  %v910_v38 = vld [vmem:[%s2569_s6 + $0x1e8] sm:$0xff]  ;;  %v912_v39 = vld [vmem:[%s2569_s6 + $0x1f8] sm:$0xff] }
 0x127   :  { %v543_v41 = vpop.f32.mrf.mxu0 }
 0x128   :  { %v544_v42 = vadd.f32 %v543_v41, %v474_v40  ;;  %v656_v40 = vld [vmem:[%s2567_s4 + $0x168] sm:$0xff]  ;;  %v658_v41 = vld [vmem:[%s2567_s4 + $0x178] sm:$0xff] }
 0x129   :  { %v1420_v43 = vpop.f32.mrf.mxu0  ;;  %700 = vmatprep.subr.mxu1 %v656_v40  ;;  %770 = vmatprep.subr.mxu0 %v658_v41  ;;  %v911_v40 = vld [vmem:[%s2569_s6 + $0x1f0] sm:$0xff]  ;;  %v906_v41 = vld [vmem:[%s2569_s6 + $0x1c8] sm:$0xff] }
 0x12a   :  { %v548_v44 = vsel %vm547_vm1, %v544_v42, 0.0  ;;  %v557_v45 = vmul.f32 %v544_v42, %v544_v42  ;;  %v657_v43 = vld [vmem:[%s2567_s4 + $0x170] sm:$0xff] }
 0x12b   :  { %v549_v46 = vrot.slane %v548_v44, 4  ;;  %771 = vmatpush1.msra.mxu0 %v657_v43  ;;  %v905_v43 = vld [vmem:[%s2569_s6 + $0x1c0] sm:$0xff] }
 0x12c   :  { %v558_v47 = vsel %vm547_vm1, %v557_v45, 0.0  ;;  %v654_v45 = vld [vmem:[%s2567_s4 + $0x158] sm:$0xff] }
 0x12d   :  { %v550_v48 = vadd.f32 %v549_v46, %v548_v44  ;;  %v559_v49 = vrot.slane %v558_v47, 4  ;;  %v652_v44 = vld [vmem:[%s2567_s4 + $0x148] sm:$0xff]  ;;  %772 = vmatprep.subr.mxu0 %v654_v45  ;;  %v651_v46 = vld [vmem:[%s2567_s4 + $0x140] sm:$0xff] }
 0x12e   :  { %v902_v45 = vld [vmem:[%s2569_s6 + $0x1a8] sm:$0xff] }
 0x12f   :  { %v551_v50 = vrot.slane %v550_v48, 2  ;;  %v560_v51 = vadd.f32 %v559_v49, %v558_v47  ;;  %v653_v47 = vld [vmem:[%s2567_s4 + $0x150] sm:$0xff]  ;;  %v650_v49 = vld [vmem:[%s2567_s4 + $0x138] sm:$0xff] }
 0x130   :  { %773 = vmatpush1.msra.mxu0 %v653_v47  ;;  %v901_v47 = vld [vmem:[%s2569_s6 + $0x1a0] sm:$0xff] }
 0x131   :  { %v552_v52 = vadd.f32 %v551_v50, %v550_v48  ;;  %v561_v53 = vrot.slane %v560_v51, 2  ;;  %v648_v48 = vld [vmem:[%s2567_s4 + $0x128] sm:$0xff]  ;;  %774 = vmatprep.subr.mxu0 %v650_v49  ;;  %v647_v50 = vld [vmem:[%s2567_s4 + $0x120] sm:$0xff] }
 0x132   :  { %v898_v49 = vld [vmem:[%s2569_s6 + $0x188] sm:$0xff] }
 0x133   :  { %v553_v54 = vrot.slane %v552_v52, 1  ;;  %v562_v55 = vadd.f32 %v561_v53, %v560_v51  ;;  %v649_v51 = vld [vmem:[%s2567_s4 + $0x130] sm:$0xff]  ;;  %v646_v53 = vld [vmem:[%s2567_s4 + $0x118] sm:$0xff] }
 0x134   :  { %775 = vmatpush1.msra.mxu0 %v649_v51  ;;  %v897_v51 = vld [vmem:[%s2569_s6 + $0x180] sm:$0xff] }
 0x135   :  { %v554_v56 = vadd.f32 %v553_v54, %v552_v52  ;;  %v563_v57 = vrot.slane %v562_v55, 1  ;;  %v644_v52 = vld [vmem:[%s2567_s4 + $0x108] sm:$0xff]  ;;  %776 = vmatprep.subr.mxu0 %v646_v53  ;;  %v643_v54 = vld [vmem:[%s2567_s4 + $0x100] sm:$0xff] }
 0x136   :  { %v894_v53 = vld [vmem:[%s2569_s6 + $0x168] sm:$0xff] }
 0x137   :  { %v556_v58 = vmul.f32 0.25, %v554_v56  ;;  %v564_v59 = vadd.f32 %v563_v57, %v562_v55  ;;  %v645_v55 = vld [vmem:[%s2567_s4 + $0x110] sm:$0xff]  ;;  %v640_v56 = vld [vmem:[%s2567_s4 + $0xe8] sm:$0xff]  ;;  %v642_v57 = vld [vmem:[%s2567_s4 + $0xf8] sm:$0xff] }
 0x138   :  { %777 = vmatpush1.msra.mxu0 %v645_v55  ;;  %v893_v55 = vld [vmem:[%s2569_s6 + $0x160] sm:$0xff] }
 0x139   :  { %v565_v60 = vmul.f32 0.25, %v564_v59  ;;  %v566_v61 = vmul.f32 %v556_v58, %v556_v58  ;;  %778 = vmatprep.subr.mxu0 %v642_v57  ;;  %v641_v59 = vld [vmem:[%s2567_s4 + $0xf0] sm:$0xff]  ;;  %v890_v57 = vld [vmem:[%s2569_s6 + $0x148] sm:$0xff] }
 0x13a   :  { %779 = vmatpush1.msra.mxu0 %v641_v59  ;;  %v889_v59 = vld [vmem:[%s2569_s6 + $0x140] sm:$0xff] }
 0x13b   :  { %v567_v62 = vsub.f32 %v565_v60, %v566_v61  ;;  %v636_v60 = vld [vmem:[%s2567_s4 + $0xc8] sm:$0xff]  ;;  %v638_v61 = vld [vmem:[%s2567_s4 + $0xd8] sm:$0xff] }
 0x13c   :  { %780 = vmatprep.subr.mxu0 %v638_v61  ;;  %v886_v61 = vld [vmem:[%s2569_s6 + $0x128] sm:$0xff] }
 0x13d   :  { %v568_v63 = vmax.f32 %v567_v62, 0.0  ;;  %v635_v62 = vld [vmem:[%s2567_s4 + $0xc0] sm:$0xff] }
 0x13f   :  { %v570_v0 = vadd.f32 1e-05, %v568_v63  ;;  %v637_v63 = vld [vmem:[%s2567_s4 + $0xd0] sm:$0xff] }
 0x140   :  { %781 = vmatpush1.msra.mxu0 %v637_v63  ;;  %v885_v63 = vld [vmem:[%s2569_s6 + $0x120] sm:$0xff] }
 0x141   :  { %1464 = vrsqrt.f32 %v570_v0  ;;  %v632_v0 = vld [vmem:[%s2567_s4 + $0xa8] sm:$0xff] }
 0x14e   :  { %v1465_v5 = vpop.eup %1464 }
 0x14f   :  { %v572_v6 = vmul.f32 %v1465_v5, %v569_v3  ;;  %v634_v3 = vld [vmem:[%s2567_s4 + $0xb8] sm:$0xff]  ;;  %v631_v5 = vld [vmem:[%s2567_s4 + $0xa0] sm:$0xff] }
 0x150   :  { %782 = vmatprep.subr.mxu0 %v634_v3  ;;  %v882_v3 = vld [vmem:[%s2569_s6 + $0x108] sm:$0xff] }
 0x151   :  { %v574_v8 = vmul.f32 %v572_v6, %v556_v58  ;;  %v580_v10 = vrot.slane %v572_v6, %v2073_v4  ;;  %v639_v58 = vld [vmem:[%s2567_s4 + $0xe0] sm:$0xff]  ;;  %v633_v6 = vld [vmem:[%s2567_s4 + $0xb0] sm:$0xff] }
 0x152   :  { %783 = vmatpush1.msra.mxu0 %v633_v6  ;;  %v881_v6 = vld [vmem:[%s2569_s6 + $0x100] sm:$0xff] }
 0x153   :  { %v575_v11 = vsub.f32 %v573_v7, %v574_v8  ;;  %v582_v12 = vmul.f32 %v580_v10, %v544_v42  ;;  %v655_v42 = vld [vmem:[%s2567_s4 + $0x160] sm:$0xff]  ;;  %v628_v7 = vld [vmem:[%s2567_s4 + $0x88] sm:$0xff]  ;;  %v630_v8 = vld [vmem:[%s2567_s4 + $0x98] sm:$0xff] }
 0x154   :  { %701 = vmatpush1.msra.mxu1 %v655_v42  ;;  %v627_v10 = vld [vmem:[%s2567_s4 + $0x80] sm:$0xff]  ;;  %784 = vmatprep.subr.mxu0 %v630_v8  ;;  %v908_v42 = vld [vmem:[%s2569_s6 + $0x1d8] sm:$0xff]  ;;  %v878_v8 = vld [vmem:[%s2569_s6 + $0xe8] sm:$0xff] }
 0x155   :  { %v587_v13 = vrot.slane %v575_v11, %v2073_v4  ;;  %702 = vmatprep.subr.mxu1 %v652_v44  ;;  %v629_v11 = vld [vmem:[%s2567_s4 + $0x90] sm:$0xff] }
 0x156   :  { %703 = vmatpush1.msra.mxu1 %v651_v46  ;;  %785 = vmatpush1.msra.mxu0 %v629_v11  ;;  %v907_v44 = vld [vmem:[%s2569_s6 + $0x1d0] sm:$0xff]  ;;  %v904_v46 = vld [vmem:[%s2569_s6 + $0x1b8] sm:$0xff]  ;;  %v877_v11 = vld [vmem:[%s2569_s6 + $0xe0] sm:$0xff] }
 0x157   :  { %v589_v14 = vadd.f32 %v587_v13, %v582_v12  ;;  %704 = vmatprep.subr.mxu1 %v648_v48  ;;  %v624_v12 = vld [vmem:[%s2567_s4 + $0x68] sm:$0xff]  ;;  %v626_v13 = vld [vmem:[%s2567_s4 + $0x78] sm:$0xff]  ;;  %v903_v48 = vld [vmem:[%s2569_s6 + $0x1b0] sm:$0xff] }
 0x158   :  { %705 = vmatpush1.msra.mxu1 %v647_v50  ;;  %786 = vmatprep.subr.mxu0 %v626_v13  ;;  %v900_v50 = vld [vmem:[%s2569_s6 + $0x198] sm:$0xff]  ;;  %v874_v13 = vld [vmem:[%s2569_s6 + $0xc8] sm:$0xff] }
 0x159   :  { %v590_v15 = vmax.f32 %v589_v14, 0.0  ;;  %706 = vmatprep.subr.mxu1 %v644_v52  ;;  %v623_v14 = vld [vmem:[%s2567_s4 + $0x60] sm:$0xff]  ;;  %v899_v52 = vld [vmem:[%s2569_s6 + $0x190] sm:$0xff] }
 0x15a   :  { %707 = vmatpush1.msra.mxu1 %v643_v54  ;;  %v896_v54 = vld [vmem:[%s2569_s6 + $0x178] sm:$0xff] }
 0x15b   :  { %v591_v16 = vsel %vm547_vm1, %v590_v15, -inf  ;;  %708 = vmatprep.subr.mxu1 %v640_v56  ;;  %v625_v15 = vld [vmem:[%s2567_s4 + $0x70] sm:$0xff] }
 0x15c   :  { %v592_v17 = vrot.slane %v591_v16, 4  ;;  %709 = vmatpush1.msra.mxu1 %v639_v58  ;;  %787 = vmatpush1.msra.mxu0 %v625_v15  ;;  %v895_v56 = vld [vmem:[%s2569_s6 + $0x170] sm:$0xff]  ;;  %v892_v58 = vld [vmem:[%s2569_s6 + $0x158] sm:$0xff]  ;;  %v873_v15 = vld [vmem:[%s2569_s6 + $0xc0] sm:$0xff] }
 0x15d   :  { %710 = vmatprep.subr.mxu1 %v636_v60  ;;  %v891_v60 = vld [vmem:[%s2569_s6 + $0x150] sm:$0xff] }
 0x15e   :  { %v593_v18 = vmax.f32 %v591_v16, %v592_v17  ;;  %711 = vmatpush1.msra.mxu1 %v635_v62  ;;  %v620_v16 = vld [vmem:[%s2567_s4 + $0x48] sm:$0xff]  ;;  %v622_v17 = vld [vmem:[%s2567_s4 + $0x58] sm:$0xff] }
 0x15f   :  { %712 = vmatprep.subr.mxu1 %v632_v0  ;;  %788 = vmatprep.subr.mxu0 %v622_v17  ;;  %v888_v62 = vld [vmem:[%s2569_s6 + $0x138] sm:$0xff]  ;;  %v887_v0 = vld [vmem:[%s2569_s6 + $0x130] sm:$0xff]  ;;  %v870_v17 = vld [vmem:[%s2569_s6 + $0xa8] sm:$0xff] }
 0x160   :  { %v594_v19 = vrot.slane %v593_v18, 2  ;;  %713 = vmatpush1.msra.mxu1 %v631_v5  ;;  %v884_v5 = vld [vmem:[%s2569_s6 + $0x118] sm:$0xff] }
 0x161   :  { %714 = vmatprep.subr.mxu1 %v628_v7  ;;  %v883_v7 = vld [vmem:[%s2569_s6 + $0x110] sm:$0xff] }
 0x162   :  { %v595_v20 = vmax.f32 %v593_v18, %v594_v19  ;;  %715 = vmatpush1.msra.mxu1 %v627_v10  ;;  %v619_v18 = vld [vmem:[%s2567_s4 + $0x40] sm:$0xff]  ;;  %v621_v19 = vld [vmem:[%s2567_s4 + $0x50] sm:$0xff]  ;;  %v880_v10 = vld [vmem:[%s2569_s6 + $0xf8] sm:$0xff] }
 0x163   :  { %716 = vmatprep.subr.mxu1 %v624_v12  ;;  %789 = vmatpush1.msra.mxu0 %v621_v19  ;;  %v879_v12 = vld [vmem:[%s2569_s6 + $0xf0] sm:$0xff]  ;;  %v869_v19 = vld [vmem:[%s2569_s6 + $0xa0] sm:$0xff] }
 0x164   :  { %v596_v21 = vrot.slane %v595_v20, 1  ;;  %717 = vmatpush1.msra.mxu1 %v623_v14  ;;  %v876_v14 = vld [vmem:[%s2569_s6 + $0xd8] sm:$0xff] }
 0x165   :  { %718 = vmatprep.subr.mxu1 %v620_v16  ;;  %v875_v16 = vld [vmem:[%s2569_s6 + $0xd0] sm:$0xff] }
 0x166   :  { %v2081_v22 = vmax.f32 %v595_v20, %v596_v21  ;;  %v616_v20 = vld [vmem:[%s2567_s4 + $0x28] sm:$0xff]  ;;  %v618_v21 = vld [vmem:[%s2567_s4 + $0x38] sm:$0xff]  ;;  %719 = vmatpush1.msra.mxu1 %v619_v18 }
 0x167   :  { %720 = vmatprep.subr.mxu1 %v616_v20  ;;  %790 = vmatprep.subr.mxu0 %v618_v21  ;;  %v872_v18 = vld [vmem:[%s2569_s6 + $0xb8] sm:$0xff]  ;;  %v871_v20 = vld [vmem:[%s2569_s6 + $0xb0] sm:$0xff]  ;;  %v866_v21 = vld [vmem:[%s2569_s6 + $0x88] sm:$0xff] }
 0x168   :  { %v598_v23 = vmul.f32 %v2081_v22, %v2081_v22  ;;  %791 = vmatpush1.msra.mxu0 %v617_v24  ;;  %v865_v24 = vld [vmem:[%s2569_s6 + $0x80] sm:$0xff] }
 0x169   :  { %792 = vmatprep.subr.mxu0 %v614_v26  ;;  %v862_v26 = vld [vmem:[%s2569_s6 + $0x68] sm:$0xff] }
 0x16a   :  { %599 = vadd.xlane.f32.xlu0 %v598_v23  ;;  %v615_v23 = vld [vmem:[%s2567_s4 + $0x20] sm:$0xff]  ;;  %793 = vmatpush1.msra.mxu0 %v613_v28 }
 0x16b   :  { %721 = vmatpush1.msra.mxu1 %v615_v23  ;;  %1000 = vmatprep.subr.mxu0 %v912_v39  ;;  %v868_v23 = vld [vmem:[%s2569_s6 + $0x98] sm:$0xff]  ;;  %v861_v28 = vld [vmem:[%s2569_s6 + $0x60] sm:$0xff] }
 0x16c   :  { %722 = vmatprep.subr.mxu1 %v612_v25  ;;  %v867_v25 = vld [vmem:[%s2569_s6 + $0x90] sm:$0xff]  ;;  %v852_v39 = vld [vmem:[%s2569_s6 + $0x18] sm:$0xff] }
 0x16d   :  { %723 = vmatpush1.msra.mxu1 %v611_v27  ;;  %v864_v27 = vld [vmem:[%s2569_s6 + $0x78] sm:$0xff] }
 0x16e   :  { %930 = vmatprep.subr.mxu1 %v910_v38  ;;  %v850_v38 = vld [vmem:[%s2569_s6 + $0x8] sm:$0xff] }
 0x1f3   :  { %v600_v29 = vpop.xlane.xlu0 %599 }
 0x1f4   :  { %1466 = vrsqrt.f32 %v600_v29  ;;  %vm603_vm2 = vcmp.eq.f32.partialorder %v600_v29, inf  ;;  %v606_v32 = vand.u32 2147483648, %v600_v29  ;;  %vm605_vm3 = vcmp.eq.f32.partialorder %v600_v29, 0.0 }
 0x201   :  { %v1467_v30 = vpop.eup %1466 }
 0x202   :  { %v602_v31 = vmul.f32 %v1467_v30, %v600_v29  ;;  %v858_v30 = vld [vmem:[%s2569_s6 + $0x48] sm:$0xff] }
 0x204   :  { %v604_v33 = vsel %vm603_vm2, %v600_v29, %v602_v31  ;;  %v863_v29 = vld [vmem:[%s2569_s6 + $0x70] sm:$0xff]  ;;  %v860_v31 = vld [vmem:[%s2569_s6 + $0x58] sm:$0xff] }
 0x205   :  { %v607_v34 = vsel %vm605_vm3, %v606_v32, %v604_v33  ;;  %v857_v32 = vld [vmem:[%s2569_s6 + $0x40] sm:$0xff]  ;;  %v859_v33 = vld [vmem:[%s2569_s6 + $0x50] sm:$0xff] }
 0x206   :  { %v608_v35 = vmax.f32 %v607_v34, 1e-12  ;;  %v854_v34 = vld [vmem:[%s2569_s6 + $0x28] sm:$0xff] }
 0x208   :  { %1468 = vrcp.f32 %v608_v35  ;;  %v856_v35 = vld [vmem:[%s2569_s6 + $0x38] sm:$0xff] }
 0x215   :  { %v1469_v36 = vpop.eup %1468 }
 0x216   :  { %v610_v37 = vmul.f32 %v1469_v36, %v2081_v22  ;;  %v909_v22 = vld [vmem:[%s2569_s6 + $0x1e0] sm:$0xff] }
 0x217   :  { %v853_v36 = vld [vmem:[%s2569_s6 + $0x20] sm:$0xff] }
 0x218   :  { %757 = vmatmul.mubr.f32.vlgmr.msra.gmra.mxu1 %v610_v37  ;;  %827 = vmatmul.mubr.f32.vlgmr.msra.gmra.mxu0 %v610_v37  ;;  %v855_v37 = vld [vmem:[%s2569_s6 + $0x30] sm:$0xff] }
 0x219   :  { %994 = vmatprep.mubr.f32.mxu1 %v1538_v9  ;;  %1064 = vmatprep.mubr.f32.mxu0 %v1538_v9 }
 0x21a   :  { %931 = vmatpush1.msra.mxu1 %v909_v22  ;;  %1001 = vmatpush1.msra.mxu0 %v911_v40  ;;  %v849_v22 = vld [vmem:[%s2569_s6] sm:$0xff]  ;;  %v851_v40 = vld [vmem:[%s2569_s6 + $0x10] sm:$0xff] }
 0x21b   :  { %932 = vmatprep.subr.mxu1 %v906_v41  ;;  %1002 = vmatprep.subr.mxu0 %v908_v42  ;;  %v675_v41 = vld [vmem:[%s2568_s5] sm:$0xf] }
 0x21c   :  { %933 = vmatpush1.msra.mxu1 %v905_v43  ;;  %1003 = vmatpush1.msra.mxu0 %v907_v44  ;;  %v680_v42 = vrot.slane %v675_v41, %v2073_v4  ;;  %v687_v44 = vsub.s32 3, %v2067_v2 }
 0x21d   :  { %934 = vmatprep.subr.mxu1 %v902_v45  ;;  %1004 = vmatprep.subr.mxu0 %v904_v46 }
 0x21e   :  { %935 = vmatpush1.msra.mxu1 %v901_v47  ;;  %1005 = vmatpush1.msra.mxu0 %v903_v48 }
 0x21f   :  { %936 = vmatprep.subr.mxu1 %v898_v49  ;;  %1006 = vmatprep.subr.mxu0 %v900_v50  ;;  %v688_v49 = vrot.slane %v675_v41, %v687_v44 }
 0x220   :  { %937 = vmatpush1.msra.mxu1 %v897_v51  ;;  %1007 = vmatpush1.msra.mxu0 %v899_v52  ;;  %v683_v51 = vsub.s32 2, %v2067_v2 }
 0x221   :  { %938 = vmatprep.subr.mxu1 %v894_v53  ;;  %1008 = vmatprep.subr.mxu0 %v896_v54 }
 0x222   :  { %939 = vmatpush1.msra.mxu1 %v893_v55  ;;  %1009 = vmatpush1.msra.mxu0 %v895_v56  ;;  %v684_v53 = vrot.slane %v675_v41, %v683_v51 }
 0x223   :  { %940 = vmatprep.subr.mxu1 %v890_v57  ;;  %1010 = vmatprep.subr.mxu0 %v892_v58 }
 0x224   :  { %941 = vmatpush1.msra.mxu1 %v889_v59  ;;  %1011 = vmatpush1.msra.mxu0 %v891_v60 }
 0x225   :  { %942 = vmatprep.subr.mxu1 %v886_v61  ;;  %1012 = vmatprep.subr.mxu0 %v888_v62 }
 0x226   :  { %943 = vmatpush1.msra.mxu1 %v885_v63  ;;  %1013 = vmatpush1.msra.mxu0 %v887_v0 }
 0x227   :  { %944 = vmatprep.subr.mxu1 %v882_v3  ;;  %1014 = vmatprep.subr.mxu0 %v884_v5  ;;  %v1108_v5 = vld [vmem:[%s2571_s8 + $0x78] sm:$0xff] }
 0x228   :  { %945 = vmatpush1.msra.mxu1 %v881_v6  ;;  %1015 = vmatpush1.msra.mxu0 %v883_v7  ;;  %v1107_v6 = vld [vmem:[%s2571_s8 + $0x70] sm:$0xff]  ;;  %v1106_v7 = vld [vmem:[%s2571_s8 + $0x68] sm:$0xff] }
 0x229   :  { %946 = vmatprep.subr.mxu1 %v878_v8  ;;  %1016 = vmatprep.subr.mxu0 %v880_v10  ;;  %v1105_v8 = vld [vmem:[%s2571_s8 + $0x60] sm:$0xff]  ;;  %v1104_v10 = vld [vmem:[%s2571_s8 + $0x58] sm:$0xff] }
 0x22a   :  { %947 = vmatpush1.msra.mxu1 %v877_v11  ;;  %1017 = vmatpush1.msra.mxu0 %v879_v12  ;;  %v1103_v11 = vld [vmem:[%s2571_s8 + $0x50] sm:$0xff]  ;;  %v1102_v12 = vld [vmem:[%s2571_s8 + $0x48] sm:$0xff] }
 0x22b   :  { %948 = vmatprep.subr.mxu1 %v874_v13  ;;  %1018 = vmatprep.subr.mxu0 %v876_v14  ;;  %v1101_v13 = vld [vmem:[%s2571_s8 + $0x40] sm:$0xff]  ;;  %v1100_v14 = vld [vmem:[%s2571_s8 + $0x38] sm:$0xff] }
 0x22c   :  { %949 = vmatpush1.msra.mxu1 %v873_v15  ;;  %1019 = vmatpush1.msra.mxu0 %v875_v16  ;;  %v1099_v15 = vld [vmem:[%s2571_s8 + $0x30] sm:$0xff]  ;;  %v1098_v16 = vld [vmem:[%s2571_s8 + $0x28] sm:$0xff] }
 0x22d   :  { %950 = vmatprep.subr.mxu1 %v870_v17  ;;  %1020 = vmatprep.subr.mxu0 %v872_v18  ;;  %v1097_v17 = vld [vmem:[%s2571_s8 + $0x20] sm:$0xff]  ;;  %v1096_v18 = vld [vmem:[%s2571_s8 + $0x18] sm:$0xff] }
 0x22e   :  { %951 = vmatpush1.msra.mxu1 %v869_v19  ;;  %1021 = vmatpush1.msra.mxu0 %v871_v20  ;;  %v1095_v19 = vld [vmem:[%s2571_s8 + $0x10] sm:$0xff]  ;;  %v1094_v20 = vld [vmem:[%s2571_s8 + $0x8] sm:$0xff] }
 0x22f   :  { %952 = vmatprep.subr.mxu1 %v866_v21  ;;  %1022 = vmatprep.subr.mxu0 %v868_v23  ;;  %v1093_v21 = vld [vmem:[%s2571_s8] sm:$0xff] }
 0x230   :  { %953 = vmatpush1.msra.mxu1 %v865_v24  ;;  %1023 = vmatpush1.msra.mxu0 %v867_v25  ;;  %v913_v23 = vld [vmem:[%s2570_s7] sm:$0xf]  ;;  %s1540_s7 = smov [#allocation4]  }
 0x231   :  { %954 = vmatprep.subr.mxu1 %v862_v26  ;;  %1024 = vmatprep.subr.mxu0 %v864_v27  ;;  %v918_v24 = vrot.slane %v913_v23, %v2073_v4  ;;  %s1196_s8 = sshll.u32 %s1540_s7, 4  ;;  %s1197_s8 = int_to_ptr.vmem [resolvable:$true] %s1196_s8 }
 0x232   :  { %955 = vmatpush1.msra.mxu1 %v861_v28  ;;  %1025 = vmatpush1.msra.mxu0 %v863_v29  ;;  %s1494_s28 = scalar_lea.vmem %s1197_s8, 32  ;;  %p1499_p1 = scmp.lt.s32.totalorder %s1197_s8, %s1197_s8 }
 0x233   :  { %956 = vmatprep.subr.mxu1 %v858_v30  ;;  %1026 = vmatprep.subr.mxu0 %v860_v31  ;;  %v926_v30 = vrot.slane %v913_v23, %v687_v44  ;;  %p1495_p0 = scmp.ne.s32.totalorder %s1197_s8, %s1494_s28  ;;  %p1500_p2 = scmp.lt.s32.totalorder %s1494_s28, %s1494_s28 }
 0x234   :  { %957 = vmatpush1.msra.mxu1 %v857_v32  ;;  %1027 = vmatpush1.msra.mxu0 %v859_v33 }
 0x235   :  { %958 = vmatprep.subr.mxu1 %v854_v34  ;;  %1028 = vmatprep.subr.mxu0 %v856_v35  ;;  %p1501_p3 = por %p1500_p2, %p1499_p1 }
 0x236   :  { %959 = vmatpush1.msra.mxu1 %v853_v36  ;;  %1029 = vmatpush1.msra.mxu0 %v855_v37 }
 0x237   :  { %960 = vmatprep.subr.mxu1 %v850_v38  ;;  %1030 = vmatprep.subr.mxu0 %v852_v39  ;;  %p1502_p4 = pnand %p1501_p3, %p1495_p0 }
 0x238   :  { %961 = vmatpush1.msra.mxu1 %v849_v22  ;;  %1031 = vmatpush1.msra.mxu0 %v851_v40 }
 0x239   :  { %1421 = vmatprep.subr.mxu1 %v1538_v9 }
 0x2d8   :  { %v758_v43 = vpop.f32.mrf.mxu1  ;;  %v828_v46 = vpop.f32.mrf.mxu0 }
 0x2d9   :  { %v759_v45 = vadd.f32 %v758_v43, %v680_v42  ;;  %v829_v55 = vadd.f32 %v828_v46, %v684_v53 }
 0x2da   :  { %v760_v47 = vpop.f32.mrf.mxu1  ;;  %v830_v50 = vpop.f32.mrf.mxu0 }
 0x2db   :  { %v1208_v48 = vmul.f32 -1.442695, %v759_v45  ;;  %v831_v52 = vadd.f32 %v830_v50, %v688_v49 }
 0x2dd   :  { %1470 = vpow2.f32 %v1208_v48  ;;  %v1209_v54 = vmul.f32 -1.442695, %v831_v52 }
 0x2df   :  { %1472 = vpow2.f32 %v1209_v54 }
 0x2e0   :  { %1474 = vtanh.f32 %v829_v55 }
 0x2ea   :  { %v1471_v56 = vpop.eup %1470 }
 0x2eb   :  { %v836_v57 = vadd.f32 1.0, %v1471_v56 }
 0x2ec   :  { %v1473_v58 = vpop.eup %1472 }
 0x2ed   :  { %1476 = vrcp.f32 %v836_v57  ;;  %v844_v59 = vadd.f32 1.0, %v1473_v58  ;;  %v1475_v60 = vpop.eup %1474 }
 0x2ef   :  { %1478 = vrcp.f32 %v844_v59 }
 0x2fa   :  { %v1477_v61 = vpop.eup %1476 }
 0x2fb   :  { %v840_v62 = vmul.f32 %v1477_v61, %v1475_v60 }
 0x2fc   :  { %v1479_v63 = vpop.eup %1478 }
 0x2fd   :  { %1480 = vtanh.f32 %v840_v62 }
 0x30a   :  { %v1481_v0 = vpop.eup %1480 }
 0x30b   :  { %v848_v3 = vmul.f32 %v1481_v0, %v1479_v63 }
 0x30d   :  { %995 = vmatmul.mubr.f32.vlgmr.msra.gmra.mxu1 %v848_v3  ;;  %1065 = vmatmul.mubr.f32.vlgmr.msra.gmra.mxu0 %v848_v3 }
 0x30e   :  { %1453 = vmatprep.mubr.msk.f32.mxu1 %vm1539_vm0, %v1538_v9  ;;  %1422 = vmatpush3.msra.mxu1 %v1108_v5 }
 0x30f   :  { %1423 = vmatprep.subr.mxu1 %v1538_v9 }
 0x310   :  { %1424 = vmatpush3.msra.mxu1 %v1107_v6 }
 0x311   :  { %1425 = vmatprep.subr.mxu1 %v1538_v9 }
 0x312   :  { %1426 = vmatpush3.msra.mxu1 %v1106_v7 }
 0x313   :  { %1427 = vmatprep.subr.mxu1 %v1538_v9 }
 0x314   :  { %1428 = vmatpush3.msra.mxu1 %v1105_v8 }
 0x315   :  { %1429 = vmatprep.subr.mxu1 %v1538_v9 }
 0x316   :  { %1430 = vmatpush3.msra.mxu1 %v1104_v10 }
 0x317   :  { %1431 = vmatprep.subr.mxu1 %v1538_v9 }
 0x318   :  { %1432 = vmatpush3.msra.mxu1 %v1103_v11 }
 0x319   :  { %1433 = vmatprep.subr.mxu1 %v1538_v9 }
 0x31a   :  { %1434 = vmatpush3.msra.mxu1 %v1102_v12 }
 0x31b   :  { %1435 = vmatprep.subr.mxu1 %v1538_v9 }
 0x31c   :  { %1436 = vmatpush3.msra.mxu1 %v1101_v13 }
 0x31d   :  { %1437 = vmatprep.subr.mxu1 %v1538_v9 }
 0x31e   :  { %1438 = vmatpush3.msra.mxu1 %v1100_v14 }
 0x31f   :  { %1439 = vmatprep.subr.mxu1 %v1538_v9 }
 0x320   :  { %1440 = vmatpush3.msra.mxu1 %v1099_v15 }
 0x321   :  { %1441 = vmatprep.subr.mxu1 %v1538_v9 }
 0x322   :  { %1442 = vmatpush3.msra.mxu1 %v1098_v16 }
 0x323   :  { %1443 = vmatprep.subr.mxu1 %v1538_v9 }
 0x324   :  { %1444 = vmatpush3.msra.mxu1 %v1097_v17 }
 0x325   :  { %1445 = vmatprep.subr.mxu1 %v1538_v9 }
 0x326   :  { %1446 = vmatpush3.msra.mxu1 %v1096_v18 }
 0x327   :  { %1447 = vmatprep.subr.mxu1 %v1538_v9 }
 0x328   :  { %1448 = vmatpush3.msra.mxu1 %v1095_v19 }
 0x329   :  { %1449 = vmatprep.subr.mxu1 %v1538_v9 }
 0x32a   :  { %1450 = vmatpush3.msra.mxu1 %v1094_v20 }
 0x32b   :  { %1451 = vmatprep.subr.mxu1 %v1538_v9  ;;  %v922_v9 = vrot.slane %v913_v23, %v683_v51 }
 0x32c   :  { %1452 = vmatpush3.msra.mxu1 %v1093_v21 }
 0x3cd   :  { %v996_v25 = vpop.f32.mrf.mxu1  ;;  %v1066_v27 = vpop.f32.mrf.mxu0 }
 0x3ce   :  { %v997_v26 = vadd.f32 %v996_v25, %v918_v24  ;;  %v1067_v34 = vadd.f32 %v1066_v27, %v922_v9 }
 0x3cf   :  { %v998_v28 = vpop.f32.mrf.mxu1  ;;  %v1068_v31 = vpop.f32.mrf.mxu0 }
 0x3d0   :  { %v1210_v29 = vmul.f32 -1.442695, %v997_v26  ;;  %v1069_v32 = vadd.f32 %v1068_v31, %v926_v30 }
 0x3d2   :  { %1482 = vpow2.f32 %v1210_v29  ;;  %v1211_v33 = vmul.f32 -1.442695, %v1069_v32 }
 0x3d4   :  { %1484 = vpow2.f32 %v1211_v33 }
 0x3d5   :  { %1486 = vtanh.f32 %v1067_v34 }
 0x3df   :  { %v1483_v35 = vpop.eup %1482 }
 0x3e0   :  { %v1074_v36 = vadd.f32 1.0, %v1483_v35 }
 0x3e1   :  { %v1485_v4 = vpop.eup %1484 }
 0x3e2   :  { %1488 = vrcp.f32 %v1074_v36  ;;  %v1082_v37 = vadd.f32 1.0, %v1485_v4  ;;  %v1487_v38 = vpop.eup %1486 }
 0x3e4   :  { %1490 = vrcp.f32 %v1082_v37 }
 0x3ef   :  { %v1489_v39 = vpop.eup %1488 }
 0x3f0   :  { %v1078_v22 = vmul.f32 %v1489_v39, %v1487_v38 }
 0x3f1   :  { %v1491_v40 = vpop.eup %1490 }
 0x3f2   :  { %1492 = vtanh.f32 %v1078_v22 }
 0x3ff   :  { %v1493_v41 = vpop.eup %1492 }
 0x400   :  { %v1086_v2 = vmul.f32 %v1493_v41, %v1491_v40 }
 0x402   :  { %1454 = vmatmul.mubr.f32.vlgmr.msra.gmra.mxu1 %v1086_v2  ;;  %1091 = vst.msk [vmem:[#allocation4] sm:$0x1] %vm1089_vm4, %v1086_v2  ;;  %1092 = vst.msk [vmem:[#allocation4 + $0x1] sm:$0x1] %vm1089_vm4, %v1086_v2 }
 0x403   :  { %1505 = shalt.err (!%p1502_p4)
}
 0x404   :  { %1199 = dma.vmem_to_hbm [thread:$0]  %s1197_s8, 32, %s2573_s10, [#allocation5]  }
 0x405   :  { %s1541_s0 = smov [#allocation2]  }
 0x406   :  { %s1186_s1 = sshll.u32 %s1541_s0, 4  ;;  %s1187_s1 = int_to_ptr.vmem [resolvable:$true] %s1186_s1 }
 0x407   :  { %s1514_s11 = scalar_lea.vmem %s1187_s1, 16  ;;  %s1518_s12 = scalar_lea.vmem %s1187_s1, 32 }
 0x408   :  { %p1515_p5 = scmp.ne.s32.totalorder %s1187_s1, %s1514_s11  ;;  %p1519_p6 = scmp.lt.s32.totalorder %s1187_s1, %s1187_s1 }
 0x409   :  { %p1520_p7 = scmp.lt.s32.totalorder %s1518_s12, %s1514_s11 }
 0x40b   :  { %p1521_p8 = por %p1520_p7, %p1519_p6 }
 0x40d   :  { %p1522_p9 = pnand %p1521_p8, %p1515_p5 }
 0x4c2   :  { %v1175_v1 = vpop.f32.mrf.mxu1 }
 0x4c3   :  { %1179 = vst [vmem:[#allocation2] sm:$0x1] %v1175_v1 }
 0x4c4   :  { %v1455_v42 = vpop.f32.mrf.mxu1 }
 0x4c5   :  { %1525 = shalt.err (!%p1522_p9)
}
 0x4c6   :  { %1189 = dma.vmem_to_hbm [thread:$0]  %s1187_s1, 16, %s2572_s9, [#allocation3]  }
 0x4c7   :  { %1534 = dma.done.wait [#allocation3], 16  }
 0x4c8   :  { %1535 = vsyncadd [#allocation3], 4294967280 }
 0x4c9   :  { %1536 = dma.done.wait [#allocation5], 32  }
 0x4ca   :  { %1537 = vsyncadd [#allocation5], 4294967264 }
 0x4cb   :  { %1206 = vsyncpa [#allocation3], 1 }
 0x4cc   :  { %1207 = vsyncpa [#allocation5], 1 }

</bundles_post_ra>
